<compile_context>
chip_gen: v6e
topology: v6e:2x2x1
jax: 0.10.0
libtpu: 0.0.40
codegen_flags: <defaults>
</compile_context>

<pallas_src>
import functools
import math

import jax
import jax.numpy as jnp
import numpy as np
from jax.experimental import pallas as pl
from jax.experimental.pallas import tpu as pltpu


# -----------------------------------------------------------------------------
# Kernel
# -----------------------------------------------------------------------------
def _spatial_attention_kernel(
    x_ref,       # [1, T_TILE*J, 3]   f32   lane-dense input slab
    wqkv_ref,    # [3, 3*D]           f32   fused Wq|Wk|Wv (VMEM resident)
    bqkv_ref,    # [1, 3*D]           f32
    wo_ref,      # [D, D]             f32
    bo_ref,      # [1, D]             f32
    adj_ref,     # [J, J]             f32   kinematic adjacency (resident)
    o_ref,       # [1, T_TILE*J, D]   f32
    *,
    t_tile: int,
    num_joints: int,
    d_model: int,
    num_heads: int,
):
    head_dim = d_model // num_heads
    m = t_tile * num_joints
    inv_sqrt_dh = 1.0 / math.sqrt(head_dim)

    x = x_ref[0]                                   # [M, 3]
    wqkv = wqkv_ref[...]                           # [3, 3D]

    # Fused QKV projection.  K=3 would waste >95% of the MXU, so use the VPU:
    # three broadcast multiply-adds over full-width [M, 3D] vregs.
    qkv = (x[:, 0:1] * wqkv[0:1, :]
           + x[:, 1:2] * wqkv[1:2, :]
           + x[:, 2:3] * wqkv[2:3, :]
           + bqkv_ref[...])                        # [M, 3D] f32

    # 128-lane-aligned slices; reshapes only split leading dims (minor dim
    # untouched -> no relayout).  Cast whole slabs to bf16 once (not per head).
    q = qkv[:, 0 * d_model:1 * d_model].reshape(
        t_tile, num_joints, d_model).astype(jnp.bfloat16)
    k = qkv[:, 1 * d_model:2 * d_model].reshape(
        t_tile, num_joints, d_model).astype(jnp.bfloat16)
    v = qkv[:, 2 * d_model:3 * d_model].reshape(
        t_tile, num_joints, d_model).astype(jnp.bfloat16)

    adj_b = adj_ref[...][None, :, :]               # [1, J, J] (hoisted)

    ctx_heads = []
    for h in range(num_heads):                     # static, unrolled at trace
        sl = slice(h * head_dim, (h + 1) * head_dim)
        qh = q[:, :, sl]                           # [T_TILE, J, Dh] bf16
        kh = k[:, :, sl]
        vh = v[:, :, sl]

        # scores = (q @ k^T + adjacency) / sqrt(Dh): bias added BEFORE the
        # scale and before the softmax, matching the PyTorch module.
        s = jnp.einsum('tjd,tkd->tjk', qh, kh,
                       preferred_element_type=jnp.float32)     # [T, J, J] f32
        s = (s + adj_b) * inv_sqrt_dh

        # Numerically stable softmax in f32; EUP approximate reciprocal.
        s_max = jnp.max(s, axis=-1, keepdims=True)
        p = jnp.exp(s - s_max)
        denom = jnp.sum(p, axis=-1, keepdims=True)
        p = p * pl.reciprocal(denom, approx=True)
        # TODO(synk): nn.Dropout(p=0.1) on attention weights is an
        # inference-mode identity here (module.eval() semantics).

        ctx_h = jnp.einsum('tjk,tkd->tjd', p.astype(jnp.bfloat16), vh,
                           preferred_element_type=jnp.float32)  # [T, J, Dh]
        ctx_heads.append(ctx_h)

    context = jnp.concatenate(ctx_heads, axis=-1)  # [T_TILE, J, D]
    context = context.reshape(m, d_model)          # [M, D]

    out = jnp.dot(context.astype(jnp.bfloat16),
                  wo_ref[...].astype(jnp.bfloat16),
                  preferred_element_type=jnp.float32) + bo_ref[...]
    o_ref[0] = out.astype(o_ref.dtype)


# -----------------------------------------------------------------------------
# Wrapper
# -----------------------------------------------------------------------------
def skeleton_aware_spatial_attention(x, params, adjacency, *, num_heads,
                                     t_tile=None):
    """x: [B, T, J, 3] f32 -> [B, T, J, d_model] f32."""
    batch, seq_len, joints, coord = x.shape
    assert coord == 3
    d_model = params['wo'].shape[0]
    assert d_model % num_heads == 0

    if t_tile is None:
        # Largest divisor of T (capped at 128 frames/step) whose slab row
        # count T_TILE*J is a multiple of 8 (sublane-aligned block).
        cands = [d for d in range(min(seq_len, 128), 0, -1)
                 if seq_len % d == 0 and (d * joints) % 8 == 0]
        t_tile = cands[0] if cands else seq_len
    assert seq_len % t_tile == 0

    # Fused QKV weight / bias (resident in VMEM across all grid steps).
    wqkv = jnp.concatenate([params['wq'], params['wk'], params['wv']], axis=1)
    bqkv = jnp.concatenate([params['bq'], params['bk'], params['bv']])[None, :]
    wo = params['wo']
    bo = params['bo'][None, :]

    x_flat = x.reshape(batch, seq_len * joints, 3)
    m_tile = t_tile * joints
    grid = (batch, seq_len // t_tile)

    kernel = functools.partial(
        _spatial_attention_kernel,
        t_tile=t_tile, num_joints=joints, d_model=d_model,
        num_heads=num_heads)

    out_flat = pl.pallas_call(
        kernel,
        out_shape=jax.ShapeDtypeStruct((batch, seq_len * joints, d_model),
                                       jnp.float32),
        grid=grid,
        in_specs=[
            pl.BlockSpec((1, m_tile, 3), lambda b, t: (b, t, 0)),
            pl.BlockSpec((3, 3 * d_model), lambda b, t: (0, 0)),
            pl.BlockSpec((1, 3 * d_model), lambda b, t: (0, 0)),
            pl.BlockSpec((d_model, d_model), lambda b, t: (0, 0)),
            pl.BlockSpec((1, d_model), lambda b, t: (0, 0)),
            pl.BlockSpec((joints, joints), lambda b, t: (0, 0)),
        ],
        out_specs=pl.BlockSpec((1, m_tile, d_model), lambda b, t: (b, t, 0)),
        compiler_params=pltpu.CompilerParams(
            dimension_semantics=("parallel", "parallel")),
    )(x_flat, wqkv, bqkv, wo, bo, adjacency)

    return out_flat.reshape(batch, seq_len, joints, d_model)


# -----------------------------------------------------------------------------
# Module buffers / pure-JAX reference
# -----------------------------------------------------------------------------
def init_kinematic_adjacency(joint_dim: int) -> jnp.ndarray:
    adj = np.zeros((joint_dim, joint_dim), dtype=np.float32)
    skeleton_connections = [(0, 1), (1, 2), (2, 3), (0, 4), (4, 5), (5, 6),
                            (0, 7), (7, 8), (8, 9), (0, 10), (10, 11), (11, 12),
                            (0, 13), (13, 14), (14, 15)]
    for parent, child in skeleton_connections:
        adj[parent, child] = 1.0
        adj[child, parent] = 1.0
    for j1, j2 in [(4, 7), (5, 8), (6, 9), (10, 13), (11, 14), (12, 15)]:
        adj[j1, j2] = 0.8
        adj[j2, j1] = 0.8
    adj = adj + np.eye(joint_dim, dtype=np.float32)
    return jnp.asarray(adj)


def reference_forward(x, params, adjacency, num_heads):
    b, t, j, _ = x.shape
    d_model = params['wo'].shape[0]
    head_dim = d_model // num_heads
    q = x @ params['wq'] + params['bq']
    k = x @ params['wk'] + params['bk']
    v = x @ params['wv'] + params['bv']

    def heads(z):
        return z.reshape(b, t, j, num_heads, head_dim).transpose(0, 1, 3, 2, 4)

    qh, kh, vh = heads(q), heads(k), heads(v)
    s = jnp.einsum('bthjd,bthkd->bthjk', qh, kh)
    s = (s + adjacency[None, None, None]) / math.sqrt(head_dim)
    p = jax.nn.softmax(s, axis=-1)
    ctx = jnp.einsum('bthjk,bthkd->bthjd', p, vh)
    ctx = ctx.transpose(0, 1, 3, 2, 4).reshape(b, t, j, d_model)
    return ctx @ params['wo'] + params['bo']


# -----------------------------------------------------------------------------
# Demo
# -----------------------------------------------------------------------------
if __name__ == "__main__":
    B, T, J = 2, 8, 16            # joint_dim=16 (skeleton indices go up to 15)
    D_MODEL, N_HEADS = 128, 8

    key = jax.random.PRNGKey(0)
    kx, kq, kbq, kk, kbk, kv, kbv, ko, kbo = jax.random.split(key, 9)
    lim_in = 1.0 / math.sqrt(3.0)
    lim_out = 1.0 / math.sqrt(D_MODEL)
    params = {
        'wq': jax.random.uniform(kq, (3, D_MODEL), jnp.float32, -lim_in, lim_in),
        'bq': jax.random.uniform(kbq, (D_MODEL,), jnp.float32, -lim_in, lim_in),
        'wk': jax.random.uniform(kk, (3, D_MODEL), jnp.float32, -lim_in, lim_in),
        'bk': jax.random.uniform(kbk, (D_MODEL,), jnp.float32, -lim_in, lim_in),
        'wv': jax.random.uniform(kv, (3, D_MODEL), jnp.float32, -lim_in, lim_in),
        'bv': jax.random.uniform(kbv, (D_MODEL,), jnp.float32, -lim_in, lim_in),
        'wo': jax.random.uniform(ko, (D_MODEL, D_MODEL), jnp.float32,
                                 -lim_out, lim_out),
        'bo': jax.random.uniform(kbo, (D_MODEL,), jnp.float32,
                                 -lim_out, lim_out),
    }
    adjacency = init_kinematic_adjacency(J)
    x = jax.random.normal(kx, (B, T, J, 3), jnp.float32)

    out = skeleton_aware_spatial_attention(x, params, adjacency,
                                           num_heads=N_HEADS)
    out = jax.block_until_ready(out)
    assert out.shape == (B, T, J, D_MODEL)

    ref = jax.block_until_ready(reference_forward(x, params, adjacency,
                                                  N_HEADS))
    # bf16 MXU operands + approximate reciprocal -> loose-ish tolerance.
    np.testing.assert_allclose(np.asarray(out), np.asarray(ref),
                               atol=4e-2, rtol=4e-2)
    print("KERNEL_OK")
</pallas_src>

<mosaic_0001>
module attributes {stable_mosaic.version = 11 : i64} {
  func.func @_spatial_attention_kernel(%arg0: i32, %arg1: i32, %arg2: memref<1x128x3xf32, #tpu.memory_space<vmem>>, %arg3: memref<3x384xf32, #tpu.memory_space<vmem>>, %arg4: memref<1x384xf32, #tpu.memory_space<vmem>>, %arg5: memref<128x128xf32, #tpu.memory_space<vmem>>, %arg6: memref<1x128xf32, #tpu.memory_space<vmem>>, %arg7: memref<16x16xf32, #tpu.memory_space<vmem>>, %arg8: memref<1x128x128xf32, #tpu.memory_space<vmem>>) attributes {dimension_semantics = [#tpu.dimension_semantics<parallel>, #tpu.dimension_semantics<parallel>], iteration_bounds = array<i64: 2, 1>, scalar_prefetch = 0 : i64, scratch_operands = 0 : i64, tpu.core_type = #tpu.core_type<tc>, window_params = [{transform_indices = @transform_0, window_bounds = array<i64: 1, 128, 3>}, {pipeline_mode = #tpu.pipeline_mode<synchronous>, transform_indices = @transform_1, window_bounds = array<i64: 3, 384>}, {pipeline_mode = #tpu.pipeline_mode<synchronous>, transform_indices = @transform_2, window_bounds = array<i64: 1, 384>}, {pipeline_mode = #tpu.pipeline_mode<synchronous>, transform_indices = @transform_3, window_bounds = array<i64: 128, 128>}, {pipeline_mode = #tpu.pipeline_mode<synchronous>, transform_indices = @transform_4, window_bounds = array<i64: 1, 128>}, {pipeline_mode = #tpu.pipeline_mode<synchronous>, transform_indices = @transform_5, window_bounds = array<i64: 16, 16>}, {transform_indices = @transform_6, window_bounds = array<i64: 1, 128, 128>}]} {
    %c0 = arith.constant 0 : index
    %c0_0 = arith.constant 0 : index
    %c0_1 = arith.constant 0 : index
    %0 = vector.load %arg2[%c0, %c0_0, %c0_1] : memref<1x128x3xf32, #tpu.memory_space<vmem>>, vector<1x128x3xf32>
    %1 = vector.shape_cast %0 : vector<1x128x3xf32> to vector<128x3xf32>
    %c0_2 = arith.constant 0 : index
    %c0_3 = arith.constant 0 : index
    %2 = vector.load %arg3[%c0_2, %c0_3] : memref<3x384xf32, #tpu.memory_space<vmem>>, vector<3x384xf32>
    %3 = vector.extract_strided_slice %1 {offsets = [0, 0], sizes = [128, 1], strides = [1, 1]} : vector<128x3xf32> to vector<128x1xf32>
    %4 = vector.extract_strided_slice %2 {offsets = [0, 0], sizes = [1, 384], strides = [1, 1]} : vector<3x384xf32> to vector<1x384xf32>
    %5 = vector.broadcast %3 : vector<128x1xf32> to vector<128x384xf32>
    %6 = vector.broadcast %4 : vector<1x384xf32> to vector<128x384xf32>
    %7 = arith.mulf %5, %6 : vector<128x384xf32>
    %8 = vector.extract_strided_slice %1 {offsets = [0, 1], sizes = [128, 1], strides = [1, 1]} : vector<128x3xf32> to vector<128x1xf32>
    %9 = vector.extract_strided_slice %2 {offsets = [1, 0], sizes = [1, 384], strides = [1, 1]} : vector<3x384xf32> to vector<1x384xf32>
    %10 = vector.broadcast %8 : vector<128x1xf32> to vector<128x384xf32>
    %11 = vector.broadcast %9 : vector<1x384xf32> to vector<128x384xf32>
    %12 = arith.mulf %10, %11 : vector<128x384xf32>
    %13 = arith.addf %7, %12 : vector<128x384xf32>
    %14 = vector.extract_strided_slice %1 {offsets = [0, 2], sizes = [128, 1], strides = [1, 1]} : vector<128x3xf32> to vector<128x1xf32>
    %15 = vector.extract_strided_slice %2 {offsets = [2, 0], sizes = [1, 384], strides = [1, 1]} : vector<3x384xf32> to vector<1x384xf32>
    %16 = vector.broadcast %14 : vector<128x1xf32> to vector<128x384xf32>
    %17 = vector.broadcast %15 : vector<1x384xf32> to vector<128x384xf32>
    %18 = arith.mulf %16, %17 : vector<128x384xf32>
    %19 = arith.addf %13, %18 : vector<128x384xf32>
    %c0_4 = arith.constant 0 : index
    %c0_5 = arith.constant 0 : index
    %20 = vector.load %arg4[%c0_4, %c0_5] : memref<1x384xf32, #tpu.memory_space<vmem>>, vector<1x384xf32>
    %21 = vector.broadcast %20 : vector<1x384xf32> to vector<128x384xf32>
    %22 = arith.addf %19, %21 : vector<128x384xf32>
    %23 = vector.extract_strided_slice %22 {offsets = [0, 0], sizes = [128, 128], strides = [1, 1]} : vector<128x384xf32> to vector<128x128xf32>
    %24 = vector.shape_cast %23 : vector<128x128xf32> to vector<8x16x128xf32>
    %25 = arith.truncf %24 : vector<8x16x128xf32> to vector<8x16x128xbf16>
    %26 = vector.extract_strided_slice %22 {offsets = [0, 128], sizes = [128, 128], strides = [1, 1]} : vector<128x384xf32> to vector<128x128xf32>
    %27 = vector.shape_cast %26 : vector<128x128xf32> to vector<8x16x128xf32>
    %28 = arith.truncf %27 : vector<8x16x128xf32> to vector<8x16x128xbf16>
    %29 = vector.extract_strided_slice %22 {offsets = [0, 256], sizes = [128, 128], strides = [1, 1]} : vector<128x384xf32> to vector<128x128xf32>
    %30 = vector.shape_cast %29 : vector<128x128xf32> to vector<8x16x128xf32>
    %31 = arith.truncf %30 : vector<8x16x128xf32> to vector<8x16x128xbf16>
    %c0_6 = arith.constant 0 : index
    %c0_7 = arith.constant 0 : index
    %32 = vector.load %arg7[%c0_6, %c0_7] : memref<16x16xf32, #tpu.memory_space<vmem>>, vector<16x16xf32>
    %33 = vector.shape_cast %32 : vector<16x16xf32> to vector<1x16x16xf32>
    %34 = vector.extract_strided_slice %25 {offsets = [0, 0, 0], sizes = [8, 16, 16], strides = [1, 1, 1]} : vector<8x16x128xbf16> to vector<8x16x16xbf16>
    %35 = vector.extract_strided_slice %28 {offsets = [0, 0, 0], sizes = [8, 16, 16], strides = [1, 1, 1]} : vector<8x16x128xbf16> to vector<8x16x16xbf16>
    %36 = vector.extract_strided_slice %31 {offsets = [0, 0, 0], sizes = [8, 16, 16], strides = [1, 1, 1]} : vector<8x16x128xbf16> to vector<8x16x16xbf16>
    "tpu.trace_start"() <{level = 10 : i32, message = "tjd,tkd->tjk"}> : () -> ()
    %cst = arith.constant dense<0.000000e+00> : vector<8x16x16xf32>
    %37 = tpu.matmul %34, %35, %cst {dimension_numbers = #tpu.dot_dimension_numbers<[2], [2], [1], [1], [0, 0, 0, 1, 1, 1], [0], [0]>} : vector<8x16x16xbf16>, vector<8x16x16xbf16>, vector<8x16x16xf32> -> vector<8x16x16xf32>
    "tpu.trace_stop"() : () -> ()
    %38 = vector.broadcast %33 : vector<1x16x16xf32> to vector<8x16x16xf32>
    %39 = arith.addf %37, %38 : vector<8x16x16xf32>
    %cst_8 = arith.constant 2.500000e-01 : f32
    %40 = vector.broadcast %cst_8 : f32 to vector<8x16x16xf32>
    %41 = arith.mulf %39, %40 : vector<8x16x16xf32>
    %cst_9 = arith.constant dense<0xFF800000> : vector<8x16xf32>
    %42 = vector.multi_reduction <maximumf>, %41, %cst_9 [2] : vector<8x16x16xf32> to vector<8x16xf32>
    %43 = vector.shape_cast %42 : vector<8x16xf32> to vector<8x16x1xf32>
    %44 = vector.broadcast %43 : vector<8x16x1xf32> to vector<8x16x16xf32>
    %45 = arith.subf %41, %44 : vector<8x16x16xf32>
    %46 = math.exp %45 : vector<8x16x16xf32>
    %cst_10 = arith.constant dense<0.000000e+00> : vector<8x16xf32>
    %47 = vector.multi_reduction <add>, %46, %cst_10 [2] : vector<8x16x16xf32> to vector<8x16xf32>
    %48 = vector.shape_cast %47 : vector<8x16xf32> to vector<8x16x1xf32>
    %49 = tpu.reciprocal %48 {approx = true} : vector<8x16x1xf32> -> vector<8x16x1xf32>
    %50 = vector.broadcast %49 : vector<8x16x1xf32> to vector<8x16x16xf32>
    %51 = arith.mulf %46, %50 : vector<8x16x16xf32>
    %52 = arith.truncf %51 : vector<8x16x16xf32> to vector<8x16x16xbf16>
    "tpu.trace_start"() <{level = 10 : i32, message = "tjk,tkd->tjd"}> : () -> ()
    %cst_11 = arith.constant dense<0.000000e+00> : vector<8x16x16xf32>
    %53 = tpu.matmul %52, %36, %cst_11 {dimension_numbers = #tpu.dot_dimension_numbers<[2], [1], [1], [2], [0, 0, 0, 1, 1, 2], [0], [0]>} : vector<8x16x16xbf16>, vector<8x16x16xbf16>, vector<8x16x16xf32> -> vector<8x16x16xf32>
    "tpu.trace_stop"() : () -> ()
    %54 = vector.extract_strided_slice %25 {offsets = [0, 0, 16], sizes = [8, 16, 16], strides = [1, 1, 1]} : vector<8x16x128xbf16> to vector<8x16x16xbf16>
    %55 = vector.extract_strided_slice %28 {offsets = [0, 0, 16], sizes = [8, 16, 16], strides = [1, 1, 1]} : vector<8x16x128xbf16> to vector<8x16x16xbf16>
    %56 = vector.extract_strided_slice %31 {offsets = [0, 0, 16], sizes = [8, 16, 16], strides = [1, 1, 1]} : vector<8x16x128xbf16> to vector<8x16x16xbf16>
    "tpu.trace_start"() <{level = 10 : i32, message = "tjd,tkd->tjk"}> : () -> ()
    %cst_12 = arith.constant dense<0.000000e+00> : vector<8x16x16xf32>
    %57 = tpu.matmul %54, %55, %cst_12 {dimension_numbers = #tpu.dot_dimension_numbers<[2], [2], [1], [1], [0, 0, 0, 1, 1, 1], [0], [0]>} : vector<8x16x16xbf16>, vector<8x16x16xbf16>, vector<8x16x16xf32> -> vector<8x16x16xf32>
    "tpu.trace_stop"() : () -> ()
    %58 = vector.broadcast %33 : vector<1x16x16xf32> to vector<8x16x16xf32>
    %59 = arith.addf %57, %58 : vector<8x16x16xf32>
    %cst_13 = arith.constant 2.500000e-01 : f32
    %60 = vector.broadcast %cst_13 : f32 to vector<8x16x16xf32>
    %61 = arith.mulf %59, %60 : vector<8x16x16xf32>
    %cst_14 = arith.constant dense<0xFF800000> : vector<8x16xf32>
    %62 = vector.multi_reduction <maximumf>, %61, %cst_14 [2] : vector<8x16x16xf32> to vector<8x16xf32>
    %63 = vector.shape_cast %62 : vector<8x16xf32> to vector<8x16x1xf32>
    %64 = vector.broadcast %63 : vector<8x16x1xf32> to vector<8x16x16xf32>
    %65 = arith.subf %61, %64 : vector<8x16x16xf32>
    %66 = math.exp %65 : vector<8x16x16xf32>
    %cst_15 = arith.constant dense<0.000000e+00> : vector<8x16xf32>
    %67 = vector.multi_reduction <add>, %66, %cst_15 [2] : vector<8x16x16xf32> to vector<8x16xf32>
    %68 = vector.shape_cast %67 : vector<8x16xf32> to vector<8x16x1xf32>
    %69 = tpu.reciprocal %68 {approx = true} : vector<8x16x1xf32> -> vector<8x16x1xf32>
    %70 = vector.broadcast %69 : vector<8x16x1xf32> to vector<8x16x16xf32>
    %71 = arith.mulf %66, %70 : vector<8x16x16xf32>
    %72 = arith.truncf %71 : vector<8x16x16xf32> to vector<8x16x16xbf16>
    "tpu.trace_start"() <{level = 10 : i32, message = "tjk,tkd->tjd"}> : () -> ()
    %cst_16 = arith.constant dense<0.000000e+00> : vector<8x16x16xf32>
    %73 = tpu.matmul %72, %56, %cst_16 {dimension_numbers = #tpu.dot_dimension_numbers<[2], [1], [1], [2], [0, 0, 0, 1, 1, 2], [0], [0]>} : vector<8x16x16xbf16>, vector<8x16x16xbf16>, vector<8x16x16xf32> -> vector<8x16x16xf32>
    "tpu.trace_stop"() : () -> ()
    %74 = vector.extract_strided_slice %25 {offsets = [0, 0, 32], sizes = [8, 16, 16], strides = [1, 1, 1]} : vector<8x16x128xbf16> to vector<8x16x16xbf16>
    %75 = vector.extract_strided_slice %28 {offsets = [0, 0, 32], sizes = [8, 16, 16], strides = [1, 1, 1]} : vector<8x16x128xbf16> to vector<8x16x16xbf16>
    %76 = vector.extract_strided_slice %31 {offsets = [0, 0, 32], sizes = [8, 16, 16], strides = [1, 1, 1]} : vector<8x16x128xbf16> to vector<8x16x16xbf16>
    "tpu.trace_start"() <{level = 10 : i32, message = "tjd,tkd->tjk"}> : () -> ()
    %cst_17 = arith.constant dense<0.000000e+00> : vector<8x16x16xf32>
    %77 = tpu.matmul %74, %75, %cst_17 {dimension_numbers = #tpu.dot_dimension_numbers<[2], [2], [1], [1], [0, 0, 0, 1, 1, 1], [0], [0]>} : vector<8x16x16xbf16>, vector<8x16x16xbf16>, vector<8x16x16xf32> -> vector<8x16x16xf32>
    "tpu.trace_stop"() : () -> ()
    %78 = vector.broadcast %33 : vector<1x16x16xf32> to vector<8x16x16xf32>
    %79 = arith.addf %77, %78 : vector<8x16x16xf32>
    %cst_18 = arith.constant 2.500000e-01 : f32
    %80 = vector.broadcast %cst_18 : f32 to vector<8x16x16xf32>
    %81 = arith.mulf %79, %80 : vector<8x16x16xf32>
    %cst_19 = arith.constant dense<0xFF800000> : vector<8x16xf32>
    %82 = vector.multi_reduction <maximumf>, %81, %cst_19 [2] : vector<8x16x16xf32> to vector<8x16xf32>
    %83 = vector.shape_cast %82 : vector<8x16xf32> to vector<8x16x1xf32>
    %84 = vector.broadcast %83 : vector<8x16x1xf32> to vector<8x16x16xf32>
    %85 = arith.subf %81, %84 : vector<8x16x16xf32>
    %86 = math.exp %85 : vector<8x16x16xf32>
    %cst_20 = arith.constant dense<0.000000e+00> : vector<8x16xf32>
    %87 = vector.multi_reduction <add>, %86, %cst_20 [2] : vector<8x16x16xf32> to vector<8x16xf32>
    %88 = vector.shape_cast %87 : vector<8x16xf32> to vector<8x16x1xf32>
    %89 = tpu.reciprocal %88 {approx = true} : vector<8x16x1xf32> -> vector<8x16x1xf32>
    %90 = vector.broadcast %89 : vector<8x16x1xf32> to vector<8x16x16xf32>
    %91 = arith.mulf %86, %90 : vector<8x16x16xf32>
    %92 = arith.truncf %91 : vector<8x16x16xf32> to vector<8x16x16xbf16>
    "tpu.trace_start"() <{level = 10 : i32, message = "tjk,tkd->tjd"}> : () -> ()
    %cst_21 = arith.constant dense<0.000000e+00> : vector<8x16x16xf32>
    %93 = tpu.matmul %92, %76, %cst_21 {dimension_numbers = #tpu.dot_dimension_numbers<[2], [1], [1], [2], [0, 0, 0, 1, 1, 2], [0], [0]>} : vector<8x16x16xbf16>, vector<8x16x16xbf16>, vector<8x16x16xf32> -> vector<8x16x16xf32>
    "tpu.trace_stop"() : () -> ()
    %94 = vector.extract_strided_slice %25 {offsets = [0, 0, 48], sizes = [8, 16, 16], strides = [1, 1, 1]} : vector<8x16x128xbf16> to vector<8x16x16xbf16>
    %95 = vector.extract_strided_slice %28 {offsets = [0, 0, 48], sizes = [8, 16, 16], strides = [1, 1, 1]} : vector<8x16x128xbf16> to vector<8x16x16xbf16>
    %96 = vector.extract_strided_slice %31 {offsets = [0, 0, 48], sizes = [8, 16, 16], strides = [1, 1, 1]} : vector<8x16x128xbf16> to vector<8x16x16xbf16>
    "tpu.trace_start"() <{level = 10 : i32, message = "tjd,tkd->tjk"}> : () -> ()
    %cst_22 = arith.constant dense<0.000000e+00> : vector<8x16x16xf32>
    %97 = tpu.matmul %94, %95, %cst_22 {dimension_numbers = #tpu.dot_dimension_numbers<[2], [2], [1], [1], [0, 0, 0, 1, 1, 1], [0], [0]>} : vector<8x16x16xbf16>, vector<8x16x16xbf16>, vector<8x16x16xf32> -> vector<8x16x16xf32>
    "tpu.trace_stop"() : () -> ()
    %98 = vector.broadcast %33 : vector<1x16x16xf32> to vector<8x16x16xf32>
    %99 = arith.addf %97, %98 : vector<8x16x16xf32>
    %cst_23 = arith.constant 2.500000e-01 : f32
    %100 = vector.broadcast %cst_23 : f32 to vector<8x16x16xf32>
    %101 = arith.mulf %99, %100 : vector<8x16x16xf32>
    %cst_24 = arith.constant dense<0xFF800000> : vector<8x16xf32>
    %102 = vector.multi_reduction <maximumf>, %101, %cst_24 [2] : vector<8x16x16xf32> to vector<8x16xf32>
    %103 = vector.shape_cast %102 : vector<8x16xf32> to vector<8x16x1xf32>
    %104 = vector.broadcast %103 : vector<8x16x1xf32> to vector<8x16x16xf32>
    %105 = arith.subf %101, %104 : vector<8x16x16xf32>
    %106 = math.exp %105 : vector<8x16x16xf32>
    %cst_25 = arith.constant dense<0.000000e+00> : vector<8x16xf32>
    %107 = vector.multi_reduction <add>, %106, %cst_25 [2] : vector<8x16x16xf32> to vector<8x16xf32>
    %108 = vector.shape_cast %107 : vector<8x16xf32> to vector<8x16x1xf32>
    %109 = tpu.reciprocal %108 {approx = true} : vector<8x16x1xf32> -> vector<8x16x1xf32>
    %110 = vector.broadcast %109 : vector<8x16x1xf32> to vector<8x16x16xf32>
    %111 = arith.mulf %106, %110 : vector<8x16x16xf32>
    %112 = arith.truncf %111 : vector<8x16x16xf32> to vector<8x16x16xbf16>
    "tpu.trace_start"() <{level = 10 : i32, message = "tjk,tkd->tjd"}> : () -> ()
    %cst_26 = arith.constant dense<0.000000e+00> : vector<8x16x16xf32>
    %113 = tpu.matmul %112, %96, %cst_26 {dimension_numbers = #tpu.dot_dimension_numbers<[2], [1], [1], [2], [0, 0, 0, 1, 1, 2], [0], [0]>} : vector<8x16x16xbf16>, vector<8x16x16xbf16>, vector<8x16x16xf32> -> vector<8x16x16xf32>
    "tpu.trace_stop"() : () -> ()
    %114 = vector.extract_strided_slice %25 {offsets = [0, 0, 64], sizes = [8, 16, 16], strides = [1, 1, 1]} : vector<8x16x128xbf16> to vector<8x16x16xbf16>
    %115 = vector.extract_strided_slice %28 {offsets = [0, 0, 64], sizes = [8, 16, 16], strides = [1, 1, 1]} : vector<8x16x128xbf16> to vector<8x16x16xbf16>
    %116 = vector.extract_strided_slice %31 {offsets = [0, 0, 64], sizes = [8, 16, 16], strides = [1, 1, 1]} : vector<8x16x128xbf16> to vector<8x16x16xbf16>
    "tpu.trace_start"() <{level = 10 : i32, message = "tjd,tkd->tjk"}> : () -> ()
    %cst_27 = arith.constant dense<0.000000e+00> : vector<8x16x16xf32>
    %117 = tpu.matmul %114, %115, %cst_27 {dimension_numbers = #tpu.dot_dimension_numbers<[2], [2], [1], [1], [0, 0, 0, 1, 1, 1], [0], [0]>} : vector<8x16x16xbf16>, vector<8x16x16xbf16>, vector<8x16x16xf32> -> vector<8x16x16xf32>
    "tpu.trace_stop"() : () -> ()
    %118 = vector.broadcast %33 : vector<1x16x16xf32> to vector<8x16x16xf32>
    %119 = arith.addf %117, %118 : vector<8x16x16xf32>
    %cst_28 = arith.constant 2.500000e-01 : f32
    %120 = vector.broadcast %cst_28 : f32 to vector<8x16x16xf32>
    %121 = arith.mulf %119, %120 : vector<8x16x16xf32>
    %cst_29 = arith.constant dense<0xFF800000> : vector<8x16xf32>
    %122 = vector.multi_reduction <maximumf>, %121, %cst_29 [2] : vector<8x16x16xf32> to vector<8x16xf32>
    %123 = vector.shape_cast %122 : vector<8x16xf32> to vector<8x16x1xf32>
    %124 = vector.broadcast %123 : vector<8x16x1xf32> to vector<8x16x16xf32>
    %125 = arith.subf %121, %124 : vector<8x16x16xf32>
    %126 = math.exp %125 : vector<8x16x16xf32>
    %cst_30 = arith.constant dense<0.000000e+00> : vector<8x16xf32>
    %127 = vector.multi_reduction <add>, %126, %cst_30 [2] : vector<8x16x16xf32> to vector<8x16xf32>
    %128 = vector.shape_cast %127 : vector<8x16xf32> to vector<8x16x1xf32>
    %129 = tpu.reciprocal %128 {approx = true} : vector<8x16x1xf32> -> vector<8x16x1xf32>
    %130 = vector.broadcast %129 : vector<8x16x1xf32> to vector<8x16x16xf32>
    %131 = arith.mulf %126, %130 : vector<8x16x16xf32>
    %132 = arith.truncf %131 : vector<8x16x16xf32> to vector<8x16x16xbf16>
    "tpu.trace_start"() <{level = 10 : i32, message = "tjk,tkd->tjd"}> : () -> ()
    %cst_31 = arith.constant dense<0.000000e+00> : vector<8x16x16xf32>
    %133 = tpu.matmul %132, %116, %cst_31 {dimension_numbers = #tpu.dot_dimension_numbers<[2], [1], [1], [2], [0, 0, 0, 1, 1, 2], [0], [0]>} : vector<8x16x16xbf16>, vector<8x16x16xbf16>, vector<8x16x16xf32> -> vector<8x16x16xf32>
    "tpu.trace_stop"() : () -> ()
    %134 = vector.extract_strided_slice %25 {offsets = [0, 0, 80], sizes = [8, 16, 16], strides = [1, 1, 1]} : vector<8x16x128xbf16> to vector<8x16x16xbf16>
    %135 = vector.extract_strided_slice %28 {offsets = [0, 0, 80], sizes = [8, 16, 16], strides = [1, 1, 1]} : vector<8x16x128xbf16> to vector<8x16x16xbf16>
    %136 = vector.extract_strided_slice %31 {offsets = [0, 0, 80], sizes = [8, 16, 16], strides = [1, 1, 1]} : vector<8x16x128xbf16> to vector<8x16x16xbf16>
    "tpu.trace_start"() <{level = 10 : i32, message = "tjd,tkd->tjk"}> : () -> ()
    %cst_32 = arith.constant dense<0.000000e+00> : vector<8x16x16xf32>
    %137 = tpu.matmul %134, %135, %cst_32 {dimension_numbers = #tpu.dot_dimension_numbers<[2], [2], [1], [1], [0, 0, 0, 1, 1, 1], [0], [0]>} : vector<8x16x16xbf16>, vector<8x16x16xbf16>, vector<8x16x16xf32> -> vector<8x16x16xf32>
    "tpu.trace_stop"() : () -> ()
    %138 = vector.broadcast %33 : vector<1x16x16xf32> to vector<8x16x16xf32>
    %139 = arith.addf %137, %138 : vector<8x16x16xf32>
    %cst_33 = arith.constant 2.500000e-01 : f32
    %140 = vector.broadcast %cst_33 : f32 to vector<8x16x16xf32>
    %141 = arith.mulf %139, %140 : vector<8x16x16xf32>
    %cst_34 = arith.constant dense<0xFF800000> : vector<8x16xf32>
    %142 = vector.multi_reduction <maximumf>, %141, %cst_34 [2] : vector<8x16x16xf32> to vector<8x16xf32>
    %143 = vector.shape_cast %142 : vector<8x16xf32> to vector<8x16x1xf32>
    %144 = vector.broadcast %143 : vector<8x16x1xf32> to vector<8x16x16xf32>
    %145 = arith.subf %141, %144 : vector<8x16x16xf32>
    %146 = math.exp %145 : vector<8x16x16xf32>
    %cst_35 = arith.constant dense<0.000000e+00> : vector<8x16xf32>
    %147 = vector.multi_reduction <add>, %146, %cst_35 [2] : vector<8x16x16xf32> to vector<8x16xf32>
    %148 = vector.shape_cast %147 : vector<8x16xf32> to vector<8x16x1xf32>
    %149 = tpu.reciprocal %148 {approx = true} : vector<8x16x1xf32> -> vector<8x16x1xf32>
    %150 = vector.broadcast %149 : vector<8x16x1xf32> to vector<8x16x16xf32>
    %151 = arith.mulf %146, %150 : vector<8x16x16xf32>
    %152 = arith.truncf %151 : vector<8x16x16xf32> to vector<8x16x16xbf16>
    "tpu.trace_start"() <{level = 10 : i32, message = "tjk,tkd->tjd"}> : () -> ()
    %cst_36 = arith.constant dense<0.000000e+00> : vector<8x16x16xf32>
    %153 = tpu.matmul %152, %136, %cst_36 {dimension_numbers = #tpu.dot_dimension_numbers<[2], [1], [1], [2], [0, 0, 0, 1, 1, 2], [0], [0]>} : vector<8x16x16xbf16>, vector<8x16x16xbf16>, vector<8x16x16xf32> -> vector<8x16x16xf32>
    "tpu.trace_stop"() : () -> ()
    %154 = vector.extract_strided_slice %25 {offsets = [0, 0, 96], sizes = [8, 16, 16], strides = [1, 1, 1]} : vector<8x16x128xbf16> to vector<8x16x16xbf16>
    %155 = vector.extract_strided_slice %28 {offsets = [0, 0, 96], sizes = [8, 16, 16], strides = [1, 1, 1]} : vector<8x16x128xbf16> to vector<8x16x16xbf16>
    %156 = vector.extract_strided_slice %31 {offsets = [0, 0, 96], sizes = [8, 16, 16], strides = [1, 1, 1]} : vector<8x16x128xbf16> to vector<8x16x16xbf16>
    "tpu.trace_start"() <{level = 10 : i32, message = "tjd,tkd->tjk"}> : () -> ()
    %cst_37 = arith.constant dense<0.000000e+00> : vector<8x16x16xf32>
    %157 = tpu.matmul %154, %155, %cst_37 {dimension_numbers = #tpu.dot_dimension_numbers<[2], [2], [1], [1], [0, 0, 0, 1, 1, 1], [0], [0]>} : vector<8x16x16xbf16>, vector<8x16x16xbf16>, vector<8x16x16xf32> -> vector<8x16x16xf32>
    "tpu.trace_stop"() : () -> ()
    %158 = vector.broadcast %33 : vector<1x16x16xf32> to vector<8x16x16xf32>
    %159 = arith.addf %157, %158 : vector<8x16x16xf32>
    %cst_38 = arith.constant 2.500000e-01 : f32
    %160 = vector.broadcast %cst_38 : f32 to vector<8x16x16xf32>
    %161 = arith.mulf %159, %160 : vector<8x16x16xf32>
    %cst_39 = arith.constant dense<0xFF800000> : vector<8x16xf32>
    %162 = vector.multi_reduction <maximumf>, %161, %cst_39 [2] : vector<8x16x16xf32> to vector<8x16xf32>
    %163 = vector.shape_cast %162 : vector<8x16xf32> to vector<8x16x1xf32>
    %164 = vector.broadcast %163 : vector<8x16x1xf32> to vector<8x16x16xf32>
    %165 = arith.subf %161, %164 : vector<8x16x16xf32>
    %166 = math.exp %165 : vector<8x16x16xf32>
    %cst_40 = arith.constant dense<0.000000e+00> : vector<8x16xf32>
    %167 = vector.multi_reduction <add>, %166, %cst_40 [2] : vector<8x16x16xf32> to vector<8x16xf32>
    %168 = vector.shape_cast %167 : vector<8x16xf32> to vector<8x16x1xf32>
    %169 = tpu.reciprocal %168 {approx = true} : vector<8x16x1xf32> -> vector<8x16x1xf32>
    %170 = vector.broadcast %169 : vector<8x16x1xf32> to vector<8x16x16xf32>
    %171 = arith.mulf %166, %170 : vector<8x16x16xf32>
    %172 = arith.truncf %171 : vector<8x16x16xf32> to vector<8x16x16xbf16>
    "tpu.trace_start"() <{level = 10 : i32, message = "tjk,tkd->tjd"}> : () -> ()
    %cst_41 = arith.constant dense<0.000000e+00> : vector<8x16x16xf32>
    %173 = tpu.matmul %172, %156, %cst_41 {dimension_numbers = #tpu.dot_dimension_numbers<[2], [1], [1], [2], [0, 0, 0, 1, 1, 2], [0], [0]>} : vector<8x16x16xbf16>, vector<8x16x16xbf16>, vector<8x16x16xf32> -> vector<8x16x16xf32>
    "tpu.trace_stop"() : () -> ()
    %174 = vector.extract_strided_slice %25 {offsets = [0, 0, 112], sizes = [8, 16, 16], strides = [1, 1, 1]} : vector<8x16x128xbf16> to vector<8x16x16xbf16>
    %175 = vector.extract_strided_slice %28 {offsets = [0, 0, 112], sizes = [8, 16, 16], strides = [1, 1, 1]} : vector<8x16x128xbf16> to vector<8x16x16xbf16>
    %176 = vector.extract_strided_slice %31 {offsets = [0, 0, 112], sizes = [8, 16, 16], strides = [1, 1, 1]} : vector<8x16x128xbf16> to vector<8x16x16xbf16>
    "tpu.trace_start"() <{level = 10 : i32, message = "tjd,tkd->tjk"}> : () -> ()
    %cst_42 = arith.constant dense<0.000000e+00> : vector<8x16x16xf32>
    %177 = tpu.matmul %174, %175, %cst_42 {dimension_numbers = #tpu.dot_dimension_numbers<[2], [2], [1], [1], [0, 0, 0, 1, 1, 1], [0], [0]>} : vector<8x16x16xbf16>, vector<8x16x16xbf16>, vector<8x16x16xf32> -> vector<8x16x16xf32>
    "tpu.trace_stop"() : () -> ()
    %178 = vector.broadcast %33 : vector<1x16x16xf32> to vector<8x16x16xf32>
    %179 = arith.addf %177, %178 : vector<8x16x16xf32>
    %cst_43 = arith.constant 2.500000e-01 : f32
    %180 = vector.broadcast %cst_43 : f32 to vector<8x16x16xf32>
    %181 = arith.mulf %179, %180 : vector<8x16x16xf32>
    %cst_44 = arith.constant dense<0xFF800000> : vector<8x16xf32>
    %182 = vector.multi_reduction <maximumf>, %181, %cst_44 [2] : vector<8x16x16xf32> to vector<8x16xf32>
    %183 = vector.shape_cast %182 : vector<8x16xf32> to vector<8x16x1xf32>
    %184 = vector.broadcast %183 : vector<8x16x1xf32> to vector<8x16x16xf32>
    %185 = arith.subf %181, %184 : vector<8x16x16xf32>
    %186 = math.exp %185 : vector<8x16x16xf32>
    %cst_45 = arith.constant dense<0.000000e+00> : vector<8x16xf32>
    %187 = vector.multi_reduction <add>, %186, %cst_45 [2] : vector<8x16x16xf32> to vector<8x16xf32>
    %188 = vector.shape_cast %187 : vector<8x16xf32> to vector<8x16x1xf32>
    %189 = tpu.reciprocal %188 {approx = true} : vector<8x16x1xf32> -> vector<8x16x1xf32>
    %190 = vector.broadcast %189 : vector<8x16x1xf32> to vector<8x16x16xf32>
    %191 = arith.mulf %186, %190 : vector<8x16x16xf32>
    %192 = arith.truncf %191 : vector<8x16x16xf32> to vector<8x16x16xbf16>
    "tpu.trace_start"() <{level = 10 : i32, message = "tjk,tkd->tjd"}> : () -> ()
    %cst_46 = arith.constant dense<0.000000e+00> : vector<8x16x16xf32>
    %193 = tpu.matmul %192, %176, %cst_46 {dimension_numbers = #tpu.dot_dimension_numbers<[2], [1], [1], [2], [0, 0, 0, 1, 1, 2], [0], [0]>} : vector<8x16x16xbf16>, vector<8x16x16xbf16>, vector<8x16x16xf32> -> vector<8x16x16xf32>
    "tpu.trace_stop"() : () -> ()
    %194 = tpu.concatenate %53, %73, %93, %113, %133, %153, %173, %193 in 2 : vector<8x16x16xf32>, vector<8x16x16xf32>, vector<8x16x16xf32>, vector<8x16x16xf32>, vector<8x16x16xf32>, vector<8x16x16xf32>, vector<8x16x16xf32>, vector<8x16x16xf32> -> vector<8x16x128xf32>
    %195 = vector.shape_cast %194 : vector<8x16x128xf32> to vector<128x128xf32>
    %196 = arith.truncf %195 : vector<128x128xf32> to vector<128x128xbf16>
    %c0_47 = arith.constant 0 : index
    %c0_48 = arith.constant 0 : index
    %197 = vector.load %arg5[%c0_47, %c0_48] : memref<128x128xf32, #tpu.memory_space<vmem>>, vector<128x128xf32>
    %198 = arith.truncf %197 : vector<128x128xf32> to vector<128x128xbf16>
    %cst_49 = arith.constant dense<0.000000e+00> : vector<128x128xf32>
    %199 = tpu.matmul %196, %198, %cst_49 {dimension_numbers = #tpu.dot_dimension_numbers<[1], [0], [0], [1], [0, 0, 1, 1], [], []>} : vector<128x128xbf16>, vector<128x128xbf16>, vector<128x128xf32> -> vector<128x128xf32>
    %c0_50 = arith.constant 0 : index
    %c0_51 = arith.constant 0 : index
    %200 = vector.load %arg6[%c0_50, %c0_51] : memref<1x128xf32, #tpu.memory_space<vmem>>, vector<1x128xf32>
    %201 = vector.broadcast %200 : vector<1x128xf32> to vector<128x128xf32>
    %202 = arith.addf %199, %201 : vector<128x128xf32>
    %c0_52 = arith.constant 0 : index
    %c0_53 = arith.constant 0 : index
    %c0_54 = arith.constant 0 : index
    %203 = vector.load %arg8[%c0_52, %c0_53, %c0_54] : memref<1x128x128xf32, #tpu.memory_space<vmem>>, vector<1x128x128xf32>
    %204 = vector.shape_cast %203 : vector<1x128x128xf32> to vector<128x128xf32>
    %205 = vector.shape_cast %202 : vector<128x128xf32> to vector<1x128x128xf32>
    tpu.vector_store %arg8[%c0_52, %c0_53, %c0_54], %205 {strides = array<i32>} : memref<1x128x128xf32, #tpu.memory_space<vmem>>, vector<1x128x128xf32>,
    return
  }
  func.func @transform_0(%arg0: i32, %arg1: i32) -> (i32, i32, i32) {
    %c0_i32 = arith.constant 0 : i32
    %c0_i32_0 = arith.constant 0 : i32
    return %arg0, %arg1, %c0_i32 : i32, i32, i32
  }
  func.func @transform_1(%arg0: i32, %arg1: i32) -> (i32, i32) {
    %c0_i32 = arith.constant 0 : i32
    %c0_i32_0 = arith.constant 0 : i32
    %c0_i32_1 = arith.constant 0 : i32
    return %c0_i32, %c0_i32_0 : i32, i32
  }
  func.func @transform_2(%arg0: i32, %arg1: i32) -> (i32, i32) {
    %c0_i32 = arith.constant 0 : i32
    %c0_i32_0 = arith.constant 0 : i32
    %c0_i32_1 = arith.constant 0 : i32
    return %c0_i32, %c0_i32_0 : i32, i32
  }
  func.func @transform_3(%arg0: i32, %arg1: i32) -> (i32, i32) {
    %c0_i32 = arith.constant 0 : i32
    %c0_i32_0 = arith.constant 0 : i32
    %c0_i32_1 = arith.constant 0 : i32
    return %c0_i32, %c0_i32_0 : i32, i32
  }
  func.func @transform_4(%arg0: i32, %arg1: i32) -> (i32, i32) {
    %c0_i32 = arith.constant 0 : i32
    %c0_i32_0 = arith.constant 0 : i32
    %c0_i32_1 = arith.constant 0 : i32
    return %c0_i32, %c0_i32_0 : i32, i32
  }
  func.func @transform_5(%arg0: i32, %arg1: i32) -> (i32, i32) {
    %c0_i32 = arith.constant 0 : i32
    %c0_i32_0 = arith.constant 0 : i32
    %c0_i32_1 = arith.constant 0 : i32
    return %c0_i32, %c0_i32_0 : i32, i32
  }
  func.func @transform_6(%arg0: i32, %arg1: i32) -> (i32, i32, i32) {
    %c0_i32 = arith.constant 0 : i32
    %c0_i32_0 = arith.constant 0 : i32
    return %arg0, %arg1, %c0_i32 : i32, i32, i32
  }
}

</mosaic_0001>

<bundles_post_ra>
// kernel: tpu_custom_call.1
= control target key start
LH: loop header
LB: loop body
LE: loop exit
PB: predicated region body
PF: predicated region fallthrough
CT: control target
= control target key end

     0   :  { %11 = vsyncpa [#allocation3], 0  ;;  %s15836_s0 = inlined_call_operand.vmem [shape: f32[2,128,3], index: 0, kind: input, shape index: {}]   ;;  %s15837_s1 = inlined_call_operand.vmem [shape: f32[3,384], index: 1, kind: input, shape index: {}]   ;;  %s15838_s2 = inlined_call_operand.vmem [shape: f32[1,384], index: 2, kind: input, shape index: {}]   ;;  %s15839_s3 = inlined_call_operand.vmem [shape: f32[128,128], index: 3, kind: input, shape index: {}]   ;;  %s15840_s4 = inlined_call_operand.vmem [shape: f32[1,128], index: 4, kind: input, shape index: {}]   ;;  %s15841_s5 = inlined_call_operand.vmem [shape: f32[16,16], index: 5, kind: input, shape index: {}]   ;;  %s15842_s6 = inlined_call_operand.hbm [shape: f32[2,128,128], index: 6, kind: output, shape index: {}]  }
   0x1   :  { %13 = vsyncpa [#allocation3 + $0x1], 0  ;;  %s11829_s21 = smov 0   ;;  %s11831_s22 = smov 0  }
   0x2   :  { %s11833_s23 = smov 0   ;;  %s11835_s24 = smov 0  }
   0x3   :  { %s11837_s25 = smov 0   ;;  %s11839_s26 = smov 0  }
   0x4 LB: > { %s9576_s27 = sadd.s32 4294967295, %s11777_s26   ;;  %s9577_s28 = sadd.s32 4294967294, %s11777_s26   ;;  %s11777_s26 = sphi %s11839_s26, %s19_s26   ;;  %s11773_s25 = sphi %s11837_s25, %s16250_s25   ;;  %s11769_s24 = sphi %s11835_s24, %s16249_s24   ;;  %s11765_s23 = sphi %s11833_s23, %s16248_s23   ;;  %s11761_s22 = sphi %s11831_s22, %s16247_s22   ;;  %s11757_s21 = sphi %s11829_s21, %s16246_s21  }
   0x5   : > { %s31_s29 = sadd.s32 1, %s11773_s25  ;;  %s173_s30 = sadd.s32 1, %s11765_s23 }
   0x6   : > { %p33_p0 = scmp.ge.s32.totalorder %s31_s29, 2  ;;  %p183_p1 = scmp.ne.s32.totalorder %s11765_s23, %s11761_s22 }
   0x7   : > { %p184_p2 = scmp.eq.s32.totalorder %s9576_s27, 1  ;;  %p189_p3 = scmp.ne.s32.totalorder %s11761_s22, %s11757_s21 }
   0x8   : > { %s16252_s29 = smov (%p33_p0, %s31_s29), 0  ;;  %p190_p5 = scmp.eq.s32.totalorder %s9577_s28, 1 }
   0x9   : > { %p11869_p4 = por %p184_p2, %p183_p1  ;;  %s168_s8 = ssub.s32 %s11773_s25, %s16252_s29 }
   0xa   : > { %p9580_p6 = scmp.ge.s32.totalorder %s11777_s26, 1  ;;  %p171_p7 = scmp.eq.s32.totalorder %s168_s8, 0 }
   0xb   : > { %p11876_p8 = por %p190_p5, %p189_p3  ;;  %p236_p9 = scmp.lt.s32.totalorder %s11777_s26, 3 }
   0xc   : > { %s11882_s10 = scalar_select %p171_p7, %s11765_s23, %s173_s30  }
   0xd   : > { %p237_p10 = pnand %p9580_p6, %p236_p9 }
   0xf   : > { %240 = sbr.rel (%p237_p10) target bundleno = 5273 (0x1499), region = 44 }
  0x14   : > { %p271_p11 = scmp.lt.s32.totalorder %s11769_s24, 1  ;;  %v11779_v0 = vmov 2   ;;  %v11780_v1 = vmov 1   ;;  %v11781_v7 = vmov 0   ;;  %v382_v8 = vlaneseq  ;;  %v11909_v12 = vld [vmem:[%s15838_s2] sm:$0x7] }
  0x15   : > { %10881 = vset.pattern.permute.xlu0 %v11779_v0  ;;  %10877 = vset.pattern.permute.xlu1 %v11780_v1  ;;  %v15843_v16 = vmov 0.0   ;;  %vm11783_vm0 = vmmov 0   ;;  %v298_v30 = vld [vmem:[%s15837_s1] sm:$0x77]  ;;  %vm922_vm1 = vcmask 130048   ;;  %s11785_s17 = smov 96  }
  0x16   : > { %s272_s11 = scalar_select %p271_p11, %s11769_s24, 1  ;;  %v11900_v10 = vshrl.u32 %v382_v8, 7  ;;  %9992 = vmatprep.subr.bf16.mxu0 %v15843_v16  ;;  %9998 = vmatprep.subr.bf16.mxu1 %v15843_v16  ;;  %vm9227_vm2 = vcmask 261120   ;;  %vm9244_vm3 = vcmask 392192   ;;  %vm9261_vm4 = vcmask 523264  }
  0x17   : > { %9994 = vmatprep.mubr.msk.bf16.mxu0 %vm11783_vm0, %v15843_v16  ;;  %10000 = vmatprep.mubr.msk.bf16.mxu1 %vm11783_vm0, %v15843_v16  ;;  %s11786_s18 = smov 80   ;;  %s11787_s30 = smov 64   ;;  %vm9278_vm5 = vcmask 654336   ;;  %vm9295_vm6 = vcmask 785408   ;;  %vm9312_vm7 = vcmask 916480  }
  0x18   : > { %s9718_s12 = sshll.u32 %s272_s11, 7  ;;  %v11904_v11 = vsub.s32 2, %v11900_v10  ;;  %v527_v29 = vsub.s32 5, %v11900_v10  ;;  %v388_v32 = vsub.s32 4, %v11900_v10  ;;  %v714_v33 = vsub.s32 6, %v11900_v10  ;;  %s11789_s16 = smov 32  }
  0x19   : > { %s11891_s15 = scalar_lea.vmem %s15836_s0, %s9718_s12  ;;  %v11969_v36 = vsub.s32 1, %v11900_v10  ;;  %v11972_v37 = vsub.s32 0, %v11900_v10  ;;  %s11784_s12 = smov 112  }
  0x1a   : > { %v283_v2 = vld [vmem:[%s11891_s15 + $0x8] sm:$0xff]  ;;  %v282_v3 = vld [vmem:[%s11891_s15] sm:$0xff]  ;;  %v289_v5 = vld [vmem:[%s11891_s15 + $0x38] sm:$0xff]  ;;  %v11914_v13 = vrot.slane %v11909_v12, %v11904_v11  ;;  %v528_v35 = vrot.slane %v298_v30, %v527_v29  ;;  %v389_v38 = vrot.slane %v298_v30, %v388_v32  ;;  %v715_v40 = vrot.slane %v298_v30, %v714_v33  ;;  %s11790_s8 = smov 16   ;;  %s11791_s14 = smov [#allocation2]  }
  0x1b   : > { %649 = vperm.xlu0 %10881, %v283_v2   ;;  %458 = vperm.xlu1 %10877, %v282_v3   ;;  %v286_v4 = vld [vmem:[%s11891_s15 + $0x20] sm:$0xff]  ;;  %v285_v6 = vld [vmem:[%s11891_s15 + $0x18] sm:$0xff]  ;;  %v291_v9 = vld [vmem:[%s11891_s15 + $0x48] sm:$0xff]  ;;  %v385_v43 = vrot.slane %v298_v30, %v11972_v37  ;;  %v524_v45 = vrot.slane %v298_v30, %v11969_v36  ;;  %v711_v50 = vrot.slane %v298_v30, %v11904_v11 }
  0x1c   : > { %v284_v14 = vld [vmem:[%s11891_s15 + $0x10] sm:$0xff]  ;;  %v287_v15 = vld [vmem:[%s11891_s15 + $0x28] sm:$0xff]  ;;  %v294_v18 = vld [vmem:[%s11891_s15 + $0x60] sm:$0xff]  ;;  %v11977_v41 = vrot.slane %v528_v35, %v11969_v36  ;;  %v11983_v44 = vrot.slane %v389_v38, %v11972_v37  ;;  %v11987_v46 = vrot.slane %v715_v40, %v11904_v11  ;;  %v12021_v62 = vrot.slane %v11909_v12, %v11969_v36 }
  0x1d   : > { %v292_v17 = vld [vmem:[%s11891_s15 + $0x50] sm:$0xff]  ;;  %v295_v20 = vld [vmem:[%s11891_s15 + $0x68] sm:$0xff]  ;;  %v290_v21 = vld [vmem:[%s11891_s15 + $0x40] sm:$0xff]  ;;  %v11999_v52 = vrot.slane %v385_v43, %v11972_v37  ;;  %v12002_v54 = vrot.slane %v524_v45, %v11969_v36  ;;  %v12017_v61 = vrot.slane %v711_v50, %v11904_v11 }
  0x1e   : > { %v288_v19 = vld [vmem:[%s11891_s15 + $0x30] sm:$0xff]  ;;  %v297_v23 = vld [vmem:[%s11891_s15 + $0x78] sm:$0xff] }
  0x1f   : > { %661 = vperm.xlu0 %10881, %v286_v4   ;;  %462 = vperm.xlu1 %10877, %v283_v2   ;;  %v296_v22 = vld [vmem:[%s11891_s15 + $0x70] sm:$0xff]  ;;  %v293_v24 = vld [vmem:[%s11891_s15 + $0x58] sm:$0xff]  ;;  %s11788_s15 = smov 48  }
  0x23   : > { %673 = vperm.xlu0 %10881, %v289_v5   ;;  %10878 = vset.pattern.permute.xlu1 %v11781_v7 }
  0x24   : > { %317 = vperm.xlu1 %10878, %v285_v6  }
  0x27   : > { %681 = vperm.xlu0 %10881, %v291_v9  }
  0x28   : > { %10879 = vset.pattern.permute.xlu1 %v11780_v1 }
  0x29   : > { %470 = vperm.xlu1 %10879, %v285_v6  }
  0x2b   : > { %10892 = vset.pattern.permute.xlu0 %v11781_v7 }
  0x2c   : > { %302 = vperm.xlu0 %10892, %v282_v3  }
  0x2d   : > { %10880 = vset.pattern.permute.xlu1 %v11779_v0 }
  0x2e   : > { %645 = vperm.xlu1 %10880, %v282_v3  }
  0x30   : > { %307 = vperm.xlu0 %10892, %v283_v2  }
  0x32   : > { %653 = vperm.xlu1 %10880, %v284_v14  }
  0x34   : > { %312 = vperm.xlu0 %10892, %v284_v14  }
  0x36   : > { %657 = vperm.xlu1 %10880, %v285_v6  }
  0x38   : > { %322 = vperm.xlu0 %10892, %v286_v4  }
  0x3a   : > { %10882 = vset.pattern.permute.xlu1 %v11781_v7 }
  0x3b   : > { %327 = vperm.xlu1 %10882, %v287_v15  }
  0x3c   : > { %347 = vperm.xlu0 %10892, %v291_v9  }
  0x3f   : > { %10883 = vset.pattern.permute.xlu1 %v11780_v1 }
  0x40   : > { %352 = vperm.xlu0 %10892, %v292_v17   ;;  %474 = vperm.xlu1 %10883, %v286_v4  }
  0x44   : > { %362 = vperm.xlu0 %10892, %v294_v18   ;;  %10884 = vset.pattern.permute.xlu1 %v11781_v7 }
  0x45   : > { %332 = vperm.xlu1 %10884, %v288_v19  }
  0x48   : > { %10893 = vset.pattern.permute.xlu0 %v11780_v1 }
  0x49   : > { %466 = vperm.xlu0 %10893, %v284_v14   ;;  %337 = vperm.xlu1 %10884, %v289_v5  }
  0x4d   : > { %478 = vperm.xlu0 %10893, %v287_v15   ;;  %10885 = vset.pattern.permute.xlu1 %v11780_v1 }
  0x4e   : > { %486 = vperm.xlu1 %10885, %v289_v5  }
  0x51   : > { %482 = vperm.xlu0 %10893, %v288_v19  }
  0x52   : > { %10886 = vset.pattern.permute.xlu1 %v11779_v0 }
  0x53   : > { %665 = vperm.xlu1 %10886, %v287_v15  }
  0x55   : > { %498 = vperm.xlu0 %10893, %v292_v17  }
  0x57   : > { %669 = vperm.xlu1 %10886, %v288_v19  }
  0x59   : > { %510 = vperm.xlu0 %10893, %v295_v20  }
  0x5b   : > { %10887 = vset.pattern.permute.xlu1 %v11781_v7 }
  0x5c   : > { %342 = vperm.xlu1 %10887, %v290_v21  }
  0x5d   : > { %514 = vperm.xlu0 %10893, %v296_v22  }
  0x60   : > { %10888 = vset.pattern.permute.xlu1 %v11780_v1 }
  0x61   : > { %490 = vperm.xlu1 %10888, %v290_v21   ;;  %10898 = vset.pattern.permute.xlu0 %v11779_v0 }
  0x62   : > { %693 = vperm.xlu0 %10898, %v294_v18  }
  0x65   : > { %494 = vperm.xlu1 %10888, %v291_v9  }
  0x66   : > { %705 = vperm.xlu0 %10898, %v297_v23  }
  0x69   : > { %10889 = vset.pattern.permute.xlu1 %v11781_v7 }
  0x6a   : > { %357 = vperm.xlu1 %10889, %v293_v24  }
  0x6e   : > { %10890 = vset.pattern.permute.xlu1 %v11780_v1 }
  0x6f   : > { %502 = vperm.xlu1 %10890, %v293_v24  }
  0x73   : > { %10891 = vset.pattern.permute.xlu1 %v11779_v0 }
  0x74   : > { %677 = vperm.xlu1 %10891, %v290_v21   ;;  %v12047_v21 = vrot.slane %v11909_v12, %v11972_v37 }
  0x78   : > { %685 = vperm.xlu1 %10891, %v292_v17  }
  0x7c   : > { %689 = vperm.xlu1 %10891, %v293_v24  }
  0x80   : > { %10894 = vset.pattern.permute.xlu1 %v11781_v7 }
  0x81   : > { %367 = vperm.xlu1 %10894, %v295_v20  }
  0x85   : > { %10895 = vset.pattern.permute.xlu1 %v11780_v1 }
  0x86   : > { %506 = vperm.xlu1 %10895, %v294_v18  }
  0x8a   : > { %10896 = vset.pattern.permute.xlu1 %v11781_v7 }
  0x8b   : > { %372 = vperm.xlu1 %10896, %v296_v22  }
  0x8f   : > { %377 = vperm.xlu1 %10896, %v297_v23  }
  0x93   : > { %10897 = vset.pattern.permute.xlu1 %v11780_v1 }
  0x94   : > { %518 = vperm.xlu1 %10897, %v297_v23  }
  0x96   : > { %v11949_v25 = vpop.permute.xlu1 %458  ;;  %v11951_v26 = vpop.permute.xlu0 %649 }
  0x97   : > { %v549_v48 = vmul.f32 %v11977_v41, %v11949_v25  ;;  %v739_v57 = vmul.f32 %v11987_v46, %v11951_v26  ;;  %v548_v5 = vmul.f32 %v12002_v54, %v11949_v25  ;;  %v738_v6 = vmul.f32 %v12017_v61, %v11951_v26 }
  0x98   : > { %10899 = vset.pattern.permute.xlu1 %v11779_v0 }
  0x99   : > { %697 = vperm.xlu1 %10899, %v295_v20  }
  0x9a   : > { %v11954_v27 = vpop.permute.xlu1 %462  ;;  %v11956_v28 = vpop.permute.xlu0 %661 }
  0x9b   : > { %v552_v58 = vmul.f32 %v11977_v41, %v11954_v27  ;;  %v551_v0 = vmul.f32 %v12002_v54, %v11954_v27 }
  0x9d   : > { %701 = vperm.xlu1 %10899, %v296_v22  }
  0x9e   : > { %v11962_v31 = vpop.permute.xlu0 %673 }
  0x9f   : > { %15959 = vst [vmem:[#allocation5_spill] sm:$0xff] %v11962_v31  ;;  %v11966_v34 = vpop.permute.xlu1 %317 }
  0xa2   : > { %v11974_v39 = vpop.permute.xlu0 %681 }
  0xa3   : > { %15960 = vst [vmem:[#allocation6_spill] sm:$0xff] %v11974_v39 }
  0xa4   : > { %v11979_v42 = vpop.permute.xlu1 %470 }
  0xa5   : > { %v558_v43 = vmul.f32 %v11977_v41, %v11979_v42 }
  0xa7   : > { %v11989_v47 = vpop.permute.xlu0 %302 }
  0xa8   : > { %v410_v49 = vmul.f32 %v11983_v44, %v11989_v47  ;;  %v409_v1 = vmul.f32 %v11999_v52, %v11989_v47 }
  0xa9   : > { %v11996_v51 = vpop.permute.xlu1 %645 }
  0xaa   : > { %v597_v53 = vadd.f32 %v549_v48, %v410_v49  ;;  %v736_v55 = vmul.f32 %v11987_v46, %v11996_v51  ;;  %v596_v10 = vadd.f32 %v548_v5, %v409_v1  ;;  %v735_v14 = vmul.f32 %v12017_v61, %v11996_v51 }
  0xab   : > { %v12006_v56 = vpop.permute.xlu0 %307  ;;  %v419_v48 = vmul.f32 %v11983_v44, %v11966_v34 }
  0xac   : > { %v412_v59 = vmul.f32 %v11999_v52, %v12006_v56  ;;  %v413_v60 = vmul.f32 %v11983_v44, %v12006_v56  ;;  %v784_v2 = vadd.f32 %v736_v55, %v597_v53  ;;  %v783_v22 = vadd.f32 %v735_v14, %v596_v10 }
  0xad   : > { %v12023_v63 = vpop.permute.xlu1 %653  ;;  %v748_v14 = vmul.f32 %v11987_v46, %v11956_v28 }
  0xae   : > { %v600_v3 = vadd.f32 %v552_v58, %v413_v60  ;;  %v599_v7 = vadd.f32 %v551_v0, %v412_v59  ;;  %v849_v15 = vadd.f32 %v12021_v62, %v784_v2  ;;  %v848_v32 = vadd.f32 %v12047_v21, %v783_v22 }
  0xaf   : > { %v12029_v4 = vpop.permute.xlu0 %312  ;;  %v742_v58 = vmul.f32 %v11987_v46, %v12023_v63  ;;  %v418_v22 = vmul.f32 %v11999_v52, %v11966_v34 }
  0xb0   : > { %v787_v8 = vadd.f32 %v739_v57, %v600_v3  ;;  %v786_v19 = vadd.f32 %v738_v6, %v599_v7  ;;  %v416_v45 = vmul.f32 %v11983_v44, %v12029_v4  ;;  %v606_v57 = vadd.f32 %v558_v43, %v419_v48 }
  0xb1   : > { %v12035_v9 = vpop.permute.xlu1 %657  ;;  %v415_v1 = vmul.f32 %v11999_v52, %v12029_v4 }
  0xb2   : > { %v852_v17 = vadd.f32 %v12021_v62, %v787_v8  ;;  %v851_v30 = vadd.f32 %v12047_v21, %v786_v19  ;;  %v745_v53 = vmul.f32 %v11987_v46, %v12035_v9  ;;  %v744_v43 = vmul.f32 %v12017_v61, %v12035_v9 }
  0xb3   : > { %v12041_v18 = vpop.permute.xlu0 %322 }
  0xb4   : > { %15961 = vst [vmem:[#allocation7_spill] sm:$0xff] %v12041_v18  ;;  %v12043_v20 = vpack.c.bf16 %v852_v17, %v849_v15  ;;  %v12062_v12 = vpack.c.bf16 %v851_v30, %v848_v32  ;;  %v422_v59 = vmul.f32 %v11983_v44, %v12041_v18  ;;  %v793_v5 = vadd.f32 %v745_v53, %v606_v57 }
  0xb5   : > { %v557_v15 = vmul.f32 %v12002_v54, %v11979_v42 }
  0xb6   : > { %v12049_v23 = vpop.permute.xlu1 %327  ;;  %v927_v24 = vsel %vm922_vm1, %v12043_v20, 0  ;;  %15965 = vst [vmem:[#allocation11_spill] sm:$0xff] %v12062_v12  ;;  %v858_v30 = vadd.f32 %v12021_v62, %v793_v5 }
  0xb7   : > { %9993 = vmatpush3.bf16.xpose.msra.mxu0 %v927_v24  ;;  %v12053_v29 = vpop.permute.xlu0 %347  ;;  %v741_v24 = vmul.f32 %v12017_v61, %v12023_v63  ;;  %v425_v48 = vmul.f32 %v11983_v44, %v12049_v23 }
  0xb8   : > { %15962 = vst [vmem:[#allocation8_spill] sm:$0xff] %v12053_v29  ;;  %10004 = vmatprep.subr.bf16.mxu0 %v15843_v16 }
  0xbb   : > { %v12058_v33 = vpop.permute.xlu1 %474  ;;  %v12060_v35 = vpop.permute.xlu0 %352 }
  0xbc   : > { %15963 = vst [vmem:[#allocation9_spill] sm:$0xff] %v12058_v33  ;;  %15964 = vst [vmem:[#allocation10_spill] sm:$0xff] %v12060_v35  ;;  %v561_v60 = vmul.f32 %v11977_v41, %v12058_v33  ;;  %v560_v53 = vmul.f32 %v12002_v54, %v12058_v33 }
  0xbe   : > { %9995 = vmatmul.mubr.msk.bf16.vlgmr.msra.gmra.mxu0 %vm922_vm1, %v12062_v12  ;;  %v609_v8 = vadd.f32 %v561_v60, %v422_v59 }
  0xbf   : > { %v12066_v38 = vpop.permute.xlu0 %362  ;;  %10006 = vmatprep.mubr.msk.bf16.mxu0 %vm11783_vm0, %v15843_v16  ;;  %v757_v16 = vmul.f32 %v11987_v46, %v11962_v31 }
  0xc0   : > { %15966 = vst [vmem:[#allocation12_spill] sm:$0xff] %v12066_v38  ;;  %v12070_v40 = vpop.permute.xlu1 %332 }
  0xc1   : > { %15967 = vst [vmem:[#allocation13_spill] sm:$0xff] %v12070_v40 }
  0xc4   : > { %v12078_v49 = vpop.permute.xlu0 %466  ;;  %v12080_v50 = vpop.permute.xlu1 %337 }
  0xc5   : > { %15968 = vst [vmem:[#allocation14_spill] sm:$0xff] %v12080_v50  ;;  %v555_v55 = vmul.f32 %v11977_v41, %v12078_v49  ;;  %v554_v2 = vmul.f32 %v12002_v54, %v12078_v49  ;;  %v431_v60 = vmul.f32 %v11983_v44, %v12080_v50 }
  0xc7   : > { %v603_v0 = vadd.f32 %v555_v55, %v416_v45  ;;  %v602_v17 = vadd.f32 %v554_v2, %v415_v1  ;;  %v421_v45 = vmul.f32 %v11999_v52, %v12041_v18  ;;  %v605_v1 = vadd.f32 %v557_v15, %v418_v22 }
  0xc8   : > { %v12096_v3 = vpop.permute.xlu0 %478 }
  0xc9   : > { %v790_v6 = vadd.f32 %v742_v58, %v603_v0  ;;  %v12098_v7 = vpop.permute.xlu1 %486  ;;  %v564_v19 = vmul.f32 %v11977_v41, %v12096_v3  ;;  %v796_v58 = vadd.f32 %v748_v14, %v609_v8  ;;  %v789_v2 = vadd.f32 %v741_v24, %v602_v17 }
  0xca   : > { %15969 = vst [vmem:[#allocation15_spill] sm:$0xff] %v12098_v7  ;;  %v570_v32 = vmul.f32 %v11977_v41, %v12098_v7  ;;  %v563_v5 = vmul.f32 %v12002_v54, %v12096_v3  ;;  %v424_v14 = vmul.f32 %v11999_v52, %v12049_v23  ;;  %v428_v17 = vmul.f32 %v11983_v44, %v12070_v40 }
  0xcb   : > { %v855_v10 = vadd.f32 %v12021_v62, %v790_v6  ;;  %v612_v6 = vadd.f32 %v564_v19, %v425_v48  ;;  %v861_v15 = vadd.f32 %v12021_v62, %v796_v58  ;;  %v854_v24 = vadd.f32 %v12047_v21, %v789_v2 }
  0xcc   : > { %v12122_v55 = vpop.permute.xlu0 %482  ;;  %v618_v12 = vadd.f32 %v570_v32, %v431_v60  ;;  %v611_v32 = vadd.f32 %v563_v5, %v424_v14  ;;  %v430_v5 = vmul.f32 %v11999_v52, %v12080_v50 }
  0xcd   : > { %15970 = vst [vmem:[#allocation16_spill] sm:$0xff] %v12122_v55  ;;  %v12126_v59 = vpack.c.bf16 %v858_v30, %v855_v10  ;;  %v567_v8 = vmul.f32 %v11977_v41, %v12122_v55  ;;  %v792_v10 = vadd.f32 %v744_v43, %v605_v1  ;;  %v608_v30 = vadd.f32 %v560_v53, %v421_v45 }
  0xce   : > { %v12124_v57 = vpop.permute.xlu1 %665  ;;  %v569_v43 = vmul.f32 %v12002_v54, %v12098_v7  ;;  %v805_v48 = vadd.f32 %v757_v16, %v618_v12  ;;  %v566_v53 = vmul.f32 %v12002_v54, %v12122_v55  ;;  %v747_v1 = vmul.f32 %v12017_v61, %v11956_v28 }
  0xcf   : > { %v751_v0 = vmul.f32 %v11987_v46, %v12124_v57  ;;  %v750_v19 = vmul.f32 %v12017_v61, %v12124_v57  ;;  %v974_v22 = vsel %vm922_vm1, %v12126_v59, 0  ;;  %v615_v58 = vadd.f32 %v567_v8, %v428_v17 }
  0xd0   : > { %9999 = vmatpush3.bf16.xpose.msra.mxu1 %v974_v22  ;;  %v857_v2 = vadd.f32 %v12047_v21, %v792_v10  ;;  %v427_v16 = vmul.f32 %v11999_v52, %v12070_v40  ;;  %v795_v17 = vadd.f32 %v747_v1, %v608_v30  ;;  %v617_v55 = vadd.f32 %v569_v43, %v430_v5 }
  0xd1   : > { %v799_v33 = vadd.f32 %v751_v0, %v612_v6  ;;  %v15972_v0 = vmov 0.0   ;;  %v798_v12 = vadd.f32 %v750_v19, %v611_v32  ;;  %v870_v10 = vadd.f32 %v12021_v62, %v805_v48 }
  0xd2   : > { %v12140_v18 = vpop.permute.xlu1 %669  ;;  %10010 = vmatprep.subr.bf16.mxu1 %v15972_v0  ;;  %v12171_v22 = vpack.c.bf16 %v857_v2, %v854_v24  ;;  %v614_v7 = vadd.f32 %v566_v53, %v427_v16  ;;  %v756_v19 = vmul.f32 %v12017_v61, %v11962_v31  ;;  %v860_v24 = vadd.f32 %v12047_v21, %v795_v17 }
  0xd3   : > { %15971 = vst [vmem:[#allocation17_spill] sm:$0xff] %v12140_v18  ;;  %v864_v45 = vadd.f32 %v12021_v62, %v799_v33  ;;  %v754_v60 = vmul.f32 %v11987_v46, %v12140_v18  ;;  %v753_v6 = vmul.f32 %v12017_v61, %v12140_v18  ;;  %v863_v32 = vadd.f32 %v12047_v21, %v798_v12 }
  0xd4   : > { %v804_v43 = vadd.f32 %v756_v19, %v617_v55  ;;  %v437_v12 = vmul.f32 %v11983_v44, %v12053_v29  ;;  %v762_v18 = vmul.f32 %v12017_v61, %v11974_v39 }
  0xd5   : > { %v12163_v33 = vpack.c.bf16 %v864_v45, %v861_v15  ;;  %v802_v8 = vadd.f32 %v754_v60, %v615_v58  ;;  %v801_v58 = vadd.f32 %v753_v6, %v614_v7  ;;  %v12192_v7 = vpack.c.bf16 %v863_v32, %v860_v24 }
  0xd6   : > { %v869_v2 = vadd.f32 %v12047_v21, %v804_v43 }
  0xd7   : > { %v12169_v14 = vpop.permute.xlu1 %342  ;;  %v867_v15 = vadd.f32 %v12021_v62, %v802_v8  ;;  %v1021_v45 = vsel %vm922_vm1, %v12163_v33, 0  ;;  %10001 = vmatmul.mubr.msk.bf16.vlgmr.msra.gmra.mxu1 %vm922_vm1, %v12171_v22  ;;  %v866_v53 = vadd.f32 %v12047_v21, %v801_v58 }
  0xd8   : > { %15973 = vst [vmem:[#allocation18_spill] sm:$0xff] %v12169_v14  ;;  %10005 = vmatpush3.bf16.xpose.msra.mxu0 %v1021_v45  ;;  %10012 = vmatprep.mubr.msk.bf16.mxu1 %vm11783_vm0, %v15972_v0  ;;  %v12223_v45 = vpop.permute.xlu0 %498 }
  0xd9   : > { %v12180_v60 = vpack.c.bf16 %v870_v10, %v867_v15  ;;  %10016 = vmatprep.subr.bf16.mxu0 %v15972_v0  ;;  %v12203_v55 = vpack.c.bf16 %v869_v2, %v866_v53  ;;  %v763_v10 = vmul.f32 %v11987_v46, %v11974_v39  ;;  %v434_v15 = vmul.f32 %v11983_v44, %v12169_v14 }
  0xda   : > { %15978 = vst [vmem:[#allocation23_spill] sm:$0xff] %v12223_v45  ;;  %v579_v53 = vmul.f32 %v11977_v41, %v12223_v45 }
  0xdb   : > { %v1068_v48 = vsel %vm922_vm1, %v12180_v60, 0 }
  0xdc   : > { %v12185_v30 = vpop.permute.xlu1 %490  ;;  %10011 = vmatpush3.bf16.xpose.msra.mxu1 %v1068_v48 }
  0xdd   : > { %15974 = vst [vmem:[#allocation19_spill] sm:$0xff] %v12185_v30  ;;  %10022 = vmatprep.subr.bf16.mxu1 %v15972_v0  ;;  %v573_v8 = vmul.f32 %v11977_v41, %v12185_v30  ;;  %v572_v43 = vmul.f32 %v12002_v54, %v12185_v30 }
  0xdf   : > { %10007 = vmatmul.mubr.msk.bf16.vlgmr.msra.gmra.mxu0 %vm922_vm1, %v12192_v7  ;;  %v621_v32 = vadd.f32 %v573_v8, %v434_v15 }
  0xe0   : > { %v12196_v1 = vpop.permute.xlu1 %494  ;;  %10018 = vmatprep.mubr.msk.bf16.mxu0 %vm11783_vm0, %v15972_v0 }
  0xe1   : > { %15975 = vst [vmem:[#allocation20_spill] sm:$0xff] %v12196_v1  ;;  %v576_v16 = vmul.f32 %v11977_v41, %v12196_v1  ;;  %v575_v48 = vmul.f32 %v12002_v54, %v12196_v1 }
  0xe3   : > { %10013 = vmatmul.mubr.msk.bf16.vlgmr.msra.gmra.mxu1 %vm922_vm1, %v12203_v55  ;;  %v624_v17 = vadd.f32 %v576_v16, %v437_v12  ;;  %v436_v16 = vmul.f32 %v11999_v52, %v12053_v29  ;;  %v433_v12 = vmul.f32 %v11999_v52, %v12169_v14 }
  0xe4   : > { %10024 = vmatprep.mubr.msk.bf16.mxu1 %vm11783_vm0, %v15972_v0 }
  0xe5   : > { %v12207_v5 = vpop.permute.xlu1 %357  ;;  %v811_v58 = vadd.f32 %v763_v10, %v624_v17  ;;  %v440_v10 = vmul.f32 %v11983_v44, %v12060_v35  ;;  %v623_v29 = vadd.f32 %v575_v48, %v436_v16 }
  0xe6   : > { %15976 = vst [vmem:[#allocation21_spill] sm:$0xff] %v12207_v5 }
  0xe7   : > { %v876_v15 = vadd.f32 %v12021_v62, %v811_v58  ;;  %v627_v30 = vadd.f32 %v579_v53, %v440_v10  ;;  %v810_v53 = vadd.f32 %v762_v18, %v623_v29  ;;  %v578_v10 = vmul.f32 %v12002_v54, %v12223_v45 }
  0xea   : > { %v12215_v6 = vpop.permute.xlu1 %502 }
  0xeb   : > { %15977 = vst [vmem:[#allocation22_spill] sm:$0xff] %v12215_v6  ;;  %v582_v1 = vmul.f32 %v11977_v41, %v12215_v6 }
  0xef   : > { %v12225_v19 = vpop.permute.xlu1 %677 }
  0xf0   : > { %15979 = vst [vmem:[#allocation24_spill] sm:$0xff] %v12225_v19  ;;  %v760_v24 = vmul.f32 %v11987_v46, %v12225_v19  ;;  %v759_v8 = vmul.f32 %v12017_v61, %v12225_v19  ;;  %v443_v19 = vmul.f32 %v11983_v44, %v12207_v5 }
  0xf2   : > { %v808_v2 = vadd.f32 %v760_v24, %v621_v32  ;;  %v620_v24 = vadd.f32 %v572_v43, %v433_v12  ;;  %v630_v43 = vadd.f32 %v582_v1, %v443_v19 }
  0xf3   : > { %v12241_v17 = vpop.permute.xlu1 %685 }
  0xf4   : > { %15980 = vst [vmem:[#allocation25_spill] sm:$0xff] %v12241_v17  ;;  %v873_v32 = vadd.f32 %v12021_v62, %v808_v2  ;;  %v766_v14 = vmul.f32 %v11987_v46, %v12241_v17  ;;  %v807_v58 = vadd.f32 %v759_v8, %v620_v24  ;;  %v581_v2 = vmul.f32 %v12002_v54, %v12215_v6 }
  0xf5   : > { %v442_v8 = vmul.f32 %v11999_v52, %v12207_v5  ;;  %v765_v29 = vmul.f32 %v12017_v61, %v12241_v17 }
  0xf6   : > { %v12253_v31 = vpack.c.bf16 %v876_v15, %v873_v32  ;;  %v814_v48 = vadd.f32 %v766_v14, %v627_v30  ;;  %v439_v14 = vmul.f32 %v11999_v52, %v12060_v35  ;;  %v872_v30 = vadd.f32 %v12047_v21, %v807_v58 }
  0xf7   : > { %v12257_v50 = vpop.permute.xlu1 %689  ;;  %v629_v18 = vadd.f32 %v581_v2, %v442_v8 }
  0xf8   : > { %15981 = vst [vmem:[#allocation26_spill] sm:$0xff] %v12257_v50  ;;  %v769_v16 = vmul.f32 %v11987_v46, %v12257_v50  ;;  %v1115_v12 = vsel %vm922_vm1, %v12253_v31, 0  ;;  %v768_v15 = vmul.f32 %v12017_v61, %v12257_v50  ;;  %v879_v1 = vadd.f32 %v12021_v62, %v814_v48 }
  0xf9   : > { %10017 = vmatpush3.bf16.xpose.msra.mxu0 %v1115_v12 }
  0xfa   : > { %v817_v32 = vadd.f32 %v769_v16, %v630_v43  ;;  %10028 = vmatprep.subr.bf16.mxu0 %v15972_v0  ;;  %v875_v43 = vadd.f32 %v12047_v21, %v810_v53  ;;  %v626_v16 = vadd.f32 %v578_v10, %v439_v14  ;;  %v816_v12 = vadd.f32 %v768_v15, %v629_v18  ;;  %v12296_v53 = vpop.permute.xlu0 %510  ;;  %v299_v15 = vld [vmem:[%s15837_s1 + $0x8] sm:$0x7] }
  0xfb   : > { %15984 = vst [vmem:[#allocation29_spill] sm:$0xff] %v12296_v53  ;;  %v393_v18 = vrot.slane %v299_v15, %v11972_v37 }
  0xfc   : > { %v882_v19 = vadd.f32 %v12021_v62, %v817_v32  ;;  %v12279_v24 = vpop.permute.xlu1 %367  ;;  %v12284_v35 = vpack.c.bf16 %v875_v43, %v872_v30  ;;  %v813_v58 = vadd.f32 %v765_v29, %v626_v16  ;;  %v881_v8 = vadd.f32 %v12047_v21, %v816_v12 }
  0xfd   : > { %15982 = vst [vmem:[#allocation27_spill] sm:$0xff] %v12279_v24  ;;  %v532_v30 = vrot.slane %v299_v15, %v11969_v36  ;;  %v12321_v16 = vrot.slane %v393_v18, %v11972_v37 }
  0xfe   : > { %v12282_v50 = vpack.c.bf16 %v882_v19, %v879_v1  ;;  %v878_v10 = vadd.f32 %v12047_v21, %v813_v58  ;;  %v12310_v29 = vpop.permute.xlu0 %514  ;;  %v719_v19 = vrot.slane %v299_v15, %v11904_v11 }
  0xff   : > { %v12318_v43 = vrot.slane %v532_v30, %v11969_v36  ;;  %v414_v36 = vmul.f32 %v12321_v16, %v12006_v56 }
 0x100   : > { %v1162_v2 = vsel %vm922_vm1, %v12282_v50, 0  ;;  %10019 = vmatmul.mubr.msk.bf16.vlgmr.msra.gmra.mxu0 %vm922_vm1, %v12284_v35  ;;  %v12302_v32 = vpack.c.bf16 %v881_v8, %v878_v10  ;;  %v411_v8 = vmul.f32 %v12321_v16, %v11989_v47  ;;  %v446_v10 = vmul.f32 %v11983_v44, %v12066_v38 }
 0x101   : > { %10023 = vmatpush3.bf16.xpose.msra.mxu1 %v1162_v2  ;;  %v12290_v48 = vpop.permute.xlu1 %506  ;;  %10030 = vmatprep.mubr.msk.bf16.mxu0 %vm11783_vm0, %v15972_v0  ;;  %v12328_v2 = vrot.slane %v719_v19, %v11904_v11  ;;  %v550_v11 = vmul.f32 %v12318_v43, %v11949_v25  ;;  %v449_v47 = vmul.f32 %v11983_v44, %v12279_v24 }
 0x102   : > { %15983 = vst [vmem:[#allocation28_spill] sm:$0xff] %v12290_v48  ;;  %10034 = vmatprep.subr.bf16.mxu1 %v15972_v0  ;;  %15985 = vst [vmem:[#allocation30_spill] sm:$0xff] %v12302_v32  ;;  %v585_v12 = vmul.f32 %v11977_v41, %v12290_v48  ;;  %v12325_v58 = vpop.permute.xlu0 %693  ;;  %v553_v56 = vmul.f32 %v12318_v43, %v11954_v27  ;;  %v588_v25 = vmul.f32 %v11977_v41, %v12296_v53 }
 0x103   : > { %v772_v19 = vmul.f32 %v11987_v46, %v12325_v58  ;;  %v740_v5 = vmul.f32 %v12328_v2, %v11951_v26  ;;  %v598_v45 = vadd.f32 %v550_v11, %v411_v8  ;;  %v737_v39 = vmul.f32 %v12328_v2, %v11996_v51 }
 0x104   : > { %v633_v18 = vadd.f32 %v585_v12, %v446_v10  ;;  %v601_v6 = vadd.f32 %v553_v56, %v414_v36  ;;  %v448_v12 = vmul.f32 %v11999_v52, %v12279_v24  ;;  %v584_v26 = vmul.f32 %v12002_v54, %v12290_v48 }
 0x105   : > { %v417_v36 = vmul.f32 %v12321_v16, %v12029_v4  ;;  %v445_v11 = vmul.f32 %v11999_v52, %v12066_v38  ;;  %v771_v4 = vmul.f32 %v12017_v61, %v12325_v58 }
 0x106   : > { %v12304_v14 = vpop.permute.xlu1 %372  ;;  %v12348_v17 = vpop.permute.xlu0 %705  ;;  %v820_v8 = vadd.f32 %v772_v19, %v633_v18  ;;  %v591_v18 = vmul.f32 %v11977_v41, %v12310_v29 }
 0x107   : > { %v781_v27 = vmul.f32 %v11987_v46, %v12348_v17  ;;  %v632_v48 = vadd.f32 %v584_v26, %v445_v11 }
 0x108   : > { %10025 = vmatmul.mubr.msk.bf16.vlgmr.msra.gmra.mxu1 %vm922_vm1, %v12302_v32  ;;  %v636_v32 = vadd.f32 %v588_v25, %v449_v47  ;;  %v587_v47 = vmul.f32 %v12002_v54, %v12296_v53 }
 0x109   : > { %10036 = vmatprep.mubr.msk.bf16.mxu1 %vm11783_vm0, %v15972_v0  ;;  %v819_v11 = vadd.f32 %v771_v4, %v632_v48 }
 0x10a   : > { %v12314_v1 = vpop.permute.xlu1 %377  ;;  %v635_v53 = vadd.f32 %v587_v47, %v448_v12  ;;  %v780_v12 = vmul.f32 %v12017_v61, %v12348_v17  ;;  %v420_v47 = vmul.f32 %v12321_v16, %v11966_v34 }
 0x10b   : > { %15986 = vst [vmem:[#allocation31_spill] sm:$0xff] %v12314_v1  ;;  %v455_v37 = vmul.f32 %v11983_v44, %v12314_v1  ;;  %v454_v25 = vmul.f32 %v11999_v52, %v12314_v1  ;;  %v884_v34 = vadd.f32 %v12047_v21, %v819_v11 }
 0x10f   : > { %v12334_v15 = vpop.permute.xlu1 %518 }
 0x110   : > { %15987 = vst [vmem:[#allocation32_spill] sm:$0xff] %v12334_v15  ;;  %v594_v30 = vmul.f32 %v11977_v41, %v12334_v15  ;;  %v885_v41 = vadd.f32 %v12021_v62, %v820_v8 }
 0x112   : > { %v642_v10 = vadd.f32 %v594_v30, %v455_v37  ;;  %v556_v37 = vmul.f32 %v12318_v43, %v12078_v49  ;;  %v452_v30 = vmul.f32 %v11983_v44, %v12304_v14  ;;  %v593_v49 = vmul.f32 %v12002_v54, %v12334_v15 }
 0x113   : > { %v590_v15 = vmul.f32 %v12002_v54, %v12310_v29 }
 0x114   : > { %v12360_v40 = vpop.permute.xlu1 %697  ;;  %v829_v44 = vadd.f32 %v781_v27, %v642_v10  ;;  %v641_v26 = vadd.f32 %v593_v49, %v454_v25 }
 0x115   : > { %15988 = vst [vmem:[#allocation33_spill] sm:$0xff] %v12360_v40  ;;  %v775_v51 = vmul.f32 %v11987_v46, %v12360_v40  ;;  %v774_v19 = vmul.f32 %v12017_v61, %v12360_v40  ;;  %v788_v40 = vadd.f32 %v740_v5, %v601_v6  ;;  %v559_v6 = vmul.f32 %v12318_v43, %v11979_v42 }
 0x116   : > { %v894_v8 = vadd.f32 %v12021_v62, %v829_v44 }
 0x117   : > { %v823_v56 = vadd.f32 %v775_v51, %v636_v32  ;;  %v451_v32 = vmul.f32 %v11999_v52, %v12304_v14  ;;  %v639_v51 = vadd.f32 %v591_v18, %v452_v30  ;;  %v822_v10 = vadd.f32 %v774_v19, %v635_v53 }
 0x118   : > { %v12388_v38 = vpop.permute.xlu1 %701  ;;  %v853_v48 = vadd.f32 %v11914_v13, %v788_v40 }
 0x119   : > { %v888_v24 = vadd.f32 %v12021_v62, %v823_v56  ;;  %v778_v1 = vmul.f32 %v11987_v46, %v12388_v38  ;;  %v777_v5 = vmul.f32 %v12017_v61, %v12388_v38  ;;  %v604_v46 = vadd.f32 %v556_v37, %v417_v36 }
 0x11a   : > { %v638_v53 = vadd.f32 %v590_v15, %v451_v32  ;;  %v743_v61 = vmul.f32 %v12328_v2, %v12023_v63  ;;  %v887_v42 = vadd.f32 %v12047_v21, %v822_v10  ;;  %v12459_v10 = vld [vmem:[%s15841_s5 + $0x8] sm:$0xff] }
 0x11b   : > { %v12398_v27 = vpack.c.bf16 %v888_v24, %v885_v41  ;;  %v826_v52 = vadd.f32 %v778_v1, %v639_v51  ;;  %v785_v24 = vadd.f32 %v737_v39, %v598_v45  ;;  %v746_v1 = vmul.f32 %v12328_v2, %v12035_v9 }
 0x11c   : > { %v828_v39 = vadd.f32 %v780_v12, %v641_v26  ;;  %v825_v45 = vadd.f32 %v777_v5, %v638_v53  ;;  %v791_v36 = vadd.f32 %v743_v61, %v604_v46  ;;  %v12425_v18 = vpack.c.bf16 %v887_v42, %v884_v34 }
 0x11d   : > { %v1209_v54 = vsel %vm922_vm1, %v12398_v27, 0  ;;  %v891_v30 = vadd.f32 %v12021_v62, %v826_v52  ;;  %v607_v62 = vadd.f32 %v559_v6, %v420_v47  ;;  %v850_v37 = vadd.f32 %v11914_v13, %v785_v24 }
 0x11e   : > { %10029 = vmatpush3.bf16.xpose.msra.mxu0 %v1209_v54  ;;  %v893_v40 = vadd.f32 %v12047_v21, %v828_v39  ;;  %v890_v56 = vadd.f32 %v12047_v21, %v825_v45  ;;  %v856_v4 = vadd.f32 %v11914_v13, %v791_v36  ;;  %v12453_v21 = vld [vmem:[%s15841_s5] sm:$0xff] }
 0x11f   : > { %10040 = vmatprep.subr.bf16.mxu0 %v15972_v0  ;;  %v12419_v15 = vpack.c.bf16 %v894_v8, %v891_v30  ;;  %v794_v9 = vadd.f32 %v746_v1, %v607_v62  ;;  %v12427_v19 = vpack.c.bf16 %v853_v48, %v850_v37 }
 0x120   : > { %v12440_v49 = vpack.c.bf16 %v893_v40, %v890_v56 }
 0x121   : > { %v1256_v63 = vsel %vm922_vm1, %v12419_v15, 0  ;;  %15989 = vst [vmem:[#allocation34_spill] sm:$0xff] %v12427_v19  ;;  %v859_v25 = vadd.f32 %v11914_v13, %v794_v9 }
 0x122   : > { %10035 = vmatpush3.bf16.xpose.msra.mxu1 %v1256_v63  ;;  %15990 = vst [vmem:[#allocation35_spill] sm:$0xff] %v12440_v49 }
 0x123   : > { %10046 = vmatprep.subr.bf16.mxu1 %v15972_v0  ;;  %v12442_v44 = vpack.c.bf16 %v859_v25, %v856_v4 }
 0x125   : > { %10031 = vmatmul.mubr.msk.bf16.vlgmr.msra.gmra.mxu0 %vm922_vm1, %v12425_v18  ;;  %15991 = vst [vmem:[#allocation36_spill] sm:$0xff] %v12442_v44 }
 0x126   : > { %10041 = vmatpush3.bf16.msra.mxu0 %v12427_v19  ;;  %10042 = vmatprep.mubr.msk.bf16.mxu0 %vm11783_vm0, %v15972_v0 }
 0x127   : > { %10052 = vmatprep.subr.bf16.mxu0 %v15972_v0 }
 0x129   : > { %10037 = vmatmul.mubr.msk.bf16.vlgmr.msra.gmra.mxu1 %vm922_vm1, %v12440_v49 }
 0x12a   : > { %10047 = vmatpush3.bf16.msra.mxu1 %v12442_v44  ;;  %10048 = vmatprep.mubr.msk.bf16.mxu1 %vm11783_vm0, %v15972_v0 }
 0x12b   : > { %10058 = vmatprep.subr.bf16.mxu1 %v15972_v0 }
 0x17e   : > { %v963_v41 = vpop.f32.mrf.mxu0 }
 0x17f   : > { %v964_v32 = vadd.f32 %v963_v41, %v12453_v21 }
 0x180   : > { %v9996_v51 = vpop.f32.mrf.mxu0 }
 0x181   : > { %v12461_v12 = vmul.f32 0.25, %v964_v32 }
 0x182   : > { %v966_v26 = vpop.f32.mrf.mxu0 }
 0x183   : > { %v967_v8 = vadd.f32 %v966_v26, %v12459_v10  ;;  %v1315_v5 = vsel %vm922_vm1, %v12461_v12, -inf }
 0x184   : > { %1316 = vmax.xlane.f32.xlu1 %v1315_v5  ;;  %v9997_v52 = vpop.f32.mrf.mxu0 }
 0x185   : > { %v12466_v6 = vmul.f32 0.25, %v967_v8 }
 0x187   : > { %v1318_v46 = vsel %vm922_vm1, %v12466_v6, -inf }
 0x188   : > { %1319 = vmax.xlane.f32.xlu0 %v1318_v46 }
 0x197   : > { %v1010_v11 = vpop.f32.mrf.mxu1 }
 0x198   : > { %v1011_v54 = vadd.f32 %v1010_v11, %v12453_v21 }
 0x199   : > { %v10002_v24 = vpop.f32.mrf.mxu1 }
 0x19a   : > { %v12471_v53 = vmul.f32 0.25, %v1011_v54 }
 0x19b   : > { %v1013_v30 = vpop.f32.mrf.mxu1 }
 0x19c   : > { %v1014_v47 = vadd.f32 %v1013_v30, %v12459_v10  ;;  %v1321_v61 = vsel %vm922_vm1, %v12471_v53, -inf }
 0x19d   : > { %1322 = vmax.xlane.f32.xlu0 %v1321_v61  ;;  %v10003_v1 = vpop.f32.mrf.mxu1 }
 0x19e   : > { %v12476_v48 = vmul.f32 0.25, %v1014_v47 }
 0x19f   : > { %v1057_v42 = vpop.f32.mrf.mxu0 }
 0x1a0   : > { %v1058_v39 = vadd.f32 %v1057_v42, %v12453_v21  ;;  %v1324_v36 = vsel %vm922_vm1, %v12476_v48, -inf }
 0x1a1   : > { %v10008_v45 = vpop.f32.mrf.mxu0  ;;  %1325 = vmax.xlane.f32.xlu1 %v1324_v36 }
 0x1a2   : > { %v12479_v62 = vmul.f32 0.25, %v1058_v39 }
 0x1a3   : > { %v1060_v34 = vpop.f32.mrf.mxu0  ;;  %v1104_v37 = vpop.f32.mrf.mxu1 }
 0x1a4   : > { %v1061_v63 = vadd.f32 %v1060_v34, %v12459_v10  ;;  %v1105_v9 = vadd.f32 %v1104_v37, %v12453_v21  ;;  %v1327_v40 = vsel %vm922_vm1, %v12479_v62, -inf }
 0x1a5   : > { %1328 = vmax.xlane.f32.xlu0 %v1327_v40  ;;  %v10009_v56 = vpop.f32.mrf.mxu0  ;;  %v10014_v4 = vpop.f32.mrf.mxu1 }
 0x1a6   : > { %v12487_v25 = vmul.f32 0.25, %v1061_v63  ;;  %v12489_v41 = vmul.f32 0.25, %v1105_v9 }
 0x1a7   : > { %v1107_v32 = vpop.f32.mrf.mxu1 }
 0x1a8   : > { %v1108_v51 = vadd.f32 %v1107_v32, %v12459_v10  ;;  %v1330_v26 = vsel %vm922_vm1, %v12487_v25, -inf  ;;  %v1333_v8 = vsel %vm922_vm1, %v12489_v41, -inf }
 0x1a9   : > { %1331 = vmax.xlane.f32.xlu1 %v1330_v26  ;;  %1334 = vmax.xlane.f32.xlu0 %v1333_v8  ;;  %v10015_v5 = vpop.f32.mrf.mxu1 }
 0x1aa   : > { %v12496_v52 = vmul.f32 0.25, %v1108_v51 }
 0x1ac   : > { %v1336_v46 = vsel %vm922_vm1, %v12496_v52, -inf }
 0x1ad   : > { %1337 = vmax.xlane.f32.xlu1 %v1336_v46 }
 0x1c0   : > { %v1151_v11 = vpop.f32.mrf.mxu0 }
 0x1c1   : > { %v1152_v54 = vadd.f32 %v1151_v11, %v12453_v21 }
 0x1c2   : > { %v10020_v24 = vpop.f32.mrf.mxu0 }
 0x1c3   : > { %v12501_v30 = vmul.f32 0.25, %v1152_v54 }
 0x1c4   : > { %v1154_v47 = vpop.f32.mrf.mxu0 }
 0x1c5   : > { %v1155_v61 = vadd.f32 %v1154_v47, %v12459_v10  ;;  %v1339_v1 = vsel %vm922_vm1, %v12501_v30, -inf }
 0x1c6   : > { %1340 = vmax.xlane.f32.xlu0 %v1339_v1  ;;  %v10021_v42 = vpop.f32.mrf.mxu0 }
 0x1c7   : > { %v12506_v39 = vmul.f32 0.25, %v1155_v61 }
 0x1c8   : > { %v1198_v45 = vpop.f32.mrf.mxu1 }
 0x1c9   : > { %v1199_v36 = vadd.f32 %v1198_v45, %v12453_v21  ;;  %v1342_v34 = vsel %vm922_vm1, %v12506_v39, -inf }
 0x1ca   : > { %v10026_v37 = vpop.f32.mrf.mxu1  ;;  %1343 = vmax.xlane.f32.xlu1 %v1342_v34 }
 0x1cb   : > { %v12511_v63 = vmul.f32 0.25, %v1199_v36 }
 0x1cc   : > { %v1201_v9 = vpop.f32.mrf.mxu1 }
 0x1cd   : > { %v1202_v40 = vadd.f32 %v1201_v9, %v12459_v10  ;;  %v1345_v56 = vsel %vm922_vm1, %v12511_v63, -inf }
 0x1ce   : > { %1346 = vmax.xlane.f32.xlu0 %v1345_v56  ;;  %v10027_v4 = vpop.f32.mrf.mxu1 }
 0x1cf   : > { %v12516_v32 = vmul.f32 0.25, %v1202_v40 }
 0x1d1   : > { %v1348_v51 = vsel %vm922_vm1, %v12516_v32, -inf }
 0x1d2   : > { %1349 = vmax.xlane.f32.xlu1 %v1348_v51 }
 0x1e5   : > { %v1245_v26 = vpop.f32.mrf.mxu0 }
 0x1e6   : > { %v1246_v8 = vadd.f32 %v1245_v26, %v12453_v21 }
 0x1e7   : > { %v10032_v5 = vpop.f32.mrf.mxu0 }
 0x1e8   : > { %v12521_v46 = vmul.f32 0.25, %v1246_v8 }
 0x1e9   : > { %v1248_v11 = vpop.f32.mrf.mxu0  ;;  %v1292_v24 = vpop.f32.mrf.mxu1 }
 0x1ea   : > { %v1249_v54 = vadd.f32 %v1248_v11, %v12459_v10  ;;  %v1351_v47 = vsel %vm922_vm1, %v12521_v46, -inf  ;;  %v1293_v61 = vadd.f32 %v1292_v24, %v12453_v21 }
 0x1eb   : > { %1352 = vmax.xlane.f32.xlu0 %v1351_v47  ;;  %v10033_v1 = vpop.f32.mrf.mxu0  ;;  %v10038_v45 = vpop.f32.mrf.mxu1 }
 0x1ec   : > { %v12527_v42 = vmul.f32 0.25, %v1249_v54  ;;  %v12529_v36 = vmul.f32 0.25, %v1293_v61 }
 0x1ed   : > { %v1295_v34 = vpop.f32.mrf.mxu1 }
 0x1ee   : > { %v1354_v37 = vsel %vm922_vm1, %v12527_v42, -inf  ;;  %v1296_v9 = vadd.f32 %v1295_v34, %v12459_v10  ;;  %v1357_v40 = vsel %vm922_vm1, %v12529_v36, -inf }
 0x1ef   : > { %1355 = vmax.xlane.f32.xlu1 %v1354_v37  ;;  %1358 = vmax.xlane.f32.xlu0 %v1357_v40  ;;  %v10039_v56 = vpop.f32.mrf.mxu1 }
 0x1f0   : > { %v12536_v4 = vmul.f32 0.25, %v1296_v9 }
 0x1f2   : > { %v1360_v51 = vsel %vm922_vm1, %v12536_v4, -inf }
 0x1f3   : > { %1361 = vmax.xlane.f32.xlu1 %v1360_v51 }
 0x20d   : > { %v1317_v26 = vpop.xlane.xlu1 %1316 }
 0x20e   : > { %v1363_v8 = vsub.f32 %v12461_v12, %v1317_v26 }
 0x210   : > { %v1379_v5 = vmul.f32 1.442695, %v1363_v8 }
 0x211   : > { %v1320_v11 = vpop.xlane.xlu0 %1319 }
 0x212   : > { %11180 = vpow2.f32 %v1379_v5  ;;  %v1364_v54 = vsub.f32 %v12466_v6, %v1320_v11 }
 0x214   : > { %v1381_v24 = vmul.f32 1.442695, %v1364_v54 }
 0x216   : > { %11182 = vpow2.f32 %v1381_v24 }
 0x21f   : > { %v12542_v47 = vpop.eup %11180 }
 0x220   : > { %v1411_v61 = vsel %vm922_vm1, %v12542_v47, 0.0 }
 0x221   : > { %1412 = vadd.xlane.f32.xlu0 %v1411_v61 }
 0x223   : > { %v12546_v1 = vpop.eup %11182 }
 0x224   : > { %v1414_v45 = vsel %vm922_vm1, %v12546_v1, 0.0 }
 0x225   : > { %1415 = vadd.xlane.f32.xlu1 %v1414_v45 }
 0x226   : > { %v1323_v12 = vpop.xlane.xlu0 %1322 }
 0x227   : > { %v1365_v34 = vsub.f32 %v12471_v53, %v1323_v12 }
 0x229   : > { %v1383_v37 = vmul.f32 1.442695, %v1365_v34 }
 0x22a   : > { %v1326_v9 = vpop.xlane.xlu1 %1325 }
 0x22b   : > { %11184 = vpow2.f32 %v1383_v37  ;;  %v1366_v6 = vsub.f32 %v12476_v48, %v1326_v9 }
 0x22d   : > { %v1385_v56 = vmul.f32 1.442695, %v1366_v6 }
 0x22e   : > { %v1329_v40 = vpop.xlane.xlu0 %1328 }
 0x22f   : > { %v1367_v51 = vsub.f32 %v12479_v62, %v1329_v40  ;;  %11186 = vpow2.f32 %v1385_v56 }
 0x231   : > { %v1387_v26 = vmul.f32 1.442695, %v1367_v51 }
 0x232   : > { %v1335_v8 = vpop.xlane.xlu0 %1334  ;;  %v1332_v5 = vpop.xlane.xlu1 %1331 }
 0x233   : > { %11188 = vpow2.f32 %v1387_v26  ;;  %v1369_v11 = vsub.f32 %v12489_v41, %v1335_v8  ;;  %v1368_v54 = vsub.f32 %v12487_v25, %v1332_v5 }
 0x235   : > { %v1391_v24 = vmul.f32 1.442695, %v1369_v11  ;;  %v1389_v53 = vmul.f32 1.442695, %v1368_v54 }
 0x236   : > { %v1338_v61 = vpop.xlane.xlu1 %1337 }
 0x237   : > { %11190 = vpow2.f32 %v1391_v24  ;;  %v1370_v45 = vsub.f32 %v12496_v52, %v1338_v61 }
 0x238   : > { %11192 = vpow2.f32 %v1389_v53  ;;  %v12556_v12 = vpop.eup %11184 }
 0x239   : > { %v1393_v48 = vmul.f32 1.442695, %v1370_v45  ;;  %v1417_v62 = vsel %vm922_vm1, %v12556_v12, 0.0 }
 0x23a   : > { %1418 = vadd.xlane.f32.xlu0 %v1417_v62 }
 0x23b   : > { %11194 = vpow2.f32 %v1393_v48 }
 0x23c   : > { %v12560_v34 = vpop.eup %11186 }
 0x23d   : > { %v1420_v25 = vsel %vm922_vm1, %v12560_v34, 0.0 }
 0x23e   : > { %1421 = vadd.xlane.f32.xlu1 %v1420_v25 }
 0x240   : > { %v12564_v41 = vpop.eup %11188 }
 0x241   : > { %v1423_v52 = vsel %vm922_vm1, %v12564_v41, 0.0 }
 0x242   : > { %1424 = vadd.xlane.f32.xlu0 %v1423_v52 }
 0x244   : > { %v12568_v37 = vpop.eup %11190 }
 0x245   : > { %v12570_v9 = vpop.eup %11192  ;;  %v1429_v6 = vsel %vm922_vm1, %v12568_v37, 0.0 }
 0x246   : > { %1430 = vadd.xlane.f32.xlu0 %v1429_v6  ;;  %v1426_v40 = vsel %vm922_vm1, %v12570_v9, 0.0 }
 0x247   : > { %1427 = vadd.xlane.f32.xlu1 %v1426_v40 }
 0x248   : > { %v12576_v56 = vpop.eup %11194 }
 0x249   : > { %v1432_v51 = vsel %vm922_vm1, %v12576_v56, 0.0 }
 0x24b   : > { %1433 = vadd.xlane.f32.xlu1 %v1432_v51 }
 0x24f   : > { %v1341_v26 = vpop.xlane.xlu0 %1340 }
 0x250   : > { %v1371_v8 = vsub.f32 %v12501_v30, %v1341_v26 }
 0x252   : > { %v1395_v5 = vmul.f32 1.442695, %v1371_v8 }
 0x253   : > { %v1344_v11 = vpop.xlane.xlu1 %1343 }
 0x254   : > { %11196 = vpow2.f32 %v1395_v5  ;;  %v1372_v54 = vsub.f32 %v12506_v39, %v1344_v11 }
 0x256   : > { %v1397_v24 = vmul.f32 1.442695, %v1372_v54 }
 0x257   : > { %v1347_v53 = vpop.xlane.xlu0 %1346 }
 0x258   : > { %v1373_v61 = vsub.f32 %v12511_v63, %v1347_v53  ;;  %11198 = vpow2.f32 %v1397_v24 }
 0x25a   : > { %v1399_v45 = vmul.f32 1.442695, %v1373_v61 }
 0x25b   : > { %v1350_v48 = vpop.xlane.xlu1 %1349 }
 0x25c   : > { %11200 = vpow2.f32 %v1399_v45  ;;  %v1374_v62 = vsub.f32 %v12516_v32, %v1350_v48 }
 0x25e   : > { %v1401_v25 = vmul.f32 1.442695, %v1374_v62 }
 0x260   : > { %11202 = vpow2.f32 %v1401_v25 }
 0x261   : > { %v12584_v52 = vpop.eup %11196 }
 0x262   : > { %v1435_v30 = vsel %vm922_vm1, %v12584_v52, 0.0 }
 0x263   : > { %1436 = vadd.xlane.f32.xlu0 %v1435_v30 }
 0x265   : > { %v12588_v6 = vpop.eup %11198 }
 0x266   : > { %v1438_v39 = vsel %vm922_vm1, %v12588_v6, 0.0 }
 0x267   : > { %1439 = vadd.xlane.f32.xlu1 %v1438_v39 }
 0x269   : > { %v12592_v63 = vpop.eup %11200 }
 0x26a   : > { %v1441_v40 = vsel %vm922_vm1, %v12592_v63, 0.0 }
 0x26b   : > { %1442 = vadd.xlane.f32.xlu0 %v1441_v40 }
 0x26d   : > { %v12596_v32 = vpop.eup %11202 }
 0x26e   : > { %v1444_v51 = vsel %vm922_vm1, %v12596_v32, 0.0 }
 0x26f   : > { %1445 = vadd.xlane.f32.xlu1 %v1444_v51 }
 0x274   : > { %v1353_v26 = vpop.xlane.xlu0 %1352 }
 0x275   : > { %v1375_v8 = vsub.f32 %v12521_v46, %v1353_v26 }
 0x277   : > { %v1403_v5 = vmul.f32 1.442695, %v1375_v8 }
 0x278   : > { %v1359_v11 = vpop.xlane.xlu0 %1358  ;;  %v1356_v61 = vpop.xlane.xlu1 %1355 }
 0x279   : > { %11204 = vpow2.f32 %v1403_v5  ;;  %v1377_v54 = vsub.f32 %v12529_v36, %v1359_v11  ;;  %v1376_v46 = vsub.f32 %v12527_v42, %v1356_v61  ;;  %v15992_v5 = vld [vmem:[#allocation7_spill] sm:$0xff]  ;;  %v565_v61 = vmul.f32 %v12318_v43, %v12096_v3 }
 0x27a   : > { %v423_v11 = vmul.f32 %v12321_v16, %v15992_v5  ;;  %v15994_v3 = vld [vmem:[#allocation11_spill] sm:$0xff] }
 0x27b   : > { %v1407_v24 = vmul.f32 1.442695, %v1377_v54  ;;  %v1405_v25 = vmul.f32 1.442695, %v1376_v46  ;;  %v15993_v54 = vld [vmem:[#allocation9_spill] sm:$0xff]  ;;  %v752_v46 = vmul.f32 %v12328_v2, %v12124_v57 }
 0x27c   : > { %v1362_v62 = vpop.xlane.xlu1 %1361 }
 0x27d   : > { %11206 = vpow2.f32 %v1407_v24  ;;  %v1378_v30 = vsub.f32 %v12536_v4, %v1362_v62  ;;  %v562_v24 = vmul.f32 %v12318_v43, %v15993_v54  ;;  %v15996_v54 = vld [vmem:[#allocation30_spill] sm:$0xff] }
 0x27e   : > { %11208 = vpow2.f32 %v1405_v25  ;;  %v749_v25 = vmul.f32 %v12328_v2, %v11956_v28 }
 0x27f   : > { %v1409_v39 = vmul.f32 1.442695, %v1378_v30  ;;  %v610_v62 = vadd.f32 %v562_v24, %v423_v11  ;;  %v15997_v24 = vld [vmem:[#allocation15_spill] sm:$0xff] }
 0x280   : > { %1908 = vrot.lane.b32.xlu1 %v12126_v59, %s11784_s12 }
 0x281   : > { %11210 = vpow2.f32 %v1409_v39 }
 0x286   : > { %v12604_v53 = vpop.eup %11204 }
 0x287   : > { %v1447_v45 = vsel %vm922_vm1, %v12604_v53, 0.0 }
 0x288   : > { %1448 = vadd.xlane.f32.xlu0 %v1447_v45  ;;  %v426_v45 = vmul.f32 %v12321_v16, %v12049_v23 }
 0x28a   : > { %v12608_v48 = vpop.eup %11206 }
 0x28b   : > { %v1453_v36 = vsel %vm922_vm1, %v12608_v48, 0.0  ;;  %v12614_v40 = vpop.eup %11208 }
 0x28c   : > { %1454 = vadd.xlane.f32.xlu0 %v1453_v36  ;;  %v1450_v51 = vsel %vm922_vm1, %v12614_v40, 0.0  ;;  %v613_v36 = vadd.f32 %v565_v61, %v426_v45  ;;  %v571_v61 = vmul.f32 %v12318_v43, %v15997_v24  ;;  %v15998_v45 = vld [vmem:[#allocation16_spill] sm:$0xff] }
 0x28e   : > { %v12620_v42 = vpop.eup %11210  ;;  %v800_v30 = vadd.f32 %v752_v46, %v613_v36  ;;  %v568_v46 = vmul.f32 %v12318_v43, %v15998_v45 }
 0x28f   : > { %v1456_v4 = vsel %vm922_vm1, %v12620_v42, 0.0 }
 0x290   : > { %v865_v57 = vadd.f32 %v11914_v13, %v800_v30 }
 0x2a2   : > { %1855 = vrot.lane.b32.xlu0 %v12043_v20, %s11784_s12 }
 0x2a4   : > { %1451 = vadd.xlane.f32.xlu1 %v1450_v51  ;;  %v797_v51 = vadd.f32 %v749_v25, %v610_v62  ;;  %v15999_v62 = vld [vmem:[#allocation13_spill] sm:$0xff]  ;;  %v16000_v25 = vld [vmem:[#allocation14_spill] sm:$0xff] }
 0x2a5   : > { %v429_v36 = vmul.f32 %v12321_v16, %v15999_v62  ;;  %v432_v30 = vmul.f32 %v12321_v16, %v16000_v25 }
 0x2a6   : > { %1961 = vrot.lane.b32.xlu0 %v12163_v33, %s11784_s12  ;;  %v862_v28 = vadd.f32 %v11914_v13, %v797_v51 }
 0x2a8   : > { %1457 = vadd.xlane.f32.xlu1 %v1456_v4  ;;  %v12658_v5 = vpack.c.bf16 %v865_v57, %v862_v28  ;;  %v16002_v28 = vld [vmem:[#allocation5_spill] sm:$0xff] }
 0x2aa   : > { %v1413_v26 = vpop.xlane.xlu0 %1412  ;;  %2014 = vrot.lane.b32.xlu0 %v12180_v60, %s11784_s12  ;;  %15995 = vst [vmem:[#allocation7_spill] sm:$0xff] %v12658_v5 }
 0x2ab   : > { %11212 = vrcp.f32 %v1413_v26 }
 0x2ae   : > { %v1416_v8 = vpop.xlane.xlu1 %1415  ;;  %2067 = vrot.lane.b32.xlu0 %v12253_v31, %s11784_s12 }
 0x2af   : > { %11214 = vrcp.f32 %v1416_v8 }
 0x2b2   : > { %2120 = vrot.lane.b32.xlu0 %v12282_v50, %s11784_s12 }
 0x2b6   : > { %2173 = vrot.lane.b32.xlu0 %v12398_v27, %s11784_s12 }
 0x2b8   : > { %v11213_v39 = vpop.eup %11212 }
 0x2b9   : > { %1852 = vrot.lane.b32.xlu1 %v15994_v3, %s11784_s12  ;;  %v1475_v4 = vmul.f32 %v11213_v39, %v12542_v47  ;;  %v16001_v39 = vld [vmem:[#allocation17_spill] sm:$0xff] }
 0x2ba   : > { %2226 = vrot.lane.b32.xlu0 %v12419_v15, %s11784_s12  ;;  %v755_v51 = vmul.f32 %v12328_v2, %v16001_v39 }
 0x2bc   : > { %v11215_v23 = vpop.eup %11214 }
 0x2bd   : > { %1905 = vrot.lane.b32.xlu1 %v12171_v22, %s11784_s12  ;;  %v1476_v26 = vmul.f32 %v11215_v23, %v12546_v1 }
 0x2be   : > { %2223 = vrot.lane.b32.xlu0 %v12440_v49, %s11784_s12 }
 0x2bf   : > { %v1491_v8 = vpack.c.bf16 %v1476_v26, %v1475_v4  ;;  %v619_v4 = vadd.f32 %v571_v61, %v432_v30  ;;  %v616_v26 = vadd.f32 %v568_v46, %v429_v36  ;;  %v16005_v61 = vld [vmem:[#allocation18_spill] sm:$0xff]  ;;  %v16006_v36 = vld [vmem:[#allocation8_spill] sm:$0xff] }
 0x2c0   : > { %v435_v46 = vmul.f32 %v12321_v16, %v16005_v61  ;;  %v438_v30 = vmul.f32 %v12321_v16, %v16006_v36  ;;  %v16009_v61 = vld [vmem:[#allocation6_spill] sm:$0xff] }
 0x2c1   : > { %1958 = vrot.lane.b32.xlu1 %v12192_v7, %s11784_s12  ;;  %10043 = vmatmul.mubr.msk.bf16.vlgmr.msra.gmra.mxu0 %vm922_vm1, %v1491_v8  ;;  %v758_v8 = vmul.f32 %v12328_v2, %v16002_v28  ;;  %v764_v36 = vmul.f32 %v12328_v2, %v16009_v61 }
 0x2c2   : > { %10053 = vmatpush3.bf16.msra.mxu0 %v12658_v5  ;;  %10054 = vmatprep.mubr.msk.bf16.mxu0 %vm11783_vm0, %v15972_v0 }
 0x2c3   : > { %2476 = vrot.lane.b32.xlu0 %v12427_v19, %s11784_s12  ;;  %10064 = vmatprep.subr.bf16.mxu0 %v15972_v0  ;;  %v1419_v47 = vpop.xlane.xlu0 %1418  ;;  %v806_v39 = vadd.f32 %v758_v8, %v619_v4  ;;  %v16010_v19 = vld [vmem:[#allocation23_spill] sm:$0xff] }
 0x2c4   : > { %11216 = vrcp.f32 %v1419_v47  ;;  %v803_v47 = vadd.f32 %v755_v51, %v616_v26  ;;  %v16007_v51 = vld [vmem:[#allocation24_spill] sm:$0xff] }
 0x2c5   : > { %2011 = vrot.lane.b32.xlu1 %v12203_v55, %s11784_s12 }
 0x2c6   : > { %v868_v26 = vadd.f32 %v11914_v13, %v803_v47  ;;  %v580_v47 = vmul.f32 %v12318_v43, %v16010_v19 }
 0x2c7   : > { %v1422_v1 = vpop.xlane.xlu1 %1421 }
 0x2c8   : > { %11218 = vrcp.f32 %v1422_v1  ;;  %v16003_v1 = vld [vmem:[#allocation19_spill] sm:$0xff] }
 0x2c9   : > { %2064 = vrot.lane.b32.xlu1 %v12284_v35, %s11784_s12  ;;  %v574_v24 = vmul.f32 %v12318_v43, %v16003_v1 }
 0x2cb   : > { %v1425_v11 = vpop.xlane.xlu0 %1424  ;;  %v622_v28 = vadd.f32 %v574_v24, %v435_v46  ;;  %v16011_v24 = vld [vmem:[#allocation21_spill] sm:$0xff] }
 0x2cc   : > { %11220 = vrcp.f32 %v1425_v11  ;;  %v16004_v11 = vld [vmem:[#allocation20_spill] sm:$0xff]  ;;  %v444_v46 = vmul.f32 %v12321_v16, %v16011_v24 }
 0x2cd   : > { %2117 = vrot.lane.b32.xlu1 %v15996_v54, %s11784_s12  ;;  %v577_v45 = vmul.f32 %v12318_v43, %v16004_v11  ;;  %v16008_v11 = vld [vmem:[#allocation22_spill] sm:$0xff] }
 0x2ce   : > { %v583_v4 = vmul.f32 %v12318_v43, %v16008_v11 }
 0x2cf   : > { %v1431_v23 = vpop.xlane.xlu0 %1430  ;;  %v625_v1 = vadd.f32 %v577_v45, %v438_v30  ;;  %v16012_v45 = vld [vmem:[#allocation26_spill] sm:$0xff] }
 0x2d0   : > { %v1428_v57 = vpop.xlane.xlu1 %1427  ;;  %v770_v30 = vmul.f32 %v12328_v2, %v16012_v45  ;;  %v631_v61 = vadd.f32 %v583_v4, %v444_v46 }
 0x2d1   : > { %2170 = vrot.lane.b32.xlu1 %v12425_v18, %s11784_s12  ;;  %11222 = vrcp.f32 %v1428_v57  ;;  %v11217_v25 = vpop.eup %11216  ;;  %v761_v57 = vmul.f32 %v12328_v2, %v16007_v51  ;;  %v871_v51 = vadd.f32 %v11914_v13, %v806_v39  ;;  %v16014_v39 = vld [vmem:[#allocation25_spill] sm:$0xff] }
 0x2d2   : > { %11224 = vrcp.f32 %v1431_v23  ;;  %v1477_v8 = vmul.f32 %v11217_v25, %v12556_v12 }
 0x2d3   : > { %v12717_v49 = vpack.c.bf16 %v871_v51, %v868_v26 }
 0x2d4   : > { %v1434_v62 = vpop.xlane.xlu1 %1433 }
 0x2d5   : > { %2524 = vrot.lane.b32.xlu1 %v12442_v44, %s11784_s12  ;;  %11226 = vrcp.f32 %v1434_v62  ;;  %v11219_v23 = vpop.eup %11218  ;;  %v767_v44 = vmul.f32 %v12328_v2, %v16014_v39  ;;  %v16018_v39 = vld [vmem:[#allocation29_spill] sm:$0xff] }
 0x2d6   : > { %v1478_v62 = vmul.f32 %v11219_v23, %v12560_v34  ;;  %v16013_v34 = vld [vmem:[#allocation10_spill] sm:$0xff]  ;;  %v812_v23 = vadd.f32 %v764_v36, %v625_v1 }
 0x2d7   : > { %v441_v25 = vmul.f32 %v12321_v16, %v16013_v34  ;;  %v16016_v34 = vld [vmem:[#allocation28_spill] sm:$0xff] }
 0x2d8   : > { %v1492_v11 = vpack.c.bf16 %v1478_v62, %v1477_v8  ;;  %v877_v62 = vadd.f32 %v11914_v13, %v812_v23  ;;  %v16017_v23 = vld [vmem:[#allocation12_spill] sm:$0xff] }
 0x2d9   : > { %2572 = vrot.lane.b32.xlu1 %v12658_v5, %s11784_s12  ;;  %v809_v5 = vadd.f32 %v761_v57, %v622_v28  ;;  %v11221_v12 = vpop.eup %11220  ;;  %v628_v57 = vadd.f32 %v580_v47, %v441_v25  ;;  %v818_v28 = vadd.f32 %v770_v30, %v631_v61  ;;  %v586_v25 = vmul.f32 %v12318_v43, %v16016_v34 }
 0x2da   : > { %10049 = vmatmul.mubr.msk.bf16.vlgmr.msra.gmra.mxu1 %vm922_vm1, %v1492_v11  ;;  %v1479_v1 = vmul.f32 %v11221_v12, %v12564_v41  ;;  %v16015_v11 = vld [vmem:[#allocation27_spill] sm:$0xff]  ;;  %v447_v61 = vmul.f32 %v12321_v16, %v16017_v23 }
 0x2db   : > { %10059 = vmatpush3.bf16.msra.mxu1 %v12717_v49  ;;  %10060 = vmatprep.mubr.msk.bf16.mxu1 %vm11783_vm0, %v15972_v0  ;;  %v874_v26 = vadd.f32 %v11914_v13, %v809_v5  ;;  %v815_v36 = vadd.f32 %v767_v44, %v628_v57  ;;  %v883_v45 = vadd.f32 %v11914_v13, %v818_v28  ;;  %v16019_v57 = vld [vmem:[#allocation33_spill] sm:$0xff] }
 0x2dc   : > { %10070 = vmatprep.subr.bf16.mxu1 %v15972_v0  ;;  %v450_v12 = vmul.f32 %v12321_v16, %v16015_v11 }
 0x2dd   : > { %v12732_v46 = vpack.c.bf16 %v877_v62, %v874_v26  ;;  %v880_v41 = vadd.f32 %v11914_v13, %v815_v36  ;;  %v776_v26 = vmul.f32 %v12328_v2, %v16019_v57  ;;  %v16020_v62 = vld [vmem:[#allocation31_spill] sm:$0xff] }
 0x2de   : > { %v11223_v19 = vpop.eup %11222  ;;  %v456_v36 = vmul.f32 %v12321_v16, %v16020_v62 }
 0x2df   : > { %v1480_v4 = vmul.f32 %v11223_v19, %v12570_v9  ;;  %v11225_v8 = vpop.eup %11224  ;;  %v12743_v9 = vpack.c.bf16 %v883_v45, %v880_v41  ;;  %v589_v19 = vmul.f32 %v12318_v43, %v16018_v39 }
 0x2e0   : > { %v1481_v5 = vmul.f32 %v11225_v8, %v12568_v37  ;;  %v773_v8 = vmul.f32 %v12328_v2, %v12325_v58  ;;  %v782_v58 = vmul.f32 %v12328_v2, %v12348_v17 }
 0x2e1   : > { %v1493_v51 = vpack.c.bf16 %v1480_v4, %v1479_v1  ;;  %v637_v1 = vadd.f32 %v589_v19, %v450_v12  ;;  %v634_v4 = vadd.f32 %v586_v25, %v447_v61 }
 0x2e2   : > { %v11227_v24 = vpop.eup %11226 }
 0x2e3   : > { %10055 = vmatmul.mubr.msk.bf16.vlgmr.msra.gmra.mxu0 %vm922_vm1, %v1493_v51  ;;  %v1482_v47 = vmul.f32 %v11227_v24, %v12576_v56  ;;  %v16021_v51 = vld [vmem:[#allocation32_spill] sm:$0xff]  ;;  %v824_v45 = vadd.f32 %v776_v26, %v637_v1  ;;  %v821_v41 = vadd.f32 %v773_v8, %v634_v4 }
 0x2e4   : > { %10065 = vmatpush3.bf16.msra.mxu0 %v12732_v46  ;;  %10066 = vmatprep.mubr.msk.bf16.mxu0 %vm11783_vm0, %v15972_v0  ;;  %v595_v24 = vmul.f32 %v12318_v43, %v16021_v51 }
 0x2e5   : > { %v1494_v44 = vpack.c.bf16 %v1482_v47, %v1481_v5  ;;  %10076 = vmatprep.subr.bf16.mxu0 %v15972_v0  ;;  %v453_v5 = vmul.f32 %v12321_v16, %v12304_v14  ;;  %v889_v11 = vadd.f32 %v11914_v13, %v824_v45  ;;  %v886_v16 = vadd.f32 %v11914_v13, %v821_v41 }
 0x2e7   : > { %10061 = vmatmul.mubr.msk.bf16.vlgmr.msra.gmra.mxu1 %vm922_vm1, %v1494_v44  ;;  %v592_v44 = vmul.f32 %v12318_v43, %v12310_v29  ;;  %v12778_v43 = vpack.c.bf16 %v889_v11, %v886_v16 }
 0x2e8   : > { %10071 = vmatpush3.bf16.msra.mxu1 %v12743_v9  ;;  %10072 = vmatprep.mubr.msk.bf16.mxu1 %vm11783_vm0, %v15972_v0 }
 0x2e9   : > { %10082 = vmatprep.subr.bf16.mxu1 %v15972_v0  ;;  %v640_v12 = vadd.f32 %v592_v44, %v453_v5 }
 0x2ec   : > { %v1437_v37 = vpop.xlane.xlu0 %1436 }
 0x2ed   : > { %11228 = vrcp.f32 %v1437_v37  ;;  %v643_v37 = vadd.f32 %v595_v24, %v456_v36 }
 0x2ef   : > { %v830_v25 = vadd.f32 %v782_v58, %v643_v37 }
 0x2f0   : > { %v1440_v56 = vpop.xlane.xlu1 %1439 }
 0x2f1   : > { %11230 = vrcp.f32 %v1440_v56  ;;  %v779_v56 = vmul.f32 %v12328_v2, %v12388_v38  ;;  %v895_v17 = vadd.f32 %v11914_v13, %v830_v25 }
 0x2f3   : > { %v827_v23 = vadd.f32 %v779_v56, %v640_v12 }
 0x2f4   : > { %v1443_v30 = vpop.xlane.xlu0 %1442 }
 0x2f5   : > { %11232 = vrcp.f32 %v1443_v30  ;;  %v892_v2 = vadd.f32 %v11914_v13, %v827_v23 }
 0x2f7   : > { %v12789_v19 = vpack.c.bf16 %v895_v17, %v892_v2 }
 0x2f8   : > { %v1446_v28 = vpop.xlane.xlu1 %1445 }
 0x2f9   : > { %11234 = vrcp.f32 %v1446_v28 }
 0x2fa   : > { %v11229_v47 = vpop.eup %11228 }
 0x2fb   : > { %v1483_v34 = vmul.f32 %v11229_v47, %v12584_v52 }
 0x2fc   : > { %v1909_v13 = vpop.permute.xlu1 %1908 }
 0x2fe   : > { %v11231_v30 = vpop.eup %11230 }
 0x2ff   : > { %v1484_v14 = vmul.f32 %v11231_v30, %v12588_v6 }
 0x301   : > { %v1495_v29 = vpack.c.bf16 %v1484_v14, %v1483_v34 }
 0x302   : > { %v11233_v61 = vpop.eup %11232 }
 0x303   : > { %10067 = vmatmul.mubr.msk.bf16.vlgmr.msra.gmra.mxu0 %vm922_vm1, %v1495_v29  ;;  %v1485_v52 = vmul.f32 %v11233_v61, %v12592_v63 }
 0x304   : > { %10077 = vmatpush3.bf16.msra.mxu0 %v12778_v43  ;;  %10078 = vmatprep.mubr.msk.bf16.mxu0 %vm11783_vm0, %v15972_v0 }
 0x305   : > { %10088 = vmatprep.subr.bf16.mxu0 %v15972_v0 }
 0x306   : > { %v11235_v38 = vpop.eup %11234 }
 0x307   : > { %v1486_v6 = vmul.f32 %v11235_v38, %v12596_v32 }
 0x309   : > { %v1496_v39 = vpack.c.bf16 %v1486_v6, %v1485_v52 }
 0x30b   : > { %10073 = vmatmul.mubr.msk.bf16.vlgmr.msra.gmra.mxu1 %vm922_vm1, %v1496_v39 }
 0x30c   : > { %10083 = vmatpush3.bf16.msra.mxu1 %v12789_v19  ;;  %10084 = vmatprep.mubr.msk.bf16.mxu1 %vm11783_vm0, %v15972_v0 }
 0x30d   : > { %10094 = vmatprep.subr.bf16.mxu1 %v15972_v0 }
 0x311   : > { %v1449_v57 = vpop.xlane.xlu0 %1448 }
 0x312   : > { %11236 = vrcp.f32 %v1449_v57 }
 0x315   : > { %v1455_v26 = vpop.xlane.xlu0 %1454 }
 0x319   : > { %v1856_v63 = vpop.permute.xlu0 %1855 }
 0x31a   : > { %v1861_v41 = vsel %vm922_vm1, %v1856_v63, 0 }
 0x31d   : > { %v1962_v1 = vpop.permute.xlu0 %1961 }
 0x31f   : > { %v11237_v4 = vpop.eup %11236 }
 0x320   : > { %v1487_v51 = vmul.f32 %v11237_v4, %v12604_v53 }
 0x321   : > { %v2015_v36 = vpop.permute.xlu0 %2014 }
 0x322   : > { %v2020_v11 = vsel %vm922_vm1, %v2015_v36, 0 }
 0x325   : > { %v2068_v56 = vpop.permute.xlu0 %2067 }
 0x326   : > { %v2073_v14 = vsel %vm922_vm1, %v2068_v56, 0 }
 0x32d   : > { %v1452_v28 = vpop.xlane.xlu1 %1451 }
 0x32e   : > { %11238 = vrcp.f32 %v1452_v28 }
 0x32f   : > { %11240 = vrcp.f32 %v1455_v26 }
 0x331   : > { %v1458_v32 = vpop.xlane.xlu1 %1457 }
 0x332   : > { %11242 = vrcp.f32 %v1458_v32 }
 0x335   : > { %v1853_v8 = vpop.permute.xlu1 %1852 }
 0x339   : > { %v1906_v44 = vpop.permute.xlu1 %1905 }
 0x33b   : > { %v11239_v62 = vpop.eup %11238 }
 0x33c   : > { %v1488_v24 = vmul.f32 %v11239_v62, %v12614_v40  ;;  %v11241_v45 = vpop.eup %11240  ;;  %v1914_v40 = vsel %vm922_vm1, %v1909_v13, 0 }
 0x33d   : > { %v1489_v37 = vmul.f32 %v11241_v45, %v12608_v48  ;;  %v1959_v30 = vpop.permute.xlu1 %1958  ;;  %v1967_v48 = vsel %vm922_vm1, %v1962_v1, 0 }
 0x33e   : > { %v1497_v5 = vpack.c.bf16 %v1488_v24, %v1487_v51 }
 0x33f   : > { %v11243_v47 = vpop.eup %11242 }
 0x340   : > { %10079 = vmatmul.mubr.msk.bf16.vlgmr.msra.gmra.mxu0 %vm922_vm1, %v1497_v5  ;;  %v1490_v58 = vmul.f32 %v11243_v47, %v12620_v42  ;;  %v2121_v42 = vpop.permute.xlu0 %2120 }
 0x341   : > { %10089 = vmatpush3.bf16.xpose.msra.mxu0 %v1861_v41  ;;  %10090 = vmatprep.mubr.msk.bf16.mxu0 %vm11783_vm0, %v15972_v0  ;;  %v2012_v12 = vpop.permute.xlu1 %2011  ;;  %v2126_v25 = vsel %vm922_vm1, %v2121_v42, 0 }
 0x342   : > { %v1498_v53 = vpack.c.bf16 %v1490_v58, %v1489_v37  ;;  %10100 = vmatprep.subr.bf16.mxu0 %v15972_v0 }
 0x344   : > { %10085 = vmatmul.mubr.msk.bf16.vlgmr.msra.gmra.mxu1 %vm922_vm1, %v1498_v53  ;;  %v2174_v34 = vpop.permute.xlu0 %2173 }
 0x345   : > { %10095 = vmatpush3.bf16.xpose.msra.mxu1 %v1914_v40  ;;  %10096 = vmatprep.mubr.msk.bf16.mxu1 %vm11783_vm0, %v15972_v0  ;;  %v2065_v16 = vpop.permute.xlu1 %2064  ;;  %v2179_v29 = vsel %vm922_vm1, %v2174_v34, 0 }
 0x346   : > { %10106 = vmatprep.subr.bf16.mxu1 %v15972_v0 }
 0x348   : > { %10091 = vmatmul.mubr.msk.bf16.vlgmr.msra.gmra.mxu0 %vm922_vm1, %v1853_v8  ;;  %v2227_v23 = vpop.permute.xlu0 %2226 }
 0x349   : > { %10101 = vmatpush3.bf16.xpose.msra.mxu0 %v1967_v48  ;;  %10102 = vmatprep.mubr.msk.bf16.mxu0 %vm11783_vm0, %v15972_v0  ;;  %v2118_v61 = vpop.permute.xlu1 %2117  ;;  %v2232_v17 = vsel %vm922_vm1, %v2227_v23, 0 }
 0x34a   : > { %10112 = vmatprep.subr.bf16.mxu0 %v15972_v0 }
 0x34c   : > { %10097 = vmatmul.mubr.msk.bf16.vlgmr.msra.gmra.mxu1 %vm922_vm1, %v1906_v44  ;;  %v2224_v38 = vpop.permute.xlu0 %2223 }
 0x34d   : > { %10107 = vmatpush3.bf16.xpose.msra.mxu1 %v2020_v11  ;;  %10108 = vmatprep.mubr.msk.bf16.mxu1 %vm11783_vm0, %v15972_v0  ;;  %v2171_v2 = vpop.permute.xlu1 %2170 }
 0x34e   : > { %10118 = vmatprep.subr.bf16.mxu1 %v15972_v0 }
 0x350   : > { %10103 = vmatmul.mubr.msk.bf16.vlgmr.msra.gmra.mxu0 %vm922_vm1, %v1959_v30  ;;  %v2477_v52 = vpop.permute.xlu0 %2476 }
 0x351   : > { %10113 = vmatpush3.bf16.xpose.msra.mxu0 %v2073_v14  ;;  %10114 = vmatprep.mubr.msk.bf16.mxu0 %vm11783_vm0, %v15972_v0  ;;  %v2525_v6 = vpop.permute.xlu1 %2524 }
 0x352   : > { %10124 = vmatprep.subr.bf16.mxu0 %v15972_v0 }
 0x354   : > { %10109 = vmatmul.mubr.msk.bf16.vlgmr.msra.gmra.mxu1 %vm922_vm1, %v2012_v12 }
 0x355   : > { %10119 = vmatpush3.bf16.xpose.msra.mxu1 %v2126_v25  ;;  %10120 = vmatprep.mubr.msk.bf16.mxu1 %vm11783_vm0, %v15972_v0 }
 0x356   : > { %10130 = vmatprep.subr.bf16.mxu1 %v15972_v0 }
 0x358   : > { %10115 = vmatmul.mubr.msk.bf16.vlgmr.msra.gmra.mxu0 %vm922_vm1, %v2065_v16 }
 0x359   : > { %10125 = vmatpush3.bf16.xpose.msra.mxu0 %v2179_v29  ;;  %10126 = vmatprep.mubr.msk.bf16.mxu0 %vm11783_vm0, %v15972_v0 }
 0x35a   : > { %10136 = vmatprep.subr.bf16.mxu0 %v15972_v0 }
 0x35c   : > { %10121 = vmatmul.mubr.msk.bf16.vlgmr.msra.gmra.mxu1 %vm922_vm1, %v2118_v61 }
 0x35d   : > { %10131 = vmatpush3.bf16.xpose.msra.mxu1 %v2232_v17  ;;  %10132 = vmatprep.mubr.msk.bf16.mxu1 %vm11783_vm0, %v15972_v0 }
 0x35e   : > { %10142 = vmatprep.subr.bf16.mxu1 %v15972_v0 }
 0x360   : > { %10127 = vmatmul.mubr.msk.bf16.vlgmr.msra.gmra.mxu0 %vm922_vm1, %v2171_v2 }
 0x361   : > { %10137 = vmatpush3.bf16.msra.mxu0 %v2477_v52  ;;  %10138 = vmatprep.mubr.msk.bf16.mxu0 %vm11783_vm0, %v15972_v0 }
 0x362   : > { %10148 = vmatprep.subr.bf16.mxu0 %v15972_v0 }
 0x364   : > { %10133 = vmatmul.mubr.msk.bf16.vlgmr.msra.gmra.mxu1 %vm922_vm1, %v2224_v38 }
 0x365   : > { %10143 = vmatpush3.bf16.msra.mxu1 %v2525_v6  ;;  %10144 = vmatprep.mubr.msk.bf16.mxu1 %vm11783_vm0, %v15972_v0 }
 0x366   : > { %10154 = vmatprep.subr.bf16.mxu1 %v15972_v0 }
 0x381   : > { %v12848_v39 = vpop.f32.mrf.mxu0 }
 0x382   : > { %16022 = vst [vmem:[#allocation9_spill] sm:$0xff] %v12848_v39 }
 0x383   : > { %v10044_v57 = vpop.f32.mrf.mxu0 }
 0x385   : > { %v12850_v13 = vpop.f32.mrf.mxu0 }
 0x386   : > { %16023 = vst [vmem:[#allocation11_spill] sm:$0xff] %v12850_v13 }
 0x387   : > { %v10045_v26 = vpop.f32.mrf.mxu0 }
 0x39a   : > { %v12852_v28 = vpop.f32.mrf.mxu1 }
 0x39b   : > { %16024 = vst [vmem:[#allocation30_spill] sm:$0xff] %v12852_v28 }
 0x39c   : > { %v10050_v63 = vpop.f32.mrf.mxu1 }
 0x39e   : > { %v12854_v32 = vpop.f32.mrf.mxu1 }
 0x39f   : > { %16025 = vst [vmem:[#allocation15_spill] sm:$0xff] %v12854_v32 }
 0x3a0   : > { %v10051_v1 = vpop.f32.mrf.mxu1 }
 0x3a3   : > { %v12856_v4 = vpop.f32.mrf.mxu0 }
 0x3a4   : > { %16026 = vst [vmem:[#allocation16_spill] sm:$0xff] %v12856_v4 }
 0x3a5   : > { %v10056_v8 = vpop.f32.mrf.mxu0 }
 0x3a7   : > { %v12858_v62 = vpop.f32.mrf.mxu0  ;;  %v12860_v36 = vpop.f32.mrf.mxu1 }
 0x3a8   : > { %16027 = vst [vmem:[#allocation13_spill] sm:$0xff] %v12858_v62  ;;  %16028 = vst [vmem:[#allocation14_spill] sm:$0xff] %v12860_v36 }
 0x3a9   : > { %v10057_v51 = vpop.f32.mrf.mxu0  ;;  %v10062_v24 = vpop.f32.mrf.mxu1 }
 0x3aa   : > { %v12894_v24 = vld [vmem:[%s15841_s5 + $0x8] sm:$0xff] }
 0x3ab   : > { %v12862_v45 = vpop.f32.mrf.mxu1 }
 0x3ac   : > { %16029 = vst [vmem:[#allocation17_spill] sm:$0xff] %v12862_v45 }
 0x3ad   : > { %v10063_v5 = vpop.f32.mrf.mxu1 }
 0x3c3   : > { %v12864_v47 = vpop.f32.mrf.mxu0 }
 0x3c4   : > { %16030 = vst [vmem:[#allocation5_spill] sm:$0xff] %v12864_v47 }
 0x3c5   : > { %v10068_v41 = vpop.f32.mrf.mxu0 }
 0x3c7   : > { %v12866_v44 = vpop.f32.mrf.mxu0 }
 0x3c8   : > { %16031 = vst [vmem:[#allocation19_spill] sm:$0xff] %v12866_v44 }
 0x3c9   : > { %v10069_v37 = vpop.f32.mrf.mxu0 }
 0x3cb   : > { %v12868_v58 = vpop.f32.mrf.mxu1 }
 0x3cc   : > { %16032 = vst [vmem:[#allocation20_spill] sm:$0xff] %v12868_v58 }
 0x3cd   : > { %v10074_v56 = vpop.f32.mrf.mxu1 }
 0x3cf   : > { %v12870_v53 = vpop.f32.mrf.mxu1 }
 0x3d0   : > { %16033 = vst [vmem:[#allocation18_spill] sm:$0xff] %v12870_v53 }
 0x3d1   : > { %v10075_v40 = vpop.f32.mrf.mxu1 }
 0x400   : > { %v12872_v30 = vpop.f32.mrf.mxu0 }
 0x401   : > { %16034 = vst [vmem:[#allocation8_spill] sm:$0xff] %v12872_v30 }
 0x402   : > { %v10080_v48 = vpop.f32.mrf.mxu0 }
 0x404   : > { %v12874_v42 = vpop.f32.mrf.mxu0  ;;  %v12876_v11 = vpop.f32.mrf.mxu1 }
 0x405   : > { %16035 = vst [vmem:[#allocation24_spill] sm:$0xff] %v12874_v42  ;;  %16036 = vst [vmem:[#allocation22_spill] sm:$0xff] %v12876_v11 }
 0x406   : > { %v10081_v12 = vpop.f32.mrf.mxu0  ;;  %v10086_v34 = vpop.f32.mrf.mxu1 }
 0x408   : > { %v12878_v14 = vpop.f32.mrf.mxu1  ;;  %v1897_v16 = vpop.f32.mrf.mxu0 }
 0x409   : > { %16037 = vst [vmem:[#allocation6_spill] sm:$0xff] %v12878_v14  ;;  %v1898_v25 = vadd.f32 %v1897_v16, %v12453_v21 }
 0x40a   : > { %v10087_v23 = vpop.f32.mrf.mxu1  ;;  %v10092_v29 = vpop.f32.mrf.mxu0 }
 0x40b   : > { %v12881_v61 = vmul.f32 0.25, %v1898_v25 }
 0x40c   : > { %v1900_v38 = vpop.f32.mrf.mxu0  ;;  %v1950_v17 = vpop.f32.mrf.mxu1 }
 0x40d   : > { %v1901_v2 = vadd.f32 %v1900_v38, %v12459_v10  ;;  %v1951_v52 = vadd.f32 %v1950_v17, %v12453_v21  ;;  %v2291_v6 = vsel %vm922_vm1, %v12881_v61, -inf  ;;  %v12900_v21 = vld [vmem:[%s15841_s5] sm:$0xff] }
 0x40e   : > { %2292 = vmax.xlane.f32.xlu1 %v2291_v6  ;;  %v10093_v57 = vpop.f32.mrf.mxu0  ;;  %v10098_v26 = vpop.f32.mrf.mxu1 }
 0x40f   : > { %v12887_v63 = vmul.f32 0.25, %v1951_v52  ;;  %v12889_v1 = vmul.f32 0.25, %v1901_v2 }
 0x410   : > { %v1953_v8 = vpop.f32.mrf.mxu1  ;;  %v2003_v51 = vpop.f32.mrf.mxu0 }
 0x411   : > { %v1954_v10 = vadd.f32 %v12894_v24, %v1953_v8  ;;  %v2004_v5 = vadd.f32 %v12900_v21, %v2003_v51  ;;  %v2297_v41 = vsel %vm922_vm1, %v12887_v63, -inf  ;;  %v2294_v34 = vsel %vm922_vm1, %v12889_v1, -inf }
 0x412   : > { %2298 = vmax.xlane.f32.xlu0 %v2297_v41  ;;  %v10099_v37 = vpop.f32.mrf.mxu1  ;;  %v10104_v56 = vpop.f32.mrf.mxu0 }
 0x413   : > { %v12905_v40 = vmul.f32 0.25, %v1954_v10  ;;  %v12909_v16 = vmul.f32 0.25, %v2004_v5 }
 0x414   : > { %v2006_v48 = vpop.f32.mrf.mxu0  ;;  %v2056_v12 = vpop.f32.mrf.mxu1 }
 0x415   : > { %v2007_v25 = vadd.f32 %v12894_v24, %v2006_v48  ;;  %v2057_v23 = vadd.f32 %v12900_v21, %v2056_v12  ;;  %v2300_v29 = vsel %vm922_vm1, %v12905_v40, -inf  ;;  %v2303_v51 = vsel %vm922_vm1, %v12909_v16, -inf }
 0x416   : > { %2295 = vmax.xlane.f32.xlu0 %v2294_v34  ;;  %2301 = vmax.xlane.f32.xlu1 %v2300_v29  ;;  %v10105_v38 = vpop.f32.mrf.mxu0  ;;  %v10110_v17 = vpop.f32.mrf.mxu1 }
 0x417   : > { %v12915_v2 = vmul.f32 0.25, %v2007_v25  ;;  %v12917_v52 = vmul.f32 0.25, %v2057_v23 }
 0x418   : > { %v2059_v6 = vpop.f32.mrf.mxu1  ;;  %v2109_v57 = vpop.f32.mrf.mxu0 }
 0x419   : > { %v2060_v26 = vadd.f32 %v12894_v24, %v2059_v6  ;;  %v2110_v8 = vadd.f32 %v12900_v21, %v2109_v57  ;;  %v2306_v10 = vsel %vm922_vm1, %v12915_v2, -inf  ;;  %v2309_v12 = vsel %vm922_vm1, %v12917_v52, -inf }
 0x41a   : > { %2304 = vmax.xlane.f32.xlu0 %v2303_v51  ;;  %2307 = vmax.xlane.f32.xlu1 %v2306_v10  ;;  %v10111_v5 = vpop.f32.mrf.mxu1  ;;  %v10116_v41 = vpop.f32.mrf.mxu0 }
 0x41b   : > { %v12925_v37 = vmul.f32 0.25, %v2060_v26  ;;  %v12929_v34 = vmul.f32 0.25, %v2110_v8 }
 0x41c   : > { %v2112_v56 = vpop.f32.mrf.mxu0  ;;  %v2162_v48 = vpop.f32.mrf.mxu1 }
 0x41d   : > { %v2113_v25 = vadd.f32 %v12894_v24, %v2112_v56  ;;  %v2163_v23 = vadd.f32 %v12900_v21, %v2162_v48  ;;  %v2312_v29 = vsel %vm922_vm1, %v12925_v37, -inf  ;;  %v2315_v5 = vsel %vm922_vm1, %v12929_v34, -inf }
 0x41e   : > { %2310 = vmax.xlane.f32.xlu0 %v2309_v12  ;;  %2313 = vmax.xlane.f32.xlu1 %v2312_v29  ;;  %v10117_v38 = vpop.f32.mrf.mxu0  ;;  %v10122_v17 = vpop.f32.mrf.mxu1 }
 0x41f   : > { %v12935_v6 = vmul.f32 0.25, %v2113_v25  ;;  %v12937_v57 = vmul.f32 0.25, %v2163_v23 }
 0x420   : > { %v2165_v26 = vpop.f32.mrf.mxu1  ;;  %v2215_v51 = vpop.f32.mrf.mxu0 }
 0x421   : > { %v2166_v8 = vadd.f32 %v12894_v24, %v2165_v26  ;;  %v2216_v10 = vadd.f32 %v12900_v21, %v2215_v51  ;;  %v2318_v41 = vsel %vm922_vm1, %v12935_v6, -inf  ;;  %v2321_v29 = vsel %vm922_vm1, %v12937_v57, -inf }
 0x422   : > { %2316 = vmax.xlane.f32.xlu0 %v2315_v5  ;;  %2319 = vmax.xlane.f32.xlu1 %v2318_v41  ;;  %v10123_v56 = vpop.f32.mrf.mxu1  ;;  %v10128_v48 = vpop.f32.mrf.mxu0 }
 0x423   : > { %v12945_v12 = vmul.f32 0.25, %v2166_v8  ;;  %v12949_v38 = vmul.f32 0.25, %v2216_v10 }
 0x424   : > { %v2218_v25 = vpop.f32.mrf.mxu0  ;;  %v2268_v23 = vpop.f32.mrf.mxu1 }
 0x425   : > { %v2219_v17 = vadd.f32 %v12894_v24, %v2218_v25  ;;  %v2269_v26 = vadd.f32 %v12900_v21, %v2268_v23  ;;  %v2324_v51 = vsel %vm922_vm1, %v12945_v12, -inf  ;;  %v2327_v10 = vsel %vm922_vm1, %v12949_v38, -inf }
 0x426   : > { %2322 = vmax.xlane.f32.xlu0 %v2321_v29  ;;  %2325 = vmax.xlane.f32.xlu1 %v2324_v51  ;;  %v10129_v5 = vpop.f32.mrf.mxu0  ;;  %v10134_v41 = vpop.f32.mrf.mxu1 }
 0x427   : > { %v12955_v8 = vmul.f32 0.25, %v2219_v17  ;;  %v12957_v48 = vmul.f32 0.25, %v2269_v26 }
 0x428   : > { %v2271_v56 = vpop.f32.mrf.mxu1 }
 0x429   : > { %v2272_v11 = vadd.f32 %v12894_v24, %v2271_v56  ;;  %v2330_v25 = vsel %vm922_vm1, %v12955_v8, -inf  ;;  %v2333_v17 = vsel %vm922_vm1, %v12957_v48, -inf }
 0x42a   : > { %v10135_v23 = vpop.f32.mrf.mxu1  ;;  %2328 = vmax.xlane.f32.xlu0 %v2327_v10  ;;  %2331 = vmax.xlane.f32.xlu1 %v2330_v25 }
 0x42b   : > { %v12964_v29 = vmul.f32 0.25, %v2272_v11  ;;  %v12982_v11 = vpop.permute.xlu1 %2572 }
 0x42d   : > { %v2336_v26 = vsel %vm922_vm1, %v12964_v29, -inf }
 0x42e   : > { %2334 = vmax.xlane.f32.xlu0 %v2333_v17  ;;  %2337 = vmax.xlane.f32.xlu1 %v2336_v26 }
 0x43f   : > { %2668 = vrot.lane.b32.xlu1 %v12732_v46, %s11784_s12 }
 0x443   : > { %2764 = vrot.lane.b32.xlu1 %v12778_v43, %s11784_s12 }
 0x444   : > { %2620 = vrot.lane.b32.xlu0 %v12717_v49, %s11784_s12 }
 0x447   : > { %2861 = vrot.lane.b32.xlu1 %v12043_v20, %s11785_s17 }
 0x448   : > { %2716 = vrot.lane.b32.xlu0 %v12743_v9, %s11784_s12 }
 0x44c   : > { %2812 = vrot.lane.b32.xlu0 %v12789_v19, %s11784_s12 }
 0x497   : > { %v2293_v51 = vpop.xlane.xlu1 %2292 }
 0x498   : > { %v2339_v5 = vsub.f32 %v12881_v61, %v2293_v51 }
 0x49a   : > { %v2355_v41 = vmul.f32 1.442695, %v2339_v5 }
 0x49b   : > { %v2299_v56 = vpop.xlane.xlu0 %2298 }
 0x49c   : > { %11244 = vpow2.f32 %v2355_v41  ;;  %v2341_v10 = vsub.f32 %v12887_v63, %v2299_v56 }
 0x49e   : > { %v2359_v25 = vmul.f32 1.442695, %v2341_v10 }
 0x49f   : > { %v2296_v23 = vpop.xlane.xlu0 %2295  ;;  %v2302_v17 = vpop.xlane.xlu1 %2301 }
 0x4a0   : > { %11246 = vpow2.f32 %v2359_v25  ;;  %v2340_v26 = vsub.f32 %v12889_v1, %v2296_v23  ;;  %v2342_v14 = vsub.f32 %v12905_v40, %v2302_v17 }
 0x4a2   : > { %v2357_v36 = vmul.f32 1.442695, %v2340_v26  ;;  %v2361_v45 = vmul.f32 1.442695, %v2342_v14 }
 0x4a3   : > { %v2305_v30 = vpop.xlane.xlu0 %2304  ;;  %v2308_v42 = vpop.xlane.xlu1 %2307 }
 0x4a4   : > { %11248 = vpow2.f32 %v2357_v36  ;;  %v2343_v61 = vsub.f32 %v12909_v16, %v2305_v30  ;;  %v2344_v51 = vsub.f32 %v12915_v2, %v2308_v42 }
 0x4a5   : > { %11250 = vpow2.f32 %v2361_v45 }
 0x4a6   : > { %v2363_v5 = vmul.f32 1.442695, %v2343_v61  ;;  %v2365_v63 = vmul.f32 1.442695, %v2344_v51 }
 0x4a7   : > { %v2311_v41 = vpop.xlane.xlu0 %2310  ;;  %v2314_v56 = vpop.xlane.xlu1 %2313 }
 0x4a8   : > { %11252 = vpow2.f32 %v2363_v5  ;;  %v2345_v10 = vsub.f32 %v12917_v52, %v2311_v41  ;;  %v2346_v1 = vsub.f32 %v12925_v37, %v2314_v56 }
 0x4a9   : > { %v12992_v40 = vpop.eup %11244  ;;  %11254 = vpow2.f32 %v2365_v63 }
 0x4aa   : > { %v2367_v14 = vmul.f32 1.442695, %v2345_v10  ;;  %v2369_v25 = vmul.f32 1.442695, %v2346_v1  ;;  %v2387_v36 = vsel %vm922_vm1, %v12992_v40, 0.0 }
 0x4ab   : > { %v2317_v30 = vpop.xlane.xlu0 %2316  ;;  %2388 = vadd.xlane.f32.xlu0 %v2387_v36  ;;  %v2320_v45 = vpop.xlane.xlu1 %2319 }
 0x4ac   : > { %11256 = vpow2.f32 %v2367_v14  ;;  %v2347_v42 = vsub.f32 %v12929_v34, %v2317_v30  ;;  %v2348_v16 = vsub.f32 %v12935_v6, %v2320_v45 }
 0x4ad   : > { %v12998_v2 = vpop.eup %11246  ;;  %11258 = vpow2.f32 %v2369_v25 }
 0x4ae   : > { %v2371_v52 = vmul.f32 1.442695, %v2347_v42  ;;  %v2373_v37 = vmul.f32 1.442695, %v2348_v16  ;;  %v2393_v23 = vsel %vm922_vm1, %v12998_v2, 0.0 }
 0x4af   : > { %v2323_v17 = vpop.xlane.xlu0 %2322  ;;  %2394 = vadd.xlane.f32.xlu0 %v2393_v23  ;;  %v2326_v26 = vpop.xlane.xlu1 %2325 }
 0x4b0   : > { %11260 = vpow2.f32 %v2371_v52  ;;  %v2349_v61 = vsub.f32 %v12937_v57, %v2323_v17  ;;  %v2350_v51 = vsub.f32 %v12945_v12, %v2326_v26 }
 0x4b1   : > { %v13004_v5 = vpop.eup %11248  ;;  %11262 = vpow2.f32 %v2373_v37 }
 0x4b2   : > { %v13006_v34 = vpop.eup %11250  ;;  %v2375_v6 = vmul.f32 1.442695, %v2349_v61  ;;  %v2377_v63 = vmul.f32 1.442695, %v2350_v51  ;;  %v2390_v41 = vsel %vm922_vm1, %v13004_v5, 0.0 }
 0x4b3   : > { %v2329_v56 = vpop.xlane.xlu0 %2328  ;;  %2391 = vadd.xlane.f32.xlu1 %v2390_v41  ;;  %v2332_v10 = vpop.xlane.xlu1 %2331  ;;  %v2396_v12 = vsel %vm922_vm1, %v13006_v34, 0.0 }
 0x4b4   : > { %11264 = vpow2.f32 %v2375_v6  ;;  %v2351_v1 = vsub.f32 %v12949_v38, %v2329_v56  ;;  %v2352_v57 = vsub.f32 %v12955_v8, %v2332_v10 }
 0x4b5   : > { %v13012_v14 = vpop.eup %11252  ;;  %11266 = vpow2.f32 %v2377_v63 }
 0x4b6   : > { %v13016_v25 = vpop.eup %11254  ;;  %v2379_v36 = vmul.f32 1.442695, %v2351_v1  ;;  %v2381_v30 = vmul.f32 1.442695, %v2352_v57  ;;  %v2399_v45 = vsel %vm922_vm1, %v13012_v14, 0.0 }
 0x4b7   : > { %v2335_v42 = vpop.xlane.xlu0 %2334  ;;  %2400 = vadd.xlane.f32.xlu0 %v2399_v45  ;;  %2397 = vadd.xlane.f32.xlu1 %v2396_v12  ;;  %v2338_v16 = vpop.xlane.xlu1 %2337  ;;  %v2402_v37 = vsel %vm922_vm1, %v13016_v25, 0.0 }
 0x4b8   : > { %11268 = vpow2.f32 %v2379_v36  ;;  %v2353_v38 = vsub.f32 %v12957_v48, %v2335_v42  ;;  %v2354_v8 = vsub.f32 %v12964_v29, %v2338_v16 }
 0x4b9   : > { %v13022_v52 = vpop.eup %11256  ;;  %11270 = vpow2.f32 %v2381_v30 }
 0x4ba   : > { %v2383_v23 = vmul.f32 1.442695, %v2353_v38  ;;  %v2385_v17 = vmul.f32 1.442695, %v2354_v8  ;;  %v2405_v26 = vsel %vm922_vm1, %v13022_v52, 0.0  ;;  %v13028_v61 = vpop.eup %11258  ;;  %v16038_v8 = vld [vmem:[#allocation36_spill] sm:$0xff] }
 0x4bb   : > { %2406 = vadd.xlane.f32.xlu0 %v2405_v26  ;;  %2403 = vadd.xlane.f32.xlu1 %v2402_v37  ;;  %v2408_v29 = vsel %vm922_vm1, %v13028_v61, 0.0  ;;  %v16039_v37 = vld [vmem:[#allocation35_spill] sm:$0xff]  ;;  %v2621_v26 = vpop.permute.xlu0 %2620 }
 0x4bc   : > { %11272 = vpow2.f32 %v2383_v23  ;;  %v16040_v23 = vld [vmem:[#allocation7_spill] sm:$0xff] }
 0x4bd   : > { %v13030_v51 = vpop.eup %11260  ;;  %11274 = vpow2.f32 %v2385_v17  ;;  %v16041_v17 = vld [vmem:[#allocation34_spill] sm:$0xff] }
 0x4be   : > { %v2411_v48 = vsel %vm922_vm1, %v13030_v51, 0.0  ;;  %v13036_v6 = vpop.eup %11262 }
 0x4bf   : > { %2412 = vadd.xlane.f32.xlu0 %v2411_v48  ;;  %2409 = vadd.xlane.f32.xlu1 %v2408_v29  ;;  %v2414_v56 = vsel %vm922_vm1, %v13036_v6, 0.0  ;;  %v13100_v48 = vpop.permute.xlu1 %2668  ;;  %v13102_v29 = vpop.permute.xlu0 %2716 }
 0x4c1   : > { %v13038_v63 = vpop.eup %11264 }
 0x4c2   : > { %v2417_v41 = vsel %vm922_vm1, %v13038_v63, 0.0  ;;  %v13044_v10 = vpop.eup %11266 }
 0x4c3   : > { %2418 = vadd.xlane.f32.xlu0 %v2417_v41  ;;  %2415 = vadd.xlane.f32.xlu1 %v2414_v56  ;;  %v2420_v12 = vsel %vm922_vm1, %v13044_v10, 0.0  ;;  %v13104_v41 = vpop.permute.xlu1 %2764  ;;  %v13106_v56 = vpop.permute.xlu0 %2812 }
 0x4c5   : > { %v13046_v1 = vpop.eup %11268 }
 0x4c6   : > { %v2423_v57 = vsel %vm922_vm1, %v13046_v1, 0.0  ;;  %v13052_v36 = vpop.eup %11270 }
 0x4c7   : > { %2424 = vadd.xlane.f32.xlu0 %v2423_v57  ;;  %2421 = vadd.xlane.f32.xlu1 %v2420_v12  ;;  %v2426_v42 = vsel %vm922_vm1, %v13052_v36, 0.0  ;;  %v13108_v12 = vpop.permute.xlu1 %2861 }
 0x4c9   : > { %v13054_v30 = vpop.eup %11272 }
 0x4ca   : > { %v2429_v45 = vsel %vm922_vm1, %v13054_v30, 0.0  ;;  %v13060_v16 = vpop.eup %11274 }
 0x4cb   : > { %2430 = vadd.xlane.f32.xlu0 %v2429_v45  ;;  %2427 = vadd.xlane.f32.xlu1 %v2426_v42  ;;  %v2432_v38 = vsel %vm922_vm1, %v13060_v16, 0.0 }
 0x4cf   : > { %2433 = vadd.xlane.f32.xlu1 %v2432_v38 }
 0x4e0   : > { %2859 = vrot.lane.b32.xlu1 %v15994_v3, %s11785_s17 }
 0x4e1   : > { %2912 = vrot.lane.b32.xlu0 %v12126_v59, %s11785_s17 }
 0x4e4   : > { %2910 = vrot.lane.b32.xlu1 %v12171_v22, %s11785_s17 }
 0x4e5   : > { %2963 = vrot.lane.b32.xlu0 %v12163_v33, %s11785_s17 }
 0x4e8   : > { %2961 = vrot.lane.b32.xlu1 %v12192_v7, %s11785_s17 }
 0x4e9   : > { %3014 = vrot.lane.b32.xlu0 %v12180_v60, %s11785_s17 }
 0x4ec   : > { %3012 = vrot.lane.b32.xlu1 %v12203_v55, %s11785_s17 }
 0x4ed   : > { %3065 = vrot.lane.b32.xlu0 %v12253_v31, %s11785_s17 }
 0x4f0   : > { %3063 = vrot.lane.b32.xlu1 %v12284_v35, %s11785_s17 }
 0x4f1   : > { %3116 = vrot.lane.b32.xlu0 %v12282_v50, %s11785_s17 }
 0x4f4   : > { %3114 = vrot.lane.b32.xlu1 %v15996_v54, %s11785_s17 }
 0x4f5   : > { %3167 = vrot.lane.b32.xlu0 %v12398_v27, %s11785_s17 }
 0x4f8   : > { %3165 = vrot.lane.b32.xlu1 %v12425_v18, %s11785_s17 }
 0x4f9   : > { %3218 = vrot.lane.b32.xlu0 %v12419_v15, %s11785_s17 }
 0x4fc   : > { %3514 = vrot.lane.b32.xlu1 %v16038_v8, %s11785_s17 }
 0x4fd   : > { %3216 = vrot.lane.b32.xlu0 %v16039_v37, %s11785_s17 }
 0x500   : > { %3561 = vrot.lane.b32.xlu1 %v16040_v23, %s11785_s17 }
 0x501   : > { %3467 = vrot.lane.b32.xlu0 %v16041_v17, %s11785_s17 }
 0x534   : > { %v2389_v57 = vpop.xlane.xlu0 %2388 }
 0x535   : > { %11276 = vrcp.f32 %v2389_v57 }
 0x538   : > { %v2395_v45 = vpop.xlane.xlu0 %2394 }
 0x53c   : > { %v2392_v42 = vpop.xlane.xlu1 %2391 }
 0x53d   : > { %11278 = vrcp.f32 %v2392_v42 }
 0x53e   : > { %11280 = vrcp.f32 %v2395_v45 }
 0x540   : > { %v2401_v38 = vpop.xlane.xlu0 %2400  ;;  %v2398_v4 = vpop.xlane.xlu1 %2397 }
 0x541   : > { %11282 = vrcp.f32 %v2398_v4 }
 0x542   : > { %11284 = vrcp.f32 %v2401_v38  ;;  %v11277_v32 = vpop.eup %11276 }
 0x543   : > { %v2451_v13 = vmul.f32 %v11277_v32, %v12992_v40 }
 0x544   : > { %v2407_v62 = vpop.xlane.xlu0 %2406  ;;  %v2404_v28 = vpop.xlane.xlu1 %2403 }
 0x545   : > { %11286 = vrcp.f32 %v2404_v28 }
 0x546   : > { %11288 = vrcp.f32 %v2407_v62 }
 0x548   : > { %v2413_v58 = vpop.xlane.xlu0 %2412  ;;  %v2410_v53 = vpop.xlane.xlu1 %2409 }
 0x549   : > { %11290 = vrcp.f32 %v2410_v53 }
 0x54a   : > { %v11279_v39 = vpop.eup %11278  ;;  %11292 = vrcp.f32 %v2413_v58 }
 0x54b   : > { %v2452_v57 = vmul.f32 %v11279_v39, %v13004_v5  ;;  %v11281_v47 = vpop.eup %11280 }
 0x54c   : > { %v2419_v42 = vpop.xlane.xlu0 %2418  ;;  %v2416_v45 = vpop.xlane.xlu1 %2415  ;;  %v2453_v53 = vmul.f32 %v11281_v47, %v12998_v2 }
 0x54d   : > { %v2467_v44 = vpack.c.bf16 %v2452_v57, %v2451_v13  ;;  %11294 = vrcp.f32 %v2416_v45 }
 0x54e   : > { %v11283_v4 = vpop.eup %11282  ;;  %11296 = vrcp.f32 %v2419_v42 }
 0x54f   : > { %10139 = vmatmul.mubr.msk.bf16.vlgmr.msra.gmra.mxu0 %vm922_vm1, %v2467_v44  ;;  %v2454_v32 = vmul.f32 %v11283_v4, %v13006_v34  ;;  %v11285_v39 = vpop.eup %11284 }
 0x550   : > { %10149 = vmatpush3.bf16.msra.mxu0 %v12982_v11  ;;  %v2425_v28 = vpop.xlane.xlu0 %2424  ;;  %v2422_v62 = vpop.xlane.xlu1 %2421  ;;  %10150 = vmatprep.mubr.msk.bf16.mxu0 %vm11783_vm0, %v15972_v0  ;;  %v2455_v40 = vmul.f32 %v11285_v39, %v13012_v14 }
 0x551   : > { %10160 = vmatprep.subr.bf16.mxu0 %v15972_v0  ;;  %11298 = vrcp.f32 %v2422_v62  ;;  %v2468_v13 = vpack.c.bf16 %v2454_v32, %v2453_v53 }
 0x552   : > { %v11287_v58 = vpop.eup %11286  ;;  %11300 = vrcp.f32 %v2425_v28 }
 0x553   : > { %10145 = vmatmul.mubr.msk.bf16.vlgmr.msra.gmra.mxu1 %vm922_vm1, %v2468_v13  ;;  %v2456_v47 = vmul.f32 %v11287_v58, %v13016_v25  ;;  %v11289_v2 = vpop.eup %11288 }
 0x554   : > { %v2431_v44 = vpop.xlane.xlu0 %2430  ;;  %v2428_v11 = vpop.xlane.xlu1 %2427  ;;  %10155 = vmatpush3.bf16.msra.mxu1 %v2621_v26  ;;  %10156 = vmatprep.mubr.msk.bf16.mxu1 %vm11783_vm0, %v15972_v0  ;;  %v2457_v42 = vmul.f32 %v11289_v2, %v13022_v52 }
 0x555   : > { %11302 = vrcp.f32 %v2428_v11  ;;  %v2469_v5 = vpack.c.bf16 %v2456_v47, %v2455_v40  ;;  %10166 = vmatprep.subr.bf16.mxu1 %v15972_v0  ;;  %v2867_v47 = vsel %vm922_vm1, %v13108_v12, 0 }
 0x556   : > { %v11291_v34 = vpop.eup %11290  ;;  %11304 = vrcp.f32 %v2431_v44 }
 0x557   : > { %10151 = vmatmul.mubr.msk.bf16.vlgmr.msra.gmra.mxu0 %vm922_vm1, %v2469_v5  ;;  %v2458_v14 = vmul.f32 %v11291_v34, %v13028_v61  ;;  %v11293_v25 = vpop.eup %11292 }
 0x558   : > { %v2913_v38 = vpop.permute.xlu0 %2912  ;;  %v2434_v57 = vpop.xlane.xlu1 %2433  ;;  %10161 = vmatpush3.bf16.msra.mxu0 %v13100_v48  ;;  %10162 = vmatprep.mubr.msk.bf16.mxu0 %vm11783_vm0, %v15972_v0  ;;  %v2459_v4 = vmul.f32 %v11293_v25, %v13030_v51 }
 0x559   : > { %11306 = vrcp.f32 %v2434_v57  ;;  %v2470_v26 = vpack.c.bf16 %v2458_v14, %v2457_v42  ;;  %10172 = vmatprep.subr.bf16.mxu0 %v15972_v0 }
 0x55a   : > { %v11295_v45 = vpop.eup %11294 }
 0x55b   : > { %10157 = vmatmul.mubr.msk.bf16.vlgmr.msra.gmra.mxu1 %vm922_vm1, %v2470_v26  ;;  %v2460_v28 = vmul.f32 %v11295_v45, %v13036_v6  ;;  %v11297_v52 = vpop.eup %11296 }
 0x55c   : > { %10167 = vmatpush3.bf16.msra.mxu1 %v13102_v29  ;;  %10168 = vmatprep.mubr.msk.bf16.mxu1 %vm11783_vm0, %v15972_v0  ;;  %v2964_v61 = vpop.permute.xlu0 %2963  ;;  %v2461_v53 = vmul.f32 %v11297_v52, %v13038_v63  ;;  %v2860_v6 = vpop.permute.xlu1 %2859 }
 0x55d   : > { %v2471_v48 = vpack.c.bf16 %v2460_v28, %v2459_v4  ;;  %10178 = vmatprep.subr.bf16.mxu1 %v15972_v0 }
 0x55e   : > { %v11299_v62 = vpop.eup %11298 }
 0x55f   : > { %10163 = vmatmul.mubr.msk.bf16.vlgmr.msra.gmra.mxu0 %vm922_vm1, %v2471_v48  ;;  %v2462_v32 = vmul.f32 %v11299_v62, %v13044_v10  ;;  %v11301_v51 = vpop.eup %11300 }
 0x560   : > { %10173 = vmatpush3.bf16.msra.mxu0 %v13104_v41  ;;  %10174 = vmatprep.mubr.msk.bf16.mxu0 %vm11783_vm0, %v15972_v0  ;;  %v3015_v58 = vpop.permute.xlu0 %3014  ;;  %v2463_v44 = vmul.f32 %v11301_v51, %v13046_v1  ;;  %v2911_v2 = vpop.permute.xlu1 %2910 }
 0x561   : > { %v2472_v29 = vpack.c.bf16 %v2462_v32, %v2461_v53  ;;  %10184 = vmatprep.subr.bf16.mxu0 %v15972_v0  ;;  %v3020_v5 = vsel %vm922_vm1, %v3015_v58, 0 }
 0x562   : > { %v11303_v39 = vpop.eup %11302 }
 0x563   : > { %v11305_v13 = vpop.eup %11304  ;;  %10169 = vmatmul.mubr.msk.bf16.vlgmr.msra.gmra.mxu1 %vm922_vm1, %v2472_v29  ;;  %v2464_v63 = vmul.f32 %v11303_v39, %v13052_v36 }
 0x564   : > { %10179 = vmatpush3.bf16.msra.mxu1 %v13106_v56  ;;  %10180 = vmatprep.mubr.msk.bf16.mxu1 %vm11783_vm0, %v15972_v0  ;;  %v2465_v11 = vmul.f32 %v11305_v13, %v13054_v30  ;;  %v3066_v36 = vpop.permute.xlu0 %3065  ;;  %v2918_v56 = vsel %vm922_vm1, %v2913_v38, 0  ;;  %v2962_v30 = vpop.permute.xlu1 %2961 }
 0x565   : > { %v2473_v41 = vpack.c.bf16 %v2464_v63, %v2463_v44  ;;  %10190 = vmatprep.subr.bf16.mxu1 %v15972_v0  ;;  %v3071_v57 = vsel %vm922_vm1, %v3066_v36, 0 }
 0x566   : > { %v11307_v10 = vpop.eup %11306 }
 0x567   : > { %v2466_v40 = vmul.f32 %v11307_v10, %v13060_v16  ;;  %10175 = vmatmul.mubr.msk.bf16.vlgmr.msra.gmra.mxu0 %vm922_vm1, %v2473_v41  ;;  %v2969_v16 = vsel %vm922_vm1, %v2964_v61, 0 }
 0x568   : > { %10185 = vmatpush3.bf16.xpose.msra.mxu0 %v2867_v47  ;;  %10186 = vmatprep.mubr.msk.bf16.mxu0 %vm11783_vm0, %v15972_v0  ;;  %v3117_v12 = vpop.permute.xlu0 %3116  ;;  %v3013_v34 = vpop.permute.xlu1 %3012 }
 0x569   : > { %v2474_v1 = vpack.c.bf16 %v2466_v40, %v2465_v11  ;;  %10196 = vmatprep.subr.bf16.mxu0 %v15972_v0  ;;  %v3122_v14 = vsel %vm922_vm1, %v3117_v12, 0 }
 0x56b   : > { %10181 = vmatmul.mubr.msk.bf16.vlgmr.msra.gmra.mxu1 %vm922_vm1, %v2474_v1 }
 0x56c   : > { %10191 = vmatpush3.bf16.xpose.msra.mxu1 %v2918_v56  ;;  %10192 = vmatprep.mubr.msk.bf16.mxu1 %vm11783_vm0, %v15972_v0  ;;  %v3168_v38 = vpop.permute.xlu0 %3167  ;;  %v3064_v42 = vpop.permute.xlu1 %3063 }
 0x56d   : > { %10202 = vmatprep.subr.bf16.mxu1 %v15972_v0  ;;  %v3173_v26 = vsel %vm922_vm1, %v3168_v38, 0 }
 0x56f   : > { %10187 = vmatmul.mubr.msk.bf16.vlgmr.msra.gmra.mxu0 %vm922_vm1, %v2860_v6 }
 0x570   : > { %10197 = vmatpush3.bf16.xpose.msra.mxu0 %v2969_v16  ;;  %10198 = vmatprep.mubr.msk.bf16.mxu0 %vm11783_vm0, %v15972_v0  ;;  %v3219_v25 = vpop.permute.xlu0 %3218  ;;  %v3115_v45 = vpop.permute.xlu1 %3114 }
 0x571   : > { %10208 = vmatprep.subr.bf16.mxu0 %v15972_v0  ;;  %v3224_v28 = vsel %vm922_vm1, %v3219_v25, 0 }
 0x573   : > { %10193 = vmatmul.mubr.msk.bf16.vlgmr.msra.gmra.mxu1 %vm922_vm1, %v2911_v2 }
 0x574   : > { %10203 = vmatpush3.bf16.xpose.msra.mxu1 %v3020_v5  ;;  %10204 = vmatprep.mubr.msk.bf16.mxu1 %vm11783_vm0, %v15972_v0  ;;  %v3217_v4 = vpop.permute.xlu0 %3216  ;;  %v3166_v52 = vpop.permute.xlu1 %3165 }
 0x575   : > { %10214 = vmatprep.subr.bf16.mxu1 %v15972_v0 }
 0x577   : > { %10199 = vmatmul.mubr.msk.bf16.vlgmr.msra.gmra.mxu0 %vm922_vm1, %v2962_v30 }
 0x578   : > { %10209 = vmatpush3.bf16.xpose.msra.mxu0 %v3071_v57  ;;  %10210 = vmatprep.mubr.msk.bf16.mxu0 %vm11783_vm0, %v15972_v0  ;;  %v3468_v61 = vpop.permute.xlu0 %3467  ;;  %v3515_v48 = vpop.permute.xlu1 %3514 }
 0x579   : > { %10220 = vmatprep.subr.bf16.mxu0 %v15972_v0 }
 0x57b   : > { %10205 = vmatmul.mubr.msk.bf16.vlgmr.msra.gmra.mxu1 %vm922_vm1, %v3013_v34 }
 0x57c   : > { %10215 = vmatpush3.bf16.xpose.msra.mxu1 %v3122_v14  ;;  %10216 = vmatprep.mubr.msk.bf16.mxu1 %vm11783_vm0, %v15972_v0 }
 0x57d   : > { %10226 = vmatprep.subr.bf16.mxu1 %v15972_v0 }
 0x57f   : > { %10211 = vmatmul.mubr.msk.bf16.vlgmr.msra.gmra.mxu0 %vm922_vm1, %v3064_v42 }
 0x580   : > { %10221 = vmatpush3.bf16.xpose.msra.mxu0 %v3173_v26  ;;  %10222 = vmatprep.mubr.msk.bf16.mxu0 %vm11783_vm0, %v15972_v0 }
 0x581   : > { %10232 = vmatprep.subr.bf16.mxu0 %v15972_v0 }
 0x583   : > { %10217 = vmatmul.mubr.msk.bf16.vlgmr.msra.gmra.mxu1 %vm922_vm1, %v3115_v45 }
 0x584   : > { %10227 = vmatpush3.bf16.xpose.msra.mxu1 %v3224_v28  ;;  %10228 = vmatprep.mubr.msk.bf16.mxu1 %vm11783_vm0, %v15972_v0 }
 0x585   : > { %10238 = vmatprep.subr.bf16.mxu1 %v15972_v0 }
 0x587   : > { %10223 = vmatmul.mubr.msk.bf16.vlgmr.msra.gmra.mxu0 %vm922_vm1, %v3166_v52 }
 0x588   : > { %10233 = vmatpush3.bf16.msra.mxu0 %v3468_v61  ;;  %10234 = vmatprep.mubr.msk.bf16.mxu0 %vm11783_vm0, %v15972_v0 }
 0x589   : > { %10244 = vmatprep.subr.bf16.mxu0 %v15972_v0 }
 0x58b   : > { %10229 = vmatmul.mubr.msk.bf16.vlgmr.msra.gmra.mxu1 %vm922_vm1, %v3217_v4 }
 0x58c   : > { %10239 = vmatpush3.bf16.msra.mxu1 %v3515_v48  ;;  %10240 = vmatprep.mubr.msk.bf16.mxu1 %vm11783_vm0, %v15972_v0 }
 0x58d   : > { %10250 = vmatprep.subr.bf16.mxu1 %v15972_v0 }
 0x60f   : > { %v13204_v62 = vpop.f32.mrf.mxu0 }
 0x610   : > { %16042 = vst [vmem:[#allocation23_spill] sm:$0xff] %v13204_v62 }
 0x611   : > { %v10140_v53 = vpop.f32.mrf.mxu0 }
 0x613   : > { %v13206_v32 = vpop.f32.mrf.mxu0  ;;  %v13210_v6 = vpop.f32.mrf.mxu1 }
 0x614   : > { %16043 = vst [vmem:[#allocation21_spill] sm:$0xff] %v13206_v32  ;;  %16044 = vst [vmem:[#allocation26_spill] sm:$0xff] %v13210_v6 }
 0x615   : > { %v10141_v29 = vpop.f32.mrf.mxu0  ;;  %v10146_v39 = vpop.f32.mrf.mxu1 }
 0x617   : > { %v13212_v13 = vpop.f32.mrf.mxu1  ;;  %v13214_v58 = vpop.f32.mrf.mxu0 }
 0x618   : > { %16045 = vst [vmem:[#allocation10_spill] sm:$0xff] %v13212_v13  ;;  %16046 = vst [vmem:[#allocation25_spill] sm:$0xff] %v13214_v58 }
 0x619   : > { %v10147_v63 = vpop.f32.mrf.mxu1  ;;  %v10152_v10 = vpop.f32.mrf.mxu0 }
 0x61b   : > { %v13218_v41 = vpop.f32.mrf.mxu0  ;;  %v13220_v11 = vpop.f32.mrf.mxu1 }
 0x61c   : > { %16047 = vst [vmem:[#allocation27_spill] sm:$0xff] %v13218_v41  ;;  %16048 = vst [vmem:[#allocation28_spill] sm:$0xff] %v13220_v11 }
 0x61d   : > { %v10153_v47 = vpop.f32.mrf.mxu0  ;;  %v10158_v2 = vpop.f32.mrf.mxu1 }
 0x61f   : > { %v13224_v1 = vpop.f32.mrf.mxu1  ;;  %v13226_v36 = vpop.f32.mrf.mxu0 }
 0x620   : > { %16049 = vst [vmem:[#allocation12_spill] sm:$0xff] %v13224_v1  ;;  %16050 = vst [vmem:[#allocation29_spill] sm:$0xff] %v13226_v36 }
 0x621   : > { %v10159_v30 = vpop.f32.mrf.mxu1  ;;  %v10164_v16 = vpop.f32.mrf.mxu0 }
 0x623   : > { %v13230_v12 = vpop.f32.mrf.mxu0  ;;  %v13232_v5 = vpop.f32.mrf.mxu1 }
 0x624   : > { %16051 = vst [vmem:[#allocation33_spill] sm:$0xff] %v13230_v12  ;;  %16052 = vst [vmem:[#allocation31_spill] sm:$0xff] %v13232_v5 }
 0x625   : > { %v10165_v38 = vpop.f32.mrf.mxu0  ;;  %v10170_v57 = vpop.f32.mrf.mxu1 }
 0x627   : > { %v13236_v42 = vpop.f32.mrf.mxu1  ;;  %v13238_v14 = vpop.f32.mrf.mxu0 }
 0x628   : > { %16053 = vst [vmem:[#allocation32_spill] sm:$0xff] %v13236_v42  ;;  %16054 = vst [vmem:[#allocation36_spill] sm:$0xff] %v13238_v14 }
 0x629   : > { %v10171_v26 = vpop.f32.mrf.mxu1  ;;  %v10176_v45 = vpop.f32.mrf.mxu0 }
 0x62b   : > { %v13242_v4 = vpop.f32.mrf.mxu0  ;;  %v13244_v28 = vpop.f32.mrf.mxu1 }
 0x62c   : > { %16055 = vst [vmem:[#allocation35_spill] sm:$0xff] %v13242_v4  ;;  %16056 = vst [vmem:[#allocation7_spill] sm:$0xff] %v13244_v28 }
 0x62d   : > { %v10177_v61 = vpop.f32.mrf.mxu0  ;;  %v10182_v48 = vpop.f32.mrf.mxu1 }
 0x62f   : > { %v13248_v53 = vpop.f32.mrf.mxu1  ;;  %v2903_v29 = vpop.f32.mrf.mxu0 }
 0x630   : > { %16057 = vst [vmem:[#allocation34_spill] sm:$0xff] %v13248_v53  ;;  %v2904_v63 = vadd.f32 %v12900_v21, %v2903_v29 }
 0x631   : > { %v10183_v10 = vpop.f32.mrf.mxu1  ;;  %v10188_v47 = vpop.f32.mrf.mxu0 }
 0x632   : > { %v13253_v2 = vmul.f32 0.25, %v2904_v63 }
 0x633   : > { %v2906_v30 = vpop.f32.mrf.mxu0  ;;  %v2954_v16 = vpop.f32.mrf.mxu1 }
 0x634   : > { %v2907_v38 = vadd.f32 %v12894_v24, %v2906_v30  ;;  %v2955_v57 = vadd.f32 %v12900_v21, %v2954_v16  ;;  %v3283_v26 = vsel %vm922_vm1, %v13253_v2, -inf }
 0x635   : > { %3284 = vmax.xlane.f32.xlu1 %v3283_v26  ;;  %v10189_v45 = vpop.f32.mrf.mxu0  ;;  %v10194_v61 = vpop.f32.mrf.mxu1 }
 0x636   : > { %v13259_v48 = vmul.f32 0.25, %v2955_v57  ;;  %v13261_v39 = vmul.f32 0.25, %v2907_v38 }
 0x637   : > { %v2957_v29 = vpop.f32.mrf.mxu1  ;;  %v3005_v10 = vpop.f32.mrf.mxu0 }
 0x638   : > { %v2958_v63 = vadd.f32 %v12894_v24, %v2957_v29  ;;  %v3006_v47 = vadd.f32 %v12900_v21, %v3005_v10  ;;  %v3289_v30 = vsel %vm922_vm1, %v13259_v48, -inf  ;;  %v3286_v38 = vsel %vm922_vm1, %v13261_v39, -inf }
 0x639   : > { %3290 = vmax.xlane.f32.xlu0 %v3289_v30  ;;  %v10195_v16 = vpop.f32.mrf.mxu1  ;;  %v10200_v52 = vpop.f32.mrf.mxu0 }
 0x63a   : > { %v13267_v56 = vmul.f32 0.25, %v2958_v63  ;;  %v13271_v57 = vmul.f32 0.25, %v3006_v47 }
 0x63b   : > { %v3008_v26 = vpop.f32.mrf.mxu0  ;;  %v3056_v45 = vpop.f32.mrf.mxu1 }
 0x63c   : > { %v3009_v61 = vadd.f32 %v12894_v24, %v3008_v26  ;;  %v3057_v29 = vadd.f32 %v12900_v21, %v3056_v45  ;;  %v3292_v10 = vsel %vm922_vm1, %v13267_v56, -inf  ;;  %v3295_v26 = vsel %vm922_vm1, %v13271_v57, -inf }
 0x63d   : > { %3287 = vmax.xlane.f32.xlu0 %v3286_v38  ;;  %3293 = vmax.xlane.f32.xlu1 %v3292_v10  ;;  %v10201_v30 = vpop.f32.mrf.mxu0  ;;  %v10206_v52 = vpop.f32.mrf.mxu1 }
 0x63e   : > { %v13277_v63 = vmul.f32 0.25, %v3009_v61  ;;  %v13279_v16 = vmul.f32 0.25, %v3057_v29 }
 0x63f   : > { %v3059_v40 = vpop.f32.mrf.mxu1  ;;  %v3107_v25 = vpop.f32.mrf.mxu0 }
 0x640   : > { %v3060_v47 = vadd.f32 %v12894_v24, %v3059_v40  ;;  %v3108_v34 = vadd.f32 %v12900_v21, %v3107_v25  ;;  %v3298_v45 = vsel %vm922_vm1, %v13277_v63, -inf  ;;  %v3301_v52 = vsel %vm922_vm1, %v13279_v16, -inf }
 0x641   : > { %3296 = vmax.xlane.f32.xlu0 %v3295_v26  ;;  %3299 = vmax.xlane.f32.xlu1 %v3298_v45  ;;  %v10207_v38 = vpop.f32.mrf.mxu1  ;;  %v10212_v10 = vpop.f32.mrf.mxu0 }
 0x642   : > { %v13287_v61 = vmul.f32 0.25, %v3060_v47  ;;  %v13291_v40 = vmul.f32 0.25, %v3108_v34 }
 0x643   : > { %v3110_v29 = vpop.f32.mrf.mxu0  ;;  %v3158_v30 = vpop.f32.mrf.mxu1 }
 0x644   : > { %v3111_v25 = vadd.f32 %v12894_v24, %v3110_v29  ;;  %v3159_v44 = vadd.f32 %v12900_v21, %v3158_v30  ;;  %v3304_v51 = vsel %vm922_vm1, %v13287_v61, -inf  ;;  %v3307_v29 = vsel %vm922_vm1, %v13291_v40, -inf }
 0x645   : > { %3302 = vmax.xlane.f32.xlu0 %v3301_v52  ;;  %3305 = vmax.xlane.f32.xlu1 %v3304_v51  ;;  %v10213_v26 = vpop.f32.mrf.mxu0  ;;  %v10218_v45 = vpop.f32.mrf.mxu1 }
 0x646   : > { %v13297_v47 = vmul.f32 0.25, %v3111_v25  ;;  %v13299_v38 = vmul.f32 0.25, %v3159_v44 }
 0x647   : > { %v3161_v10 = vpop.f32.mrf.mxu1  ;;  %v3209_v28 = vpop.f32.mrf.mxu0 }
 0x648   : > { %v3162_v34 = vadd.f32 %v12894_v24, %v3161_v10  ;;  %v3210_v53 = vadd.f32 %v12900_v21, %v3209_v28  ;;  %v3310_v30 = vsel %vm922_vm1, %v13297_v47, -inf  ;;  %v3313_v45 = vsel %vm922_vm1, %v13299_v38, -inf }
 0x649   : > { %3308 = vmax.xlane.f32.xlu0 %v3307_v29  ;;  %3311 = vmax.xlane.f32.xlu1 %v3310_v30  ;;  %v10219_v51 = vpop.f32.mrf.mxu1  ;;  %v10224_v52 = vpop.f32.mrf.mxu0 }
 0x64a   : > { %v13307_v25 = vmul.f32 0.25, %v3162_v34  ;;  %v13311_v10 = vmul.f32 0.25, %v3210_v53 }
 0x64b   : > { %v3212_v44 = vpop.f32.mrf.mxu0  ;;  %v3260_v26 = vpop.f32.mrf.mxu1 }
 0x64c   : > { %v3213_v28 = vadd.f32 %v12894_v24, %v3212_v44  ;;  %v3261_v14 = vadd.f32 %v12900_v21, %v3260_v26  ;;  %v3316_v4 = vsel %vm922_vm1, %v13307_v25, -inf  ;;  %v3319_v53 = vsel %vm922_vm1, %v13311_v10, -inf }
 0x64d   : > { %3314 = vmax.xlane.f32.xlu0 %v3313_v45  ;;  %3317 = vmax.xlane.f32.xlu1 %v3316_v4  ;;  %v10225_v29 = vpop.f32.mrf.mxu0  ;;  %v10230_v30 = vpop.f32.mrf.mxu1 }
 0x64e   : > { %v13317_v34 = vmul.f32 0.25, %v3213_v28  ;;  %v13319_v52 = vmul.f32 0.25, %v3261_v14 }
 0x64f   : > { %v3263_v51 = vpop.f32.mrf.mxu1 }
 0x650   : > { %v3264_v11 = vadd.f32 %v12894_v24, %v3263_v51  ;;  %v3322_v21 = vsel %vm922_vm1, %v13317_v34, -inf  ;;  %v3325_v4 = vsel %vm922_vm1, %v13319_v52, -inf  ;;  %v13344_v24 = vpop.permute.xlu1 %3561 }
 0x651   : > { %v10231_v44 = vpop.f32.mrf.mxu1  ;;  %3320 = vmax.xlane.f32.xlu0 %v3319_v53  ;;  %3323 = vmax.xlane.f32.xlu1 %v3322_v21 }
 0x652   : > { %v13326_v26 = vmul.f32 0.25, %v3264_v11 }
 0x654   : > { %v3328_v14 = vsel %vm922_vm1, %v13326_v26, -inf }
 0x655   : > { %3326 = vmax.xlane.f32.xlu0 %v3325_v4  ;;  %3329 = vmax.xlane.f32.xlu1 %v3328_v14 }
 0x666   : > { %3655 = vrot.lane.b32.xlu1 %v12732_v46, %s11785_s17 }
 0x66a   : > { %3749 = vrot.lane.b32.xlu1 %v12778_v43, %s11785_s17 }
 0x66b   : > { %3608 = vrot.lane.b32.xlu0 %v12717_v49, %s11785_s17 }
 0x66e   : > { %3845 = vrot.lane.b32.xlu1 %v12043_v20, %s11786_s18 }
 0x66f   : > { %3702 = vrot.lane.b32.xlu0 %v12743_v9, %s11785_s17 }
 0x673   : > { %3796 = vrot.lane.b32.xlu0 %v12789_v19, %s11785_s17 }
 0x6be   : > { %v3285_v11 = vpop.xlane.xlu1 %3284 }
 0x6bf   : > { %v3331_v45 = vsub.f32 %v13253_v2, %v3285_v11 }
 0x6c1   : > { %v3347_v28 = vmul.f32 1.442695, %v3331_v45 }
 0x6c2   : > { %v3291_v29 = vpop.xlane.xlu0 %3290 }
 0x6c3   : > { %11308 = vpow2.f32 %v3347_v28  ;;  %v3333_v30 = vsub.f32 %v13259_v48, %v3291_v29 }
 0x6c5   : > { %v3351_v51 = vmul.f32 1.442695, %v3333_v30 }
 0x6c6   : > { %v3288_v53 = vpop.xlane.xlu0 %3287  ;;  %v3294_v21 = vpop.xlane.xlu1 %3293 }
 0x6c7   : > { %11310 = vpow2.f32 %v3351_v51  ;;  %v3332_v44 = vsub.f32 %v13261_v39, %v3288_v53  ;;  %v3334_v4 = vsub.f32 %v13267_v56, %v3294_v21 }
 0x6c9   : > { %v3349_v14 = vmul.f32 1.442695, %v3332_v44  ;;  %v3353_v1 = vmul.f32 1.442695, %v3334_v4 }
 0x6ca   : > { %v3297_v58 = vpop.xlane.xlu0 %3296  ;;  %v3300_v41 = vpop.xlane.xlu1 %3299 }
 0x6cb   : > { %11312 = vpow2.f32 %v3349_v14  ;;  %v3335_v2 = vsub.f32 %v13271_v57, %v3297_v58  ;;  %v3336_v11 = vsub.f32 %v13277_v63, %v3300_v41 }
 0x6cc   : > { %11314 = vpow2.f32 %v3353_v1 }
 0x6cd   : > { %v3355_v45 = vmul.f32 1.442695, %v3335_v2  ;;  %v3357_v48 = vmul.f32 1.442695, %v3336_v11 }
 0x6ce   : > { %v3303_v28 = vpop.xlane.xlu0 %3302  ;;  %v3306_v29 = vpop.xlane.xlu1 %3305 }
 0x6cf   : > { %11316 = vpow2.f32 %v3355_v45  ;;  %v3337_v30 = vsub.f32 %v13279_v16, %v3303_v28  ;;  %v3338_v39 = vsub.f32 %v13287_v61, %v3306_v29 }
 0x6d0   : > { %v13354_v56 = vpop.eup %11308  ;;  %11318 = vpow2.f32 %v3357_v48 }
 0x6d1   : > { %v3359_v51 = vmul.f32 1.442695, %v3337_v30  ;;  %v3361_v53 = vmul.f32 1.442695, %v3338_v39  ;;  %v3379_v58 = vsel %vm922_vm1, %v13354_v56, 0.0 }
 0x6d2   : > { %v3309_v57 = vpop.xlane.xlu0 %3308  ;;  %3380 = vadd.xlane.f32.xlu0 %v3379_v58  ;;  %v3312_v41 = vpop.xlane.xlu1 %3311 }
 0x6d3   : > { %11320 = vpow2.f32 %v3359_v51  ;;  %v3339_v1 = vsub.f32 %v13291_v40, %v3309_v57  ;;  %v3340_v63 = vsub.f32 %v13297_v47, %v3312_v41 }
 0x6d4   : > { %v13360_v21 = vpop.eup %11310  ;;  %11322 = vpow2.f32 %v3361_v53 }
 0x6d5   : > { %v3363_v16 = vmul.f32 1.442695, %v3339_v1  ;;  %v3365_v61 = vmul.f32 1.442695, %v3340_v63  ;;  %v3385_v44 = vsel %vm922_vm1, %v13360_v21, 0.0 }
 0x6d6   : > { %v3315_v4 = vpop.xlane.xlu0 %3314  ;;  %3386 = vadd.xlane.f32.xlu0 %v3385_v44  ;;  %v3318_v14 = vpop.xlane.xlu1 %3317 }
 0x6d7   : > { %11324 = vpow2.f32 %v3363_v16  ;;  %v3341_v2 = vsub.f32 %v13299_v38, %v3315_v4  ;;  %v3342_v11 = vsub.f32 %v13307_v25, %v3318_v14 }
 0x6d8   : > { %v13366_v45 = vpop.eup %11312  ;;  %11326 = vpow2.f32 %v3365_v61 }
 0x6d9   : > { %v13368_v40 = vpop.eup %11314  ;;  %v3367_v47 = vmul.f32 1.442695, %v3341_v2  ;;  %v3369_v48 = vmul.f32 1.442695, %v3342_v11  ;;  %v3382_v28 = vsel %vm922_vm1, %v13366_v45, 0.0 }
 0x6da   : > { %v3321_v29 = vpop.xlane.xlu0 %3320  ;;  %3383 = vadd.xlane.f32.xlu1 %v3382_v28  ;;  %v3324_v30 = vpop.xlane.xlu1 %3323  ;;  %v3388_v25 = vsel %vm922_vm1, %v13368_v40, 0.0 }
 0x6db   : > { %11328 = vpow2.f32 %v3367_v47  ;;  %v3343_v39 = vsub.f32 %v13311_v10, %v3321_v29  ;;  %v3344_v38 = vsub.f32 %v13317_v34, %v3324_v30 }
 0x6dc   : > { %v13374_v51 = vpop.eup %11316  ;;  %11330 = vpow2.f32 %v3369_v48 }
 0x6dd   : > { %v13378_v53 = vpop.eup %11318  ;;  %v3371_v58 = vmul.f32 1.442695, %v3343_v39  ;;  %v3373_v57 = vmul.f32 1.442695, %v3344_v38  ;;  %v3391_v41 = vsel %vm922_vm1, %v13374_v51, 0.0 }
 0x6de   : > { %v3327_v1 = vpop.xlane.xlu0 %3326  ;;  %3392 = vadd.xlane.f32.xlu0 %v3391_v41  ;;  %3389 = vadd.xlane.f32.xlu1 %v3388_v25  ;;  %v3330_v63 = vpop.xlane.xlu1 %3329  ;;  %v3394_v61 = vsel %vm922_vm1, %v13378_v53, 0.0 }
 0x6df   : > { %11332 = vpow2.f32 %v3371_v58  ;;  %v3345_v10 = vsub.f32 %v13319_v52, %v3327_v1  ;;  %v3346_v34 = vsub.f32 %v13326_v26, %v3330_v63 }
 0x6e0   : > { %v13384_v16 = vpop.eup %11320  ;;  %11334 = vpow2.f32 %v3373_v57 }
 0x6e1   : > { %v3375_v44 = vmul.f32 1.442695, %v3345_v10  ;;  %v3377_v4 = vmul.f32 1.442695, %v3346_v34  ;;  %v3397_v14 = vsel %vm922_vm1, %v13384_v16, 0.0  ;;  %v13390_v2 = vpop.eup %11322 }
 0x6e2   : > { %3398 = vadd.xlane.f32.xlu0 %v3397_v14  ;;  %3395 = vadd.xlane.f32.xlu1 %v3394_v61  ;;  %v3400_v26 = vsel %vm922_vm1, %v13390_v2, 0.0  ;;  %v3609_v34 = vpop.permute.xlu0 %3608  ;;  %v13462_v61 = vpop.permute.xlu1 %3655 }
 0x6e3   : > { %11336 = vpow2.f32 %v3375_v44 }
 0x6e4   : > { %v13392_v11 = vpop.eup %11324  ;;  %11338 = vpow2.f32 %v3377_v4 }
 0x6e5   : > { %v3403_v52 = vsel %vm922_vm1, %v13392_v11, 0.0  ;;  %v13398_v47 = vpop.eup %11326 }
 0x6e6   : > { %3404 = vadd.xlane.f32.xlu0 %v3403_v52  ;;  %3401 = vadd.xlane.f32.xlu1 %v3400_v26  ;;  %v3406_v29 = vsel %vm922_vm1, %v13398_v47, 0.0  ;;  %v13464_v44 = vpop.permute.xlu0 %3702  ;;  %v13466_v4 = vpop.permute.xlu1 %3749 }
 0x6e8   : > { %v13400_v48 = vpop.eup %11328 }
 0x6e9   : > { %v3409_v28 = vsel %vm922_vm1, %v13400_v48, 0.0  ;;  %v13406_v30 = vpop.eup %11330 }
 0x6ea   : > { %3410 = vadd.xlane.f32.xlu0 %v3409_v28  ;;  %3407 = vadd.xlane.f32.xlu1 %v3406_v29  ;;  %v3412_v25 = vsel %vm922_vm1, %v13406_v30, 0.0  ;;  %v13468_v14 = vpop.permute.xlu0 %3796  ;;  %v13470_v26 = vpop.permute.xlu1 %3845 }
 0x6ec   : > { %v13408_v39 = vpop.eup %11332 }
 0x6ed   : > { %v3415_v38 = vsel %vm922_vm1, %v13408_v39, 0.0  ;;  %v13414_v58 = vpop.eup %11334 }
 0x6ee   : > { %3416 = vadd.xlane.f32.xlu0 %v3415_v38  ;;  %3413 = vadd.xlane.f32.xlu1 %v3412_v25  ;;  %v3418_v1 = vsel %vm922_vm1, %v13414_v58, 0.0 }
 0x6f0   : > { %v13416_v57 = vpop.eup %11336 }
 0x6f1   : > { %v3421_v41 = vsel %vm922_vm1, %v13416_v57, 0.0  ;;  %v13422_v63 = vpop.eup %11338 }
 0x6f2   : > { %3422 = vadd.xlane.f32.xlu0 %v3421_v41  ;;  %3419 = vadd.xlane.f32.xlu1 %v3418_v1  ;;  %v3424_v10 = vsel %vm922_vm1, %v13422_v63, 0.0 }
 0x6f6   : > { %3425 = vadd.xlane.f32.xlu1 %v3424_v10 }
 0x707   : > { %3843 = vrot.lane.b32.xlu1 %v15994_v3, %s11786_s18 }
 0x708   : > { %3896 = vrot.lane.b32.xlu0 %v12126_v59, %s11786_s18 }
 0x70b   : > { %3894 = vrot.lane.b32.xlu1 %v12171_v22, %s11786_s18 }
 0x70c   : > { %3947 = vrot.lane.b32.xlu0 %v12163_v33, %s11786_s18 }
 0x70f   : > { %3945 = vrot.lane.b32.xlu1 %v12192_v7, %s11786_s18 }
 0x710   : > { %3998 = vrot.lane.b32.xlu0 %v12180_v60, %s11786_s18 }
 0x713   : > { %3996 = vrot.lane.b32.xlu1 %v12203_v55, %s11786_s18 }
 0x714   : > { %4049 = vrot.lane.b32.xlu0 %v12253_v31, %s11786_s18 }
 0x717   : > { %4047 = vrot.lane.b32.xlu1 %v12284_v35, %s11786_s18 }
 0x718   : > { %4100 = vrot.lane.b32.xlu0 %v12282_v50, %s11786_s18 }
 0x71b   : > { %4098 = vrot.lane.b32.xlu1 %v15996_v54, %s11786_s18 }
 0x71c   : > { %4151 = vrot.lane.b32.xlu0 %v12398_v27, %s11786_s18 }
 0x71f   : > { %4149 = vrot.lane.b32.xlu1 %v12425_v18, %s11786_s18 }
 0x720   : > { %4202 = vrot.lane.b32.xlu0 %v12419_v15, %s11786_s18 }
 0x723   : > { %4498 = vrot.lane.b32.xlu1 %v16038_v8, %s11786_s18 }
 0x724   : > { %4200 = vrot.lane.b32.xlu0 %v16039_v37, %s11786_s18 }
 0x727   : > { %4545 = vrot.lane.b32.xlu1 %v16040_v23, %s11786_s18 }
 0x728   : > { %4451 = vrot.lane.b32.xlu0 %v16041_v17, %s11786_s18 }
 0x75b   : > { %v3381_v52 = vpop.xlane.xlu0 %3380 }
 0x75c   : > { %11340 = vrcp.f32 %v3381_v52 }
 0x75f   : > { %v3387_v28 = vpop.xlane.xlu0 %3386 }
 0x763   : > { %v3384_v29 = vpop.xlane.xlu1 %3383 }
 0x764   : > { %11342 = vrcp.f32 %v3384_v29 }
 0x765   : > { %11344 = vrcp.f32 %v3387_v28 }
 0x767   : > { %v3393_v38 = vpop.xlane.xlu0 %3392  ;;  %v3390_v25 = vpop.xlane.xlu1 %3389 }
 0x768   : > { %11346 = vrcp.f32 %v3390_v25 }
 0x769   : > { %11348 = vrcp.f32 %v3393_v38  ;;  %v11341_v10 = vpop.eup %11340 }
 0x76a   : > { %v3443_v12 = vmul.f32 %v11341_v10, %v13354_v56 }
 0x76b   : > { %v3399_v41 = vpop.xlane.xlu0 %3398  ;;  %v3396_v1 = vpop.xlane.xlu1 %3395 }
 0x76c   : > { %11350 = vrcp.f32 %v3396_v1 }
 0x76d   : > { %11352 = vrcp.f32 %v3399_v41 }
 0x76f   : > { %v3405_v5 = vpop.xlane.xlu0 %3404  ;;  %v3402_v42 = vpop.xlane.xlu1 %3401 }
 0x770   : > { %11354 = vrcp.f32 %v3402_v42 }
 0x771   : > { %v11343_v36 = vpop.eup %11342  ;;  %11356 = vrcp.f32 %v3405_v5 }
 0x772   : > { %v3444_v52 = vmul.f32 %v11343_v36, %v13366_v45  ;;  %v11345_v6 = vpop.eup %11344 }
 0x773   : > { %v3411_v29 = vpop.xlane.xlu0 %3410  ;;  %v3408_v28 = vpop.xlane.xlu1 %3407  ;;  %v3445_v42 = vmul.f32 %v11345_v6, %v13360_v21 }
 0x774   : > { %v3459_v13 = vpack.c.bf16 %v3444_v52, %v3443_v12  ;;  %11358 = vrcp.f32 %v3408_v28 }
 0x775   : > { %v11347_v38 = vpop.eup %11346  ;;  %11360 = vrcp.f32 %v3411_v29 }
 0x776   : > { %10235 = vmatmul.mubr.msk.bf16.vlgmr.msra.gmra.mxu0 %vm922_vm1, %v3459_v13  ;;  %v3446_v56 = vmul.f32 %v11347_v38, %v13368_v40  ;;  %v11349_v36 = vpop.eup %11348 }
 0x777   : > { %10245 = vmatpush3.bf16.msra.mxu0 %v13344_v24  ;;  %v3417_v25 = vpop.xlane.xlu0 %3416  ;;  %v3414_v41 = vpop.xlane.xlu1 %3413  ;;  %10246 = vmatprep.mubr.msk.bf16.mxu0 %vm11783_vm0, %v15972_v0  ;;  %v3447_v45 = vmul.f32 %v11349_v36, %v13374_v51 }
 0x778   : > { %10256 = vmatprep.subr.bf16.mxu0 %v15972_v0  ;;  %11362 = vrcp.f32 %v3414_v41  ;;  %v3460_v12 = vpack.c.bf16 %v3446_v56, %v3445_v42 }
 0x779   : > { %v11351_v5 = vpop.eup %11350  ;;  %11364 = vrcp.f32 %v3417_v25 }
 0x77a   : > { %10241 = vmatmul.mubr.msk.bf16.vlgmr.msra.gmra.mxu1 %vm922_vm1, %v3460_v12  ;;  %v3448_v6 = vmul.f32 %v11351_v5, %v13378_v53  ;;  %v11353_v21 = vpop.eup %11352 }
 0x77b   : > { %v3423_v13 = vpop.xlane.xlu0 %3422  ;;  %v3420_v24 = vpop.xlane.xlu1 %3419  ;;  %10251 = vmatpush3.bf16.msra.mxu1 %v3609_v34  ;;  %10252 = vmatprep.mubr.msk.bf16.mxu1 %vm11783_vm0, %v15972_v0  ;;  %v3449_v29 = vmul.f32 %v11353_v21, %v13384_v16 }
 0x77c   : > { %11366 = vrcp.f32 %v3420_v24  ;;  %v3461_v40 = vpack.c.bf16 %v3448_v6, %v3447_v45  ;;  %10262 = vmatprep.subr.bf16.mxu1 %v15972_v0  ;;  %v3851_v6 = vsel %vm922_vm1, %v13470_v26, 0 }
 0x77d   : > { %v11355_v1 = vpop.eup %11354  ;;  %11368 = vrcp.f32 %v3423_v13 }
 0x77e   : > { %10247 = vmatmul.mubr.msk.bf16.vlgmr.msra.gmra.mxu0 %vm922_vm1, %v3461_v40  ;;  %v3450_v51 = vmul.f32 %v11355_v1, %v13390_v2  ;;  %v11357_v53 = vpop.eup %11356 }
 0x77f   : > { %v3897_v10 = vpop.permute.xlu0 %3896  ;;  %v3426_v52 = vpop.xlane.xlu1 %3425  ;;  %10257 = vmatpush3.bf16.msra.mxu0 %v13462_v61  ;;  %10258 = vmatprep.mubr.msk.bf16.mxu0 %vm11783_vm0, %v15972_v0  ;;  %v3451_v38 = vmul.f32 %v11357_v53, %v13392_v11 }
 0x780   : > { %11370 = vrcp.f32 %v3426_v52  ;;  %v3462_v34 = vpack.c.bf16 %v3450_v51, %v3449_v29  ;;  %10268 = vmatprep.subr.bf16.mxu0 %v15972_v0 }
 0x781   : > { %v11359_v28 = vpop.eup %11358 }
 0x782   : > { %10253 = vmatmul.mubr.msk.bf16.vlgmr.msra.gmra.mxu1 %vm922_vm1, %v3462_v34  ;;  %v3452_v25 = vmul.f32 %v11359_v28, %v13398_v47  ;;  %v11361_v16 = vpop.eup %11360 }
 0x783   : > { %10263 = vmatpush3.bf16.msra.mxu1 %v13464_v44  ;;  %10264 = vmatprep.mubr.msk.bf16.mxu1 %vm11783_vm0, %v15972_v0  ;;  %v3948_v2 = vpop.permute.xlu0 %3947  ;;  %v3453_v42 = vmul.f32 %v11361_v16, %v13400_v48  ;;  %v3844_v47 = vpop.permute.xlu1 %3843 }
 0x784   : > { %v3463_v61 = vpack.c.bf16 %v3452_v25, %v3451_v38  ;;  %10274 = vmatprep.subr.bf16.mxu1 %v15972_v0 }
 0x785   : > { %v11363_v41 = vpop.eup %11362 }
 0x786   : > { %10259 = vmatmul.mubr.msk.bf16.vlgmr.msra.gmra.mxu0 %vm922_vm1, %v3463_v61  ;;  %v3454_v56 = vmul.f32 %v11363_v41, %v13406_v30  ;;  %v11365_v11 = vpop.eup %11364 }
 0x787   : > { %10269 = vmatpush3.bf16.msra.mxu0 %v13466_v4  ;;  %10270 = vmatprep.mubr.msk.bf16.mxu0 %vm11783_vm0, %v15972_v0  ;;  %v3999_v5 = vpop.permute.xlu0 %3998  ;;  %v3455_v13 = vmul.f32 %v11365_v11, %v13408_v39  ;;  %v3895_v21 = vpop.permute.xlu1 %3894 }
 0x788   : > { %v3464_v44 = vpack.c.bf16 %v3454_v56, %v3453_v42  ;;  %10280 = vmatprep.subr.bf16.mxu0 %v15972_v0  ;;  %v4004_v40 = vsel %vm922_vm1, %v3999_v5, 0 }
 0x789   : > { %v11367_v36 = vpop.eup %11366 }
 0x78a   : > { %v11369_v12 = vpop.eup %11368  ;;  %10265 = vmatmul.mubr.msk.bf16.vlgmr.msra.gmra.mxu1 %vm922_vm1, %v3464_v44  ;;  %v3456_v48 = vmul.f32 %v11367_v36, %v13414_v58 }
 0x78b   : > { %10275 = vmatpush3.bf16.msra.mxu1 %v13468_v14  ;;  %10276 = vmatprep.mubr.msk.bf16.mxu1 %vm11783_vm0, %v15972_v0  ;;  %v3457_v24 = vmul.f32 %v11369_v12, %v13416_v57  ;;  %v4050_v58 = vpop.permute.xlu0 %4049  ;;  %v3902_v14 = vsel %vm922_vm1, %v3897_v10, 0  ;;  %v3946_v57 = vpop.permute.xlu1 %3945 }
 0x78c   : > { %v3465_v4 = vpack.c.bf16 %v3456_v48, %v3455_v13  ;;  %10286 = vmatprep.subr.bf16.mxu1 %v15972_v0  ;;  %v4055_v52 = vsel %vm922_vm1, %v4050_v58, 0 }
 0x78d   : > { %v11371_v30 = vpop.eup %11370 }
 0x78e   : > { %v3458_v45 = vmul.f32 %v11371_v30, %v13422_v63  ;;  %10271 = vmatmul.mubr.msk.bf16.vlgmr.msra.gmra.mxu0 %vm922_vm1, %v3465_v4  ;;  %v3953_v63 = vsel %vm922_vm1, %v3948_v2, 0 }
 0x78f   : > { %10281 = vmatpush3.bf16.xpose.msra.mxu0 %v3851_v6  ;;  %10282 = vmatprep.mubr.msk.bf16.mxu0 %vm11783_vm0, %v15972_v0  ;;  %v4101_v26 = vpop.permute.xlu0 %4100  ;;  %v3997_v1 = vpop.permute.xlu1 %3996 }
 0x790   : > { %v3466_v39 = vpack.c.bf16 %v3458_v45, %v3457_v24  ;;  %10292 = vmatprep.subr.bf16.mxu0 %v15972_v0  ;;  %v4106_v51 = vsel %vm922_vm1, %v4101_v26, 0 }
 0x792   : > { %10277 = vmatmul.mubr.msk.bf16.vlgmr.msra.gmra.mxu1 %vm922_vm1, %v3466_v39 }
 0x793   : > { %10287 = vmatpush3.bf16.xpose.msra.mxu1 %v3902_v14  ;;  %10288 = vmatprep.mubr.msk.bf16.mxu1 %vm11783_vm0, %v15972_v0  ;;  %v4152_v10 = vpop.permute.xlu0 %4151  ;;  %v4048_v29 = vpop.permute.xlu1 %4047 }
 0x794   : > { %10298 = vmatprep.subr.bf16.mxu1 %v15972_v0  ;;  %v4157_v34 = vsel %vm922_vm1, %v4152_v10, 0 }
 0x796   : > { %10283 = vmatmul.mubr.msk.bf16.vlgmr.msra.gmra.mxu0 %vm922_vm1, %v3844_v47 }
 0x797   : > { %10293 = vmatpush3.bf16.xpose.msra.mxu0 %v3953_v63  ;;  %10294 = vmatprep.mubr.msk.bf16.mxu0 %vm11783_vm0, %v15972_v0  ;;  %v4203_v53 = vpop.permute.xlu0 %4202  ;;  %v4099_v28 = vpop.permute.xlu1 %4098 }
 0x798   : > { %10304 = vmatprep.subr.bf16.mxu0 %v15972_v0  ;;  %v4208_v25 = vsel %vm922_vm1, %v4203_v53, 0 }
 0x79a   : > { %10289 = vmatmul.mubr.msk.bf16.vlgmr.msra.gmra.mxu1 %vm922_vm1, %v3895_v21 }
 0x79b   : > { %10299 = vmatpush3.bf16.xpose.msra.mxu1 %v4004_v40  ;;  %10300 = vmatprep.mubr.msk.bf16.mxu1 %vm11783_vm0, %v15972_v0  ;;  %v4201_v38 = vpop.permute.xlu0 %4200  ;;  %v4150_v16 = vpop.permute.xlu1 %4149 }
 0x79c   : > { %10310 = vmatprep.subr.bf16.mxu1 %v15972_v0 }
 0x79e   : > { %10295 = vmatmul.mubr.msk.bf16.vlgmr.msra.gmra.mxu0 %vm922_vm1, %v3946_v57 }
 0x79f   : > { %10305 = vmatpush3.bf16.xpose.msra.mxu0 %v4055_v52  ;;  %10306 = vmatprep.mubr.msk.bf16.mxu0 %vm11783_vm0, %v15972_v0  ;;  %v4452_v2 = vpop.permute.xlu0 %4451  ;;  %v4499_v61 = vpop.permute.xlu1 %4498 }
 0x7a0   : > { %10316 = vmatprep.subr.bf16.mxu0 %v15972_v0 }
 0x7a2   : > { %10301 = vmatmul.mubr.msk.bf16.vlgmr.msra.gmra.mxu1 %vm922_vm1, %v3997_v1 }
 0x7a3   : > { %10311 = vmatpush3.bf16.xpose.msra.mxu1 %v4106_v51  ;;  %10312 = vmatprep.mubr.msk.bf16.mxu1 %vm11783_vm0, %v15972_v0 }
 0x7a4   : > { %10322 = vmatprep.subr.bf16.mxu1 %v15972_v0 }
 0x7a6   : > { %10307 = vmatmul.mubr.msk.bf16.vlgmr.msra.gmra.mxu0 %vm922_vm1, %v4048_v29 }
 0x7a7   : > { %10317 = vmatpush3.bf16.xpose.msra.mxu0 %v4157_v34  ;;  %10318 = vmatprep.mubr.msk.bf16.mxu0 %vm11783_vm0, %v15972_v0 }
 0x7a8   : > { %10328 = vmatprep.subr.bf16.mxu0 %v15972_v0 }
 0x7aa   : > { %10313 = vmatmul.mubr.msk.bf16.vlgmr.msra.gmra.mxu1 %vm922_vm1, %v4099_v28 }
 0x7ab   : > { %10323 = vmatpush3.bf16.xpose.msra.mxu1 %v4208_v25  ;;  %10324 = vmatprep.mubr.msk.bf16.mxu1 %vm11783_vm0, %v15972_v0 }
 0x7ac   : > { %10334 = vmatprep.subr.bf16.mxu1 %v15972_v0 }
 0x7ae   : > { %10319 = vmatmul.mubr.msk.bf16.vlgmr.msra.gmra.mxu0 %vm922_vm1, %v4150_v16 }
 0x7af   : > { %10329 = vmatpush3.bf16.msra.mxu0 %v4452_v2  ;;  %10330 = vmatprep.mubr.msk.bf16.mxu0 %vm11783_vm0, %v15972_v0 }
 0x7b0   : > { %10340 = vmatprep.subr.bf16.mxu0 %v15972_v0 }
 0x7b2   : > { %10325 = vmatmul.mubr.msk.bf16.vlgmr.msra.gmra.mxu1 %vm922_vm1, %v4201_v38 }
 0x7b3   : > { %10335 = vmatpush3.bf16.msra.mxu1 %v4499_v61  ;;  %10336 = vmatprep.mubr.msk.bf16.mxu1 %vm11783_vm0, %v15972_v0 }
 0x7b4   : > { %10346 = vmatprep.subr.bf16.mxu1 %v15972_v0 }
 0x836   : > { %v13566_v41 = vpop.f32.mrf.mxu0 }
 0x837   : > { %16058 = vst [vmem:[#allocation37_spill] sm:$0xff] %v13566_v41 }
 0x838   : > { %v10236_v42 = vpop.f32.mrf.mxu0 }
 0x83a   : > { %v13568_v56 = vpop.f32.mrf.mxu0  ;;  %v13572_v47 = vpop.f32.mrf.mxu1 }
 0x83b   : > { %16059 = vst [vmem:[#allocation38_spill] sm:$0xff] %v13568_v56  ;;  %16060 = vst [vmem:[#allocation39_spill] sm:$0xff] %v13572_v47 }
 0x83c   : > { %v10237_v44 = vpop.f32.mrf.mxu0  ;;  %v10242_v36 = vpop.f32.mrf.mxu1 }
 0x83e   : > { %v13574_v12 = vpop.f32.mrf.mxu1  ;;  %v13576_v5 = vpop.f32.mrf.mxu0 }
 0x83f   : > { %16061 = vst [vmem:[#allocation40_spill] sm:$0xff] %v13574_v12  ;;  %16062 = vst [vmem:[#allocation41_spill] sm:$0xff] %v13576_v5 }
 0x840   : > { %v10243_v48 = vpop.f32.mrf.mxu1  ;;  %v10248_v30 = vpop.f32.mrf.mxu0 }
 0x841   : > { %v13617_v48 = vld [vmem:[%s15841_s5] sm:$0xff] }
 0x842   : > { %v13580_v4 = vpop.f32.mrf.mxu0  ;;  %v13582_v24 = vpop.f32.mrf.mxu1 }
 0x843   : > { %16063 = vst [vmem:[#allocation42_spill] sm:$0xff] %v13580_v4  ;;  %16064 = vst [vmem:[#allocation43_spill] sm:$0xff] %v13582_v24 }
 0x844   : > { %v10249_v6 = vpop.f32.mrf.mxu0  ;;  %v10254_v21 = vpop.f32.mrf.mxu1 }
 0x846   : > { %v13586_v39 = vpop.f32.mrf.mxu1  ;;  %v13588_v58 = vpop.f32.mrf.mxu0 }
 0x847   : > { %16065 = vst [vmem:[#allocation44_spill] sm:$0xff] %v13586_v39  ;;  %16066 = vst [vmem:[#allocation45_spill] sm:$0xff] %v13588_v58 }
 0x848   : > { %v10255_v57 = vpop.f32.mrf.mxu1  ;;  %v10260_v63 = vpop.f32.mrf.mxu0 }
 0x84a   : > { %v13592_v26 = vpop.f32.mrf.mxu0  ;;  %v13594_v40 = vpop.f32.mrf.mxu1 }
 0x84b   : > { %16067 = vst [vmem:[#allocation46_spill] sm:$0xff] %v13592_v26  ;;  %16068 = vst [vmem:[#allocation47_spill] sm:$0xff] %v13594_v40 }
 0x84c   : > { %v10261_v10 = vpop.f32.mrf.mxu0  ;;  %v10266_v52 = vpop.f32.mrf.mxu1 }
 0x84d   : > { %v13625_v52 = vld [vmem:[%s15841_s5 + $0x8] sm:$0xff] }
 0x84e   : > { %v13598_v29 = vpop.f32.mrf.mxu1  ;;  %v13600_v51 = vpop.f32.mrf.mxu0 }
 0x84f   : > { %16069 = vst [vmem:[#allocation48_spill] sm:$0xff] %v13598_v29  ;;  %16070 = vst [vmem:[#allocation49_spill] sm:$0xff] %v13600_v51 }
 0x850   : > { %v10267_v34 = vpop.f32.mrf.mxu1  ;;  %v10272_v28 = vpop.f32.mrf.mxu0 }
 0x852   : > { %v13604_v38 = vpop.f32.mrf.mxu0  ;;  %v13606_v25 = vpop.f32.mrf.mxu1 }
 0x853   : > { %16071 = vst [vmem:[#allocation50_spill] sm:$0xff] %v13604_v38  ;;  %16072 = vst [vmem:[#allocation51_spill] sm:$0xff] %v13606_v25 }
 0x854   : > { %v10273_v2 = vpop.f32.mrf.mxu0  ;;  %v10278_v61 = vpop.f32.mrf.mxu1 }
 0x856   : > { %v13610_v42 = vpop.f32.mrf.mxu1  ;;  %v3887_v44 = vpop.f32.mrf.mxu0 }
 0x857   : > { %16073 = vst [vmem:[#allocation52_spill] sm:$0xff] %v13610_v42  ;;  %v3888_v30 = vadd.f32 %v13617_v48, %v3887_v44 }
 0x858   : > { %v10279_v6 = vpop.f32.mrf.mxu1  ;;  %v10284_v21 = vpop.f32.mrf.mxu0 }
 0x859   : > { %v13620_v57 = vmul.f32 0.25, %v3888_v30 }
 0x85a   : > { %v3890_v63 = vpop.f32.mrf.mxu0  ;;  %v3938_v10 = vpop.f32.mrf.mxu1 }
 0x85b   : > { %v3891_v34 = vadd.f32 %v13625_v52, %v3890_v63  ;;  %v3939_v28 = vadd.f32 %v13617_v48, %v3938_v10  ;;  %v4267_v2 = vsel %vm922_vm1, %v13620_v57, -inf }
 0x85c   : > { %4268 = vmax.xlane.f32.xlu1 %v4267_v2  ;;  %v10285_v61 = vpop.f32.mrf.mxu0  ;;  %v10290_v44 = vpop.f32.mrf.mxu1 }
 0x85d   : > { %v13631_v6 = vmul.f32 0.25, %v3939_v28  ;;  %v13633_v30 = vmul.f32 0.25, %v3891_v34 }
 0x85e   : > { %v3941_v21 = vpop.f32.mrf.mxu1  ;;  %v3989_v36 = vpop.f32.mrf.mxu0 }
 0x85f   : > { %v3942_v16 = vadd.f32 %v13625_v52, %v3941_v21  ;;  %v3990_v14 = vadd.f32 %v13617_v48, %v3989_v36  ;;  %v4273_v63 = vsel %vm922_vm1, %v13631_v6, -inf  ;;  %v4270_v34 = vsel %vm922_vm1, %v13633_v30, -inf }
 0x860   : > { %4274 = vmax.xlane.f32.xlu0 %v4273_v63  ;;  %v10291_v10 = vpop.f32.mrf.mxu1  ;;  %v10296_v45 = vpop.f32.mrf.mxu0 }
 0x861   : > { %v13639_v53 = vmul.f32 0.25, %v3942_v16  ;;  %v13643_v28 = vmul.f32 0.25, %v3990_v14 }
 0x862   : > { %v3992_v2 = vpop.f32.mrf.mxu0  ;;  %v4040_v61 = vpop.f32.mrf.mxu1 }
 0x863   : > { %v3993_v44 = vadd.f32 %v13625_v52, %v3992_v2  ;;  %v4041_v21 = vadd.f32 %v13617_v48, %v4040_v61  ;;  %v4276_v36 = vsel %vm922_vm1, %v13639_v53, -inf  ;;  %v4279_v2 = vsel %vm922_vm1, %v13643_v28, -inf }
 0x864   : > { %4271 = vmax.xlane.f32.xlu0 %v4270_v34  ;;  %4277 = vmax.xlane.f32.xlu1 %v4276_v36  ;;  %v10297_v63 = vpop.f32.mrf.mxu0  ;;  %v10302_v45 = vpop.f32.mrf.mxu1 }
 0x865   : > { %v13649_v16 = vmul.f32 0.25, %v3993_v44  ;;  %v13651_v10 = vmul.f32 0.25, %v4041_v21 }
 0x866   : > { %v4043_v1 = vpop.f32.mrf.mxu1  ;;  %v4091_v13 = vpop.f32.mrf.mxu0 }
 0x867   : > { %v4044_v14 = vadd.f32 %v13625_v52, %v4043_v1  ;;  %v4092_v11 = vadd.f32 %v13617_v48, %v4091_v13  ;;  %v4282_v61 = vsel %vm922_vm1, %v13649_v16, -inf  ;;  %v4285_v45 = vsel %vm922_vm1, %v13651_v10, -inf }
 0x868   : > { %4280 = vmax.xlane.f32.xlu0 %v4279_v2  ;;  %4283 = vmax.xlane.f32.xlu1 %v4282_v61  ;;  %v10303_v34 = vpop.f32.mrf.mxu1  ;;  %v10308_v36 = vpop.f32.mrf.mxu0 }
 0x869   : > { %v13659_v44 = vmul.f32 0.25, %v4044_v14  ;;  %v13663_v1 = vmul.f32 0.25, %v4092_v11 }
 0x86a   : > { %v4094_v21 = vpop.f32.mrf.mxu0  ;;  %v4142_v63 = vpop.f32.mrf.mxu1 }
 0x86b   : > { %v4095_v13 = vadd.f32 %v13625_v52, %v4094_v21  ;;  %v4143_v25 = vadd.f32 %v13617_v48, %v4142_v63  ;;  %v4288_v42 = vsel %vm922_vm1, %v13659_v44, -inf  ;;  %v4291_v21 = vsel %vm922_vm1, %v13663_v1, -inf }
 0x86c   : > { %4286 = vmax.xlane.f32.xlu0 %v4285_v45  ;;  %4289 = vmax.xlane.f32.xlu1 %v4288_v42  ;;  %v10309_v2 = vpop.f32.mrf.mxu0  ;;  %v10314_v61 = vpop.f32.mrf.mxu1 }
 0x86d   : > { %v13669_v14 = vmul.f32 0.25, %v4095_v13  ;;  %v13671_v34 = vmul.f32 0.25, %v4143_v25 }
 0x86e   : > { %v4145_v36 = vpop.f32.mrf.mxu1  ;;  %v4193_v51 = vpop.f32.mrf.mxu0 }
 0x86f   : > { %v4146_v11 = vadd.f32 %v13625_v52, %v4145_v36  ;;  %v4194_v38 = vadd.f32 %v13617_v48, %v4193_v51  ;;  %v4294_v63 = vsel %vm922_vm1, %v13669_v14, -inf  ;;  %v4297_v61 = vsel %vm922_vm1, %v13671_v34, -inf }
 0x870   : > { %4292 = vmax.xlane.f32.xlu0 %v4291_v21  ;;  %4295 = vmax.xlane.f32.xlu1 %v4294_v63  ;;  %v10315_v42 = vpop.f32.mrf.mxu1  ;;  %v10320_v45 = vpop.f32.mrf.mxu0 }
 0x871   : > { %v13679_v13 = vmul.f32 0.25, %v4146_v11  ;;  %v13683_v36 = vmul.f32 0.25, %v4194_v38 }
 0x872   : > { %v4196_v25 = vpop.f32.mrf.mxu0  ;;  %v4244_v2 = vpop.f32.mrf.mxu1 }
 0x873   : > { %v4197_v51 = vadd.f32 %v13625_v52, %v4196_v25  ;;  %v4245_v24 = vadd.f32 %v13617_v48, %v4244_v2  ;;  %v4300_v39 = vsel %vm922_vm1, %v13679_v13, -inf  ;;  %v4303_v38 = vsel %vm922_vm1, %v13683_v36, -inf }
 0x874   : > { %4298 = vmax.xlane.f32.xlu0 %v4297_v61  ;;  %4301 = vmax.xlane.f32.xlu1 %v4300_v39  ;;  %v10321_v21 = vpop.f32.mrf.mxu0  ;;  %v10326_v63 = vpop.f32.mrf.mxu1 }
 0x875   : > { %v13689_v11 = vmul.f32 0.25, %v4197_v51  ;;  %v13691_v45 = vmul.f32 0.25, %v4245_v24 }
 0x876   : > { %v4247_v42 = vpop.f32.mrf.mxu1 }
 0x877   : > { %v4248_v5 = vadd.f32 %v13625_v52, %v4247_v42  ;;  %v4306_v25 = vsel %vm922_vm1, %v13689_v11, -inf  ;;  %v4309_v39 = vsel %vm922_vm1, %v13691_v45, -inf }
 0x878   : > { %v10327_v2 = vpop.f32.mrf.mxu1  ;;  %4304 = vmax.xlane.f32.xlu0 %v4303_v38  ;;  %4307 = vmax.xlane.f32.xlu1 %v4306_v25 }
 0x879   : > { %v13698_v61 = vmul.f32 0.25, %v4248_v5  ;;  %v13716_v5 = vpop.permute.xlu1 %4545 }
 0x87b   : > { %v4312_v24 = vsel %vm922_vm1, %v13698_v61, -inf }
 0x87c   : > { %4310 = vmax.xlane.f32.xlu0 %v4309_v39  ;;  %4313 = vmax.xlane.f32.xlu1 %v4312_v24 }
 0x88d   : > { %4639 = vrot.lane.b32.xlu1 %v12732_v46, %s11786_s18 }
 0x891   : > { %4733 = vrot.lane.b32.xlu1 %v12778_v43, %s11786_s18 }
 0x892   : > { %4592 = vrot.lane.b32.xlu0 %v12717_v49, %s11786_s18 }
 0x895   : > { %4829 = vrot.lane.b32.xlu1 %v12043_v20, %s11787_s30 }
 0x896   : > { %4686 = vrot.lane.b32.xlu0 %v12743_v9, %s11786_s18 }
 0x89a   : > { %4780 = vrot.lane.b32.xlu0 %v12789_v19, %s11786_s18 }
 0x8e5   : > { %v4269_v51 = vpop.xlane.xlu1 %4268 }
 0x8e6   : > { %v4315_v21 = vsub.f32 %v13620_v57, %v4269_v51 }
 0x8e8   : > { %v4331_v63 = vmul.f32 1.442695, %v4315_v21 }
 0x8e9   : > { %v4275_v42 = vpop.xlane.xlu0 %4274 }
 0x8ea   : > { %11372 = vpow2.f32 %v4331_v63  ;;  %v4317_v38 = vsub.f32 %v13631_v6, %v4275_v42 }
 0x8ec   : > { %v4335_v25 = vmul.f32 1.442695, %v4317_v38 }
 0x8ed   : > { %v4272_v2 = vpop.xlane.xlu0 %4271  ;;  %v4278_v39 = vpop.xlane.xlu1 %4277 }
 0x8ee   : > { %11374 = vpow2.f32 %v4335_v25  ;;  %v4316_v24 = vsub.f32 %v13633_v30, %v4272_v2  ;;  %v4318_v4 = vsub.f32 %v13639_v53, %v4278_v39 }
 0x8f0   : > { %v4333_v40 = vmul.f32 1.442695, %v4316_v24  ;;  %v4337_v29 = vmul.f32 1.442695, %v4318_v4 }
 0x8f1   : > { %v4281_v58 = vpop.xlane.xlu0 %4280  ;;  %v4284_v26 = vpop.xlane.xlu1 %4283 }
 0x8f2   : > { %11376 = vpow2.f32 %v4333_v40  ;;  %v4319_v57 = vsub.f32 %v13643_v28, %v4281_v58  ;;  %v4320_v51 = vsub.f32 %v13649_v16, %v4284_v26 }
 0x8f3   : > { %11378 = vpow2.f32 %v4337_v29 }
 0x8f4   : > { %v4339_v21 = vmul.f32 1.442695, %v4319_v57  ;;  %v4341_v6 = vmul.f32 1.442695, %v4320_v51 }
 0x8f5   : > { %v4287_v63 = vpop.xlane.xlu0 %4286  ;;  %v4290_v42 = vpop.xlane.xlu1 %4289 }
 0x8f6   : > { %11380 = vpow2.f32 %v4339_v21  ;;  %v4321_v38 = vsub.f32 %v13651_v10, %v4287_v63  ;;  %v4322_v30 = vsub.f32 %v13659_v44, %v4290_v42 }
 0x8f7   : > { %v13726_v53 = vpop.eup %11372  ;;  %11382 = vpow2.f32 %v4341_v6 }
 0x8f8   : > { %v4343_v4 = vmul.f32 1.442695, %v4321_v38  ;;  %v4345_v25 = vmul.f32 1.442695, %v4322_v30  ;;  %v4363_v58 = vsel %vm922_vm1, %v13726_v53, 0.0 }
 0x8f9   : > { %v4293_v40 = vpop.xlane.xlu0 %4292  ;;  %4364 = vadd.xlane.f32.xlu0 %v4363_v58  ;;  %v4296_v26 = vpop.xlane.xlu1 %4295 }
 0x8fa   : > { %11384 = vpow2.f32 %v4343_v4  ;;  %v4323_v29 = vsub.f32 %v13663_v1, %v4293_v40  ;;  %v4324_v28 = vsub.f32 %v13669_v14, %v4296_v26 }
 0x8fb   : > { %v13732_v16 = vpop.eup %11374  ;;  %11386 = vpow2.f32 %v4345_v25 }
 0x8fc   : > { %v4347_v10 = vmul.f32 1.442695, %v4323_v29  ;;  %v4349_v44 = vmul.f32 1.442695, %v4324_v28  ;;  %v4369_v2 = vsel %vm922_vm1, %v13732_v16, 0.0 }
 0x8fd   : > { %v4299_v39 = vpop.xlane.xlu0 %4298  ;;  %4370 = vadd.xlane.f32.xlu0 %v4369_v2  ;;  %v4302_v24 = vpop.xlane.xlu1 %4301 }
 0x8fe   : > { %11388 = vpow2.f32 %v4347_v10  ;;  %v4325_v57 = vsub.f32 %v13671_v34, %v4299_v39  ;;  %v4326_v51 = vsub.f32 %v13679_v13, %v4302_v24 }
 0x8ff   : > { %v13738_v21 = vpop.eup %11376  ;;  %11390 = vpow2.f32 %v4349_v44 }
 0x900   : > { %v13740_v1 = vpop.eup %11378  ;;  %v4351_v14 = vmul.f32 1.442695, %v4325_v57  ;;  %v4353_v6 = vmul.f32 1.442695, %v4326_v51  ;;  %v4366_v63 = vsel %vm922_vm1, %v13738_v21, 0.0 }
 0x901   : > { %v4305_v42 = vpop.xlane.xlu0 %4304  ;;  %4367 = vadd.xlane.f32.xlu1 %v4366_v63  ;;  %v4308_v38 = vpop.xlane.xlu1 %4307  ;;  %v4372_v13 = vsel %vm922_vm1, %v13740_v1, 0.0 }
 0x902   : > { %11392 = vpow2.f32 %v4351_v14  ;;  %v4327_v30 = vsub.f32 %v13683_v36, %v4305_v42  ;;  %v4328_v34 = vsub.f32 %v13689_v11, %v4308_v38 }
 0x903   : > { %v13746_v4 = vpop.eup %11380  ;;  %11394 = vpow2.f32 %v4353_v6 }
 0x904   : > { %v13750_v25 = vpop.eup %11382  ;;  %v4355_v58 = vmul.f32 1.442695, %v4327_v30  ;;  %v4357_v40 = vmul.f32 1.442695, %v4328_v34  ;;  %v4375_v26 = vsel %vm922_vm1, %v13746_v4, 0.0 }
 0x905   : > { %v4311_v29 = vpop.xlane.xlu0 %4310  ;;  %4376 = vadd.xlane.f32.xlu0 %v4375_v26  ;;  %4373 = vadd.xlane.f32.xlu1 %v4372_v13  ;;  %v4314_v28 = vpop.xlane.xlu1 %4313  ;;  %v4378_v44 = vsel %vm922_vm1, %v13750_v25, 0.0 }
 0x906   : > { %11396 = vpow2.f32 %v4355_v58  ;;  %v4329_v36 = vsub.f32 %v13691_v45, %v4311_v29  ;;  %v4330_v11 = vsub.f32 %v13698_v61, %v4314_v28 }
 0x907   : > { %v13756_v10 = vpop.eup %11384  ;;  %11398 = vpow2.f32 %v4357_v40 }
 0x908   : > { %v4359_v2 = vmul.f32 1.442695, %v4329_v36  ;;  %v4361_v39 = vmul.f32 1.442695, %v4330_v11  ;;  %v4381_v24 = vsel %vm922_vm1, %v13756_v10, 0.0  ;;  %v13762_v57 = vpop.eup %11386 }
 0x909   : > { %4382 = vadd.xlane.f32.xlu0 %v4381_v24  ;;  %4379 = vadd.xlane.f32.xlu1 %v4378_v44  ;;  %v4384_v61 = vsel %vm922_vm1, %v13762_v57, 0.0  ;;  %v4593_v11 = vpop.permute.xlu0 %4592  ;;  %v13834_v44 = vpop.permute.xlu1 %4639 }
 0x90a   : > { %11400 = vpow2.f32 %v4359_v2 }
 0x90b   : > { %v13764_v51 = vpop.eup %11388  ;;  %11402 = vpow2.f32 %v4361_v39 }
 0x90c   : > { %v4387_v45 = vsel %vm922_vm1, %v13764_v51, 0.0  ;;  %v13770_v14 = vpop.eup %11390 }
 0x90d   : > { %4388 = vadd.xlane.f32.xlu0 %v4387_v45  ;;  %4385 = vadd.xlane.f32.xlu1 %v4384_v61  ;;  %v4390_v42 = vsel %vm922_vm1, %v13770_v14, 0.0  ;;  %v13836_v2 = vpop.permute.xlu0 %4686  ;;  %v13838_v39 = vpop.permute.xlu1 %4733 }
 0x90f   : > { %v13772_v6 = vpop.eup %11392 }
 0x910   : > { %v4393_v63 = vsel %vm922_vm1, %v13772_v6, 0.0  ;;  %v13778_v38 = vpop.eup %11394 }
 0x911   : > { %4394 = vadd.xlane.f32.xlu0 %v4393_v63  ;;  %4391 = vadd.xlane.f32.xlu1 %v4390_v42  ;;  %v4396_v13 = vsel %vm922_vm1, %v13778_v38, 0.0  ;;  %v13840_v24 = vpop.permute.xlu0 %4780  ;;  %v13842_v61 = vpop.permute.xlu1 %4829 }
 0x913   : > { %v13780_v30 = vpop.eup %11396 }
 0x914   : > { %v4399_v34 = vsel %vm922_vm1, %v13780_v30, 0.0  ;;  %v13786_v58 = vpop.eup %11398 }
 0x915   : > { %4400 = vadd.xlane.f32.xlu0 %v4399_v34  ;;  %4397 = vadd.xlane.f32.xlu1 %v4396_v13  ;;  %v4402_v29 = vsel %vm922_vm1, %v13786_v58, 0.0 }
 0x917   : > { %v13788_v40 = vpop.eup %11400 }
 0x918   : > { %v4405_v26 = vsel %vm922_vm1, %v13788_v40, 0.0  ;;  %v13794_v28 = vpop.eup %11402 }
 0x919   : > { %4406 = vadd.xlane.f32.xlu0 %v4405_v26  ;;  %4403 = vadd.xlane.f32.xlu1 %v4402_v29  ;;  %v4408_v36 = vsel %vm922_vm1, %v13794_v28, 0.0 }
 0x91d   : > { %4409 = vadd.xlane.f32.xlu1 %v4408_v36 }
 0x92e   : > { %4827 = vrot.lane.b32.xlu1 %v15994_v3, %s11787_s30 }
 0x92f   : > { %4880 = vrot.lane.b32.xlu0 %v12126_v59, %s11787_s30 }
 0x932   : > { %4878 = vrot.lane.b32.xlu1 %v12171_v22, %s11787_s30 }
 0x933   : > { %4931 = vrot.lane.b32.xlu0 %v12163_v33, %s11787_s30 }
 0x936   : > { %4929 = vrot.lane.b32.xlu1 %v12192_v7, %s11787_s30 }
 0x937   : > { %4982 = vrot.lane.b32.xlu0 %v12180_v60, %s11787_s30 }
 0x93a   : > { %4980 = vrot.lane.b32.xlu1 %v12203_v55, %s11787_s30 }
 0x93b   : > { %5033 = vrot.lane.b32.xlu0 %v12253_v31, %s11787_s30 }
 0x93e   : > { %5031 = vrot.lane.b32.xlu1 %v12284_v35, %s11787_s30 }
 0x93f   : > { %5084 = vrot.lane.b32.xlu0 %v12282_v50, %s11787_s30 }
 0x942   : > { %5082 = vrot.lane.b32.xlu1 %v15996_v54, %s11787_s30 }
 0x943   : > { %5135 = vrot.lane.b32.xlu0 %v12398_v27, %s11787_s30 }
 0x946   : > { %5133 = vrot.lane.b32.xlu1 %v12425_v18, %s11787_s30 }
 0x947   : > { %5186 = vrot.lane.b32.xlu0 %v12419_v15, %s11787_s30 }
 0x94a   : > { %5482 = vrot.lane.b32.xlu1 %v16038_v8, %s11787_s30 }
 0x94b   : > { %5184 = vrot.lane.b32.xlu0 %v16039_v37, %s11787_s30 }
 0x94e   : > { %5529 = vrot.lane.b32.xlu1 %v16040_v23, %s11787_s30 }
 0x94f   : > { %5435 = vrot.lane.b32.xlu0 %v16041_v17, %s11787_s30 }
 0x982   : > { %v4365_v45 = vpop.xlane.xlu0 %4364 }
 0x983   : > { %11404 = vrcp.f32 %v4365_v45 }
 0x986   : > { %v4371_v63 = vpop.xlane.xlu0 %4370 }
 0x98a   : > { %v4368_v42 = vpop.xlane.xlu1 %4367 }
 0x98b   : > { %11406 = vrcp.f32 %v4368_v42 }
 0x98c   : > { %11408 = vrcp.f32 %v4371_v63 }
 0x98e   : > { %v4377_v34 = vpop.xlane.xlu0 %4376  ;;  %v4374_v13 = vpop.xlane.xlu1 %4373 }
 0x98f   : > { %11410 = vrcp.f32 %v4374_v13 }
 0x990   : > { %11412 = vrcp.f32 %v4377_v34  ;;  %v11405_v36 = vpop.eup %11404 }
 0x991   : > { %v4427_v56 = vmul.f32 %v11405_v36, %v13726_v53 }
 0x992   : > { %v4383_v26 = vpop.xlane.xlu0 %4382  ;;  %v4380_v29 = vpop.xlane.xlu1 %4379 }
 0x993   : > { %11414 = vrcp.f32 %v4380_v29 }
 0x994   : > { %11416 = vrcp.f32 %v4383_v26 }
 0x996   : > { %v4389_v47 = vpop.xlane.xlu0 %4388  ;;  %v4386_v12 = vpop.xlane.xlu1 %4385 }
 0x997   : > { %11418 = vrcp.f32 %v4386_v12 }
 0x998   : > { %v11407_v41 = vpop.eup %11406  ;;  %11420 = vrcp.f32 %v4389_v47 }
 0x999   : > { %v4428_v45 = vmul.f32 %v11407_v41, %v13738_v21  ;;  %v11409_v62 = vpop.eup %11408 }
 0x99a   : > { %v4395_v42 = vpop.xlane.xlu0 %4394  ;;  %v4392_v63 = vpop.xlane.xlu1 %4391  ;;  %v4429_v13 = vmul.f32 %v11409_v62, %v13732_v16 }
 0x99b   : > { %v4443_v32 = vpack.c.bf16 %v4428_v45, %v4427_v56  ;;  %11422 = vrcp.f32 %v4392_v63 }
 0x99c   : > { %v11411_v34 = vpop.eup %11410  ;;  %11424 = vrcp.f32 %v4395_v42 }
 0x99d   : > { %10331 = vmatmul.mubr.msk.bf16.vlgmr.msra.gmra.mxu0 %vm922_vm1, %v4443_v32  ;;  %v4430_v26 = vmul.f32 %v11411_v34, %v13740_v1  ;;  %v11413_v41 = vpop.eup %11412 }
 0x99e   : > { %10341 = vmatpush3.bf16.msra.mxu0 %v13716_v5  ;;  %v4401_v12 = vpop.xlane.xlu0 %4400  ;;  %v4398_v53 = vpop.xlane.xlu1 %4397  ;;  %10342 = vmatprep.mubr.msk.bf16.mxu0 %vm11783_vm0, %v15972_v0  ;;  %v4431_v32 = vmul.f32 %v11413_v41, %v13746_v4 }
 0x99f   : > { %10352 = vmatprep.subr.bf16.mxu0 %v15972_v0  ;;  %11426 = vrcp.f32 %v4398_v53  ;;  %v4444_v56 = vpack.c.bf16 %v4430_v26, %v4429_v13 }
 0x9a0   : > { %v11415_v47 = vpop.eup %11414  ;;  %11428 = vrcp.f32 %v4401_v12 }
 0x9a1   : > { %v4432_v62 = vmul.f32 %v11415_v47, %v13750_v25  ;;  %10337 = vmatmul.mubr.msk.bf16.vlgmr.msra.gmra.mxu1 %vm922_vm1, %v4444_v56  ;;  %v11417_v21 = vpop.eup %11416 }
 0x9a2   : > { %v4407_v16 = vpop.xlane.xlu0 %4406  ;;  %v4404_v5 = vpop.xlane.xlu1 %4403  ;;  %10347 = vmatpush3.bf16.msra.mxu1 %v4593_v11  ;;  %10348 = vmatprep.mubr.msk.bf16.mxu1 %vm11783_vm0, %v15972_v0  ;;  %v4433_v4 = vmul.f32 %v11417_v21, %v13756_v10 }
 0x9a3   : > { %11430 = vrcp.f32 %v4404_v5  ;;  %v4445_v1 = vpack.c.bf16 %v4432_v62, %v4431_v32  ;;  %10358 = vmatprep.subr.bf16.mxu1 %v15972_v0 }
 0x9a4   : > { %v11419_v29 = vpop.eup %11418  ;;  %11432 = vrcp.f32 %v4407_v16 }
 0x9a5   : > { %v4434_v25 = vmul.f32 %v11419_v29, %v13762_v57  ;;  %10343 = vmatmul.mubr.msk.bf16.vlgmr.msra.gmra.mxu0 %vm922_vm1, %v4445_v1  ;;  %v11421_v42 = vpop.eup %11420 }
 0x9a6   : > { %v4881_v36 = vpop.permute.xlu0 %4880  ;;  %v4410_v45 = vpop.xlane.xlu1 %4409  ;;  %10353 = vmatpush3.bf16.msra.mxu0 %v13834_v44  ;;  %10354 = vmatprep.mubr.msk.bf16.mxu0 %vm11783_vm0, %v15972_v0  ;;  %v4435_v34 = vmul.f32 %v11421_v42, %v13764_v51 }
 0x9a7   : > { %11434 = vrcp.f32 %v4410_v45  ;;  %v4446_v11 = vpack.c.bf16 %v4434_v25, %v4433_v4  ;;  %10364 = vmatprep.subr.bf16.mxu0 %v15972_v0  ;;  %v4886_v21 = vsel %vm922_vm1, %v4881_v36, 0 }
 0x9a8   : > { %v11423_v63 = vpop.eup %11422 }
 0x9a9   : > { %v4436_v10 = vmul.f32 %v11423_v63, %v13770_v14  ;;  %10349 = vmatmul.mubr.msk.bf16.vlgmr.msra.gmra.mxu1 %vm922_vm1, %v4446_v11  ;;  %v11425_v57 = vpop.eup %11424 }
 0x9aa   : > { %10359 = vmatpush3.bf16.msra.mxu1 %v13836_v2  ;;  %10360 = vmatprep.mubr.msk.bf16.mxu1 %vm11783_vm0, %v15972_v0  ;;  %v4932_v44 = vpop.permute.xlu0 %4931  ;;  %v4437_v12 = vmul.f32 %v11425_v57, %v13772_v6  ;;  %v4828_v14 = vpop.permute.xlu1 %4827 }
 0x9ab   : > { %v4447_v13 = vpack.c.bf16 %v4436_v10, %v4435_v34  ;;  %10370 = vmatprep.subr.bf16.mxu1 %v15972_v0 }
 0x9ac   : > { %v11427_v26 = vpop.eup %11426 }
 0x9ad   : > { %v4438_v53 = vmul.f32 %v11427_v26, %v13778_v38  ;;  %10355 = vmatmul.mubr.msk.bf16.vlgmr.msra.gmra.mxu0 %vm922_vm1, %v4447_v13  ;;  %v11429_v51 = vpop.eup %11428 }
 0x9ae   : > { %10365 = vmatpush3.bf16.msra.mxu0 %v13838_v39  ;;  %10366 = vmatprep.mubr.msk.bf16.mxu0 %vm11783_vm0, %v15972_v0  ;;  %v4439_v47 = vmul.f32 %v11429_v51, %v13780_v30  ;;  %v4983_v32 = vpop.permute.xlu0 %4982  ;;  %v4835_v30 = vsel %vm922_vm1, %v13842_v61, 0 }
 0x9af   : > { %v4448_v2 = vpack.c.bf16 %v4438_v53, %v4437_v12  ;;  %10376 = vmatprep.subr.bf16.mxu0 %v15972_v0  ;;  %v4988_v1 = vsel %vm922_vm1, %v4983_v32, 0 }
 0x9b0   : > { %v11431_v41 = vpop.eup %11430 }
 0x9b1   : > { %v11433_v56 = vpop.eup %11432  ;;  %v4440_v6 = vmul.f32 %v11431_v41, %v13786_v58  ;;  %10361 = vmatmul.mubr.msk.bf16.vlgmr.msra.gmra.mxu1 %vm922_vm1, %v4448_v2  ;;  %v4879_v58 = vpop.permute.xlu1 %4878 }
 0x9b2   : > { %10371 = vmatpush3.bf16.msra.mxu1 %v13840_v24  ;;  %10372 = vmatprep.mubr.msk.bf16.mxu1 %vm11783_vm0, %v15972_v0  ;;  %v4441_v62 = vmul.f32 %v11433_v56, %v13788_v40  ;;  %v5034_v24 = vpop.permute.xlu0 %5033 }
 0x9b3   : > { %v4449_v39 = vpack.c.bf16 %v4440_v6, %v4439_v47  ;;  %10382 = vmatprep.subr.bf16.mxu1 %v15972_v0  ;;  %v5039_v25 = vsel %vm922_vm1, %v5034_v24, 0 }
 0x9b4   : > { %v11435_v38 = vpop.eup %11434 }
 0x9b5   : > { %v4442_v16 = vmul.f32 %v11435_v38, %v13794_v28  ;;  %10367 = vmatmul.mubr.msk.bf16.vlgmr.msra.gmra.mxu0 %vm922_vm1, %v4449_v39  ;;  %v4930_v40 = vpop.permute.xlu1 %4929  ;;  %v4937_v28 = vsel %vm922_vm1, %v4932_v44, 0 }
 0x9b6   : > { %10377 = vmatpush3.bf16.xpose.msra.mxu0 %v4835_v30  ;;  %10378 = vmatprep.mubr.msk.bf16.mxu0 %vm11783_vm0, %v15972_v0  ;;  %v5085_v61 = vpop.permute.xlu0 %5084 }
 0x9b7   : > { %v4450_v5 = vpack.c.bf16 %v4442_v16, %v4441_v62  ;;  %10388 = vmatprep.subr.bf16.mxu0 %v15972_v0  ;;  %v5090_v45 = vsel %vm922_vm1, %v5085_v61, 0 }
 0x9b9   : > { %10373 = vmatmul.mubr.msk.bf16.vlgmr.msra.gmra.mxu1 %vm922_vm1, %v4450_v5  ;;  %v4981_v29 = vpop.permute.xlu1 %4980 }
 0x9ba   : > { %10383 = vmatpush3.bf16.xpose.msra.mxu1 %v4886_v21  ;;  %10384 = vmatprep.mubr.msk.bf16.mxu1 %vm11783_vm0, %v15972_v0  ;;  %v5136_v4 = vpop.permute.xlu0 %5135 }
 0x9bb   : > { %10394 = vmatprep.subr.bf16.mxu1 %v15972_v0  ;;  %v5141_v11 = vsel %vm922_vm1, %v5136_v4, 0 }
 0x9bd   : > { %10379 = vmatmul.mubr.msk.bf16.vlgmr.msra.gmra.mxu0 %vm922_vm1, %v4828_v14  ;;  %v5032_v36 = vpop.permute.xlu1 %5031 }
 0x9be   : > { %10389 = vmatpush3.bf16.xpose.msra.mxu0 %v4937_v28  ;;  %10390 = vmatprep.mubr.msk.bf16.mxu0 %vm11783_vm0, %v15972_v0  ;;  %v5187_v42 = vpop.permute.xlu0 %5186 }
 0x9bf   : > { %10400 = vmatprep.subr.bf16.mxu0 %v15972_v0  ;;  %v5192_v10 = vsel %vm922_vm1, %v5187_v42, 0 }
 0x9c1   : > { %10385 = vmatmul.mubr.msk.bf16.vlgmr.msra.gmra.mxu1 %vm922_vm1, %v4879_v58  ;;  %v5083_v63 = vpop.permute.xlu1 %5082 }
 0x9c2   : > { %10395 = vmatpush3.bf16.xpose.msra.mxu1 %v4988_v1  ;;  %10396 = vmatprep.mubr.msk.bf16.mxu1 %vm11783_vm0, %v15972_v0  ;;  %v5185_v34 = vpop.permute.xlu0 %5184 }
 0x9c3   : > { %10406 = vmatprep.subr.bf16.mxu1 %v15972_v0 }
 0x9c5   : > { %10391 = vmatmul.mubr.msk.bf16.vlgmr.msra.gmra.mxu0 %vm922_vm1, %v4930_v40  ;;  %v5134_v57 = vpop.permute.xlu1 %5133 }
 0x9c6   : > { %10401 = vmatpush3.bf16.xpose.msra.mxu0 %v5039_v25  ;;  %10402 = vmatprep.mubr.msk.bf16.mxu0 %vm11783_vm0, %v15972_v0  ;;  %v5436_v44 = vpop.permute.xlu0 %5435 }
 0x9c7   : > { %10412 = vmatprep.subr.bf16.mxu0 %v15972_v0 }
 0x9c9   : > { %10397 = vmatmul.mubr.msk.bf16.vlgmr.msra.gmra.mxu1 %vm922_vm1, %v4981_v29  ;;  %v5483_v13 = vpop.permute.xlu1 %5482 }
 0x9ca   : > { %10407 = vmatpush3.bf16.xpose.msra.mxu1 %v5090_v45  ;;  %10408 = vmatprep.mubr.msk.bf16.mxu1 %vm11783_vm0, %v15972_v0 }
 0x9cb   : > { %10418 = vmatprep.subr.bf16.mxu1 %v15972_v0 }
 0x9cd   : > { %10403 = vmatmul.mubr.msk.bf16.vlgmr.msra.gmra.mxu0 %vm922_vm1, %v5032_v36 }
 0x9ce   : > { %10413 = vmatpush3.bf16.xpose.msra.mxu0 %v5141_v11  ;;  %10414 = vmatprep.mubr.msk.bf16.mxu0 %vm11783_vm0, %v15972_v0 }
 0x9cf   : > { %10424 = vmatprep.subr.bf16.mxu0 %v15972_v0 }
 0x9d1   : > { %10409 = vmatmul.mubr.msk.bf16.vlgmr.msra.gmra.mxu1 %vm922_vm1, %v5083_v63 }
 0x9d2   : > { %10419 = vmatpush3.bf16.xpose.msra.mxu1 %v5192_v10  ;;  %10420 = vmatprep.mubr.msk.bf16.mxu1 %vm11783_vm0, %v15972_v0 }
 0x9d3   : > { %10430 = vmatprep.subr.bf16.mxu1 %v15972_v0 }
 0x9d5   : > { %10415 = vmatmul.mubr.msk.bf16.vlgmr.msra.gmra.mxu0 %vm922_vm1, %v5134_v57 }
 0x9d6   : > { %10425 = vmatpush3.bf16.msra.mxu0 %v5436_v44  ;;  %10426 = vmatprep.mubr.msk.bf16.mxu0 %vm11783_vm0, %v15972_v0 }
 0x9d7   : > { %10436 = vmatprep.subr.bf16.mxu0 %v15972_v0 }
 0x9d9   : > { %10421 = vmatmul.mubr.msk.bf16.vlgmr.msra.gmra.mxu1 %vm922_vm1, %v5185_v34 }
 0x9da   : > { %10431 = vmatpush3.bf16.msra.mxu1 %v5483_v13  ;;  %10432 = vmatprep.mubr.msk.bf16.mxu1 %vm11783_vm0, %v15972_v0 }
 0x9db   : > { %10442 = vmatprep.subr.bf16.mxu1 %v15972_v0 }
 0xa5d   : > { %v13938_v26 = vpop.f32.mrf.mxu0 }
 0xa5e   : > { %16074 = vst [vmem:[#allocation53_spill] sm:$0xff] %v13938_v26 }
 0xa5f   : > { %v10332_v12 = vpop.f32.mrf.mxu0 }
 0xa61   : > { %v13940_v53 = vpop.f32.mrf.mxu0  ;;  %v13944_v14 = vpop.f32.mrf.mxu1 }
 0xa62   : > { %16075 = vst [vmem:[#allocation54_spill] sm:$0xff] %v13940_v53  ;;  %16076 = vst [vmem:[#allocation55_spill] sm:$0xff] %v13944_v14 }
 0xa63   : > { %v10333_v2 = vpop.f32.mrf.mxu0  ;;  %v10338_v41 = vpop.f32.mrf.mxu1 }
 0xa65   : > { %v13946_v56 = vpop.f32.mrf.mxu1  ;;  %v13948_v47 = vpop.f32.mrf.mxu0 }
 0xa66   : > { %16077 = vst [vmem:[#allocation56_spill] sm:$0xff] %v13946_v56  ;;  %16078 = vst [vmem:[#allocation57_spill] sm:$0xff] %v13948_v47 }
 0xa67   : > { %v10339_v32 = vpop.f32.mrf.mxu1  ;;  %v10344_v38 = vpop.f32.mrf.mxu0 }
 0xa69   : > { %v13952_v39 = vpop.f32.mrf.mxu0  ;;  %v13954_v62 = vpop.f32.mrf.mxu1 }
 0xa6a   : > { %16079 = vst [vmem:[#allocation58_spill] sm:$0xff] %v13952_v39  ;;  %16080 = vst [vmem:[#allocation59_spill] sm:$0xff] %v13954_v62 }
 0xa6b   : > { %v10345_v30 = vpop.f32.mrf.mxu0  ;;  %v10350_v58 = vpop.f32.mrf.mxu1 }
 0xa6d   : > { %v13958_v5 = vpop.f32.mrf.mxu1  ;;  %v13960_v24 = vpop.f32.mrf.mxu0 }
 0xa6e   : > { %16081 = vst [vmem:[#allocation60_spill] sm:$0xff] %v13958_v5  ;;  %16082 = vst [vmem:[#allocation61_spill] sm:$0xff] %v13960_v24 }
 0xa6f   : > { %v10351_v40 = vpop.f32.mrf.mxu1  ;;  %v10356_v28 = vpop.f32.mrf.mxu0 }
 0xa71   : > { %v13964_v61 = vpop.f32.mrf.mxu0  ;;  %v13966_v1 = vpop.f32.mrf.mxu1 }
 0xa72   : > { %16083 = vst [vmem:[#allocation62_spill] sm:$0xff] %v13964_v61  ;;  %16084 = vst [vmem:[#allocation63_spill] sm:$0xff] %v13966_v1 }
 0xa73   : > { %v10357_v4 = vpop.f32.mrf.mxu0  ;;  %v10362_v25 = vpop.f32.mrf.mxu1 }
 0xa75   : > { %v13970_v36 = vpop.f32.mrf.mxu1  ;;  %v13972_v45 = vpop.f32.mrf.mxu0 }
 0xa76   : > { %16085 = vst [vmem:[#allocation64_spill] sm:$0xff] %v13970_v36  ;;  %16086 = vst [vmem:[#allocation65_spill] sm:$0xff] %v13972_v45 }
 0xa77   : > { %v10363_v11 = vpop.f32.mrf.mxu1  ;;  %v10368_v63 = vpop.f32.mrf.mxu0 }
 0xa79   : > { %v13976_v34 = vpop.f32.mrf.mxu0  ;;  %v13978_v10 = vpop.f32.mrf.mxu1 }
 0xa7a   : > { %16087 = vst [vmem:[#allocation66_spill] sm:$0xff] %v13976_v34  ;;  %16088 = vst [vmem:[#allocation67_spill] sm:$0xff] %v13978_v10 }
 0xa7b   : > { %v10369_v44 = vpop.f32.mrf.mxu0  ;;  %v10374_v13 = vpop.f32.mrf.mxu1 }
 0xa7d   : > { %v13982_v12 = vpop.f32.mrf.mxu1  ;;  %v4871_v2 = vpop.f32.mrf.mxu0 }
 0xa7e   : > { %16089 = vst [vmem:[#allocation68_spill] sm:$0xff] %v13982_v12  ;;  %v4872_v32 = vadd.f32 %v13617_v48, %v4871_v2 }
 0xa7f   : > { %v10375_v38 = vpop.f32.mrf.mxu1  ;;  %v10380_v30 = vpop.f32.mrf.mxu0 }
 0xa80   : > { %v13987_v58 = vmul.f32 0.25, %v4872_v32 }
 0xa81   : > { %v4874_v40 = vpop.f32.mrf.mxu0  ;;  %v4922_v28 = vpop.f32.mrf.mxu1 }
 0xa82   : > { %v4875_v4 = vadd.f32 %v13625_v52, %v4874_v40  ;;  %v4923_v25 = vadd.f32 %v13617_v48, %v4922_v28  ;;  %v5251_v11 = vsel %vm922_vm1, %v13987_v58, -inf }
 0xa83   : > { %5252 = vmax.xlane.f32.xlu1 %v5251_v11  ;;  %v10381_v63 = vpop.f32.mrf.mxu0  ;;  %v10386_v44 = vpop.f32.mrf.mxu1 }
 0xa84   : > { %v13993_v13 = vmul.f32 0.25, %v4923_v25  ;;  %v13995_v41 = vmul.f32 0.25, %v4875_v4 }
 0xa85   : > { %v4925_v2 = vpop.f32.mrf.mxu1  ;;  %v4973_v38 = vpop.f32.mrf.mxu0 }
 0xa86   : > { %v4926_v32 = vadd.f32 %v13625_v52, %v4925_v2  ;;  %v4974_v30 = vadd.f32 %v13617_v48, %v4973_v38  ;;  %v5257_v40 = vsel %vm922_vm1, %v13993_v13, -inf  ;;  %v5254_v4 = vsel %vm922_vm1, %v13995_v41, -inf }
 0xa87   : > { %5258 = vmax.xlane.f32.xlu0 %v5257_v40  ;;  %v10387_v28 = vpop.f32.mrf.mxu1  ;;  %v10392_v57 = vpop.f32.mrf.mxu0 }
 0xa88   : > { %v14001_v21 = vmul.f32 0.25, %v4926_v32  ;;  %v14005_v25 = vmul.f32 0.25, %v4974_v30 }
 0xa89   : > { %v4976_v11 = vpop.f32.mrf.mxu0  ;;  %v5024_v63 = vpop.f32.mrf.mxu1 }
 0xa8a   : > { %v4977_v44 = vadd.f32 %v13625_v52, %v4976_v11  ;;  %v5025_v2 = vadd.f32 %v13617_v48, %v5024_v63  ;;  %v5260_v38 = vsel %vm922_vm1, %v14001_v21, -inf  ;;  %v5263_v11 = vsel %vm922_vm1, %v14005_v25, -inf }
 0xa8b   : > { %5255 = vmax.xlane.f32.xlu0 %v5254_v4  ;;  %5261 = vmax.xlane.f32.xlu1 %v5260_v38  ;;  %v10393_v40 = vpop.f32.mrf.mxu0  ;;  %v10398_v57 = vpop.f32.mrf.mxu1 }
 0xa8c   : > { %v14011_v32 = vmul.f32 0.25, %v4977_v44  ;;  %v14013_v28 = vmul.f32 0.25, %v5025_v2 }
 0xa8d   : > { %v5027_v16 = vpop.f32.mrf.mxu1  ;;  %v5075_v42 = vpop.f32.mrf.mxu0 }
 0xa8e   : > { %v5028_v30 = vadd.f32 %v13625_v52, %v5027_v16  ;;  %v5076_v29 = vadd.f32 %v13617_v48, %v5075_v42  ;;  %v5266_v63 = vsel %vm922_vm1, %v14011_v32, -inf  ;;  %v5269_v57 = vsel %vm922_vm1, %v14013_v28, -inf }
 0xa8f   : > { %5264 = vmax.xlane.f32.xlu0 %v5263_v11  ;;  %5267 = vmax.xlane.f32.xlu1 %v5266_v63  ;;  %v10399_v4 = vpop.f32.mrf.mxu1  ;;  %v10404_v38 = vpop.f32.mrf.mxu0 }
 0xa90   : > { %v14021_v44 = vmul.f32 0.25, %v5028_v30  ;;  %v14025_v16 = vmul.f32 0.25, %v5076_v29 }
 0xa91   : > { %v5078_v2 = vpop.f32.mrf.mxu0  ;;  %v5126_v40 = vpop.f32.mrf.mxu1 }
 0xa92   : > { %v5079_v42 = vadd.f32 %v13625_v52, %v5078_v2  ;;  %v5127_v6 = vadd.f32 %v13617_v48, %v5126_v40  ;;  %v5272_v51 = vsel %vm922_vm1, %v14021_v44, -inf  ;;  %v5275_v2 = vsel %vm922_vm1, %v14025_v16, -inf }
 0xa93   : > { %5270 = vmax.xlane.f32.xlu0 %v5269_v57  ;;  %5273 = vmax.xlane.f32.xlu1 %v5272_v51  ;;  %v10405_v11 = vpop.f32.mrf.mxu0  ;;  %v10410_v63 = vpop.f32.mrf.mxu1 }
 0xa94   : > { %v14031_v30 = vmul.f32 0.25, %v5079_v42  ;;  %v14033_v4 = vmul.f32 0.25, %v5127_v6 }
 0xa95   : > { %v5129_v38 = vpop.f32.mrf.mxu1  ;;  %v5177_v10 = vpop.f32.mrf.mxu0 }
 0xa96   : > { %v5130_v29 = vadd.f32 %v13625_v52, %v5129_v38  ;;  %v5178_v12 = vadd.f32 %v13617_v48, %v5177_v10  ;;  %v5278_v40 = vsel %vm922_vm1, %v14031_v30, -inf  ;;  %v5281_v63 = vsel %vm922_vm1, %v14033_v4, -inf  ;;  %v14051_v10 = vld [vmem:[%s15841_s5] sm:$0xff] }
 0xa97   : > { %5276 = vmax.xlane.f32.xlu0 %v5275_v2  ;;  %5279 = vmax.xlane.f32.xlu1 %v5278_v40  ;;  %v10411_v51 = vpop.f32.mrf.mxu1  ;;  %v10416_v57 = vpop.f32.mrf.mxu0 }
 0xa98   : > { %v14041_v42 = vmul.f32 0.25, %v5130_v29  ;;  %v14045_v38 = vmul.f32 0.25, %v5178_v12 }
 0xa99   : > { %v5180_v6 = vpop.f32.mrf.mxu0  ;;  %v5228_v11 = vpop.f32.mrf.mxu1 }
 0xa9a   : > { %v5181_v48 = vadd.f32 %v13625_v52, %v5180_v6  ;;  %v5229_v2 = vadd.f32 %v14051_v10, %v5228_v11  ;;  %v5284_v29 = vsel %vm922_vm1, %v14041_v42, -inf  ;;  %v14063_v52 = vld [vmem:[%s15841_s5 + $0x8] sm:$0xff]  ;;  %v5287_v11 = vsel %vm922_vm1, %v14045_v38, -inf }
 0xa9b   : > { %5282 = vmax.xlane.f32.xlu0 %v5281_v63  ;;  %5285 = vmax.xlane.f32.xlu1 %v5284_v29  ;;  %v10417_v40 = vpop.f32.mrf.mxu0  ;;  %v10422_v51 = vpop.f32.mrf.mxu1 }
 0xa9c   : > { %v14056_v57 = vmul.f32 0.25, %v5181_v48  ;;  %v14058_v45 = vmul.f32 0.25, %v5229_v2  ;;  %v14088_v51 = vpop.permute.xlu1 %5529 }
 0xa9d   : > { %v5231_v12 = vpop.f32.mrf.mxu1 }
 0xa9e   : > { %v5232_v6 = vadd.f32 %v14063_v52, %v5231_v12  ;;  %v5290_v63 = vsel %vm922_vm1, %v14056_v57, -inf  ;;  %v5293_v2 = vsel %vm922_vm1, %v14058_v45, -inf }
 0xa9f   : > { %v10423_v29 = vpop.f32.mrf.mxu1  ;;  %5288 = vmax.xlane.f32.xlu0 %v5287_v11  ;;  %5291 = vmax.xlane.f32.xlu1 %v5290_v63 }
 0xaa0   : > { %v14070_v48 = vmul.f32 0.25, %v5232_v6 }
 0xaa2   : > { %v5296_v40 = vsel %vm922_vm1, %v14070_v48, -inf }
 0xaa3   : > { %5294 = vmax.xlane.f32.xlu0 %v5293_v2  ;;  %5297 = vmax.xlane.f32.xlu1 %v5296_v40 }
 0xab4   : > { %5623 = vrot.lane.b32.xlu1 %v12732_v46, %s11787_s30 }
 0xab8   : > { %5717 = vrot.lane.b32.xlu1 %v12778_v43, %s11787_s30 }
 0xab9   : > { %5576 = vrot.lane.b32.xlu0 %v12717_v49, %s11787_s30 }
 0xabc   : > { %5813 = vrot.lane.b32.xlu1 %v12043_v20, %s11788_s15 }
 0xabd   : > { %5670 = vrot.lane.b32.xlu0 %v12743_v9, %s11787_s30 }
 0xac1   : > { %5764 = vrot.lane.b32.xlu0 %v12789_v19, %s11787_s30 }
 0xb0c   : > { %v5253_v12 = vpop.xlane.xlu1 %5252 }
 0xb0d   : > { %v5299_v6 = vsub.f32 %v13987_v58, %v5253_v12 }
 0xb0f   : > { %v5315_v11 = vmul.f32 1.442695, %v5299_v6 }
 0xb10   : > { %v5259_v63 = vpop.xlane.xlu0 %5258 }
 0xb11   : > { %11436 = vpow2.f32 %v5315_v11  ;;  %v5301_v29 = vsub.f32 %v13993_v13, %v5259_v63 }
 0xb13   : > { %v5319_v2 = vmul.f32 1.442695, %v5301_v29 }
 0xb14   : > { %v5256_v40 = vpop.xlane.xlu0 %5255  ;;  %v5262_v34 = vpop.xlane.xlu1 %5261 }
 0xb15   : > { %11438 = vpow2.f32 %v5319_v2  ;;  %v5300_v62 = vsub.f32 %v13995_v41, %v5256_v40  ;;  %v5302_v5 = vsub.f32 %v14001_v21, %v5262_v34 }
 0xb17   : > { %v5317_v47 = vmul.f32 1.442695, %v5300_v62  ;;  %v5321_v39 = vmul.f32 1.442695, %v5302_v5 }
 0xb18   : > { %v5265_v1 = vpop.xlane.xlu0 %5264  ;;  %v5268_v36 = vpop.xlane.xlu1 %5267 }
 0xb19   : > { %11440 = vpow2.f32 %v5317_v47  ;;  %v5303_v58 = vsub.f32 %v14005_v25, %v5265_v1  ;;  %v5304_v12 = vsub.f32 %v14011_v32, %v5268_v36 }
 0xb1a   : > { %11442 = vpow2.f32 %v5321_v39 }
 0xb1b   : > { %v5323_v6 = vmul.f32 1.442695, %v5303_v58  ;;  %v5325_v13 = vmul.f32 1.442695, %v5304_v12 }
 0xb1c   : > { %v5271_v11 = vpop.xlane.xlu0 %5270  ;;  %v5274_v63 = vpop.xlane.xlu1 %5273 }
 0xb1d   : > { %11444 = vpow2.f32 %v5323_v6  ;;  %v5305_v29 = vsub.f32 %v14013_v28, %v5271_v11  ;;  %v5306_v41 = vsub.f32 %v14021_v44, %v5274_v63 }
 0xb1e   : > { %v14098_v21 = vpop.eup %11436  ;;  %11446 = vpow2.f32 %v5325_v13 }
 0xb1f   : > { %v5327_v62 = vmul.f32 1.442695, %v5305_v29  ;;  %v5329_v5 = vmul.f32 1.442695, %v5306_v41  ;;  %v5347_v47 = vsel %vm922_vm1, %v14098_v21, 0.0 }
 0xb20   : > { %v5277_v1 = vpop.xlane.xlu0 %5276  ;;  %5348 = vadd.xlane.f32.xlu0 %v5347_v47  ;;  %v5280_v39 = vpop.xlane.xlu1 %5279 }
 0xb21   : > { %11448 = vpow2.f32 %v5327_v62  ;;  %v5307_v36 = vsub.f32 %v14025_v16, %v5277_v1  ;;  %v5308_v34 = vsub.f32 %v14031_v30, %v5280_v39 }
 0xb22   : > { %v14104_v25 = vpop.eup %11438  ;;  %11450 = vpow2.f32 %v5329_v5 }
 0xb23   : > { %v5331_v32 = vmul.f32 1.442695, %v5307_v36  ;;  %v5333_v28 = vmul.f32 1.442695, %v5308_v34  ;;  %v5353_v44 = vsel %vm922_vm1, %v14104_v25, 0.0 }
 0xb24   : > { %v5283_v2 = vpop.xlane.xlu0 %5282  ;;  %5354 = vadd.xlane.f32.xlu0 %v5353_v44  ;;  %v5286_v40 = vpop.xlane.xlu1 %5285 }
 0xb25   : > { %11452 = vpow2.f32 %v5331_v32  ;;  %v5309_v58 = vsub.f32 %v14033_v4, %v5283_v2  ;;  %v5310_v12 = vsub.f32 %v14041_v42, %v5286_v40 }
 0xb26   : > { %v14110_v6 = vpop.eup %11440  ;;  %11454 = vpow2.f32 %v5333_v28 }
 0xb27   : > { %v14112_v16 = vpop.eup %11442  ;;  %v5335_v30 = vmul.f32 1.442695, %v5309_v58  ;;  %v5337_v13 = vmul.f32 1.442695, %v5310_v12  ;;  %v5350_v11 = vsel %vm922_vm1, %v14110_v6, 0.0 }
 0xb28   : > { %v5289_v63 = vpop.xlane.xlu0 %5288  ;;  %5351 = vadd.xlane.f32.xlu1 %v5350_v11  ;;  %v5292_v29 = vpop.xlane.xlu1 %5291  ;;  %v5356_v42 = vsel %vm922_vm1, %v14112_v16, 0.0 }
 0xb29   : > { %11456 = vpow2.f32 %v5335_v30  ;;  %v5311_v41 = vsub.f32 %v14045_v38, %v5289_v63  ;;  %v5312_v4 = vsub.f32 %v14056_v57, %v5292_v29 }
 0xb2a   : > { %v14118_v62 = vpop.eup %11444  ;;  %11458 = vpow2.f32 %v5337_v13 }
 0xb2b   : > { %v14122_v5 = vpop.eup %11446  ;;  %v5339_v47 = vmul.f32 1.442695, %v5311_v41  ;;  %v5341_v1 = vmul.f32 1.442695, %v5312_v4  ;;  %v5359_v39 = vsel %vm922_vm1, %v14118_v62, 0.0 }
 0xb2c   : > { %v5295_v36 = vpop.xlane.xlu0 %5294  ;;  %5360 = vadd.xlane.f32.xlu0 %v5359_v39  ;;  %5357 = vadd.xlane.f32.xlu1 %v5356_v42  ;;  %v5298_v34 = vpop.xlane.xlu1 %5297  ;;  %v5362_v28 = vsel %vm922_vm1, %v14122_v5, 0.0 }
 0xb2d   : > { %11460 = vpow2.f32 %v5339_v47  ;;  %v5313_v38 = vsub.f32 %v14058_v45, %v5295_v36  ;;  %v5314_v57 = vsub.f32 %v14070_v48, %v5298_v34 }
 0xb2e   : > { %v14128_v32 = vpop.eup %11448  ;;  %11462 = vpow2.f32 %v5341_v1 }
 0xb2f   : > { %v5343_v44 = vmul.f32 1.442695, %v5313_v38  ;;  %v5345_v2 = vmul.f32 1.442695, %v5314_v57  ;;  %v5365_v40 = vsel %vm922_vm1, %v14128_v32, 0.0  ;;  %v14134_v58 = vpop.eup %11450 }
 0xb30   : > { %5366 = vadd.xlane.f32.xlu0 %v5365_v40  ;;  %5363 = vadd.xlane.f32.xlu1 %v5362_v28  ;;  %v5368_v48 = vsel %vm922_vm1, %v14134_v58, 0.0  ;;  %v5577_v57 = vpop.permute.xlu0 %5576  ;;  %v14206_v28 = vpop.permute.xlu1 %5623 }
 0xb31   : > { %11464 = vpow2.f32 %v5343_v44 }
 0xb32   : > { %v14136_v12 = vpop.eup %11452  ;;  %11466 = vpow2.f32 %v5345_v2 }
 0xb33   : > { %v5371_v45 = vsel %vm922_vm1, %v14136_v12, 0.0  ;;  %v14142_v30 = vpop.eup %11454 }
 0xb34   : > { %5372 = vadd.xlane.f32.xlu0 %v5371_v45  ;;  %5369 = vadd.xlane.f32.xlu1 %v5368_v48  ;;  %v5374_v63 = vsel %vm922_vm1, %v14142_v30, 0.0  ;;  %v14208_v44 = vpop.permute.xlu0 %5670  ;;  %v14210_v2 = vpop.permute.xlu1 %5717 }
 0xb36   : > { %v14144_v13 = vpop.eup %11456 }
 0xb37   : > { %v5377_v11 = vsel %vm922_vm1, %v14144_v13, 0.0  ;;  %v14150_v29 = vpop.eup %11458 }
 0xb38   : > { %5378 = vadd.xlane.f32.xlu0 %v5377_v11  ;;  %5375 = vadd.xlane.f32.xlu1 %v5374_v63  ;;  %v5380_v42 = vsel %vm922_vm1, %v14150_v29, 0.0  ;;  %v14212_v40 = vpop.permute.xlu0 %5764  ;;  %v14214_v48 = vpop.permute.xlu1 %5813 }
 0xb3a   : > { %v14152_v41 = vpop.eup %11460 }
 0xb3b   : > { %v5383_v4 = vsel %vm922_vm1, %v14152_v41, 0.0  ;;  %v14158_v47 = vpop.eup %11462 }
 0xb3c   : > { %5384 = vadd.xlane.f32.xlu0 %v5383_v4  ;;  %5381 = vadd.xlane.f32.xlu1 %v5380_v42  ;;  %v5386_v36 = vsel %vm922_vm1, %v14158_v47, 0.0 }
 0xb3e   : > { %v14160_v1 = vpop.eup %11464 }
 0xb3f   : > { %v5389_v39 = vsel %vm922_vm1, %v14160_v1, 0.0  ;;  %v14166_v34 = vpop.eup %11466 }
 0xb40   : > { %5390 = vadd.xlane.f32.xlu0 %v5389_v39  ;;  %5387 = vadd.xlane.f32.xlu1 %v5386_v36  ;;  %v5392_v38 = vsel %vm922_vm1, %v14166_v34, 0.0 }
 0xb44   : > { %5393 = vadd.xlane.f32.xlu1 %v5392_v38 }
 0xb55   : > { %5811 = vrot.lane.b32.xlu1 %v15994_v3, %s11788_s15 }
 0xb56   : > { %5864 = vrot.lane.b32.xlu0 %v12126_v59, %s11788_s15 }
 0xb59   : > { %5862 = vrot.lane.b32.xlu1 %v12171_v22, %s11788_s15 }
 0xb5a   : > { %5915 = vrot.lane.b32.xlu0 %v12163_v33, %s11788_s15 }
 0xb5d   : > { %5913 = vrot.lane.b32.xlu1 %v12192_v7, %s11788_s15 }
 0xb5e   : > { %5966 = vrot.lane.b32.xlu0 %v12180_v60, %s11788_s15 }
 0xb61   : > { %5964 = vrot.lane.b32.xlu1 %v12203_v55, %s11788_s15 }
 0xb62   : > { %6017 = vrot.lane.b32.xlu0 %v12253_v31, %s11788_s15 }
 0xb65   : > { %6015 = vrot.lane.b32.xlu1 %v12284_v35, %s11788_s15 }
 0xb66   : > { %6068 = vrot.lane.b32.xlu0 %v12282_v50, %s11788_s15 }
 0xb69   : > { %6066 = vrot.lane.b32.xlu1 %v15996_v54, %s11788_s15 }
 0xb6a   : > { %6119 = vrot.lane.b32.xlu0 %v12398_v27, %s11788_s15 }
 0xb6d   : > { %6117 = vrot.lane.b32.xlu1 %v12425_v18, %s11788_s15 }
 0xb6e   : > { %6170 = vrot.lane.b32.xlu0 %v12419_v15, %s11788_s15 }
 0xb71   : > { %6466 = vrot.lane.b32.xlu1 %v16038_v8, %s11788_s15 }
 0xb72   : > { %6168 = vrot.lane.b32.xlu0 %v16039_v37, %s11788_s15 }
 0xb75   : > { %6513 = vrot.lane.b32.xlu1 %v16040_v23, %s11788_s15 }
 0xb76   : > { %6419 = vrot.lane.b32.xlu0 %v16041_v17, %s11788_s15 }
 0xba9   : > { %v5349_v45 = vpop.xlane.xlu0 %5348 }
 0xbaa   : > { %11468 = vrcp.f32 %v5349_v45 }
 0xbad   : > { %v5355_v11 = vpop.xlane.xlu0 %5354 }
 0xbb1   : > { %v5352_v63 = vpop.xlane.xlu1 %5351 }
 0xbb2   : > { %11470 = vrcp.f32 %v5352_v63 }
 0xbb3   : > { %11472 = vrcp.f32 %v5355_v11 }
 0xbb5   : > { %v5361_v4 = vpop.xlane.xlu0 %5360  ;;  %v5358_v42 = vpop.xlane.xlu1 %5357 }
 0xbb6   : > { %11474 = vrcp.f32 %v5358_v42 }
 0xbb7   : > { %11476 = vrcp.f32 %v5361_v4  ;;  %v11469_v38 = vpop.eup %11468 }
 0xbb8   : > { %v5411_v56 = vmul.f32 %v11469_v38, %v14098_v21 }
 0xbb9   : > { %v5367_v39 = vpop.xlane.xlu0 %5366  ;;  %v5364_v36 = vpop.xlane.xlu1 %5363 }
 0xbba   : > { %11478 = vrcp.f32 %v5364_v36 }
 0xbbb   : > { %11480 = vrcp.f32 %v5367_v39 }
 0xbbd   : > { %v5373_v24 = vpop.xlane.xlu0 %5372  ;;  %v5370_v61 = vpop.xlane.xlu1 %5369 }
 0xbbe   : > { %11482 = vrcp.f32 %v5370_v61 }
 0xbbf   : > { %v11471_v14 = vpop.eup %11470  ;;  %11484 = vrcp.f32 %v5373_v24 }
 0xbc0   : > { %v5412_v45 = vmul.f32 %v11471_v14, %v14110_v6  ;;  %v11473_v26 = vpop.eup %11472 }
 0xbc1   : > { %v5379_v63 = vpop.xlane.xlu0 %5378  ;;  %v5376_v11 = vpop.xlane.xlu1 %5375  ;;  %v5413_v42 = vmul.f32 %v11473_v26, %v14104_v25 }
 0xbc2   : > { %v5427_v53 = vpack.c.bf16 %v5412_v45, %v5411_v56  ;;  %11486 = vrcp.f32 %v5376_v11 }
 0xbc3   : > { %v11475_v4 = vpop.eup %11474  ;;  %11488 = vrcp.f32 %v5379_v63 }
 0xbc4   : > { %10427 = vmatmul.mubr.msk.bf16.vlgmr.msra.gmra.mxu0 %vm922_vm1, %v5427_v53  ;;  %v5414_v39 = vmul.f32 %v11475_v4, %v14112_v16  ;;  %v11477_v14 = vpop.eup %11476 }
 0xbc5   : > { %10437 = vmatpush3.bf16.msra.mxu0 %v14088_v51  ;;  %v5385_v61 = vpop.xlane.xlu0 %5384  ;;  %v5382_v21 = vpop.xlane.xlu1 %5381  ;;  %10438 = vmatprep.mubr.msk.bf16.mxu0 %vm11783_vm0, %v15972_v0  ;;  %v5415_v53 = vmul.f32 %v11477_v14, %v14118_v62 }
 0xbc6   : > { %10448 = vmatprep.subr.bf16.mxu0 %v15972_v0  ;;  %11490 = vrcp.f32 %v5382_v21  ;;  %v5428_v56 = vpack.c.bf16 %v5414_v39, %v5413_v42 }
 0xbc7   : > { %v11479_v24 = vpop.eup %11478  ;;  %11492 = vrcp.f32 %v5385_v61 }
 0xbc8   : > { %v5416_v26 = vmul.f32 %v11479_v24, %v14122_v5  ;;  %10433 = vmatmul.mubr.msk.bf16.vlgmr.msra.gmra.mxu1 %vm922_vm1, %v5428_v56  ;;  %v11481_v6 = vpop.eup %11480 }
 0xbc9   : > { %v5391_v25 = vpop.xlane.xlu0 %5390  ;;  %v5388_v51 = vpop.xlane.xlu1 %5387  ;;  %10443 = vmatpush3.bf16.msra.mxu1 %v5577_v57  ;;  %10444 = vmatprep.mubr.msk.bf16.mxu1 %vm11783_vm0, %v15972_v0  ;;  %v5417_v62 = vmul.f32 %v11481_v6, %v14128_v32 }
 0xbca   : > { %11494 = vrcp.f32 %v5388_v51  ;;  %v5429_v16 = vpack.c.bf16 %v5416_v26, %v5415_v53  ;;  %10454 = vmatprep.subr.bf16.mxu1 %v15972_v0 }
 0xbcb   : > { %v11483_v36 = vpop.eup %11482  ;;  %11496 = vrcp.f32 %v5391_v25 }
 0xbcc   : > { %v5418_v5 = vmul.f32 %v11483_v36, %v14134_v58  ;;  %10439 = vmatmul.mubr.msk.bf16.vlgmr.msra.gmra.mxu0 %vm922_vm1, %v5429_v16  ;;  %v11485_v63 = vpop.eup %11484 }
 0xbcd   : > { %v5865_v38 = vpop.permute.xlu0 %5864  ;;  %v5394_v45 = vpop.xlane.xlu1 %5393  ;;  %10449 = vmatpush3.bf16.msra.mxu0 %v14206_v28  ;;  %10450 = vmatprep.mubr.msk.bf16.mxu0 %vm11783_vm0, %v15972_v0  ;;  %v5419_v4 = vmul.f32 %v11485_v63, %v14136_v12 }
 0xbce   : > { %11498 = vrcp.f32 %v5394_v45  ;;  %v5430_v57 = vpack.c.bf16 %v5418_v5, %v5417_v62  ;;  %10460 = vmatprep.subr.bf16.mxu0 %v15972_v0  ;;  %v5870_v6 = vsel %vm922_vm1, %v5865_v38, 0 }
 0xbcf   : > { %v11487_v11 = vpop.eup %11486 }
 0xbd0   : > { %v5420_v32 = vmul.f32 %v11487_v11, %v14142_v30  ;;  %10445 = vmatmul.mubr.msk.bf16.vlgmr.msra.gmra.mxu1 %vm922_vm1, %v5430_v57  ;;  %v11489_v58 = vpop.eup %11488 }
 0xbd1   : > { %10455 = vmatpush3.bf16.msra.mxu1 %v14208_v44  ;;  %10456 = vmatprep.mubr.msk.bf16.mxu1 %vm11783_vm0, %v15972_v0  ;;  %v5916_v28 = vpop.permute.xlu0 %5915  ;;  %v5421_v61 = vmul.f32 %v11489_v58, %v14144_v13  ;;  %v5812_v30 = vpop.permute.xlu1 %5811 }
 0xbd2   : > { %v5431_v42 = vpack.c.bf16 %v5420_v32, %v5419_v4  ;;  %10466 = vmatprep.subr.bf16.mxu1 %v15972_v0 }
 0xbd3   : > { %v11491_v39 = vpop.eup %11490 }
 0xbd4   : > { %v5422_v21 = vmul.f32 %v11491_v39, %v14150_v29  ;;  %10451 = vmatmul.mubr.msk.bf16.vlgmr.msra.gmra.mxu0 %vm922_vm1, %v5431_v42  ;;  %v11493_v12 = vpop.eup %11492 }
 0xbd5   : > { %10461 = vmatpush3.bf16.msra.mxu0 %v14210_v2  ;;  %10462 = vmatprep.mubr.msk.bf16.mxu0 %vm11783_vm0, %v15972_v0  ;;  %v5423_v24 = vmul.f32 %v11493_v12, %v14152_v41  ;;  %v5967_v53 = vpop.permute.xlu0 %5966  ;;  %v5819_v41 = vsel %vm922_vm1, %v14214_v48, 0 }
 0xbd6   : > { %v5432_v44 = vpack.c.bf16 %v5422_v21, %v5421_v61  ;;  %10472 = vmatprep.subr.bf16.mxu0 %v15972_v0  ;;  %v5972_v16 = vsel %vm922_vm1, %v5967_v53, 0 }
 0xbd7   : > { %v11495_v14 = vpop.eup %11494 }
 0xbd8   : > { %v11497_v56 = vpop.eup %11496  ;;  %v5424_v13 = vmul.f32 %v11495_v14, %v14158_v47  ;;  %10457 = vmatmul.mubr.msk.bf16.vlgmr.msra.gmra.mxu1 %vm922_vm1, %v5432_v44  ;;  %v5863_v47 = vpop.permute.xlu1 %5862 }
 0xbd9   : > { %10467 = vmatpush3.bf16.msra.mxu1 %v14212_v40  ;;  %10468 = vmatprep.mubr.msk.bf16.mxu1 %vm11783_vm0, %v15972_v0  ;;  %v5425_v26 = vmul.f32 %v11497_v56, %v14160_v1  ;;  %v6018_v40 = vpop.permute.xlu0 %6017 }
 0xbda   : > { %v5433_v2 = vpack.c.bf16 %v5424_v13, %v5423_v24  ;;  %10478 = vmatprep.subr.bf16.mxu1 %v15972_v0  ;;  %v6023_v5 = vsel %vm922_vm1, %v6018_v40, 0 }
 0xbdb   : > { %v11499_v29 = vpop.eup %11498 }
 0xbdc   : > { %v5426_v25 = vmul.f32 %v11499_v29, %v14166_v34  ;;  %10463 = vmatmul.mubr.msk.bf16.vlgmr.msra.gmra.mxu0 %vm922_vm1, %v5433_v2  ;;  %v5914_v1 = vpop.permute.xlu1 %5913  ;;  %v5921_v34 = vsel %vm922_vm1, %v5916_v28, 0 }
 0xbdd   : > { %10473 = vmatpush3.bf16.xpose.msra.mxu0 %v5819_v41  ;;  %10474 = vmatprep.mubr.msk.bf16.mxu0 %vm11783_vm0, %v15972_v0  ;;  %v6069_v48 = vpop.permute.xlu0 %6068 }
 0xbde   : > { %v5434_v51 = vpack.c.bf16 %v5426_v25, %v5425_v26  ;;  %10484 = vmatprep.subr.bf16.mxu0 %v15972_v0  ;;  %v6074_v45 = vsel %vm922_vm1, %v6069_v48, 0 }
 0xbe0   : > { %10469 = vmatmul.mubr.msk.bf16.vlgmr.msra.gmra.mxu1 %vm922_vm1, %v5434_v51  ;;  %v5965_v36 = vpop.permute.xlu1 %5964 }
 0xbe1   : > { %10479 = vmatpush3.bf16.xpose.msra.mxu1 %v5870_v6  ;;  %10480 = vmatprep.mubr.msk.bf16.mxu1 %vm11783_vm0, %v15972_v0  ;;  %v6120_v62 = vpop.permute.xlu0 %6119 }
 0xbe2   : > { %10490 = vmatprep.subr.bf16.mxu1 %v15972_v0  ;;  %v6125_v57 = vsel %vm922_vm1, %v6120_v62, 0 }
 0xbe4   : > { %10475 = vmatmul.mubr.msk.bf16.vlgmr.msra.gmra.mxu0 %vm922_vm1, %v5812_v30  ;;  %v6016_v38 = vpop.permute.xlu1 %6015 }
 0xbe5   : > { %10485 = vmatpush3.bf16.xpose.msra.mxu0 %v5921_v34  ;;  %10486 = vmatprep.mubr.msk.bf16.mxu0 %vm11783_vm0, %v15972_v0  ;;  %v6171_v63 = vpop.permute.xlu0 %6170 }
 0xbe6   : > { %10496 = vmatprep.subr.bf16.mxu0 %v15972_v0  ;;  %v6176_v32 = vsel %vm922_vm1, %v6171_v63, 0 }
 0xbe8   : > { %10481 = vmatmul.mubr.msk.bf16.vlgmr.msra.gmra.mxu1 %vm922_vm1, %v5863_v47  ;;  %v6067_v11 = vpop.permute.xlu1 %6066 }
 0xbe9   : > { %10491 = vmatpush3.bf16.xpose.msra.mxu1 %v5972_v16  ;;  %10492 = vmatprep.mubr.msk.bf16.mxu1 %vm11783_vm0, %v15972_v0  ;;  %v6169_v4 = vpop.permute.xlu0 %6168 }
 0xbea   : > { %10502 = vmatprep.subr.bf16.mxu1 %v15972_v0 }
 0xbec   : > { %10487 = vmatmul.mubr.msk.bf16.vlgmr.msra.gmra.mxu0 %vm922_vm1, %v5914_v1  ;;  %v6118_v58 = vpop.permute.xlu1 %6117 }
 0xbed   : > { %10497 = vmatpush3.bf16.xpose.msra.mxu0 %v6023_v5  ;;  %10498 = vmatprep.mubr.msk.bf16.mxu0 %vm11783_vm0, %v15972_v0  ;;  %v6420_v28 = vpop.permute.xlu0 %6419 }
 0xbee   : > { %10508 = vmatprep.subr.bf16.mxu0 %v15972_v0 }
 0xbf0   : > { %10493 = vmatmul.mubr.msk.bf16.vlgmr.msra.gmra.mxu1 %vm922_vm1, %v5965_v36  ;;  %v6467_v42 = vpop.permute.xlu1 %6466 }
 0xbf1   : > { %10503 = vmatpush3.bf16.xpose.msra.mxu1 %v6074_v45  ;;  %10504 = vmatprep.mubr.msk.bf16.mxu1 %vm11783_vm0, %v15972_v0 }
 0xbf2   : > { %10514 = vmatprep.subr.bf16.mxu1 %v15972_v0 }
 0xbf4   : > { %10499 = vmatmul.mubr.msk.bf16.vlgmr.msra.gmra.mxu0 %vm922_vm1, %v6016_v38 }
 0xbf5   : > { %10509 = vmatpush3.bf16.xpose.msra.mxu0 %v6125_v57  ;;  %10510 = vmatprep.mubr.msk.bf16.mxu0 %vm11783_vm0, %v15972_v0 }
 0xbf6   : > { %10520 = vmatprep.subr.bf16.mxu0 %v15972_v0 }
 0xbf8   : > { %10505 = vmatmul.mubr.msk.bf16.vlgmr.msra.gmra.mxu1 %vm922_vm1, %v6067_v11 }
 0xbf9   : > { %10515 = vmatpush3.bf16.xpose.msra.mxu1 %v6176_v32  ;;  %10516 = vmatprep.mubr.msk.bf16.mxu1 %vm11783_vm0, %v15972_v0 }
 0xbfa   : > { %10526 = vmatprep.subr.bf16.mxu1 %v15972_v0 }
 0xbfc   : > { %10511 = vmatmul.mubr.msk.bf16.vlgmr.msra.gmra.mxu0 %vm922_vm1, %v6118_v58 }
 0xbfd   : > { %10521 = vmatpush3.bf16.msra.mxu0 %v6420_v28  ;;  %10522 = vmatprep.mubr.msk.bf16.mxu0 %vm11783_vm0, %v15972_v0 }
 0xbfe   : > { %10532 = vmatprep.subr.bf16.mxu0 %v15972_v0 }
 0xc00   : > { %10517 = vmatmul.mubr.msk.bf16.vlgmr.msra.gmra.mxu1 %vm922_vm1, %v6169_v4 }
 0xc01   : > { %10527 = vmatpush3.bf16.msra.mxu1 %v6467_v42  ;;  %10528 = vmatprep.mubr.msk.bf16.mxu1 %vm11783_vm0, %v15972_v0 }
 0xc02   : > { %10538 = vmatprep.subr.bf16.mxu1 %v15972_v0 }
 0xc84   : > { %v14310_v39 = vpop.f32.mrf.mxu0 }
 0xc86   : > { %v10428_v61 = vpop.f32.mrf.mxu0 }
 0xc88   : > { %v14312_v21 = vpop.f32.mrf.mxu0  ;;  %v14316_v30 = vpop.f32.mrf.mxu1 }
 0xc89   : > { %16090 = vst [vmem:[#allocation69_spill] sm:$0xff] %v14316_v30 }
 0xc8a   : > { %v10429_v44 = vpop.f32.mrf.mxu0  ;;  %v10434_v14 = vpop.f32.mrf.mxu1 }
 0xc8c   : > { %v14318_v56 = vpop.f32.mrf.mxu1  ;;  %v14320_v24 = vpop.f32.mrf.mxu0 }
 0xc8d   : > { %16091 = vst [vmem:[#allocation70_spill] sm:$0xff] %v14318_v56  ;;  %16092 = vst [vmem:[#allocation71_spill] sm:$0xff] %v14320_v24 }
 0xc8e   : > { %v10435_v53 = vpop.f32.mrf.mxu1  ;;  %v10440_v29 = vpop.f32.mrf.mxu0 }
 0xc90   : > { %v14324_v2 = vpop.f32.mrf.mxu0  ;;  %v14326_v26 = vpop.f32.mrf.mxu1 }
 0xc91   : > { %16093 = vst [vmem:[#allocation72_spill] sm:$0xff] %v14324_v2  ;;  %16094 = vst [vmem:[#allocation73_spill] sm:$0xff] %v14326_v26 }
 0xc92   : > { %v10441_v41 = vpop.f32.mrf.mxu0  ;;  %v10446_v47 = vpop.f32.mrf.mxu1 }
 0xc94   : > { %v14330_v51 = vpop.f32.mrf.mxu1  ;;  %v14332_v40 = vpop.f32.mrf.mxu0 }
 0xc95   : > { %16095 = vst [vmem:[#allocation74_spill] sm:$0xff] %v14330_v51  ;;  %16096 = vst [vmem:[#allocation75_spill] sm:$0xff] %v14332_v40 }
 0xc96   : > { %v10447_v1 = vpop.f32.mrf.mxu1  ;;  %v10452_v34 = vpop.f32.mrf.mxu0 }
 0xc98   : > { %v14336_v48 = vpop.f32.mrf.mxu0  ;;  %v14338_v16 = vpop.f32.mrf.mxu1 }
 0xc99   : > { %16097 = vst [vmem:[#allocation76_spill] sm:$0xff] %v14336_v48  ;;  %16098 = vst [vmem:[#allocation77_spill] sm:$0xff] %v14338_v16 }
 0xc9a   : > { %v10453_v62 = vpop.f32.mrf.mxu0  ;;  %v10458_v5 = vpop.f32.mrf.mxu1 }
 0xc9c   : > { %v14342_v38 = vpop.f32.mrf.mxu1  ;;  %v14344_v45 = vpop.f32.mrf.mxu0 }
 0xc9d   : > { %16099 = vst [vmem:[#allocation78_spill] sm:$0xff] %v14342_v38  ;;  %16100 = vst [vmem:[#allocation79_spill] sm:$0xff] %v14344_v45 }
 0xc9e   : > { %v10459_v57 = vpop.f32.mrf.mxu1  ;;  %v10464_v11 = vpop.f32.mrf.mxu0 }
 0xca0   : > { %v14348_v4 = vpop.f32.mrf.mxu0  ;;  %v14350_v32 = vpop.f32.mrf.mxu1 }
 0xca1   : > { %16101 = vst [vmem:[#allocation80_spill] sm:$0xff] %v14348_v4  ;;  %16102 = vst [vmem:[#allocation81_spill] sm:$0xff] %v14350_v32 }
 0xca2   : > { %v10465_v28 = vpop.f32.mrf.mxu0  ;;  %v10470_v42 = vpop.f32.mrf.mxu1 }
 0xca4   : > { %v14354_v61 = vpop.f32.mrf.mxu1  ;;  %v5855_v44 = vpop.f32.mrf.mxu0 }
 0xca5   : > { %16103 = vst [vmem:[#allocation82_spill] sm:$0xff] %v14354_v61  ;;  %v5856_v53 = vadd.f32 %v14051_v10, %v5855_v44 }
 0xca6   : > { %v10471_v29 = vpop.f32.mrf.mxu1  ;;  %v10476_v41 = vpop.f32.mrf.mxu0 }
 0xca7   : > { %v14359_v47 = vmul.f32 0.25, %v5856_v53 }
 0xca8   : > { %v5858_v1 = vpop.f32.mrf.mxu0  ;;  %v5906_v34 = vpop.f32.mrf.mxu1 }
 0xca9   : > { %v5859_v62 = vadd.f32 %v14063_v52, %v5858_v1  ;;  %v5907_v5 = vadd.f32 %v14051_v10, %v5906_v34  ;;  %v6235_v57 = vsel %vm922_vm1, %v14359_v47, -inf }
 0xcaa   : > { %6236 = vmax.xlane.f32.xlu1 %v6235_v57  ;;  %v10477_v11 = vpop.f32.mrf.mxu0  ;;  %v10482_v28 = vpop.f32.mrf.mxu1 }
 0xcab   : > { %v14365_v42 = vmul.f32 0.25, %v5907_v5  ;;  %v14367_v14 = vmul.f32 0.25, %v5859_v62 }
 0xcac   : > { %v5909_v44 = vpop.f32.mrf.mxu1  ;;  %v5957_v29 = vpop.f32.mrf.mxu0 }
 0xcad   : > { %v5910_v53 = vadd.f32 %v14063_v52, %v5909_v44  ;;  %v5958_v41 = vadd.f32 %v14051_v10, %v5957_v29  ;;  %v6241_v1 = vsel %vm922_vm1, %v14365_v42, -inf  ;;  %v6238_v62 = vsel %vm922_vm1, %v14367_v14, -inf }
 0xcae   : > { %6242 = vmax.xlane.f32.xlu0 %v6241_v1  ;;  %v10483_v34 = vpop.f32.mrf.mxu1  ;;  %v10488_v58 = vpop.f32.mrf.mxu0 }
 0xcaf   : > { %v14373_v6 = vmul.f32 0.25, %v5910_v53  ;;  %v14377_v5 = vmul.f32 0.25, %v5958_v41 }
 0xcb0   : > { %v5960_v57 = vpop.f32.mrf.mxu0  ;;  %v6008_v11 = vpop.f32.mrf.mxu1 }
 0xcb1   : > { %v5961_v28 = vadd.f32 %v14063_v52, %v5960_v57  ;;  %v6009_v44 = vadd.f32 %v14051_v10, %v6008_v11  ;;  %v6244_v29 = vsel %vm922_vm1, %v14373_v6, -inf  ;;  %v6247_v57 = vsel %vm922_vm1, %v14377_v5, -inf }
 0xcb2   : > { %6239 = vmax.xlane.f32.xlu0 %v6238_v62  ;;  %6245 = vmax.xlane.f32.xlu1 %v6244_v29  ;;  %v10489_v1 = vpop.f32.mrf.mxu0  ;;  %v10494_v58 = vpop.f32.mrf.mxu1 }
 0xcb3   : > { %v14383_v53 = vmul.f32 0.25, %v5961_v28  ;;  %v14385_v34 = vmul.f32 0.25, %v6009_v44 }
 0xcb4   : > { %v6011_v25 = vpop.f32.mrf.mxu1  ;;  %v6059_v63 = vpop.f32.mrf.mxu0 }
 0xcb5   : > { %v6012_v41 = vadd.f32 %v14063_v52, %v6011_v25  ;;  %v6060_v36 = vadd.f32 %v14051_v10, %v6059_v63  ;;  %v6250_v11 = vsel %vm922_vm1, %v14383_v53, -inf  ;;  %v6253_v58 = vsel %vm922_vm1, %v14385_v34, -inf }
 0xcb6   : > { %6248 = vmax.xlane.f32.xlu0 %v6247_v57  ;;  %6251 = vmax.xlane.f32.xlu1 %v6250_v11  ;;  %v10495_v62 = vpop.f32.mrf.mxu1  ;;  %v10500_v29 = vpop.f32.mrf.mxu0 }
 0xcb7   : > { %v14393_v28 = vmul.f32 0.25, %v6012_v41  ;;  %v14397_v25 = vmul.f32 0.25, %v6060_v36 }
 0xcb8   : > { %v6062_v44 = vpop.f32.mrf.mxu0  ;;  %v6110_v1 = vpop.f32.mrf.mxu1 }
 0xcb9   : > { %v6063_v63 = vadd.f32 %v14063_v52, %v6062_v44  ;;  %v6111_v13 = vadd.f32 %v14051_v10, %v6110_v1  ;;  %v6256_v12 = vsel %vm922_vm1, %v14393_v28, -inf  ;;  %v6259_v44 = vsel %vm922_vm1, %v14397_v25, -inf }
 0xcba   : > { %6254 = vmax.xlane.f32.xlu0 %v6253_v58  ;;  %6257 = vmax.xlane.f32.xlu1 %v6256_v12  ;;  %v10501_v57 = vpop.f32.mrf.mxu0  ;;  %v10506_v11 = vpop.f32.mrf.mxu1 }
 0xcbb   : > { %v14403_v41 = vmul.f32 0.25, %v6063_v63  ;;  %v14405_v62 = vmul.f32 0.25, %v6111_v13 }
 0xcbc   : > { %v6113_v29 = vpop.f32.mrf.mxu1  ;;  %v6161_v32 = vpop.f32.mrf.mxu0 }
 0xcbd   : > { %v6114_v36 = vadd.f32 %v14063_v52, %v6113_v29  ;;  %v6162_v61 = vadd.f32 %v14051_v10, %v6161_v32  ;;  %v6262_v1 = vsel %vm922_vm1, %v14403_v41, -inf  ;;  %v6265_v11 = vsel %vm922_vm1, %v14405_v62, -inf }
 0xcbe   : > { %6260 = vmax.xlane.f32.xlu0 %v6259_v44  ;;  %6263 = vmax.xlane.f32.xlu1 %v6262_v1  ;;  %v10507_v12 = vpop.f32.mrf.mxu1  ;;  %v10512_v58 = vpop.f32.mrf.mxu0 }
 0xcbf   : > { %v14413_v63 = vmul.f32 0.25, %v6114_v36  ;;  %v14417_v29 = vmul.f32 0.25, %v6162_v61 }
 0xcc0   : > { %v6164_v13 = vpop.f32.mrf.mxu0  ;;  %v6212_v57 = vpop.f32.mrf.mxu1 }
 0xcc1   : > { %v6165_v32 = vadd.f32 %v14063_v52, %v6164_v13  ;;  %v6213_v45 = vadd.f32 %v14051_v10, %v6212_v57  ;;  %v6268_v4 = vsel %vm922_vm1, %v14413_v63, -inf  ;;  %v6271_v61 = vsel %vm922_vm1, %v14417_v29, -inf }
 0xcc2   : > { %6266 = vmax.xlane.f32.xlu0 %v6265_v11  ;;  %6269 = vmax.xlane.f32.xlu1 %v6268_v4  ;;  %v10513_v44 = vpop.f32.mrf.mxu0  ;;  %v10518_v1 = vpop.f32.mrf.mxu1 }
 0xcc3   : > { %v14423_v36 = vmul.f32 0.25, %v6165_v32  ;;  %v14425_v58 = vmul.f32 0.25, %v6213_v45 }
 0xcc4   : > { %v6215_v12 = vpop.f32.mrf.mxu1 }
 0xcc5   : > { %v6216_v26 = vadd.f32 %v14063_v52, %v6215_v12  ;;  %v6274_v10 = vsel %vm922_vm1, %v14423_v36, -inf  ;;  %v6277_v4 = vsel %vm922_vm1, %v14425_v58, -inf  ;;  %v14450_v52 = vpop.permute.xlu1 %6513 }
 0xcc6   : > { %v10519_v13 = vpop.f32.mrf.mxu1  ;;  %6272 = vmax.xlane.f32.xlu0 %v6271_v61  ;;  %6275 = vmax.xlane.f32.xlu1 %v6274_v10 }
 0xcc7   : > { %v14432_v57 = vmul.f32 0.25, %v6216_v26 }
 0xcc9   : > { %v6280_v45 = vsel %vm922_vm1, %v14432_v57, -inf }
 0xcca   : > { %6278 = vmax.xlane.f32.xlu0 %v6277_v4  ;;  %6281 = vmax.xlane.f32.xlu1 %v6280_v45 }
 0xcdb   : > { %6607 = vrot.lane.b32.xlu1 %v12732_v46, %s11788_s15 }
 0xcdf   : > { %6701 = vrot.lane.b32.xlu1 %v12778_v43, %s11788_s15 }
 0xce0   : > { %6560 = vrot.lane.b32.xlu0 %v12717_v49, %s11788_s15 }
 0xce3   : > { %6797 = vrot.lane.b32.xlu1 %v12043_v20, %s11789_s16 }
 0xce4   : > { %6654 = vrot.lane.b32.xlu0 %v12743_v9, %s11788_s15 }
 0xce8   : > { %6748 = vrot.lane.b32.xlu0 %v12789_v19, %s11788_s15 }
 0xd33   : > { %v6237_v26 = vpop.xlane.xlu1 %6236 }
 0xd34   : > { %v6283_v11 = vsub.f32 %v14359_v47, %v6237_v26 }
 0xd36   : > { %v6299_v32 = vmul.f32 1.442695, %v6283_v11 }
 0xd37   : > { %v6243_v44 = vpop.xlane.xlu0 %6242 }
 0xd38   : > { %11500 = vpow2.f32 %v6299_v32  ;;  %v6285_v1 = vsub.f32 %v14365_v42, %v6243_v44 }
 0xd3a   : > { %v6303_v12 = vmul.f32 1.442695, %v6285_v1 }
 0xd3b   : > { %v6240_v61 = vpop.xlane.xlu0 %6239  ;;  %v6246_v10 = vpop.xlane.xlu1 %6245 }
 0xd3c   : > { %11502 = vpow2.f32 %v6303_v12  ;;  %v6284_v13 = vsub.f32 %v14367_v14, %v6240_v61  ;;  %v6286_v4 = vsub.f32 %v14373_v6, %v6246_v10 }
 0xd3e   : > { %v6301_v45 = vmul.f32 1.442695, %v6284_v13  ;;  %v6305_v51 = vmul.f32 1.442695, %v6286_v4 }
 0xd3f   : > { %v6249_v24 = vpop.xlane.xlu0 %6248  ;;  %v6252_v2 = vpop.xlane.xlu1 %6251 }
 0xd40   : > { %11504 = vpow2.f32 %v6301_v45  ;;  %v6287_v47 = vsub.f32 %v14377_v5, %v6249_v24  ;;  %v6288_v26 = vsub.f32 %v14383_v53, %v6252_v2 }
 0xd41   : > { %11506 = vpow2.f32 %v6305_v51 }
 0xd42   : > { %v6307_v11 = vmul.f32 1.442695, %v6287_v47  ;;  %v6309_v42 = vmul.f32 1.442695, %v6288_v26 }
 0xd43   : > { %v6255_v32 = vpop.xlane.xlu0 %6254  ;;  %v6258_v44 = vpop.xlane.xlu1 %6257 }
 0xd44   : > { %11508 = vpow2.f32 %v6307_v11  ;;  %v6289_v1 = vsub.f32 %v14385_v34, %v6255_v32  ;;  %v6290_v14 = vsub.f32 %v14393_v28, %v6258_v44 }
 0xd45   : > { %v14460_v6 = vpop.eup %11500  ;;  %11510 = vpow2.f32 %v6309_v42 }
 0xd46   : > { %v6311_v12 = vmul.f32 1.442695, %v6289_v1  ;;  %v6313_v61 = vmul.f32 1.442695, %v6290_v14  ;;  %v6331_v24 = vsel %vm922_vm1, %v14460_v6, 0.0 }
 0xd47   : > { %v6261_v5 = vpop.xlane.xlu0 %6260  ;;  %6332 = vadd.xlane.f32.xlu0 %v6331_v24  ;;  %v6264_v2 = vpop.xlane.xlu1 %6263 }
 0xd48   : > { %11512 = vpow2.f32 %v6311_v12  ;;  %v6291_v51 = vsub.f32 %v14397_v25, %v6261_v5  ;;  %v6292_v53 = vsub.f32 %v14403_v41, %v6264_v2 }
 0xd49   : > { %v14466_v10 = vpop.eup %11502  ;;  %11514 = vpow2.f32 %v6313_v61 }
 0xd4a   : > { %v6315_v34 = vmul.f32 1.442695, %v6291_v51  ;;  %v6317_v28 = vmul.f32 1.442695, %v6292_v53  ;;  %v6337_v13 = vsel %vm922_vm1, %v14466_v10, 0.0 }
 0xd4b   : > { %v6267_v4 = vpop.xlane.xlu0 %6266  ;;  %6338 = vadd.xlane.f32.xlu0 %v6337_v13  ;;  %v6270_v45 = vpop.xlane.xlu1 %6269 }
 0xd4c   : > { %11516 = vpow2.f32 %v6315_v34  ;;  %v6293_v47 = vsub.f32 %v14405_v62, %v6267_v4  ;;  %v6294_v26 = vsub.f32 %v14413_v63, %v6270_v45 }
 0xd4d   : > { %v14472_v11 = vpop.eup %11504  ;;  %11518 = vpow2.f32 %v6317_v28 }
 0xd4e   : > { %v14474_v25 = vpop.eup %11506  ;;  %v6319_v41 = vmul.f32 1.442695, %v6293_v47  ;;  %v6321_v42 = vmul.f32 1.442695, %v6294_v26  ;;  %v6334_v32 = vsel %vm922_vm1, %v14472_v11, 0.0 }
 0xd4f   : > { %v6273_v44 = vpop.xlane.xlu0 %6272  ;;  %6335 = vadd.xlane.f32.xlu1 %v6334_v32  ;;  %v6276_v1 = vpop.xlane.xlu1 %6275  ;;  %v6340_v63 = vsel %vm922_vm1, %v14474_v25, 0.0 }
 0xd50   : > { %11520 = vpow2.f32 %v6319_v41  ;;  %v6295_v14 = vsub.f32 %v14417_v29, %v6273_v44  ;;  %v6296_v62 = vsub.f32 %v14423_v36, %v6276_v1 }
 0xd51   : > { %v14480_v12 = vpop.eup %11508  ;;  %11522 = vpow2.f32 %v6321_v42 }
 0xd52   : > { %v14484_v61 = vpop.eup %11510  ;;  %v6323_v24 = vmul.f32 1.442695, %v6295_v14  ;;  %v6325_v5 = vmul.f32 1.442695, %v6296_v62  ;;  %v6343_v2 = vsel %vm922_vm1, %v14480_v12, 0.0 }
 0xd53   : > { %v6279_v51 = vpop.xlane.xlu0 %6278  ;;  %6344 = vadd.xlane.f32.xlu0 %v6343_v2  ;;  %6341 = vadd.xlane.f32.xlu1 %v6340_v63  ;;  %v6282_v53 = vpop.xlane.xlu1 %6281  ;;  %v6346_v28 = vsel %vm922_vm1, %v14484_v61, 0.0 }
 0xd54   : > { %11524 = vpow2.f32 %v6323_v24  ;;  %v6297_v29 = vsub.f32 %v14425_v58, %v6279_v51  ;;  %v6298_v36 = vsub.f32 %v14432_v57, %v6282_v53 }
 0xd55   : > { %v14490_v34 = vpop.eup %11512  ;;  %11526 = vpow2.f32 %v6325_v5 }
 0xd56   : > { %v6327_v13 = vmul.f32 1.442695, %v6297_v29  ;;  %v6329_v4 = vmul.f32 1.442695, %v6298_v36  ;;  %v6349_v45 = vsel %vm922_vm1, %v14490_v34, 0.0  ;;  %v14496_v47 = vpop.eup %11514 }
 0xd57   : > { %6350 = vadd.xlane.f32.xlu0 %v6349_v45  ;;  %6347 = vadd.xlane.f32.xlu1 %v6346_v28  ;;  %v6352_v57 = vsel %vm922_vm1, %v14496_v47, 0.0  ;;  %v6561_v36 = vpop.permute.xlu0 %6560  ;;  %v14568_v28 = vpop.permute.xlu1 %6607 }
 0xd58   : > { %11528 = vpow2.f32 %v6327_v13 }
 0xd59   : > { %v14498_v26 = vpop.eup %11516  ;;  %11530 = vpow2.f32 %v6329_v4 }
 0xd5a   : > { %v6355_v58 = vsel %vm922_vm1, %v14498_v26, 0.0  ;;  %v14504_v41 = vpop.eup %11518 }
 0xd5b   : > { %6356 = vadd.xlane.f32.xlu0 %v6355_v58  ;;  %6353 = vadd.xlane.f32.xlu1 %v6352_v57  ;;  %v6358_v44 = vsel %vm922_vm1, %v14504_v41, 0.0  ;;  %v14570_v13 = vpop.permute.xlu0 %6654  ;;  %v14572_v4 = vpop.permute.xlu1 %6701 }
 0xd5d   : > { %v14506_v42 = vpop.eup %11520 }
 0xd5e   : > { %v6361_v32 = vsel %vm922_vm1, %v14506_v42, 0.0  ;;  %v14512_v1 = vpop.eup %11522 }
 0xd5f   : > { %6362 = vadd.xlane.f32.xlu0 %v6361_v32  ;;  %6359 = vadd.xlane.f32.xlu1 %v6358_v44  ;;  %v6364_v63 = vsel %vm922_vm1, %v14512_v1, 0.0  ;;  %v14574_v45 = vpop.permute.xlu0 %6748  ;;  %v14576_v57 = vpop.permute.xlu1 %6797 }
 0xd61   : > { %v14514_v14 = vpop.eup %11524 }
 0xd62   : > { %v6367_v62 = vsel %vm922_vm1, %v14514_v14, 0.0  ;;  %v14520_v24 = vpop.eup %11526 }
 0xd63   : > { %6368 = vadd.xlane.f32.xlu0 %v6367_v62  ;;  %6365 = vadd.xlane.f32.xlu1 %v6364_v63  ;;  %v6370_v51 = vsel %vm922_vm1, %v14520_v24, 0.0 }
 0xd65   : > { %v14522_v5 = vpop.eup %11528 }
 0xd66   : > { %v6373_v2 = vsel %vm922_vm1, %v14522_v5, 0.0  ;;  %v14528_v53 = vpop.eup %11530 }
 0xd67   : > { %6374 = vadd.xlane.f32.xlu0 %v6373_v2  ;;  %6371 = vadd.xlane.f32.xlu1 %v6370_v51  ;;  %v6376_v29 = vsel %vm922_vm1, %v14528_v53, 0.0 }
 0xd6b   : > { %6377 = vadd.xlane.f32.xlu1 %v6376_v29 }
 0xd7c   : > { %6795 = vrot.lane.b32.xlu1 %v15994_v3, %s11789_s16 }
 0xd7d   : > { %6848 = vrot.lane.b32.xlu0 %v12126_v59, %s11789_s16 }
 0xd80   : > { %6846 = vrot.lane.b32.xlu1 %v12171_v22, %s11789_s16 }
 0xd81   : > { %6899 = vrot.lane.b32.xlu0 %v12163_v33, %s11789_s16 }
 0xd84   : > { %6897 = vrot.lane.b32.xlu1 %v12192_v7, %s11789_s16 }
 0xd85   : > { %6950 = vrot.lane.b32.xlu0 %v12180_v60, %s11789_s16 }
 0xd88   : > { %6948 = vrot.lane.b32.xlu1 %v12203_v55, %s11789_s16 }
 0xd89   : > { %7001 = vrot.lane.b32.xlu0 %v12253_v31, %s11789_s16 }
 0xd8c   : > { %6999 = vrot.lane.b32.xlu1 %v12284_v35, %s11789_s16 }
 0xd8d   : > { %7052 = vrot.lane.b32.xlu0 %v12282_v50, %s11789_s16 }
 0xd90   : > { %7050 = vrot.lane.b32.xlu1 %v15996_v54, %s11789_s16 }
 0xd91   : > { %7103 = vrot.lane.b32.xlu0 %v12398_v27, %s11789_s16 }
 0xd94   : > { %7101 = vrot.lane.b32.xlu1 %v12425_v18, %s11789_s16 }
 0xd95   : > { %7154 = vrot.lane.b32.xlu0 %v12419_v15, %s11789_s16 }
 0xd98   : > { %7450 = vrot.lane.b32.xlu1 %v16038_v8, %s11789_s16 }
 0xd99   : > { %7152 = vrot.lane.b32.xlu0 %v16039_v37, %s11789_s16 }
 0xd9c   : > { %7497 = vrot.lane.b32.xlu1 %v16040_v23, %s11789_s16 }
 0xd9d   : > { %7403 = vrot.lane.b32.xlu0 %v16041_v17, %s11789_s16 }
 0xdd0   : > { %v6333_v58 = vpop.xlane.xlu0 %6332 }
 0xdd1   : > { %11532 = vrcp.f32 %v6333_v58 }
 0xdd4   : > { %v6339_v32 = vpop.xlane.xlu0 %6338 }
 0xdd8   : > { %v6336_v44 = vpop.xlane.xlu1 %6335 }
 0xdd9   : > { %11534 = vrcp.f32 %v6336_v44 }
 0xdda   : > { %11536 = vrcp.f32 %v6339_v32 }
 0xddc   : > { %v6345_v62 = vpop.xlane.xlu0 %6344  ;;  %v6342_v63 = vpop.xlane.xlu1 %6341 }
 0xddd   : > { %11538 = vrcp.f32 %v6342_v63 }
 0xdde   : > { %11540 = vrcp.f32 %v6345_v62  ;;  %v11533_v29 = vpop.eup %11532 }
 0xddf   : > { %v6395_v48 = vmul.f32 %v11533_v29, %v14460_v6 }
 0xde0   : > { %v6351_v2 = vpop.xlane.xlu0 %6350  ;;  %v6348_v51 = vpop.xlane.xlu1 %6347 }
 0xde1   : > { %11542 = vrcp.f32 %v6348_v51 }
 0xde2   : > { %11544 = vrcp.f32 %v6351_v2 }
 0xde4   : > { %v6357_v16 = vpop.xlane.xlu0 %6356  ;;  %v6354_v38 = vpop.xlane.xlu1 %6353 }
 0xde5   : > { %11546 = vrcp.f32 %v6354_v38 }
 0xde6   : > { %v11535_v40 = vpop.eup %11534  ;;  %11548 = vrcp.f32 %v6357_v16 }
 0xde7   : > { %v6396_v58 = vmul.f32 %v11535_v40, %v14472_v11  ;;  %v11537_v30 = vpop.eup %11536 }
 0xde8   : > { %v6363_v44 = vpop.xlane.xlu0 %6362  ;;  %v6360_v32 = vpop.xlane.xlu1 %6359  ;;  %v6397_v63 = vmul.f32 %v11537_v30, %v14466_v10 }
 0xde9   : > { %v6411_v56 = vpack.c.bf16 %v6396_v58, %v6395_v48  ;;  %11550 = vrcp.f32 %v6360_v32 }
 0xdea   : > { %v11539_v62 = vpop.eup %11538  ;;  %11552 = vrcp.f32 %v6363_v44 }
 0xdeb   : > { %10523 = vmatmul.mubr.msk.bf16.vlgmr.msra.gmra.mxu0 %vm922_vm1, %v6411_v56  ;;  %v6398_v2 = vmul.f32 %v11539_v62, %v14474_v25  ;;  %v11541_v40 = vpop.eup %11540 }
 0xdec   : > { %10533 = vmatpush3.bf16.msra.mxu0 %v14450_v52  ;;  %v6369_v38 = vpop.xlane.xlu0 %6368  ;;  %v6366_v6 = vpop.xlane.xlu1 %6365  ;;  %10534 = vmatprep.mubr.msk.bf16.mxu0 %vm11783_vm0, %v15972_v0  ;;  %v6399_v56 = vmul.f32 %v11541_v40, %v14480_v12 }
 0xded   : > { %10544 = vmatprep.subr.bf16.mxu0 %v15972_v0  ;;  %11554 = vrcp.f32 %v6366_v6  ;;  %v6412_v48 = vpack.c.bf16 %v6398_v2, %v6397_v63 }
 0xdee   : > { %v11543_v16 = vpop.eup %11542  ;;  %11556 = vrcp.f32 %v6369_v38 }
 0xdef   : > { %v6400_v30 = vmul.f32 %v11543_v16, %v14484_v61  ;;  %10529 = vmatmul.mubr.msk.bf16.vlgmr.msra.gmra.mxu1 %vm922_vm1, %v6412_v48  ;;  %v11545_v11 = vpop.eup %11544 }
 0xdf0   : > { %v6375_v10 = vpop.xlane.xlu0 %6374  ;;  %v6372_v52 = vpop.xlane.xlu1 %6371  ;;  %10539 = vmatpush3.bf16.msra.mxu1 %v6561_v36  ;;  %10540 = vmatprep.mubr.msk.bf16.mxu1 %vm11783_vm0, %v15972_v0  ;;  %v6401_v12 = vmul.f32 %v11545_v11, %v14490_v34 }
 0xdf1   : > { %11558 = vrcp.f32 %v6372_v52  ;;  %v6413_v25 = vpack.c.bf16 %v6400_v30, %v6399_v56  ;;  %10550 = vmatprep.subr.bf16.mxu1 %v15972_v0 }
 0xdf2   : > { %v11547_v51 = vpop.eup %11546  ;;  %11560 = vrcp.f32 %v6375_v10 }
 0xdf3   : > { %v6402_v61 = vmul.f32 %v11547_v51, %v14496_v47  ;;  %10535 = vmatmul.mubr.msk.bf16.vlgmr.msra.gmra.mxu0 %vm922_vm1, %v6413_v25  ;;  %v11549_v44 = vpop.eup %11548 }
 0xdf4   : > { %v6849_v29 = vpop.permute.xlu0 %6848  ;;  %v6378_v58 = vpop.xlane.xlu1 %6377  ;;  %10545 = vmatpush3.bf16.msra.mxu0 %v14568_v28  ;;  %10546 = vmatprep.mubr.msk.bf16.mxu0 %vm11783_vm0, %v15972_v0  ;;  %v6403_v62 = vmul.f32 %v11549_v44, %v14498_v26 }
 0xdf5   : > { %11562 = vrcp.f32 %v6378_v58  ;;  %v6414_v36 = vpack.c.bf16 %v6402_v61, %v6401_v12  ;;  %10556 = vmatprep.subr.bf16.mxu0 %v15972_v0  ;;  %v6854_v11 = vsel %vm922_vm1, %v6849_v29, 0 }
 0xdf6   : > { %v11551_v32 = vpop.eup %11550 }
 0xdf7   : > { %v6404_v34 = vmul.f32 %v11551_v32, %v14504_v41  ;;  %10541 = vmatmul.mubr.msk.bf16.vlgmr.msra.gmra.mxu1 %vm922_vm1, %v6414_v36  ;;  %v11553_v47 = vpop.eup %11552 }
 0xdf8   : > { %10551 = vmatpush3.bf16.msra.mxu1 %v14570_v13  ;;  %10552 = vmatprep.mubr.msk.bf16.mxu1 %vm11783_vm0, %v15972_v0  ;;  %v6900_v28 = vpop.permute.xlu0 %6899  ;;  %v6405_v38 = vmul.f32 %v11553_v47, %v14506_v42  ;;  %v6796_v41 = vpop.permute.xlu1 %6795 }
 0xdf9   : > { %v6415_v63 = vpack.c.bf16 %v6404_v34, %v6403_v62  ;;  %10562 = vmatprep.subr.bf16.mxu1 %v15972_v0 }
 0xdfa   : > { %v11555_v2 = vpop.eup %11554 }
 0xdfb   : > { %v6406_v6 = vmul.f32 %v11555_v2, %v14512_v1  ;;  %10547 = vmatmul.mubr.msk.bf16.vlgmr.msra.gmra.mxu0 %vm922_vm1, %v6415_v63  ;;  %v11557_v26 = vpop.eup %11556 }
 0xdfc   : > { %10557 = vmatpush3.bf16.msra.mxu0 %v14572_v4  ;;  %10558 = vmatprep.mubr.msk.bf16.mxu0 %vm11783_vm0, %v15972_v0  ;;  %v6407_v16 = vmul.f32 %v11557_v26, %v14514_v14  ;;  %v6951_v56 = vpop.permute.xlu0 %6950  ;;  %v6803_v14 = vsel %vm922_vm1, %v14576_v57, 0 }
 0xdfd   : > { %v6416_v13 = vpack.c.bf16 %v6406_v6, %v6405_v38  ;;  %10568 = vmatprep.subr.bf16.mxu0 %v15972_v0  ;;  %v6956_v25 = vsel %vm922_vm1, %v6951_v56, 0 }
 0xdfe   : > { %v11559_v40 = vpop.eup %11558 }
 0xdff   : > { %v11561_v48 = vpop.eup %11560  ;;  %v6408_v42 = vmul.f32 %v11559_v40, %v14520_v24  ;;  %10553 = vmatmul.mubr.msk.bf16.vlgmr.msra.gmra.mxu1 %vm922_vm1, %v6416_v13  ;;  %v6847_v24 = vpop.permute.xlu1 %6846 }
 0xe00   : > { %10563 = vmatpush3.bf16.msra.mxu1 %v14574_v45  ;;  %10564 = vmatprep.mubr.msk.bf16.mxu1 %vm11783_vm0, %v15972_v0  ;;  %v6409_v30 = vmul.f32 %v11561_v48, %v14522_v5  ;;  %v7002_v45 = vpop.permute.xlu0 %7001 }
 0xe01   : > { %v6417_v4 = vpack.c.bf16 %v6408_v42, %v6407_v16  ;;  %10574 = vmatprep.subr.bf16.mxu1 %v15972_v0  ;;  %v7007_v61 = vsel %vm922_vm1, %v7002_v45, 0 }
 0xe02   : > { %v11563_v1 = vpop.eup %11562 }
 0xe03   : > { %v6410_v10 = vmul.f32 %v11563_v1, %v14528_v53  ;;  %10559 = vmatmul.mubr.msk.bf16.vlgmr.msra.gmra.mxu0 %vm922_vm1, %v6417_v4  ;;  %v6898_v5 = vpop.permute.xlu1 %6897  ;;  %v6905_v53 = vsel %vm922_vm1, %v6900_v28, 0 }
 0xe04   : > { %10569 = vmatpush3.bf16.xpose.msra.mxu0 %v6803_v14  ;;  %10570 = vmatprep.mubr.msk.bf16.mxu0 %vm11783_vm0, %v15972_v0  ;;  %v7053_v57 = vpop.permute.xlu0 %7052 }
 0xe05   : > { %v6418_v52 = vpack.c.bf16 %v6410_v10, %v6409_v30  ;;  %10580 = vmatprep.subr.bf16.mxu0 %v15972_v0  ;;  %v7058_v58 = vsel %vm922_vm1, %v7053_v57, 0 }
 0xe07   : > { %10565 = vmatmul.mubr.msk.bf16.vlgmr.msra.gmra.mxu1 %vm922_vm1, %v6418_v52  ;;  %v6949_v51 = vpop.permute.xlu1 %6948 }
 0xe08   : > { %10575 = vmatpush3.bf16.xpose.msra.mxu1 %v6854_v11  ;;  %10576 = vmatprep.mubr.msk.bf16.mxu1 %vm11783_vm0, %v15972_v0  ;;  %v7104_v12 = vpop.permute.xlu0 %7103 }
 0xe09   : > { %10586 = vmatprep.subr.bf16.mxu1 %v15972_v0  ;;  %v7109_v36 = vsel %vm922_vm1, %v7104_v12, 0 }
 0xe0b   : > { %10571 = vmatmul.mubr.msk.bf16.vlgmr.msra.gmra.mxu0 %vm922_vm1, %v6796_v41  ;;  %v7000_v29 = vpop.permute.xlu1 %6999 }
 0xe0c   : > { %10581 = vmatpush3.bf16.xpose.msra.mxu0 %v6905_v53  ;;  %10582 = vmatprep.mubr.msk.bf16.mxu0 %vm11783_vm0, %v15972_v0  ;;  %v7155_v44 = vpop.permute.xlu0 %7154 }
 0xe0d   : > { %10592 = vmatprep.subr.bf16.mxu0 %v15972_v0  ;;  %v7160_v34 = vsel %vm922_vm1, %v7155_v44, 0 }
 0xe0f   : > { %10577 = vmatmul.mubr.msk.bf16.vlgmr.msra.gmra.mxu1 %vm922_vm1, %v6847_v24  ;;  %v7051_v32 = vpop.permute.xlu1 %7050 }
 0xe10   : > { %10587 = vmatpush3.bf16.xpose.msra.mxu1 %v6956_v25  ;;  %10588 = vmatprep.mubr.msk.bf16.mxu1 %vm11783_vm0, %v15972_v0  ;;  %v7153_v62 = vpop.permute.xlu0 %7152 }
 0xe11   : > { %10598 = vmatprep.subr.bf16.mxu1 %v15972_v0 }
 0xe13   : > { %10583 = vmatmul.mubr.msk.bf16.vlgmr.msra.gmra.mxu0 %vm922_vm1, %v6898_v5  ;;  %v7102_v47 = vpop.permute.xlu1 %7101 }
 0xe14   : > { %10593 = vmatpush3.bf16.xpose.msra.mxu0 %v7007_v61  ;;  %10594 = vmatprep.mubr.msk.bf16.mxu0 %vm11783_vm0, %v15972_v0  ;;  %v7404_v28 = vpop.permute.xlu0 %7403 }
 0xe15   : > { %10604 = vmatprep.subr.bf16.mxu0 %v15972_v0 }
 0xe17   : > { %10589 = vmatmul.mubr.msk.bf16.vlgmr.msra.gmra.mxu1 %vm922_vm1, %v6949_v51  ;;  %v7451_v63 = vpop.permute.xlu1 %7450 }
 0xe18   : > { %10599 = vmatpush3.bf16.xpose.msra.mxu1 %v7058_v58  ;;  %10600 = vmatprep.mubr.msk.bf16.mxu1 %vm11783_vm0, %v15972_v0 }
 0xe19   : > { %10610 = vmatprep.subr.bf16.mxu1 %v15972_v0 }
 0xe1b   : > { %10595 = vmatmul.mubr.msk.bf16.vlgmr.msra.gmra.mxu0 %vm922_vm1, %v7000_v29 }
 0xe1c   : > { %10605 = vmatpush3.bf16.xpose.msra.mxu0 %v7109_v36  ;;  %10606 = vmatprep.mubr.msk.bf16.mxu0 %vm11783_vm0, %v15972_v0 }
 0xe1d   : > { %10616 = vmatprep.subr.bf16.mxu0 %v15972_v0 }
 0xe1f   : > { %10601 = vmatmul.mubr.msk.bf16.vlgmr.msra.gmra.mxu1 %vm922_vm1, %v7051_v32 }
 0xe20   : > { %10611 = vmatpush3.bf16.xpose.msra.mxu1 %v7160_v34  ;;  %10612 = vmatprep.mubr.msk.bf16.mxu1 %vm11783_vm0, %v15972_v0 }
 0xe21   : > { %10622 = vmatprep.subr.bf16.mxu1 %v15972_v0 }
 0xe23   : > { %10607 = vmatmul.mubr.msk.bf16.vlgmr.msra.gmra.mxu0 %vm922_vm1, %v7102_v47 }
 0xe24   : > { %10617 = vmatpush3.bf16.msra.mxu0 %v7404_v28  ;;  %10618 = vmatprep.mubr.msk.bf16.mxu0 %vm11783_vm0, %v15972_v0 }
 0xe25   : > { %10628 = vmatprep.subr.bf16.mxu0 %v15972_v0 }
 0xe27   : > { %10613 = vmatmul.mubr.msk.bf16.vlgmr.msra.gmra.mxu1 %vm922_vm1, %v7153_v62 }
 0xe28   : > { %10623 = vmatpush3.bf16.msra.mxu1 %v7451_v63  ;;  %10624 = vmatprep.mubr.msk.bf16.mxu1 %vm11783_vm0, %v15972_v0 }
 0xe29   : > { %10634 = vmatprep.subr.bf16.mxu1 %v15972_v0 }
 0xeab   : > { %v14672_v2 = vpop.f32.mrf.mxu0 }
 0xead   : > { %v10524_v38 = vpop.f32.mrf.mxu0 }
 0xeaf   : > { %v14674_v6 = vpop.f32.mrf.mxu0  ;;  %v14678_v41 = vpop.f32.mrf.mxu1 }
 0xeb1   : > { %v10525_v13 = vpop.f32.mrf.mxu0  ;;  %v10530_v40 = vpop.f32.mrf.mxu1 }
 0xeb3   : > { %v14680_v48 = vpop.f32.mrf.mxu1  ;;  %v14682_v16 = vpop.f32.mrf.mxu0 }
 0xeb4   : > { %16104 = vst [vmem:[#allocation83_spill] sm:$0xff] %v14682_v16 }
 0xeb5   : > { %v10531_v56 = vpop.f32.mrf.mxu1  ;;  %v10536_v1 = vpop.f32.mrf.mxu0 }
 0xeb6   : > { %v14723_v56 = vld [vmem:[%s15841_s5] sm:$0xff] }
 0xeb7   : > { %v14686_v4 = vpop.f32.mrf.mxu0  ;;  %v14688_v30 = vpop.f32.mrf.mxu1 }
 0xeb8   : > { %16105 = vst [vmem:[#allocation84_spill] sm:$0xff] %v14686_v4  ;;  %16106 = vst [vmem:[#allocation85_spill] sm:$0xff] %v14688_v30 }
 0xeb9   : > { %v10537_v14 = vpop.f32.mrf.mxu0  ;;  %v10542_v24 = vpop.f32.mrf.mxu1 }
 0xebb   : > { %v14692_v52 = vpop.f32.mrf.mxu1  ;;  %v14694_v45 = vpop.f32.mrf.mxu0 }
 0xebc   : > { %16107 = vst [vmem:[#allocation86_spill] sm:$0xff] %v14692_v52  ;;  %16108 = vst [vmem:[#allocation87_spill] sm:$0xff] %v14694_v45 }
 0xebd   : > { %v10543_v5 = vpop.f32.mrf.mxu1  ;;  %v10548_v53 = vpop.f32.mrf.mxu0 }
 0xebf   : > { %v14698_v57 = vpop.f32.mrf.mxu0  ;;  %v14700_v25 = vpop.f32.mrf.mxu1 }
 0xec0   : > { %16109 = vst [vmem:[#allocation88_spill] sm:$0xff] %v14700_v25 }
 0xec1   : > { %v10549_v12 = vpop.f32.mrf.mxu0  ;;  %v10554_v61 = vpop.f32.mrf.mxu1 }
 0xec2   : > { %v14731_v61 = vld [vmem:[%s15841_s5 + $0x8] sm:$0xff] }
 0xec3   : > { %v14704_v29 = vpop.f32.mrf.mxu1  ;;  %v14706_v58 = vpop.f32.mrf.mxu0 }
 0xec4   : > { %16110 = vst [vmem:[#allocation89_spill] sm:$0xff] %v14704_v29  ;;  %16111 = vst [vmem:[#allocation90_spill] sm:$0xff] %v14706_v58 }
 0xec5   : > { %v10555_v36 = vpop.f32.mrf.mxu1  ;;  %v10560_v32 = vpop.f32.mrf.mxu0 }
 0xec7   : > { %v14710_v62 = vpop.f32.mrf.mxu0  ;;  %v14712_v34 = vpop.f32.mrf.mxu1 }
 0xec8   : > { %16112 = vst [vmem:[#allocation91_spill] sm:$0xff] %v14710_v62  ;;  %16113 = vst [vmem:[#allocation92_spill] sm:$0xff] %v14712_v34 }
 0xec9   : > { %v10561_v28 = vpop.f32.mrf.mxu0  ;;  %v10566_v63 = vpop.f32.mrf.mxu1 }
 0xecb   : > { %v14716_v38 = vpop.f32.mrf.mxu1  ;;  %v6839_v13 = vpop.f32.mrf.mxu0 }
 0xecc   : > { %16114 = vst [vmem:[#allocation93_spill] sm:$0xff] %v14716_v38  ;;  %v6840_v1 = vadd.f32 %v14723_v56, %v6839_v13 }
 0xecd   : > { %v10567_v14 = vpop.f32.mrf.mxu1  ;;  %v10572_v24 = vpop.f32.mrf.mxu0 }
 0xece   : > { %v14726_v5 = vmul.f32 0.25, %v6840_v1 }
 0xecf   : > { %v6842_v53 = vpop.f32.mrf.mxu0  ;;  %v6890_v12 = vpop.f32.mrf.mxu1 }
 0xed0   : > { %v6843_v36 = vadd.f32 %v14731_v61, %v6842_v53  ;;  %v6891_v32 = vadd.f32 %v14723_v56, %v6890_v12  ;;  %v7219_v28 = vsel %vm922_vm1, %v14726_v5, -inf }
 0xed1   : > { %7220 = vmax.xlane.f32.xlu1 %v7219_v28  ;;  %v10573_v63 = vpop.f32.mrf.mxu0  ;;  %v10578_v13 = vpop.f32.mrf.mxu1 }
 0xed2   : > { %v14737_v14 = vmul.f32 0.25, %v6891_v32  ;;  %v14739_v1 = vmul.f32 0.25, %v6843_v36 }
 0xed3   : > { %v6893_v24 = vpop.f32.mrf.mxu1  ;;  %v6941_v40 = vpop.f32.mrf.mxu0 }
 0xed4   : > { %v6894_v47 = vadd.f32 %v14731_v61, %v6893_v24  ;;  %v6942_v11 = vadd.f32 %v14723_v56, %v6941_v40  ;;  %v7225_v53 = vsel %vm922_vm1, %v14737_v14, -inf  ;;  %v7222_v36 = vsel %vm922_vm1, %v14739_v1, -inf }
 0xed5   : > { %7226 = vmax.xlane.f32.xlu0 %v7225_v53  ;;  %v10579_v12 = vpop.f32.mrf.mxu1  ;;  %v10584_v10 = vpop.f32.mrf.mxu0 }
 0xed6   : > { %v14745_v44 = vmul.f32 0.25, %v6894_v47  ;;  %v14749_v32 = vmul.f32 0.25, %v6942_v11 }
 0xed7   : > { %v6944_v28 = vpop.f32.mrf.mxu0  ;;  %v6992_v63 = vpop.f32.mrf.mxu1 }
 0xed8   : > { %v6945_v13 = vadd.f32 %v14731_v61, %v6944_v28  ;;  %v6993_v24 = vadd.f32 %v14723_v56, %v6992_v63  ;;  %v7228_v40 = vsel %vm922_vm1, %v14745_v44, -inf  ;;  %v7231_v28 = vsel %vm922_vm1, %v14749_v32, -inf }
 0xed9   : > { %7223 = vmax.xlane.f32.xlu0 %v7222_v36  ;;  %7229 = vmax.xlane.f32.xlu1 %v7228_v40  ;;  %v10585_v53 = vpop.f32.mrf.mxu0  ;;  %v10590_v10 = vpop.f32.mrf.mxu1 }
 0xeda   : > { %v14755_v47 = vmul.f32 0.25, %v6945_v13  ;;  %v14757_v12 = vmul.f32 0.25, %v6993_v24 }
 0xedb   : > { %v6995_v51 = vpop.f32.mrf.mxu1  ;;  %v7043_v42 = vpop.f32.mrf.mxu0 }
 0xedc   : > { %v6996_v11 = vadd.f32 %v14731_v61, %v6995_v51  ;;  %v7044_v26 = vadd.f32 %v14723_v56, %v7043_v42  ;;  %v7234_v63 = vsel %vm922_vm1, %v14755_v47, -inf  ;;  %v7237_v10 = vsel %vm922_vm1, %v14757_v12, -inf }
 0xedd   : > { %7232 = vmax.xlane.f32.xlu0 %v7231_v28  ;;  %7235 = vmax.xlane.f32.xlu1 %v7234_v63  ;;  %v10591_v36 = vpop.f32.mrf.mxu1  ;;  %v10596_v40 = vpop.f32.mrf.mxu0 }
 0xede   : > { %v14765_v13 = vmul.f32 0.25, %v6996_v11  ;;  %v14769_v51 = vmul.f32 0.25, %v7044_v26 }
 0xedf   : > { %v7046_v24 = vpop.f32.mrf.mxu0  ;;  %v7094_v53 = vpop.f32.mrf.mxu1 }
 0xee0   : > { %v7047_v42 = vadd.f32 %v14731_v61, %v7046_v24  ;;  %v7095_v34 = vadd.f32 %v14723_v56, %v7094_v53  ;;  %v7240_v38 = vsel %vm922_vm1, %v14765_v13, -inf  ;;  %v7243_v24 = vsel %vm922_vm1, %v14769_v51, -inf }
 0xee1   : > { %7238 = vmax.xlane.f32.xlu0 %v7237_v10  ;;  %7241 = vmax.xlane.f32.xlu1 %v7240_v38  ;;  %v10597_v28 = vpop.f32.mrf.mxu0  ;;  %v10602_v63 = vpop.f32.mrf.mxu1 }
 0xee2   : > { %v14775_v11 = vmul.f32 0.25, %v7047_v42  ;;  %v14777_v36 = vmul.f32 0.25, %v7095_v34 }
 0xee3   : > { %v7097_v40 = vpop.f32.mrf.mxu1  ;;  %v7145_v58 = vpop.f32.mrf.mxu0 }
 0xee4   : > { %v7098_v26 = vadd.f32 %v14731_v61, %v7097_v40  ;;  %v7146_v62 = vadd.f32 %v14723_v56, %v7145_v58  ;;  %v7246_v53 = vsel %vm922_vm1, %v14775_v11, -inf  ;;  %v7249_v63 = vsel %vm922_vm1, %v14777_v36, -inf }
 0xee5   : > { %7244 = vmax.xlane.f32.xlu0 %v7243_v24  ;;  %7247 = vmax.xlane.f32.xlu1 %v7246_v53  ;;  %v10603_v38 = vpop.f32.mrf.mxu1  ;;  %v10608_v10 = vpop.f32.mrf.mxu0 }
 0xee6   : > { %v14785_v42 = vmul.f32 0.25, %v7098_v26  ;;  %v14789_v40 = vmul.f32 0.25, %v7146_v62 }
 0xee7   : > { %v7148_v34 = vpop.f32.mrf.mxu0  ;;  %v7196_v28 = vpop.f32.mrf.mxu1 }
 0xee8   : > { %v7149_v58 = vadd.f32 %v14731_v61, %v7148_v34  ;;  %v7197_v30 = vadd.f32 %v14723_v56, %v7196_v28  ;;  %v7252_v52 = vsel %vm922_vm1, %v14785_v42, -inf  ;;  %v7255_v62 = vsel %vm922_vm1, %v14789_v40, -inf }
 0xee9   : > { %7250 = vmax.xlane.f32.xlu0 %v7249_v63  ;;  %7253 = vmax.xlane.f32.xlu1 %v7252_v52  ;;  %v10609_v24 = vpop.f32.mrf.mxu0  ;;  %v10614_v53 = vpop.f32.mrf.mxu1 }
 0xeea   : > { %v14795_v26 = vmul.f32 0.25, %v7149_v58  ;;  %v14797_v10 = vmul.f32 0.25, %v7197_v30 }
 0xeeb   : > { %v7199_v38 = vpop.f32.mrf.mxu1 }
 0xeec   : > { %v7200_v16 = vadd.f32 %v14731_v61, %v7199_v38  ;;  %v7258_v34 = vsel %vm922_vm1, %v14795_v26, -inf  ;;  %v7261_v52 = vsel %vm922_vm1, %v14797_v10, -inf }
 0xeed   : > { %v10615_v28 = vpop.f32.mrf.mxu1  ;;  %7256 = vmax.xlane.f32.xlu0 %v7255_v62  ;;  %7259 = vmax.xlane.f32.xlu1 %v7258_v34 }
 0xeee   : > { %v14804_v63 = vmul.f32 0.25, %v7200_v16  ;;  %v14822_v16 = vpop.permute.xlu1 %7497 }
 0xef0   : > { %v7264_v30 = vsel %vm922_vm1, %v14804_v63, -inf }
 0xef1   : > { %7262 = vmax.xlane.f32.xlu0 %v7261_v52  ;;  %7265 = vmax.xlane.f32.xlu1 %v7264_v30 }
 0xf02   : > { %7591 = vrot.lane.b32.xlu1 %v12732_v46, %s11789_s16 }
 0xf06   : > { %7685 = vrot.lane.b32.xlu1 %v12778_v43, %s11789_s16 }
 0xf07   : > { %7544 = vrot.lane.b32.xlu0 %v12717_v49, %s11789_s16 }
 0xf0a   : > { %7781 = vrot.lane.b32.xlu1 %v12043_v20, %s11790_s8 }
 0xf0b   : > { %7638 = vrot.lane.b32.xlu0 %v12743_v9, %s11789_s16 }
 0xf0f   : > { %7732 = vrot.lane.b32.xlu0 %v12789_v19, %s11789_s16 }
 0xf5a   : > { %v7221_v58 = vpop.xlane.xlu1 %7220 }
 0xf5b   : > { %v7267_v24 = vsub.f32 %v14726_v5, %v7221_v58 }
 0xf5d   : > { %v7283_v53 = vmul.f32 1.442695, %v7267_v24 }
 0xf5e   : > { %v7227_v38 = vpop.xlane.xlu0 %7226 }
 0xf5f   : > { %11564 = vpow2.f32 %v7283_v53  ;;  %v7269_v62 = vsub.f32 %v14737_v14, %v7227_v38 }
 0xf61   : > { %v7287_v34 = vmul.f32 1.442695, %v7269_v62 }
 0xf62   : > { %v7224_v28 = vpop.xlane.xlu0 %7223  ;;  %v7230_v52 = vpop.xlane.xlu1 %7229 }
 0xf63   : > { %11566 = vpow2.f32 %v7287_v34  ;;  %v7268_v20 = vsub.f32 %v14739_v1, %v7224_v28  ;;  %v7270_v30 = vsub.f32 %v14745_v44, %v7230_v52 }
 0xf65   : > { %v7285_v4 = vmul.f32 1.442695, %v7268_v20  ;;  %v7289_v25 = vmul.f32 1.442695, %v7270_v30 }
 0xf66   : > { %v7233_v29 = vpop.xlane.xlu0 %7232  ;;  %v7236_v45 = vpop.xlane.xlu1 %7235 }
 0xf67   : > { %11568 = vpow2.f32 %v7285_v4  ;;  %v7271_v5 = vsub.f32 %v14749_v32, %v7233_v29  ;;  %v7272_v58 = vsub.f32 %v14755_v47, %v7236_v45 }
 0xf68   : > { %11570 = vpow2.f32 %v7289_v25 }
 0xf69   : > { %v7291_v24 = vmul.f32 1.442695, %v7271_v5  ;;  %v7293_v14 = vmul.f32 1.442695, %v7272_v58 }
 0xf6a   : > { %v7239_v53 = vpop.xlane.xlu0 %7238  ;;  %v7242_v38 = vpop.xlane.xlu1 %7241 }
 0xf6b   : > { %11572 = vpow2.f32 %v7291_v24  ;;  %v7273_v62 = vsub.f32 %v14757_v12, %v7239_v53  ;;  %v7274_v1 = vsub.f32 %v14765_v13, %v7242_v38 }
 0xf6c   : > { %v14832_v44 = vpop.eup %11564  ;;  %11574 = vpow2.f32 %v7293_v14 }
 0xf6d   : > { %v7295_v34 = vmul.f32 1.442695, %v7273_v62  ;;  %v7297_v28 = vmul.f32 1.442695, %v7274_v1  ;;  %v7315_v4 = vsel %vm922_vm1, %v14832_v44, 0.0 }
 0xf6e   : > { %v7245_v29 = vpop.xlane.xlu0 %7244  ;;  %7316 = vadd.xlane.f32.xlu0 %v7315_v4  ;;  %v7248_v45 = vpop.xlane.xlu1 %7247 }
 0xf6f   : > { %11576 = vpow2.f32 %v7295_v34  ;;  %v7275_v25 = vsub.f32 %v14769_v51, %v7245_v29  ;;  %v7276_v32 = vsub.f32 %v14775_v11, %v7248_v45 }
 0xf70   : > { %v14838_v47 = vpop.eup %11566  ;;  %11578 = vpow2.f32 %v7297_v28 }
 0xf71   : > { %v7299_v12 = vmul.f32 1.442695, %v7275_v25  ;;  %v7301_v13 = vmul.f32 1.442695, %v7276_v32  ;;  %v7321_v52 = vsel %vm922_vm1, %v14838_v47, 0.0 }
 0xf72   : > { %v7251_v20 = vpop.xlane.xlu0 %7250  ;;  %7322 = vadd.xlane.f32.xlu0 %v7321_v52  ;;  %v7254_v30 = vpop.xlane.xlu1 %7253 }
 0xf73   : > { %11580 = vpow2.f32 %v7299_v12  ;;  %v7277_v5 = vsub.f32 %v14777_v36, %v7251_v20  ;;  %v7278_v58 = vsub.f32 %v14785_v42, %v7254_v30 }
 0xf74   : > { %v14844_v24 = vpop.eup %11568  ;;  %11582 = vpow2.f32 %v7301_v13 }
 0xf75   : > { %v14846_v51 = vpop.eup %11570  ;;  %v7303_v11 = vmul.f32 1.442695, %v7277_v5  ;;  %v7305_v14 = vmul.f32 1.442695, %v7278_v58  ;;  %v7318_v53 = vsel %vm922_vm1, %v14844_v24, 0.0 }
 0xf76   : > { %v7257_v38 = vpop.xlane.xlu0 %7256  ;;  %7319 = vadd.xlane.f32.xlu1 %v7318_v53  ;;  %v7260_v62 = vpop.xlane.xlu1 %7259  ;;  %v7324_v42 = vsel %vm922_vm1, %v14846_v51, 0.0 }
 0xf77   : > { %11584 = vpow2.f32 %v7303_v11  ;;  %v7279_v1 = vsub.f32 %v14789_v40, %v7257_v38  ;;  %v7280_v36 = vsub.f32 %v14795_v26, %v7260_v62 }
 0xf78   : > { %v14852_v34 = vpop.eup %11572  ;;  %11586 = vpow2.f32 %v7305_v14 }
 0xf79   : > { %v14856_v28 = vpop.eup %11574  ;;  %v7307_v4 = vmul.f32 1.442695, %v7279_v1  ;;  %v7309_v29 = vmul.f32 1.442695, %v7280_v36  ;;  %v7327_v45 = vsel %vm922_vm1, %v14852_v34, 0.0 }
 0xf7a   : > { %v7263_v25 = vpop.xlane.xlu0 %7262  ;;  %7328 = vadd.xlane.f32.xlu0 %v7327_v45  ;;  %7325 = vadd.xlane.f32.xlu1 %v7324_v42  ;;  %v7266_v32 = vpop.xlane.xlu1 %7265  ;;  %v7330_v13 = vsel %vm922_vm1, %v14856_v28, 0.0 }
 0xf7b   : > { %11588 = vpow2.f32 %v7307_v4  ;;  %v7281_v40 = vsub.f32 %v14797_v10, %v7263_v25  ;;  %v7282_v26 = vsub.f32 %v14804_v63, %v7266_v32 }
 0xf7c   : > { %v14862_v12 = vpop.eup %11576  ;;  %11590 = vpow2.f32 %v7309_v29 }
 0xf7d   : > { %v7311_v52 = vmul.f32 1.442695, %v7281_v40  ;;  %v7313_v20 = vmul.f32 1.442695, %v7282_v26  ;;  %v7333_v30 = vsel %vm922_vm1, %v14862_v12, 0.0  ;;  %v14868_v5 = vpop.eup %11578 }
 0xf7e   : > { %7334 = vadd.xlane.f32.xlu0 %v7333_v30  ;;  %7331 = vadd.xlane.f32.xlu1 %v7330_v13  ;;  %v7336_v63 = vsel %vm922_vm1, %v14868_v5, 0.0 }
 0xf7f   : > { %11592 = vpow2.f32 %v7311_v52 }
 0xf80   : > { %v14870_v58 = vpop.eup %11580  ;;  %11594 = vpow2.f32 %v7313_v20 }
 0xf81   : > { %v7339_v10 = vsel %vm922_vm1, %v14870_v58, 0.0  ;;  %v14876_v11 = vpop.eup %11582 }
 0xf82   : > { %7340 = vadd.xlane.f32.xlu0 %v7339_v10  ;;  %7337 = vadd.xlane.f32.xlu1 %v7336_v63  ;;  %v7342_v38 = vsel %vm922_vm1, %v14876_v11, 0.0 }
 0xf84   : > { %v14878_v14 = vpop.eup %11584 }
 0xf85   : > { %v7345_v53 = vsel %vm922_vm1, %v14878_v14, 0.0  ;;  %v14884_v62 = vpop.eup %11586 }
 0xf86   : > { %7346 = vadd.xlane.f32.xlu0 %v7345_v53  ;;  %7343 = vadd.xlane.f32.xlu1 %v7342_v38  ;;  %v7348_v42 = vsel %vm922_vm1, %v14884_v62, 0.0 }
 0xf88   : > { %v14886_v1 = vpop.eup %11588 }
 0xf89   : > { %v7351_v36 = vsel %vm922_vm1, %v14886_v1, 0.0  ;;  %v14892_v4 = vpop.eup %11590 }
 0xf8a   : > { %7352 = vadd.xlane.f32.xlu0 %v7351_v36  ;;  %7349 = vadd.xlane.f32.xlu1 %v7348_v42  ;;  %v7354_v25 = vsel %vm922_vm1, %v14892_v4, 0.0 }
 0xf8c   : > { %v14894_v29 = vpop.eup %11592 }
 0xf8d   : > { %v7357_v45 = vsel %vm922_vm1, %v14894_v29, 0.0  ;;  %v14900_v32 = vpop.eup %11594 }
 0xf8e   : > { %7358 = vadd.xlane.f32.xlu0 %v7357_v45  ;;  %7355 = vadd.xlane.f32.xlu1 %v7354_v25  ;;  %v7360_v40 = vsel %vm922_vm1, %v14900_v32, 0.0 }
 0xf92   : > { %7361 = vadd.xlane.f32.xlu1 %v7360_v40 }
 0xfa3   : > { %7779 = vrot.lane.b32.xlu1 %v15994_v3, %s11790_s8 }
 0xfa4   : > { %7832 = vrot.lane.b32.xlu0 %v12126_v59, %s11790_s8 }
 0xfa7   : > { %7830 = vrot.lane.b32.xlu1 %v12171_v22, %s11790_s8 }
 0xfa8   : > { %7883 = vrot.lane.b32.xlu0 %v12163_v33, %s11790_s8 }
 0xfab   : > { %7881 = vrot.lane.b32.xlu1 %v12192_v7, %s11790_s8 }
 0xfac   : > { %7934 = vrot.lane.b32.xlu0 %v12180_v60, %s11790_s8 }
 0xfaf   : > { %7932 = vrot.lane.b32.xlu1 %v12203_v55, %s11790_s8 }
 0xfb0   : > { %7985 = vrot.lane.b32.xlu0 %v12253_v31, %s11790_s8  ;;  %v7545_v31 = vpop.permute.xlu0 %7544 }
 0xfb3   : > { %7983 = vrot.lane.b32.xlu1 %v12284_v35, %s11790_s8  ;;  %v14934_v35 = vpop.permute.xlu1 %7591 }
 0xfb4   : > { %8036 = vrot.lane.b32.xlu0 %v12282_v50, %s11790_s8  ;;  %v14936_v59 = vpop.permute.xlu0 %7638 }
 0xfb7   : > { %8034 = vrot.lane.b32.xlu1 %v15996_v54, %s11790_s8  ;;  %v14938_v50 = vpop.permute.xlu1 %7685 }
 0xfb8   : > { %8087 = vrot.lane.b32.xlu0 %v12398_v27, %s11790_s8  ;;  %v14940_v33 = vpop.permute.xlu0 %7732 }
 0xfbb   : > { %8085 = vrot.lane.b32.xlu1 %v12425_v18, %s11790_s8  ;;  %v14942_v60 = vpop.permute.xlu1 %7781 }
 0xfbc   : > { %8138 = vrot.lane.b32.xlu0 %v12419_v15, %s11790_s8 }
 0xfc0   : > { %8136 = vrot.lane.b32.xlu0 %v16039_v37, %s11790_s8 }
 0xff7   : > { %v7317_v22 = vpop.xlane.xlu0 %7316 }
 0xff8   : > { %11596 = vrcp.f32 %v7317_v22 }
 0xffb   : > { %v7323_v7 = vpop.xlane.xlu0 %7322 }
 0xfff   : > { %v7320_v55 = vpop.xlane.xlu1 %7319 }
0x1000   : > { %11598 = vrcp.f32 %v7320_v55 }
0x1001   : > { %11600 = vrcp.f32 %v7323_v7 }
0x1003   : > { %v7329_v27 = vpop.xlane.xlu0 %7328  ;;  %v7326_v15 = vpop.xlane.xlu1 %7325 }
0x1004   : > { %11602 = vrcp.f32 %v7326_v15 }
0x1005   : > { %11604 = vrcp.f32 %v7329_v27  ;;  %v11597_v54 = vpop.eup %11596 }
0x1006   : > { %v7379_v52 = vmul.f32 %v11597_v54, %v14832_v44 }
0x1007   : > { %v7335_v18 = vpop.xlane.xlu0 %7334  ;;  %v7332_v3 = vpop.xlane.xlu1 %7331 }
0x1008   : > { %11606 = vrcp.f32 %v7332_v3 }
0x1009   : > { %11608 = vrcp.f32 %v7335_v18 }
0x100b   : > { %v7341_v37 = vpop.xlane.xlu0 %7340  ;;  %v7338_v26 = vpop.xlane.xlu1 %7337 }
0x100c   : > { %11610 = vrcp.f32 %v7338_v26 }
0x100d   : > { %v11599_v13 = vpop.eup %11598  ;;  %11612 = vrcp.f32 %v7341_v37 }
0x100e   : > { %v7380_v20 = vmul.f32 %v11599_v13, %v14844_v24  ;;  %v11601_v63 = vpop.eup %11600 }
0x100f   : > { %v7347_v30 = vpop.xlane.xlu0 %7346  ;;  %v7344_v10 = vpop.xlane.xlu1 %7343  ;;  %v7381_v36 = vmul.f32 %v11601_v63, %v14838_v47 }
0x1010   : > { %v7395_v53 = vpack.c.bf16 %v7380_v20, %v7379_v52  ;;  %11614 = vrcp.f32 %v7344_v10 }
0x1011   : > { %v11603_v38 = vpop.eup %11602  ;;  %11616 = vrcp.f32 %v7347_v30 }
0x1012   : > { %10619 = vmatmul.mubr.msk.bf16.vlgmr.msra.gmra.mxu0 %vm922_vm1, %v7395_v53  ;;  %v7382_v42 = vmul.f32 %v11603_v38, %v14846_v51  ;;  %v11605_v24 = vpop.eup %11604 }
0x1013   : > { %10629 = vmatpush3.bf16.msra.mxu0 %v14822_v16  ;;  %v7353_v45 = vpop.xlane.xlu0 %7352  ;;  %v7350_v44 = vpop.xlane.xlu1 %7349  ;;  %10630 = vmatprep.mubr.msk.bf16.mxu0 %vm11783_vm0, %v15972_v0  ;;  %v7383_v22 = vmul.f32 %v11605_v24, %v14852_v34 }
0x1014   : > { %10640 = vmatprep.subr.bf16.mxu0 %v15972_v0  ;;  %11618 = vrcp.f32 %v7350_v44  ;;  %v7396_v25 = vpack.c.bf16 %v7382_v42, %v7381_v36 }
0x1015   : > { %v11607_v40 = vpop.eup %11606  ;;  %11620 = vrcp.f32 %v7353_v45 }
0x1016   : > { %v7384_v47 = vmul.f32 %v11607_v40, %v14856_v28  ;;  %10625 = vmatmul.mubr.msk.bf16.vlgmr.msra.gmra.mxu1 %vm922_vm1, %v7396_v25  ;;  %v11609_v7 = vpop.eup %11608 }
0x1017   : > { %v7359_v51 = vpop.xlane.xlu0 %7358  ;;  %v7356_v16 = vpop.xlane.xlu1 %7355  ;;  %10635 = vmatpush3.bf16.msra.mxu1 %v7545_v31  ;;  %10636 = vmatprep.mubr.msk.bf16.mxu1 %vm11783_vm0, %v15972_v0  ;;  %v7385_v34 = vmul.f32 %v11609_v7, %v14862_v12 }
0x1018   : > { %11622 = vrcp.f32 %v7356_v16  ;;  %v7397_v55 = vpack.c.bf16 %v7384_v47, %v7383_v22  ;;  %10646 = vmatprep.subr.bf16.mxu1 %v15972_v0 }
0x1019   : > { %v11611_v27 = vpop.eup %11610  ;;  %11624 = vrcp.f32 %v7359_v51 }
0x101a   : > { %v7386_v28 = vmul.f32 %v11611_v27, %v14868_v5  ;;  %10631 = vmatmul.mubr.msk.bf16.vlgmr.msra.gmra.mxu0 %vm922_vm1, %v7397_v55  ;;  %v11613_v18 = vpop.eup %11612 }
0x101b   : > { %v7362_v15 = vpop.xlane.xlu1 %7361  ;;  %10641 = vmatpush3.bf16.msra.mxu0 %v14934_v35  ;;  %10642 = vmatprep.mubr.msk.bf16.mxu0 %vm11783_vm0, %v15972_v0  ;;  %v7387_v54 = vmul.f32 %v11613_v18, %v14870_v58  ;;  %v7833_v37 = vpop.permute.xlu0 %7832 }
0x101c   : > { %11626 = vrcp.f32 %v7362_v15  ;;  %v7398_v31 = vpack.c.bf16 %v7386_v28, %v7385_v34  ;;  %10652 = vmatprep.subr.bf16.mxu0 %v15972_v0  ;;  %v7838_v42 = vsel %vm922_vm1, %v7833_v37, 0 }
0x101d   : > { %v11615_v3 = vpop.eup %11614 }
0x101e   : > { %v7388_v12 = vmul.f32 %v11615_v3, %v14876_v11  ;;  %10637 = vmatmul.mubr.msk.bf16.vlgmr.msra.gmra.mxu1 %vm922_vm1, %v7398_v31  ;;  %v11617_v5 = vpop.eup %11616 }
0x101f   : > { %10647 = vmatpush3.bf16.msra.mxu1 %v14936_v59  ;;  %10648 = vmatprep.mubr.msk.bf16.mxu1 %vm11783_vm0, %v15972_v0  ;;  %v7389_v13 = vmul.f32 %v11617_v5, %v14878_v14  ;;  %v7884_v20 = vpop.permute.xlu0 %7883  ;;  %v7780_v30 = vpop.permute.xlu1 %7779 }
0x1020   : > { %v7399_v35 = vpack.c.bf16 %v7388_v12, %v7387_v54  ;;  %10658 = vmatprep.subr.bf16.mxu1 %v15972_v0 }
0x1021   : > { %v11619_v26 = vpop.eup %11618 }
0x1022   : > { %v7390_v52 = vmul.f32 %v11619_v26, %v14884_v62  ;;  %10643 = vmatmul.mubr.msk.bf16.vlgmr.msra.gmra.mxu0 %vm922_vm1, %v7399_v35  ;;  %v11621_v58 = vpop.eup %11620 }
0x1023   : > { %10653 = vmatpush3.bf16.msra.mxu0 %v14938_v50  ;;  %10654 = vmatprep.mubr.msk.bf16.mxu0 %vm11783_vm0, %v15972_v0  ;;  %v7391_v63 = vmul.f32 %v11621_v58, %v14886_v1  ;;  %v7787_v1 = vsel %vm922_vm1, %v14942_v60, 0  ;;  %v7831_v36 = vpop.permute.xlu1 %7830  ;;  %v7889_v60 = vsel %vm922_vm1, %v7884_v20, 0 }
0x1024   : > { %v7400_v11 = vpack.c.bf16 %v7390_v52, %v7389_v13  ;;  %10664 = vmatprep.subr.bf16.mxu0 %v15972_v0 }
0x1025   : > { %v11623_v59 = vpop.eup %11622 }
0x1026   : > { %v11625_v10 = vpop.eup %11624  ;;  %v7392_v14 = vmul.f32 %v11623_v59, %v14892_v4  ;;  %10649 = vmatmul.mubr.msk.bf16.vlgmr.msra.gmra.mxu1 %vm922_vm1, %v7400_v11  ;;  %v7935_v4 = vpop.permute.xlu0 %7934 }
0x1027   : > { %10659 = vmatpush3.bf16.msra.mxu1 %v14940_v33  ;;  %10660 = vmatprep.mubr.msk.bf16.mxu1 %vm11783_vm0, %v15972_v0  ;;  %v7393_v53 = vmul.f32 %v11625_v10, %v14894_v29  ;;  %v7940_v45 = vsel %vm922_vm1, %v7935_v4, 0 }
0x1028   : > { %v7401_v50 = vpack.c.bf16 %v7392_v14, %v7391_v63  ;;  %10670 = vmatprep.subr.bf16.mxu1 %v15972_v0 }
0x1029   : > { %v11627_v62 = vpop.eup %11626 }
0x102a   : > { %v7394_v38 = vmul.f32 %v11627_v62, %v14900_v32  ;;  %10655 = vmatmul.mubr.msk.bf16.vlgmr.msra.gmra.mxu0 %vm922_vm1, %v7401_v50  ;;  %v7986_v29 = vpop.permute.xlu0 %7985  ;;  %v7882_v32 = vpop.permute.xlu1 %7881 }
0x102b   : > { %10665 = vmatpush3.bf16.xpose.msra.mxu0 %v7787_v1  ;;  %10666 = vmatprep.mubr.msk.bf16.mxu0 %vm11783_vm0, %v15972_v0  ;;  %v7991_v25 = vsel %vm922_vm1, %v7986_v29, 0 }
0x102c   : > { %v7402_v33 = vpack.c.bf16 %v7394_v38, %v7393_v53  ;;  %10676 = vmatprep.subr.bf16.mxu0 %v15972_v0 }
0x102e   : > { %10661 = vmatmul.mubr.msk.bf16.vlgmr.msra.gmra.mxu1 %vm922_vm1, %v7402_v33  ;;  %v8037_v44 = vpop.permute.xlu0 %8036  ;;  %v7933_v24 = vpop.permute.xlu1 %7932 }
0x102f   : > { %10671 = vmatpush3.bf16.xpose.msra.mxu1 %v7838_v42  ;;  %10672 = vmatprep.mubr.msk.bf16.mxu1 %vm11783_vm0, %v15972_v0  ;;  %v8042_v47 = vsel %vm922_vm1, %v8037_v44, 0 }
0x1030   : > { %10682 = vmatprep.subr.bf16.mxu1 %v15972_v0 }
0x1032   : > { %10667 = vmatmul.mubr.msk.bf16.vlgmr.msra.gmra.mxu0 %vm922_vm1, %v7780_v30  ;;  %v8088_v40 = vpop.permute.xlu0 %8087  ;;  %v7984_v22 = vpop.permute.xlu1 %7983 }
0x1033   : > { %10677 = vmatpush3.bf16.xpose.msra.mxu0 %v7889_v60  ;;  %10678 = vmatprep.mubr.msk.bf16.mxu0 %vm11783_vm0, %v15972_v0  ;;  %v8093_v51 = vsel %vm922_vm1, %v8088_v40, 0 }
0x1034   : > { %10688 = vmatprep.subr.bf16.mxu0 %v15972_v0 }
0x1036   : > { %10673 = vmatmul.mubr.msk.bf16.vlgmr.msra.gmra.mxu1 %vm922_vm1, %v7831_v36  ;;  %v8139_v16 = vpop.permute.xlu0 %8138  ;;  %v8035_v7 = vpop.permute.xlu1 %8034 }
0x1037   : > { %10683 = vmatpush3.bf16.xpose.msra.mxu1 %v7940_v45  ;;  %10684 = vmatprep.mubr.msk.bf16.mxu1 %vm11783_vm0, %v15972_v0  ;;  %v8144_v55 = vsel %vm922_vm1, %v8139_v16, 0 }
0x1038   : > { %10694 = vmatprep.subr.bf16.mxu1 %v15972_v0 }
0x103a   : > { %10679 = vmatmul.mubr.msk.bf16.vlgmr.msra.gmra.mxu0 %vm922_vm1, %v7882_v32  ;;  %v8086_v27 = vpop.permute.xlu1 %8085  ;;  %v8137_v34 = vpop.permute.xlu0 %8136 }
0x103b   : > { %10689 = vmatpush3.bf16.xpose.msra.mxu0 %v7991_v25  ;;  %10690 = vmatprep.mubr.msk.bf16.mxu0 %vm11783_vm0, %v15972_v0 }
0x103c   : > { %10700 = vmatprep.subr.bf16.mxu0 %v15972_v0 }
0x103e   : > { %10685 = vmatmul.mubr.msk.bf16.vlgmr.msra.gmra.mxu1 %vm922_vm1, %v7933_v24 }
0x103f   : > { %10695 = vmatpush3.bf16.xpose.msra.mxu1 %v8042_v47  ;;  %10696 = vmatprep.mubr.msk.bf16.mxu1 %vm11783_vm0, %v15972_v0 }
0x1040   : > { %10706 = vmatprep.subr.bf16.mxu1 %v15972_v0 }
0x1042   : > { %10691 = vmatmul.mubr.msk.bf16.vlgmr.msra.gmra.mxu0 %vm922_vm1, %v7984_v22 }
0x1043   : > { %10701 = vmatpush3.bf16.xpose.msra.mxu0 %v8093_v51  ;;  %10702 = vmatprep.mubr.msk.bf16.mxu0 %vm11783_vm0, %v15972_v0 }
0x1044   : > { %10712 = vmatprep.subr.bf16.mxu0 %v15972_v0 }
0x1046   : > { %10697 = vmatmul.mubr.msk.bf16.vlgmr.msra.gmra.mxu1 %vm922_vm1, %v8035_v7 }
0x1047   : > { %10707 = vmatpush3.bf16.xpose.msra.mxu1 %v8144_v55  ;;  %10708 = vmatprep.mubr.msk.bf16.mxu1 %vm11783_vm0, %v15972_v0 }
0x1048   : > { %10718 = vmatprep.subr.bf16.mxu1 %v15972_v0 }
0x104a   : > { %10703 = vmatmul.mubr.msk.bf16.vlgmr.msra.gmra.mxu0 %vm922_vm1, %v8086_v27 }
0x104b   : > { %10714 = vmatprep.mubr.msk.bf16.mxu0 %vm11783_vm0, %v15972_v0 }
0x104e   : > { %10709 = vmatmul.mubr.msk.bf16.vlgmr.msra.gmra.mxu1 %vm922_vm1, %v8137_v34 }
0x104f   : > { %10720 = vmatprep.mubr.msk.bf16.mxu1 %vm11783_vm0, %v15972_v0 }
0x10d2   : > { %v15036_v28 = vpop.f32.mrf.mxu0 }
0x10d4   : > { %v10620_v15 = vpop.f32.mrf.mxu0 }
0x10d6   : > { %v15038_v18 = vpop.f32.mrf.mxu0  ;;  %v15042_v3 = vpop.f32.mrf.mxu1 }
0x10d7   : > { %v11000_v31 = vpack.i.bf16 %v15038_v18, %v15036_v28  ;;  %v16171_v18 = vld [vmem:[#allocation12_spill] sm:$0xff] }
0x10d8   : > { %v10621_v54 = vpop.f32.mrf.mxu0  ;;  %v10626_v12 = vpop.f32.mrf.mxu1 }
0x10da   : > { %v15044_v5 = vpop.f32.mrf.mxu1  ;;  %v15046_v37 = vpop.f32.mrf.mxu0 }
0x10db   : > { %v11010_v35 = vpack.i.bf16 %v15044_v5, %v15042_v3  ;;  %v16174_v5 = vld [vmem:[#allocation35_spill] sm:$0xff] }
0x10dc   : > { %v10627_v26 = vpop.f32.mrf.mxu1  ;;  %v10632_v13 = vpop.f32.mrf.mxu0 }
0x10de   : > { %v15050_v52 = vpop.f32.mrf.mxu0  ;;  %v15052_v58 = vpop.f32.mrf.mxu1 }
0x10df   : > { %v11120_v11 = vpack.i.bf16 %v15050_v52, %v15046_v37 }
0x10e0   : > { %v10633_v59 = vpop.f32.mrf.mxu0  ;;  %v10638_v20 = vpop.f32.mrf.mxu1 }
0x10e2   : > { %v15056_v30 = vpop.f32.mrf.mxu1  ;;  %v15058_v10 = vpop.f32.mrf.mxu0 }
0x10e3   : > { %v11130_v63 = vpack.i.bf16 %v15056_v30, %v15052_v58 }
0x10e4   : > { %v10639_v14 = vpop.f32.mrf.mxu1  ;;  %v10644_v62 = vpop.f32.mrf.mxu0 }
0x10e6   : > { %v15062_v50 = vpop.f32.mrf.mxu0  ;;  %v15064_v53 = vpop.f32.mrf.mxu1 }
0x10e7   : > { %v11005_v38 = vpack.i.bf16 %v15062_v50, %v15058_v10 }
0x10e8   : > { %v10645_v1 = vpop.f32.mrf.mxu0  ;;  %v10650_v4 = vpop.f32.mrf.mxu1 }
0x10ea   : > { %v15068_v36 = vpop.f32.mrf.mxu1  ;;  %v15070_v33 = vpop.f32.mrf.mxu0 }
0x10eb   : > { %v11015_v42 = vpack.i.bf16 %v15068_v36, %v15064_v53  ;;  %v16180_v53 = vld [vmem:[#allocation34_spill] sm:$0xff]  ;;  %v16181_v36 = vld [vmem:[#allocation7_spill] sm:$0xff] }
0x10ec   : > { %v10651_v29 = vpop.f32.mrf.mxu1  ;;  %v10656_v32 = vpop.f32.mrf.mxu0 }
0x10ee   : > { %v15074_v60 = vpop.f32.mrf.mxu0  ;;  %v15076_v45 = vpop.f32.mrf.mxu1 }
0x10f0   : > { %v10657_v24 = vpop.f32.mrf.mxu0  ;;  %v10662_v25 = vpop.f32.mrf.mxu1 }
0x10f2   : > { %v15080_v40 = vpop.f32.mrf.mxu1  ;;  %v7823_v22 = vpop.f32.mrf.mxu0 }
0x10f3   : > { %v7824_v51 = vadd.f32 %v14723_v56, %v7823_v22 }
0x10f4   : > { %v10663_v16 = vpop.f32.mrf.mxu1  ;;  %v10668_v7 = vpop.f32.mrf.mxu0 }
0x10f5   : > { %v15085_v55 = vmul.f32 0.25, %v7824_v51 }
0x10f6   : > { %v7826_v27 = vpop.f32.mrf.mxu0  ;;  %v7874_v34 = vpop.f32.mrf.mxu1 }
0x10f7   : > { %v7827_v15 = vadd.f32 %v14731_v61, %v7826_v27  ;;  %v7875_v54 = vadd.f32 %v14723_v56, %v7874_v34  ;;  %v8203_v12 = vsel %vm922_vm1, %v15085_v55, -inf }
0x10f8   : > { %8204 = vmax.xlane.f32.xlu1 %v8203_v12  ;;  %v10669_v26 = vpop.f32.mrf.mxu0  ;;  %v10674_v13 = vpop.f32.mrf.mxu1 }
0x10f9   : > { %v15091_v59 = vmul.f32 0.25, %v7875_v54  ;;  %v15093_v62 = vmul.f32 0.25, %v7827_v15 }
0x10fa   : > { %v7877_v20 = vpop.f32.mrf.mxu1  ;;  %v7925_v14 = vpop.f32.mrf.mxu0 }
0x10fb   : > { %v8209_v1 = vsel %vm922_vm1, %v15091_v59, -inf  ;;  %v8206_v25 = vsel %vm922_vm1, %v15093_v62, -inf }
0x10fc   : > { %8210 = vmax.xlane.f32.xlu0 %v8209_v1  ;;  %v10675_v4 = vpop.f32.mrf.mxu1  ;;  %v10680_v29 = vpop.f32.mrf.mxu0 }
0x10fe   : > { %v7928_v32 = vpop.f32.mrf.mxu0  ;;  %v7976_v24 = vpop.f32.mrf.mxu1 }
0x1100   : > { %8207 = vmax.xlane.f32.xlu0 %v8206_v25  ;;  %v10681_v22 = vpop.f32.mrf.mxu0  ;;  %v10686_v51 = vpop.f32.mrf.mxu1 }
0x1102   : > { %v7979_v16 = vpop.f32.mrf.mxu1  ;;  %v8027_v7 = vpop.f32.mrf.mxu0 }
0x1104   : > { %v10687_v27 = vpop.f32.mrf.mxu1  ;;  %v10692_v34 = vpop.f32.mrf.mxu0 }
0x1106   : > { %v8030_v15 = vpop.f32.mrf.mxu0  ;;  %v8078_v54 = vpop.f32.mrf.mxu1 }
0x1108   : > { %v10693_v12 = vpop.f32.mrf.mxu0  ;;  %v10698_v26 = vpop.f32.mrf.mxu1 }
0x1109   : > { %8434 = vrot.lane.b32.xlu1 %v16038_v8, %s11790_s8  ;;  %v7878_v12 = vadd.f32 %v14731_v61, %v7877_v20  ;;  %v7926_v8 = vadd.f32 %v14723_v56, %v7925_v14 }
0x110a   : > { %v8081_v13 = vpop.f32.mrf.mxu1  ;;  %v8129_v1 = vpop.f32.mrf.mxu0 }
0x110b   : > { %v15107_v26 = vmul.f32 0.25, %v7878_v12 }
0x110c   : > { %v10699_v4 = vpop.f32.mrf.mxu1  ;;  %v10704_v29 = vpop.f32.mrf.mxu0 }
0x110d   : > { %8481 = vrot.lane.b32.xlu1 %v16040_v23, %s11790_s8  ;;  %v7929_v4 = vadd.f32 %v14731_v61, %v7928_v32  ;;  %v15110_v29 = vmul.f32 0.25, %v7926_v8  ;;  %v7977_v23 = vadd.f32 %v14723_v56, %v7976_v24  ;;  %v8028_v32 = vadd.f32 %v14723_v56, %v8027_v7 }
0x110e   : > { %v8132_v25 = vpop.f32.mrf.mxu0  ;;  %v8180_v22 = vpop.f32.mrf.mxu1 }
0x110f   : > { %v15113_v44 = vmul.f32 0.25, %v7929_v4  ;;  %v8215_v20 = vsel %vm922_vm1, %v15110_v29, -inf  ;;  %v15131_v8 = vmul.f32 0.25, %v8028_v32 }
0x1110   : > { %v10705_v51 = vpop.f32.mrf.mxu0  ;;  %v10710_v47 = vpop.f32.mrf.mxu1 }
0x1111   : > { %v7980_v47 = vadd.f32 %v14731_v61, %v7979_v16  ;;  %v8212_v51 = vsel %vm922_vm1, %v15107_v26, -inf  ;;  %v8218_v24 = vsel %vm922_vm1, %v15113_v44, -inf  ;;  %v8079_v16 = vadd.f32 %v14723_v56, %v8078_v54 }
0x1112   : > { %v8183_v27 = vpop.f32.mrf.mxu1  ;;  %v8133_v54 = vadd.f32 %v14731_v61, %v8132_v25 }
0x1113   : > { %v15122_v14 = vmul.f32 0.25, %v7980_v47  ;;  %v8130_v47 = vadd.f32 %v14723_v56, %v8129_v1  ;;  %v11700_v56 = vld [vmem:[%s15841_s5] sm:$0xff]  ;;  %v8184_v25 = vadd.f32 %v14731_v61, %v8183_v27 }
0x1114   : > { %v10711_v34 = vpop.f32.mrf.mxu1  ;;  %v8181_v1 = vadd.f32 %v11700_v56, %v8180_v22 }
0x1115   : > { %v8031_v34 = vadd.f32 %v14731_v61, %v8030_v15  ;;  %v8224_v7 = vsel %vm922_vm1, %v15122_v14, -inf  ;;  %v15138_v15 = vmul.f32 0.25, %v8079_v16 }
0x1116   : > { %8387 = vrot.lane.b32.xlu0 %v16041_v17, %s11790_s8  ;;  %v15118_v17 = vmul.f32 0.25, %v7977_v23  ;;  %v8082_v23 = vadd.f32 %v14731_v61, %v8081_v13  ;;  %v15148_v13 = vmul.f32 0.25, %v8130_v47 }
0x1117   : > { %v15133_v4 = vmul.f32 0.25, %v8031_v34  ;;  %v8233_v34 = vsel %vm922_vm1, %v15138_v15, -inf }
0x1118   : > { %v8221_v12 = vsel %vm922_vm1, %v15118_v17, -inf }
0x1119   : > { %v8230_v32 = vsel %vm922_vm1, %v15133_v4, -inf }
0x1131   : > { %8213 = vmax.xlane.f32.xlu1 %v8212_v51  ;;  %v15141_v51 = vmul.f32 0.25, %v8082_v23  ;;  %v15162_v23 = vmul.f32 0.25, %v8184_v25 }
0x1133   : > { %v8236_v16 = vsel %vm922_vm1, %v15141_v51, -inf  ;;  %v8248_v22 = vsel %vm922_vm1, %v15162_v23, -inf }
0x1135   : > { %8216 = vmax.xlane.f32.xlu0 %v8215_v20  ;;  %8219 = vmax.xlane.f32.xlu1 %v8218_v24  ;;  %v8227_v20 = vsel %vm922_vm1, %v15131_v8, -inf  ;;  %v15152_v24 = vmul.f32 0.25, %v8133_v54 }
0x1137   : > { %v8242_v47 = vsel %vm922_vm1, %v15152_v24, -inf }
0x1139   : > { %8222 = vmax.xlane.f32.xlu0 %v8221_v12  ;;  %8225 = vmax.xlane.f32.xlu1 %v8224_v7  ;;  %v15160_v12 = vmul.f32 0.25, %v8181_v1  ;;  %v8239_v7 = vsel %vm922_vm1, %v15148_v13, -inf }
0x113b   : > { %v8245_v61 = vsel %vm922_vm1, %v15160_v12, -inf }
0x113d   : > { %8228 = vmax.xlane.f32.xlu0 %v8227_v20  ;;  %8231 = vmax.xlane.f32.xlu1 %v8230_v32 }
0x1141   : > { %8234 = vmax.xlane.f32.xlu0 %v8233_v34  ;;  %8237 = vmax.xlane.f32.xlu1 %v8236_v16 }
0x1145   : > { %8240 = vmax.xlane.f32.xlu0 %v8239_v7  ;;  %8243 = vmax.xlane.f32.xlu1 %v8242_v47 }
0x1149   : > { %8246 = vmax.xlane.f32.xlu0 %v8245_v61  ;;  %8249 = vmax.xlane.f32.xlu1 %v8248_v22 }
0x115a   : > { %8575 = vrot.lane.b32.xlu1 %v12732_v46, %s11790_s8 }
0x115f   : > { %8528 = vrot.lane.b32.xlu0 %v12717_v49, %s11790_s8 }
0x1163   : > { %8622 = vrot.lane.b32.xlu0 %v12743_v9, %s11790_s8 }
0x1181   : > { %v8205_v27 = vpop.xlane.xlu1 %8204 }
0x1182   : > { %v8251_v54 = vsub.f32 %v15085_v55, %v8205_v27 }
0x1184   : > { %v8267_v20 = vmul.f32 1.442695, %v8251_v54 }
0x1185   : > { %v8211_v32 = vpop.xlane.xlu0 %8210  ;;  %v8435_v34 = vpop.permute.xlu1 %8434 }
0x1186   : > { %11628 = vpow2.f32 %v8267_v20  ;;  %v8253_v56 = vsub.f32 %v15091_v59, %v8211_v32  ;;  %10719 = vmatpush3.bf16.msra.mxu1 %v8435_v34 }
0x1187   : > { %10730 = vmatprep.subr.bf16.mxu1 %v15972_v0 }
0x1188   : > { %v8271_v1 = vmul.f32 1.442695, %v8253_v56 }
0x1189   : > { %v8208_v46 = vpop.xlane.xlu0 %8207  ;;  %v15195_v61 = vpop.permute.xlu1 %8481 }
0x118a   : > { %11630 = vpow2.f32 %v8271_v1  ;;  %v8252_v49 = vsub.f32 %v15093_v62, %v8208_v46 }
0x118c   : > { %v8269_v25 = vmul.f32 1.442695, %v8252_v49 }
0x118d   : > { %v8388_v16 = vpop.permute.xlu0 %8387 }
0x118e   : > { %11632 = vpow2.f32 %v8269_v25  ;;  %10713 = vmatpush3.bf16.msra.mxu0 %v8388_v16 }
0x118f   : > { %10724 = vmatprep.subr.bf16.mxu0 %v15972_v0 }
0x1193   : > { %v15183_v9 = vpop.eup %11628 }
0x1194   : > { %v8299_v55 = vsel %vm922_vm1, %v15183_v9, 0.0 }
0x1195   : > { %8300 = vadd.xlane.f32.xlu0 %v8299_v55 }
0x1197   : > { %v15187_v59 = vpop.eup %11630 }
0x1198   : > { %v8305_v7 = vsel %vm922_vm1, %v15187_v59, 0.0 }
0x1199   : > { %8306 = vadd.xlane.f32.xlu0 %v8305_v7 }
0x119b   : > { %v15191_v47 = vpop.eup %11632 }
0x119c   : > { %v8302_v62 = vsel %vm922_vm1, %v15191_v47, 0.0 }
0x119d   : > { %8303 = vadd.xlane.f32.xlu1 %v8302_v62 }
0x11ba   : > { %v8214_v22 = vpop.xlane.xlu1 %8213 }
0x11bb   : > { %v8254_v27 = vsub.f32 %v15107_v26, %v8214_v22 }
0x11bd   : > { %v8273_v54 = vmul.f32 1.442695, %v8254_v27 }
0x11be   : > { %v8217_v20 = vpop.xlane.xlu0 %8216  ;;  %v8220_v32 = vpop.xlane.xlu1 %8219 }
0x11bf   : > { %11634 = vpow2.f32 %v8273_v54  ;;  %v8255_v34 = vsub.f32 %v15110_v29, %v8217_v20  ;;  %v8256_v56 = vsub.f32 %v15113_v44, %v8220_v32 }
0x11c1   : > { %v8275_v1 = vmul.f32 1.442695, %v8255_v34  ;;  %v8277_v46 = vmul.f32 1.442695, %v8256_v56 }
0x11c2   : > { %v8223_v49 = vpop.xlane.xlu0 %8222  ;;  %v8226_v25 = vpop.xlane.xlu1 %8225 }
0x11c3   : > { %11636 = vpow2.f32 %v8275_v1  ;;  %v8257_v16 = vsub.f32 %v15118_v17, %v8223_v49  ;;  %v8258_v55 = vsub.f32 %v15122_v14, %v8226_v25 }
0x11c4   : > { %11638 = vpow2.f32 %v8277_v46 }
0x11c5   : > { %v8279_v7 = vmul.f32 1.442695, %v8257_v16  ;;  %v8281_v26 = vmul.f32 1.442695, %v8258_v55 }
0x11c6   : > { %v8229_v62 = vpop.xlane.xlu0 %8228  ;;  %v8232_v22 = vpop.xlane.xlu1 %8231 }
0x11c7   : > { %11640 = vpow2.f32 %v8279_v7  ;;  %v8259_v27 = vsub.f32 %v15131_v8, %v8229_v62  ;;  %v8260_v29 = vsub.f32 %v15133_v4, %v8232_v22 }
0x11c8   : > { %11642 = vpow2.f32 %v8281_v26 }
0x11c9   : > { %v8283_v44 = vmul.f32 1.442695, %v8259_v27  ;;  %v8285_v54 = vmul.f32 1.442695, %v8260_v29 }
0x11ca   : > { %v8235_v20 = vpop.xlane.xlu0 %8234  ;;  %v8238_v32 = vpop.xlane.xlu1 %8237 }
0x11cb   : > { %11644 = vpow2.f32 %v8283_v44  ;;  %v8261_v17 = vsub.f32 %v15138_v15, %v8235_v20  ;;  %v8262_v14 = vsub.f32 %v15141_v51, %v8238_v32 }
0x11cc   : > { %v15206_v34 = vpop.eup %11634  ;;  %11646 = vpow2.f32 %v8285_v54 }
0x11cd   : > { %v8287_v56 = vmul.f32 1.442695, %v8261_v17  ;;  %v8289_v1 = vmul.f32 1.442695, %v8262_v14  ;;  %v8308_v8 = vsel %vm922_vm1, %v15206_v34, 0.0 }
0x11ce   : > { %v8241_v46 = vpop.xlane.xlu0 %8240  ;;  %8309 = vadd.xlane.f32.xlu1 %v8308_v8  ;;  %v8244_v4 = vpop.xlane.xlu1 %8243 }
0x11cf   : > { %11648 = vpow2.f32 %v8287_v56  ;;  %v8263_v49 = vsub.f32 %v15148_v13, %v8241_v46  ;;  %v8264_v25 = vsub.f32 %v15152_v24, %v8244_v4 }
0x11d0   : > { %v15212_v16 = vpop.eup %11636  ;;  %11650 = vpow2.f32 %v8289_v1 }
0x11d1   : > { %v15214_v15 = vpop.eup %11638  ;;  %v8291_v51 = vmul.f32 1.442695, %v8263_v49  ;;  %v8293_v55 = vmul.f32 1.442695, %v8264_v25  ;;  %v8311_v7 = vsel %vm922_vm1, %v15212_v16, 0.0 }
0x11d2   : > { %v8247_v26 = vpop.xlane.xlu0 %8246  ;;  %8312 = vadd.xlane.f32.xlu0 %v8311_v7  ;;  %v8314_v62 = vsel %vm922_vm1, %v15214_v15, 0.0  ;;  %v8250_v22 = vpop.xlane.xlu1 %8249 }
0x11d3   : > { %11652 = vpow2.f32 %v8291_v51  ;;  %v8265_v13 = vsub.f32 %v15160_v12, %v8247_v26  ;;  %8315 = vadd.xlane.f32.xlu1 %v8314_v62  ;;  %v8266_v24 = vsub.f32 %v15162_v23, %v8250_v22  ;;  %v16115_v22 = vld [vmem:[#allocation21_spill] sm:$0xff] }
0x11d4   : > { %v15222_v27 = vpop.eup %11640  ;;  %11654 = vpow2.f32 %v8293_v55 }
0x11d5   : > { %v15224_v29 = vpop.eup %11642  ;;  %v8295_v44 = vmul.f32 1.442695, %v8265_v13  ;;  %v8297_v54 = vmul.f32 1.442695, %v8266_v24  ;;  %v8317_v20 = vsel %vm922_vm1, %v15222_v27, 0.0  ;;  %v16116_v13 = vld [vmem:[#allocation23_spill] sm:$0xff] }
0x11d6   : > { %8318 = vadd.xlane.f32.xlu0 %v8317_v20  ;;  %v8320_v32 = vsel %vm922_vm1, %v15224_v29, 0.0  ;;  %v16117_v24 = vpack.i.bf16 %v16115_v22, %v16116_v13  ;;  %v16133_v13 = vld [vmem:[#allocation46_spill] sm:$0xff] }
0x11d7   : > { %11656 = vpow2.f32 %v8295_v44  ;;  %8321 = vadd.xlane.f32.xlu1 %v8320_v32  ;;  %v16118_v44 = vld [vmem:[#allocation10_spill] sm:$0xff]  ;;  %v16121_v32 = vld [vmem:[#allocation33_spill] sm:$0xff] }
0x11d8   : > { %v15230_v12 = vpop.eup %11644  ;;  %11658 = vpow2.f32 %v8297_v54  ;;  %v16119_v54 = vld [vmem:[#allocation26_spill] sm:$0xff] }
0x11d9   : > { %v15232_v23 = vpop.eup %11646  ;;  %v8323_v17 = vsel %vm922_vm1, %v15230_v12, 0.0  ;;  %v16120_v20 = vpack.i.bf16 %v16118_v44, %v16119_v54  ;;  %v16136_v54 = vld [vmem:[#allocation54_spill] sm:$0xff] }
0x11da   : > { %8324 = vadd.xlane.f32.xlu0 %v8323_v17  ;;  %v8326_v14 = vsel %vm922_vm1, %v15232_v23, 0.0  ;;  %v16122_v17 = vld [vmem:[#allocation29_spill] sm:$0xff] }
0x11db   : > { %8327 = vadd.xlane.f32.xlu1 %v8326_v14  ;;  %v16123_v14 = vpack.i.bf16 %v16121_v32, %v16122_v17  ;;  %v16139_v17 = vld [vmem:[#allocation48_spill] sm:$0xff] }
0x11dc   : > { %v15238_v56 = vpop.eup %11648 }
0x11dd   : > { %v15240_v1 = vpop.eup %11650  ;;  %v8329_v8 = vsel %vm922_vm1, %v15238_v56, 0.0 }
0x11de   : > { %8330 = vadd.xlane.f32.xlu0 %v8329_v8  ;;  %v8332_v46 = vsel %vm922_vm1, %v15240_v1, 0.0  ;;  %v16125_v8 = vld [vmem:[#allocation37_spill] sm:$0xff] }
0x11df   : > { %8333 = vadd.xlane.f32.xlu1 %v8332_v46 }
0x11e0   : > { %v15246_v4 = vpop.eup %11652 }
0x11e1   : > { %v15248_v49 = vpop.eup %11654  ;;  %v8335_v25 = vsel %vm922_vm1, %v15246_v4, 0.0 }
0x11e2   : > { %8336 = vadd.xlane.f32.xlu0 %v8335_v25  ;;  %v8338_v51 = vsel %vm922_vm1, %v15248_v49, 0.0  ;;  %v16127_v25 = vld [vmem:[#allocation32_spill] sm:$0xff] }
0x11e3   : > { %8339 = vadd.xlane.f32.xlu1 %v8338_v51  ;;  %v16128_v51 = vld [vmem:[#allocation31_spill] sm:$0xff] }
0x11e4   : > { %v15254_v55 = vpop.eup %11656 }
0x11e5   : > { %v15256_v7 = vpop.eup %11658  ;;  %v8341_v26 = vsel %vm922_vm1, %v15254_v55, 0.0 }
0x11e6   : > { %8342 = vadd.xlane.f32.xlu0 %v8341_v26  ;;  %v8344_v62 = vsel %vm922_vm1, %v15256_v7, 0.0  ;;  %v16129_v26 = vpack.i.bf16 %v16127_v25, %v16128_v51  ;;  %v16145_v51 = vld [vmem:[#allocation62_spill] sm:$0xff] }
0x11e7   : > { %8345 = vadd.xlane.f32.xlu1 %v8344_v62  ;;  %v16131_v62 = vld [vmem:[#allocation39_spill] sm:$0xff] }
0x11f8   : > { %8669 = vrot.lane.b32.xlu1 %v12778_v43, %s11790_s8  ;;  %v16124_v43 = vld [vmem:[#allocation38_spill] sm:$0xff] }
0x11f9   : > { %v16126_v46 = vpack.i.bf16 %v16124_v43, %v16125_v8  ;;  %v16142_v8 = vld [vmem:[#allocation56_spill] sm:$0xff] }
0x11fc   : > { %10901 = vrot.lane.b32.xlu1 %v16117_v24, %s11790_s8  ;;  %8716 = vrot.lane.b32.xlu0 %v12789_v19, %s11790_s8  ;;  %v16130_v19 = vld [vmem:[#allocation40_spill] sm:$0xff]  ;;  %v16134_v24 = vld [vmem:[#allocation45_spill] sm:$0xff] }
0x11fd   : > { %v16132_v22 = vpack.i.bf16 %v16130_v19, %v16131_v62  ;;  %v16135_v44 = vpack.i.bf16 %v16133_v13, %v16134_v24  ;;  %v16148_v62 = vpack.i.bf16 %v14312_v21, %v14310_v39  ;;  %v16150_v13 = vld [vmem:[#allocation63_spill] sm:$0xff]  ;;  %v16158_v39 = vpack.i.bf16 %v14674_v6, %v14672_v2  ;;  %v16159_v21 = vld [vmem:[#allocation78_spill] sm:$0xff]  ;;  %v16165_v6 = vld [vmem:[#allocation89_spill] sm:$0xff] }
0x1200   : > { %10911 = vrot.lane.b32.xlu1 %v16120_v20, %s11790_s8  ;;  %10906 = vrot.lane.b32.xlu0 %v16123_v14, %s11790_s8  ;;  %v16137_v20 = vld [vmem:[#allocation53_spill] sm:$0xff]  ;;  %v16140_v14 = vld [vmem:[#allocation47_spill] sm:$0xff] }
0x1201   : > { %v16138_v32 = vpack.i.bf16 %v16136_v54, %v16137_v20  ;;  %v16141_v43 = vpack.i.bf16 %v16139_v17, %v16140_v14  ;;  %v16152_v54 = vld [vmem:[#allocation70_spill] sm:$0xff]  ;;  %v16153_v20 = vld [vmem:[#allocation69_spill] sm:$0xff]  ;;  %v16155_v17 = vld [vmem:[#allocation76_spill] sm:$0xff] }
0x1202   : > { %v16156_v14 = vld [vmem:[#allocation75_spill] sm:$0xff] }
0x1204   : > { %10921 = vrot.lane.b32.xlu1 %v16126_v46, %s11789_s16  ;;  %10916 = vrot.lane.b32.xlu0 %v16129_v26, %s11790_s8  ;;  %v16143_v46 = vld [vmem:[#allocation55_spill] sm:$0xff]  ;;  %v16146_v26 = vld [vmem:[#allocation61_spill] sm:$0xff] }
0x1205   : > { %v16144_v25 = vpack.i.bf16 %v16142_v8, %v16143_v46  ;;  %v16147_v19 = vpack.i.bf16 %v16145_v51, %v16146_v26  ;;  %v16160_v8 = vld [vmem:[#allocation77_spill] sm:$0xff]  ;;  %v16162_v51 = vpack.i.bf16 %v14680_v48, %v14678_v41  ;;  %v16163_v26 = vld [vmem:[#allocation87_spill] sm:$0xff] }
0x1206   : > { %v16161_v46 = vpack.i.bf16 %v16159_v21, %v16160_v8  ;;  %v16168_v48 = vld [vmem:[#allocation27_spill] sm:$0xff]  ;;  %v16186_v8 = vld [vmem:[#allocation50_spill] sm:$0xff] }
0x1208   : > { %10931 = vrot.lane.b32.xlu1 %v16132_v22, %s11789_s16  ;;  %10926 = vrot.lane.b32.xlu0 %v16135_v44, %s11789_s16  ;;  %v16149_v22 = vld [vmem:[#allocation64_spill] sm:$0xff]  ;;  %v15318_v44 = vpop.permute.xlu0 %8528 }
0x1209   : > { %v16151_v24 = vpack.i.bf16 %v16149_v22, %v16150_v13  ;;  %v16166_v22 = vld [vmem:[#allocation88_spill] sm:$0xff] }
0x120a   : > { %v16167_v13 = vpack.i.bf16 %v16165_v6, %v16166_v22  ;;  %v16195_v22 = vld [vmem:[#allocation60_spill] sm:$0xff] }
0x120c   : > { %10941 = vrot.lane.b32.xlu1 %v16138_v32, %s11788_s15  ;;  %10936 = vrot.lane.b32.xlu0 %v16141_v43, %s11789_s16  ;;  %v16154_v32 = vpack.i.bf16 %v16152_v54, %v16153_v20  ;;  %v16157_v43 = vpack.i.bf16 %v16155_v17, %v16156_v14  ;;  %v16178_v54 = vld [vmem:[#allocation41_spill] sm:$0xff] }
0x1210   : > { %10951 = vrot.lane.b32.xlu1 %v16144_v25, %s11788_s15  ;;  %10946 = vrot.lane.b32.xlu0 %v16147_v19, %s11788_s15  ;;  %v15336_v25 = vpop.permute.xlu0 %8622  ;;  %v16164_v19 = vpack.i.bf16 %v14698_v57, %v16163_v26  ;;  %v16169_v57 = vld [vmem:[#allocation25_spill] sm:$0xff] }
0x1211   : > { %v16170_v28 = vpack.i.bf16 %v16168_v48, %v16169_v57  ;;  %v16199_v48 = vld [vmem:[#allocation65_spill] sm:$0xff] }
0x1214   : > { %10961 = vrot.lane.b32.xlu1 %v16148_v62, %s11787_s30  ;;  %10956 = vrot.lane.b32.xlu0 %v16151_v24, %s11788_s15  ;;  %v15346_v62 = vpop.permute.xlu1 %8575  ;;  %v16177_v24 = vld [vmem:[#allocation42_spill] sm:$0xff] }
0x1215   : > { %v16179_v20 = vpack.i.bf16 %v16177_v24, %v16178_v54  ;;  %v16210_v24 = vld [vmem:[#allocation80_spill] sm:$0xff]  ;;  %v16211_v54 = vld [vmem:[#allocation79_spill] sm:$0xff] }
0x1218   : > { %10971 = vrot.lane.b32.xlu1 %v16154_v32, %s11787_s30  ;;  %10966 = vrot.lane.b32.xlu0 %v16157_v43, %s11787_s30  ;;  %v16183_v43 = vld [vmem:[#allocation44_spill] sm:$0xff] }
0x121c   : > { %10981 = vrot.lane.b32.xlu1 %v16158_v39, %s11786_s18  ;;  %10976 = vrot.lane.b32.xlu0 %v16161_v46, %s11787_s30  ;;  %v16184_v39 = vld [vmem:[#allocation43_spill] sm:$0xff]  ;;  %v16187_v46 = vld [vmem:[#allocation49_spill] sm:$0xff] }
0x121d   : > { %v16185_v21 = vpack.i.bf16 %v16183_v43, %v16184_v39  ;;  %v16219_v43 = vld [vmem:[#allocation86_spill] sm:$0xff]  ;;  %v16220_v39 = vld [vmem:[#allocation85_spill] sm:$0xff] }
0x121e   : > { %v8301_v2 = vpop.xlane.xlu0 %8300 }
0x121f   : > { %11660 = vrcp.f32 %v8301_v2  ;;  %v16193_v2 = vld [vmem:[#allocation51_spill] sm:$0xff] }
0x1220   : > { %10991 = vrot.lane.b32.xlu1 %v16162_v51, %s11786_s18  ;;  %10986 = vrot.lane.b32.xlu0 %v16164_v19, %s11786_s18  ;;  %v16188_v51 = vpack.i.bf16 %v16186_v8, %v16187_v46  ;;  %v16192_v19 = vld [vmem:[#allocation52_spill] sm:$0xff]  ;;  %v16222_v8 = vld [vmem:[#allocation91_spill] sm:$0xff]  ;;  %v16223_v46 = vld [vmem:[#allocation90_spill] sm:$0xff] }
0x1221   : > { %v16194_v6 = vpack.i.bf16 %v16192_v19, %v16193_v2 }
0x1224   : > { %11001 = vrot.lane.b32.xlu1 %v11000_v31, %s11785_s17  ;;  %10996 = vrot.lane.b32.xlu0 %v16167_v13, %s11786_s18  ;;  %v16172_v31 = vld [vmem:[#allocation28_spill] sm:$0xff]  ;;  %v16196_v13 = vld [vmem:[#allocation59_spill] sm:$0xff] }
0x1225   : > { %v16173_v3 = vpack.i.bf16 %v16171_v18, %v16172_v31  ;;  %v16202_v18 = vld [vmem:[#allocation71_spill] sm:$0xff] }
0x1226   : > { %v8304_v41 = vpop.xlane.xlu1 %8303 }
0x1227   : > { %11662 = vrcp.f32 %v8304_v41  ;;  %v16197_v41 = vpack.i.bf16 %v16195_v22, %v16196_v13 }
0x1228   : > { %11011 = vrot.lane.b32.xlu1 %v11010_v35, %s11785_s17  ;;  %11006 = vrot.lane.b32.xlu0 %v11005_v38, %s11785_s17  ;;  %v16175_v35 = vld [vmem:[#allocation36_spill] sm:$0xff] }
0x1229   : > { %v16176_v10 = vpack.i.bf16 %v16174_v5, %v16175_v35  ;;  %v16205_v5 = vld [vmem:[#allocation67_spill] sm:$0xff] }
0x122c   : > { %11021 = vrot.lane.b32.xlu1 %v16170_v28, %s11790_s8  ;;  %11016 = vrot.lane.b32.xlu0 %v11015_v42, %s11785_s17  ;;  %v11661_v50 = vpop.eup %11660  ;;  %v16182_v42 = vpack.i.bf16 %v16180_v53, %v16181_v36  ;;  %v16201_v28 = vld [vmem:[#allocation72_spill] sm:$0xff]  ;;  %v16214_v36 = vld [vmem:[#allocation83_spill] sm:$0xff] }
0x122d   : > { %v8363_v32 = vmul.f32 %v11661_v50, %v15183_v9  ;;  %v16189_v9 = vld [vmem:[#allocation58_spill] sm:$0xff]  ;;  %v16203_v31 = vpack.i.bf16 %v16201_v28, %v16202_v18  ;;  %v16208_v50 = vld [vmem:[#allocation73_spill] sm:$0xff]  ;;  %v16213_v53 = vld [vmem:[#allocation84_spill] sm:$0xff] }
0x1230   : > { %11031 = vrot.lane.b32.xlu1 %v16173_v3, %s11790_s8  ;;  %11026 = vrot.lane.b32.xlu0 %v16176_v10, %s11790_s8  ;;  %v16204_v3 = vld [vmem:[#allocation68_spill] sm:$0xff]  ;;  %v16207_v10 = vld [vmem:[#allocation74_spill] sm:$0xff] }
0x1231   : > { %v16206_v35 = vpack.i.bf16 %v16204_v3, %v16205_v5 }
0x1234   : > { %v11663_v38 = vpop.eup %11662  ;;  %11041 = vrot.lane.b32.xlu1 %v16179_v20, %s11789_s16  ;;  %11036 = vrot.lane.b32.xlu0 %v16182_v42, %s11790_s8  ;;  %v16212_v20 = vpack.i.bf16 %v16210_v24, %v16211_v54  ;;  %v16215_v42 = vpack.i.bf16 %v16213_v53, %v16214_v36  ;;  %s9719_s8 = sshll.u32 %s11769_s24, 11 }
0x1235   : > { %v8364_v17 = vmul.f32 %v11663_v38, %v15191_v47  ;;  %v16190_v47 = vld [vmem:[#allocation57_spill] sm:$0xff]  ;;  %v16209_v38 = vpack.i.bf16 %v16207_v10, %v16208_v50 }
0x1236   : > { %v16191_v26 = vpack.i.bf16 %v16189_v9, %v16190_v47  ;;  %v8307_v9 = vpop.xlane.xlu0 %8306  ;;  %v16225_v47 = vld [vmem:[#allocation93_spill] sm:$0xff] }
0x1237   : > { %v8379_v14 = vpack.c.bf16 %v8364_v17, %v8363_v32  ;;  %v16216_v32 = vld [vmem:[#allocation82_spill] sm:$0xff]  ;;  %v16217_v17 = vld [vmem:[#allocation81_spill] sm:$0xff]  ;;  %11664 = vrcp.f32 %v8307_v9 }
0x1238   : > { %11051 = vrot.lane.b32.xlu1 %v16185_v21, %s11789_s16  ;;  %11046 = vrot.lane.b32.xlu0 %v16188_v51, %s11789_s16  ;;  %v16221_v21 = vpack.i.bf16 %v16219_v43, %v16220_v39  ;;  %v16224_v51 = vpack.i.bf16 %v16222_v8, %v16223_v46 }
0x1239   : > { %10715 = vmatmul.mubr.msk.bf16.vlgmr.msra.gmra.mxu0 %vm922_vm1, %v8379_v14  ;;  %v16218_v14 = vpack.i.bf16 %v16216_v32, %v16217_v17 }
0x123a   : > { %10725 = vmatpush3.bf16.msra.mxu0 %v15195_v61  ;;  %10726 = vmatprep.mubr.msk.bf16.mxu0 %vm11783_vm0, %v15972_v0  ;;  %v16198_v61 = vld [vmem:[#allocation66_spill] sm:$0xff] }
0x123b   : > { %10736 = vmatprep.subr.bf16.mxu0 %v15972_v0  ;;  %v16200_v57 = vpack.i.bf16 %v16198_v61, %v16199_v48 }
0x123c   : > { %11061 = vrot.lane.b32.xlu1 %v16191_v26, %s11788_s15  ;;  %11056 = vrot.lane.b32.xlu0 %v16194_v6, %s11789_s16  ;;  %v16226_v26 = vld [vmem:[#allocation92_spill] sm:$0xff]  ;;  %v16228_v6 = vpack.i.bf16 %v15074_v60, %v15070_v33 }
0x123d   : > { %v16227_v19 = vpack.i.bf16 %v16225_v47, %v16226_v26 }
0x1240   : > { %11071 = vrot.lane.b32.xlu1 %v16197_v41, %s11788_s15  ;;  %11066 = vrot.lane.b32.xlu0 %v16200_v57, %s11788_s15 }
0x1244   : > { %11081 = vrot.lane.b32.xlu1 %v16203_v31, %s11787_s30  ;;  %11076 = vrot.lane.b32.xlu0 %v16206_v35, %s11788_s15  ;;  %v11665_v58 = vpop.eup %11664  ;;  %s11705_s15 = sshll.u32 %s11791_s14, 4  ;;  %s11706_s15 = int_to_ptr.vmem [resolvable:$false] %s11705_s15 }
0x1245   : > { %v8365_v33 = vmul.f32 %v11665_v58, %v15187_v59  ;;  %s11707_s16 = scalar_lea.vmem %s11706_s15, 4096 }
0x1248   : > { %11091 = vrot.lane.b32.xlu1 %v16209_v38, %s11787_s30  ;;  %11086 = vrot.lane.b32.xlu0 %v16212_v20, %s11787_s30 }
0x124c   : > { %11101 = vrot.lane.b32.xlu1 %v16215_v42, %s11786_s18  ;;  %11096 = vrot.lane.b32.xlu0 %v16218_v14, %s11787_s30 }
0x1250   : > { %11111 = vrot.lane.b32.xlu1 %v16221_v21, %s11786_s18  ;;  %11106 = vrot.lane.b32.xlu0 %v16224_v51, %s11786_s18 }
0x1254   : > { %11121 = vrot.lane.b32.xlu1 %v11120_v11, %s11785_s17  ;;  %11116 = vrot.lane.b32.xlu0 %v16227_v19, %s11786_s18  ;;  %v16229_v11 = vpack.i.bf16 %v15080_v40, %v15076_v45  ;;  %s15783_s18 = scalar_lea.hbm %s15842_s6, %s9719_s8 }
0x1257   : > { %v8310_v2 = vpop.xlane.xlu1 %8309 }
0x1258   : > { %11131 = vrot.lane.b32.xlu1 %v11130_v63, %s11785_s17  ;;  %11666 = vrcp.f32 %v8310_v2  ;;  %11126 = vrot.lane.b32.xlu0 %v16228_v6, %s11785_s17  ;;  %v16231_v2 = vld [vmem:[#allocation5_spill] sm:$0xff] }
0x125b   : > { %v8313_v37 = vpop.xlane.xlu0 %8312 }
0x125c   : > { %11668 = vrcp.f32 %v8313_v37  ;;  %v8316_v52 = vpop.xlane.xlu1 %8315  ;;  %11136 = vrot.lane.b32.xlu0 %v16229_v11, %s11785_s17  ;;  %v16232_v37 = vld [vmem:[#allocation11_spill] sm:$0xff]  ;;  %v16233_v11 = vld [vmem:[#allocation9_spill] sm:$0xff] }
0x125d   : > { %11670 = vrcp.f32 %v8316_v52 }
0x125f   : > { %v8319_v22 = vpop.xlane.xlu0 %8318 }
0x1260   : > { %11672 = vrcp.f32 %v8319_v22  ;;  %v8322_v13 = vpop.xlane.xlu1 %8321 }
0x1261   : > { %11674 = vrcp.f32 %v8322_v13 }
0x1263   : > { %v8325_v30 = vpop.xlane.xlu0 %8324 }
0x1264   : > { %11676 = vrcp.f32 %v8325_v30  ;;  %v8328_v63 = vpop.xlane.xlu1 %8327 }
0x1265   : > { %v11667_v41 = vpop.eup %11666  ;;  %11678 = vrcp.f32 %v8328_v63 }
0x1266   : > { %v8366_v60 = vmul.f32 %v11667_v41, %v15206_v34 }
0x1267   : > { %v8331_v61 = vpop.xlane.xlu0 %8330 }
0x1268   : > { %v8380_v48 = vpack.c.bf16 %v8366_v60, %v8365_v33  ;;  %11680 = vrcp.f32 %v8331_v61  ;;  %v8334_v45 = vpop.xlane.xlu1 %8333 }
0x1269   : > { %v11669_v40 = vpop.eup %11668  ;;  %11682 = vrcp.f32 %v8334_v45 }
0x126a   : > { %v11671_v57 = vpop.eup %11670  ;;  %v8367_v28 = vmul.f32 %v11669_v40, %v15212_v16  ;;  %10721 = vmatmul.mubr.msk.bf16.vlgmr.msra.gmra.mxu1 %vm922_vm1, %v8380_v48 }
0x126b   : > { %v8368_v18 = vmul.f32 %v11671_v57, %v15214_v15  ;;  %10731 = vmatpush3.bf16.msra.mxu1 %v15318_v44  ;;  %v8337_v31 = vpop.xlane.xlu0 %8336  ;;  %10732 = vmatprep.mubr.msk.bf16.mxu1 %vm11783_vm0, %v15972_v0 }
0x126c   : > { %11684 = vrcp.f32 %v8337_v31  ;;  %v8340_v59 = vpop.xlane.xlu1 %8339  ;;  %10742 = vmatprep.subr.bf16.mxu1 %v15972_v0 }
0x126d   : > { %v11673_v34 = vpop.eup %11672  ;;  %v8381_v3 = vpack.c.bf16 %v8368_v18, %v8367_v28  ;;  %11686 = vrcp.f32 %v8340_v59 }
0x126e   : > { %v11675_v5 = vpop.eup %11674  ;;  %v8369_v16 = vmul.f32 %v11673_v34, %v15222_v27  ;;  %v16234_v34 = vld [vmem:[#allocation18_spill] sm:$0xff] }
0x126f   : > { %v8370_v35 = vmul.f32 %v11675_v5, %v15224_v29  ;;  %10727 = vmatmul.mubr.msk.bf16.vlgmr.msra.gmra.mxu0 %vm922_vm1, %v8381_v3  ;;  %v8343_v15 = vpop.xlane.xlu0 %8342  ;;  %v16235_v5 = vld [vmem:[#allocation20_spill] sm:$0xff] }
0x1270   : > { %10737 = vmatpush3.bf16.msra.mxu0 %v15346_v62  ;;  %11688 = vrcp.f32 %v8343_v15  ;;  %v8346_v44 = vpop.xlane.xlu1 %8345  ;;  %10738 = vmatprep.mubr.msk.bf16.mxu0 %vm11783_vm0, %v15972_v0 }
0x1271   : > { %v11677_v10 = vpop.eup %11676  ;;  %v8382_v50 = vpack.c.bf16 %v8370_v35, %v8369_v16  ;;  %11690 = vrcp.f32 %v8346_v44  ;;  %10748 = vmatprep.subr.bf16.mxu0 %v15972_v0  ;;  %v16236_v44 = vld [vmem:[#allocation15_spill] sm:$0xff] }
0x1272   : > { %v11679_v38 = vpop.eup %11678  ;;  %v8371_v27 = vmul.f32 %v11677_v10, %v15230_v12 }
0x1273   : > { %v8372_v29 = vmul.f32 %v11679_v38, %v15232_v23  ;;  %10733 = vmatmul.mubr.msk.bf16.vlgmr.msra.gmra.mxu1 %vm922_vm1, %v8382_v50  ;;  %v8717_v24 = vpop.permute.xlu0 %8716  ;;  %v16237_v50 = vld [vmem:[#allocation30_spill] sm:$0xff] }
0x1274   : > { %10743 = vmatpush3.bf16.msra.mxu1 %v15336_v25  ;;  %v8670_v62 = vpop.permute.xlu1 %8669  ;;  %10744 = vmatprep.mubr.msk.bf16.mxu1 %vm11783_vm0, %v15972_v0 }
0x1275   : > { %v11681_v54 = vpop.eup %11680  ;;  %v8383_v20 = vpack.c.bf16 %v8372_v29, %v8371_v27  ;;  %10754 = vmatprep.subr.bf16.mxu1 %v15972_v0 }
0x1276   : > { %v11683_v53 = vpop.eup %11682  ;;  %v8373_v36 = vmul.f32 %v11681_v54, %v15238_v56 }
0x1277   : > { %v8374_v12 = vmul.f32 %v11683_v53, %v15240_v1  ;;  %10739 = vmatmul.mubr.msk.bf16.vlgmr.msra.gmra.mxu0 %vm922_vm1, %v8383_v20  ;;  %v10907_v23 = vpop.permute.xlu0 %10906 }
0x1278   : > { %10749 = vmatpush3.bf16.msra.mxu0 %v8670_v62  ;;  %v10902_v42 = vpop.permute.xlu1 %10901  ;;  %10750 = vmatprep.mubr.msk.bf16.mxu0 %vm11783_vm0, %v15972_v0  ;;  %v10909_v39 = vunpack.i.h.bf16 %v10907_v23  ;;  %v10908_v21 = vunpack.i.l.bf16 %v10907_v23 }
0x1279   : > { %v11685_v25 = vpop.eup %11684  ;;  %v8384_v32 = vpack.c.bf16 %v8374_v12, %v8373_v36  ;;  %v10904_v56 = vunpack.i.h.bf16 %v10902_v42  ;;  %v10903_v8 = vunpack.i.l.bf16 %v10902_v42 }
0x127a   : > { %v11687_v17 = vpop.eup %11686  ;;  %v8375_v14 = vmul.f32 %v11685_v25, %v15246_v4  ;;  %v9219_v6 = vsel %vm922_vm1, %v16231_v2, %v10908_v21 }
0x127b   : > { %v8376_v43 = vmul.f32 %v11687_v17, %v15248_v49  ;;  %10745 = vmatmul.mubr.msk.bf16.vlgmr.msra.gmra.mxu1 %vm922_vm1, %v8384_v32  ;;  %v10917_v1 = vpop.permute.xlu0 %10916  ;;  %v16230_v49 = vld [vmem:[#allocation19_spill] sm:$0xff]  ;;  %v9212_v52 = vsel %vm922_vm1, %v16232_v37, %v10904_v56  ;;  %v9211_v22 = vsel %vm922_vm1, %v16233_v11, %v10903_v8 }
0x127c   : > { %10755 = vmatpush3.bf16.msra.mxu1 %v8717_v24  ;;  %v10912_v46 = vpop.permute.xlu1 %10911  ;;  %10756 = vmatprep.mubr.msk.bf16.mxu1 %vm11783_vm0, %v15972_v0  ;;  %v9220_v19 = vsel %vm922_vm1, %v16230_v49, %v10909_v39  ;;  %v10919_v13 = vunpack.i.h.bf16 %v10917_v1  ;;  %v10918_v63 = vunpack.i.l.bf16 %v10917_v1 }
0x127d   : > { %v11689_v51 = vpop.eup %11688  ;;  %v8385_v9 = vpack.c.bf16 %v8376_v43, %v8375_v14  ;;  %v10914_v60 = vunpack.i.h.bf16 %v10912_v46  ;;  %v10913_v61 = vunpack.i.l.bf16 %v10912_v46 }
0x127e   : > { %v11691_v47 = vpop.eup %11690  ;;  %v8377_v26 = vmul.f32 %v11689_v51, %v15254_v55  ;;  %v9222_v3 = vsel %vm922_vm1, %v16234_v34, %v10919_v13  ;;  %v9221_v16 = vsel %vm922_vm1, %v16235_v5, %v10918_v63 }
0x127f   : > { %v8378_v4 = vmul.f32 %v11691_v47, %v15256_v7  ;;  %10751 = vmatmul.mubr.msk.bf16.vlgmr.msra.gmra.mxu0 %vm922_vm1, %v8385_v9  ;;  %v10927_v0 = vpop.permute.xlu0 %10926  ;;  %v9214_v10 = vsel %vm922_vm1, %v16236_v44, %v10914_v60  ;;  %v9213_v38 = vsel %vm922_vm1, %v16237_v50, %v10913_v61 }
0x1280   : > { %v10929_v55 = vunpack.i.h.bf16 %v10927_v0  ;;  %v10928_v58 = vunpack.i.l.bf16 %v10927_v0  ;;  %v10922_v30 = vpop.permute.xlu1 %10921 }
0x1281   : > { %v8386_v7 = vpack.c.bf16 %v8378_v4, %v8377_v26  ;;  %v10924_v41 = vunpack.i.h.bf16 %v10922_v30  ;;  %v10923_v33 = vunpack.i.l.bf16 %v10922_v30 }
0x1282   : > { %v9236_v48 = vsel %vm9227_vm2, %v9219_v6, %v10928_v58  ;;  %v9237_v45 = vsel %vm9227_vm2, %v9220_v19, %v10929_v55 }
0x1283   : > { %v9228_v40 = vsel %vm9227_vm2, %v9211_v22, %v10923_v33  ;;  %v9229_v57 = vsel %vm9227_vm2, %v9212_v52, %v10924_v41  ;;  %10757 = vmatmul.mubr.msk.bf16.vlgmr.msra.gmra.mxu1 %vm922_vm1, %v8386_v7  ;;  %v10937_v28 = vpop.permute.xlu0 %10936 }
0x1284   : > { %v10939_v18 = vunpack.i.h.bf16 %v10937_v28  ;;  %v10938_v31 = vunpack.i.l.bf16 %v10937_v28  ;;  %v10932_v59 = vpop.permute.xlu1 %10931 }
0x1285   : > { %v10934_v35 = vunpack.i.h.bf16 %v10932_v59  ;;  %v10933_v15 = vunpack.i.l.bf16 %v10932_v59 }
0x1286   : > { %v9238_v27 = vsel %vm9227_vm2, %v9221_v16, %v10938_v31  ;;  %v9239_v29 = vsel %vm9227_vm2, %v9222_v3, %v10939_v18 }
0x1287   : > { %v9230_v24 = vsel %vm9227_vm2, %v9213_v38, %v10933_v15  ;;  %v9231_v62 = vsel %vm9227_vm2, %v9214_v10, %v10934_v35  ;;  %v10947_v54 = vpop.permute.xlu0 %10946 }
0x1288   : > { %v10949_v20 = vunpack.i.h.bf16 %v10947_v54  ;;  %v10948_v53 = vunpack.i.l.bf16 %v10947_v54  ;;  %v10942_v36 = vpop.permute.xlu1 %10941 }
0x1289   : > { %v10944_v12 = vunpack.i.h.bf16 %v10942_v36  ;;  %v10943_v23 = vunpack.i.l.bf16 %v10942_v36 }
0x128a   : > { %v9253_v42 = vsel %vm9244_vm3, %v9236_v48, %v10948_v53  ;;  %v9254_v25 = vsel %vm9244_vm3, %v9237_v45, %v10949_v20 }
0x128b   : > { %v9245_v32 = vsel %vm9244_vm3, %v9228_v40, %v10943_v23  ;;  %v9246_v17 = vsel %vm9244_vm3, %v9229_v57, %v10944_v12  ;;  %v10957_v14 = vpop.permute.xlu0 %10956 }
0x128c   : > { %v10959_v43 = vunpack.i.h.bf16 %v10957_v14  ;;  %v10958_v39 = vunpack.i.l.bf16 %v10957_v14  ;;  %v10952_v21 = vpop.permute.xlu1 %10951 }
0x128d   : > { %v10954_v56 = vunpack.i.h.bf16 %v10952_v21  ;;  %v10953_v1 = vunpack.i.l.bf16 %v10952_v21 }
0x128e   : > { %v9255_v8 = vsel %vm9244_vm3, %v9238_v27, %v10958_v39  ;;  %v9256_v46 = vsel %vm9244_vm3, %v9239_v29, %v10959_v43  ;;  %v16238_v39 = vld [vmem:[#allocation13_spill] sm:$0xff] }
0x128f   : > { %v9247_v51 = vsel %vm9244_vm3, %v9230_v24, %v10953_v1  ;;  %v9248_v9 = vsel %vm9244_vm3, %v9231_v62, %v10954_v56  ;;  %v10967_v47 = vpop.permute.xlu0 %10966  ;;  %v16239_v56 = vld [vmem:[#allocation16_spill] sm:$0xff] }
0x1290   : > { %v10969_v26 = vunpack.i.h.bf16 %v10967_v47  ;;  %v10968_v4 = vunpack.i.l.bf16 %v10967_v47  ;;  %v10962_v49 = vpop.permute.xlu1 %10961 }
0x1291   : > { %v10964_v19 = vunpack.i.h.bf16 %v10962_v49  ;;  %v10963_v2 = vunpack.i.l.bf16 %v10962_v49 }
0x1292   : > { %v15541_v6 = vsel %vm9261_vm4, %v9253_v42, %v10968_v4  ;;  %v15544_v37 = vsel %vm9261_vm4, %v9254_v25, %v10969_v26 }
0x1293   : > { %v15547_v52 = vsel %vm9261_vm4, %v9245_v32, %v10963_v2  ;;  %v15550_v0 = vsel %vm9261_vm4, %v9246_v17, %v10964_v19  ;;  %v10977_v11 = vpop.permute.xlu0 %10976 }
0x1294   : > { %v10979_v22 = vunpack.i.h.bf16 %v10977_v11  ;;  %v10978_v13 = vunpack.i.l.bf16 %v10977_v11  ;;  %v10972_v55 = vpop.permute.xlu1 %10971  ;;  %v16240_v11 = vld [vmem:[#allocation24_spill] sm:$0xff] }
0x1295   : > { %v10974_v58 = vunpack.i.h.bf16 %v10972_v55  ;;  %v10973_v30 = vunpack.i.l.bf16 %v10972_v55 }
0x1296   : > { %v9272_v7 = vsel %vm9261_vm4, %v9255_v8, %v10978_v13  ;;  %v9273_v63 = vsel %vm9261_vm4, %v9256_v46, %v10979_v22  ;;  %v16241_v13 = vld [vmem:[#allocation8_spill] sm:$0xff] }
0x1297   : > { %v9264_v41 = vsel %vm9261_vm4, %v9247_v51, %v10973_v30  ;;  %v9265_v33 = vsel %vm9261_vm4, %v9248_v9, %v10974_v58  ;;  %v15556_v60 = vpop.permute.xlu0 %10986  ;;  %v16242_v58 = vld [vmem:[#allocation17_spill] sm:$0xff] }
0x1298   : > { %v15558_v61 = vpop.permute.xlu1 %10981 }
0x129b   : > { %v10997_v48 = vpop.permute.xlu0 %10996 }
0x129c   : > { %v10999_v45 = vunpack.i.h.bf16 %v10997_v48  ;;  %v10998_v40 = vunpack.i.l.bf16 %v10997_v48  ;;  %v10992_v57 = vpop.permute.xlu1 %10991 }
0x129d   : > { %v10994_v28 = vunpack.i.h.bf16 %v10992_v57  ;;  %v10993_v18 = vunpack.i.l.bf16 %v10992_v57 }
0x129e   : > { %v9289_v31 = vsel %vm9278_vm5, %v9272_v7, %v10998_v40  ;;  %v9290_v59 = vsel %vm9278_vm5, %v9273_v63, %v10999_v45  ;;  %v16243_v7 = vld [vmem:[#allocation14_spill] sm:$0xff] }
0x129f   : > { %v9281_v34 = vsel %vm9278_vm5, %v9264_v41, %v10993_v18  ;;  %v9282_v3 = vsel %vm9278_vm5, %v9265_v33, %v10994_v28  ;;  %v15564_v5 = vpop.permute.xlu0 %11006 }
0x12a0   : > { %v15566_v16 = vpop.permute.xlu1 %11001 }
0x12a3   : > { %v11017_v35 = vpop.permute.xlu0 %11016 }
0x12a4   : > { %v11019_v15 = vunpack.i.h.bf16 %v11017_v35  ;;  %v11018_v44 = vunpack.i.l.bf16 %v11017_v35  ;;  %v11012_v10 = vpop.permute.xlu1 %11011 }
0x12a5   : > { %v11014_v50 = vunpack.i.h.bf16 %v11012_v10  ;;  %v11013_v38 = vunpack.i.l.bf16 %v11012_v10 }
0x12a6   : > { %v15569_v27 = vsel %vm9295_vm6, %v9289_v31, %v11018_v44  ;;  %v15572_v29 = vsel %vm9295_vm6, %v9290_v59, %v11019_v15 }
0x12a7   : > { %v15575_v24 = vsel %vm9295_vm6, %v9281_v34, %v11013_v38  ;;  %v15578_v62 = vsel %vm9295_vm6, %v9282_v3, %v11014_v50  ;;  %v11027_v54 = vpop.permute.xlu0 %11026 }
0x12a8   : > { %v11022_v20 = vpop.permute.xlu1 %11021  ;;  %v11029_v32 = vunpack.i.h.bf16 %v11027_v54  ;;  %v11028_v17 = vunpack.i.l.bf16 %v11027_v54 }
0x12a9   : > { %v11024_v12 = vunpack.i.h.bf16 %v11022_v20  ;;  %v11023_v23 = vunpack.i.l.bf16 %v11022_v20  ;;  %v16244_v20 = vld [vmem:[#allocation6_spill] sm:$0xff] }
0x12aa   : > { %v9224_v22 = vsel %vm922_vm1, %v16240_v11, %v11029_v32  ;;  %v9223_v55 = vsel %vm922_vm1, %v16241_v13, %v11028_v17 }
0x12ab   : > { %v11037_v53 = vpop.permute.xlu0 %11036  ;;  %v9216_v21 = vsel %vm922_vm1, %v16238_v39, %v11024_v12  ;;  %v9215_v1 = vsel %vm922_vm1, %v16239_v56, %v11023_v23 }
0x12ac   : > { %v11032_v36 = vpop.permute.xlu1 %11031  ;;  %v11039_v41 = vunpack.i.h.bf16 %v11037_v53  ;;  %v11038_v33 = vunpack.i.l.bf16 %v11037_v53 }
0x12ad   : > { %v11034_v8 = vunpack.i.h.bf16 %v11032_v36  ;;  %v11033_v46 = vunpack.i.l.bf16 %v11032_v36  ;;  %v16245_v36 = vld [vmem:[#allocation22_spill] sm:$0xff] }
0x12ae   : > { %v9226_v53 = vsel %vm922_vm1, %v16244_v20, %v11039_v41  ;;  %v9225_v12 = vsel %vm922_vm1, %v16245_v36, %v11038_v33 }
0x12af   : > { %v11047_v42 = vpop.permute.xlu0 %11046  ;;  %v9218_v30 = vsel %vm922_vm1, %v16242_v58, %v11034_v8  ;;  %v9217_v63 = vsel %vm922_vm1, %v16243_v7, %v11033_v46 }
0x12b0   : > { %v11042_v25 = vpop.permute.xlu1 %11041  ;;  %v11049_v26 = vunpack.i.h.bf16 %v11047_v42  ;;  %v11048_v4 = vunpack.i.l.bf16 %v11047_v42 }
0x12b1   : > { %v11044_v14 = vunpack.i.h.bf16 %v11042_v25  ;;  %v11043_v43 = vunpack.i.l.bf16 %v11042_v25 }
0x12b2   : > { %v9240_v57 = vsel %vm9227_vm2, %v9223_v55, %v11048_v4  ;;  %v9241_v28 = vsel %vm9227_vm2, %v9224_v22, %v11049_v26 }
0x12b3   : > { %v9232_v51 = vsel %vm9227_vm2, %v9215_v1, %v11043_v43  ;;  %v9233_v9 = vsel %vm9227_vm2, %v9216_v21, %v11044_v14  ;;  %v11057_v47 = vpop.permute.xlu0 %11056 }
0x12b4   : > { %v11052_v49 = vpop.permute.xlu1 %11051  ;;  %v11059_v34 = vunpack.i.h.bf16 %v11057_v47  ;;  %v11058_v3 = vunpack.i.l.bf16 %v11057_v47 }
0x12b5   : > { %v11054_v19 = vunpack.i.h.bf16 %v11052_v49  ;;  %v11053_v2 = vunpack.i.l.bf16 %v11052_v49 }
0x12b6   : > { %v9242_v32 = vsel %vm9227_vm2, %v9225_v12, %v11058_v3  ;;  %v9243_v17 = vsel %vm9227_vm2, %v9226_v53, %v11059_v34 }
0x12b7   : > { %v9234_v48 = vsel %vm9227_vm2, %v9217_v63, %v11053_v2  ;;  %v9235_v45 = vsel %vm9227_vm2, %v9218_v30, %v11054_v19  ;;  %v11067_v40 = vpop.permute.xlu0 %11066 }
0x12b8   : > { %v11069_v18 = vunpack.i.h.bf16 %v11067_v40  ;;  %v11068_v31 = vunpack.i.l.bf16 %v11067_v40  ;;  %v11062_v59 = vpop.permute.xlu1 %11061 }
0x12b9   : > { %v11064_v35 = vunpack.i.h.bf16 %v11062_v59  ;;  %v11063_v15 = vunpack.i.l.bf16 %v11062_v59 }
0x12ba   : > { %v9257_v44 = vsel %vm9244_vm3, %v9240_v57, %v11068_v31  ;;  %v9258_v10 = vsel %vm9244_vm3, %v9241_v28, %v11069_v18 }
0x12bb   : > { %v9249_v50 = vsel %vm9244_vm3, %v9232_v51, %v11063_v15  ;;  %v9250_v38 = vsel %vm9244_vm3, %v9233_v9, %v11064_v35  ;;  %v11077_v54 = vpop.permute.xlu0 %11076 }
0x12bc   : > { %v11079_v23 = vunpack.i.h.bf16 %v11077_v54  ;;  %v11078_v42 = vunpack.i.l.bf16 %v11077_v54  ;;  %v11072_v25 = vpop.permute.xlu1 %11071 }
0x12bd   : > { %v11074_v14 = vunpack.i.h.bf16 %v11072_v25  ;;  %v11073_v43 = vunpack.i.l.bf16 %v11072_v25 }
0x12be   : > { %v9259_v39 = vsel %vm9244_vm3, %v9242_v32, %v11078_v42  ;;  %v9260_v21 = vsel %vm9244_vm3, %v9243_v17, %v11079_v23 }
0x12bf   : > { %v9251_v56 = vsel %vm9244_vm3, %v9234_v48, %v11073_v43  ;;  %v9252_v1 = vsel %vm9244_vm3, %v9235_v45, %v11074_v14  ;;  %v11087_v8 = vpop.permute.xlu0 %11086 }
0x12c0   : > { %v11089_v46 = vunpack.i.h.bf16 %v11087_v8  ;;  %v11088_v51 = vunpack.i.l.bf16 %v11087_v8  ;;  %v11082_v9 = vpop.permute.xlu1 %11081  ;;  %v9349_v8 = vld [vmem:[%s15839_s3 + $0x60] sm:$0xff] }
0x12c1   : > { %v11084_v47 = vunpack.i.h.bf16 %v11082_v9  ;;  %v11083_v26 = vunpack.i.l.bf16 %v11082_v9  ;;  %v9350_v9 = vld [vmem:[%s15839_s3 + $0x68] sm:$0xff] }
0x12c2   : > { %v9274_v4 = vsel %vm9261_vm4, %v9257_v44, %v11088_v51  ;;  %v9275_v49 = vsel %vm9261_vm4, %v9258_v10, %v11089_v46 }
0x12c3   : > { %v9266_v19 = vsel %vm9261_vm4, %v9249_v50, %v11083_v26  ;;  %v9267_v2 = vsel %vm9261_vm4, %v9250_v38, %v11084_v47  ;;  %v11097_v11 = vpop.permute.xlu0 %11096  ;;  %v9359_v47 = vpack.c.bf16 %v9350_v9, %v9349_v8  ;;  %v9347_v26 = vld [vmem:[%s15839_s3 + $0x50] sm:$0xff] }
0x12c4   : > { %v11099_v22 = vunpack.i.h.bf16 %v11097_v11  ;;  %v11098_v13 = vunpack.i.l.bf16 %v11097_v11  ;;  %v11092_v55 = vpop.permute.xlu1 %11091 }
0x12c5   : > { %v11094_v58 = vunpack.i.h.bf16 %v11092_v55  ;;  %v11093_v30 = vunpack.i.l.bf16 %v11092_v55 }
0x12c6   : > { %v9276_v7 = vsel %vm9261_vm4, %v9259_v39, %v11098_v13  ;;  %v9277_v63 = vsel %vm9261_vm4, %v9260_v21, %v11099_v22  ;;  %v9345_v22 = vld [vmem:[%s15839_s3 + $0x40] sm:$0xff]  ;;  %v9346_v13 = vld [vmem:[%s15839_s3 + $0x48] sm:$0xff] }
0x12c7   : > { %v9268_v41 = vsel %vm9261_vm4, %v9251_v56, %v11093_v30  ;;  %v9269_v33 = vsel %vm9261_vm4, %v9252_v1, %v11094_v58  ;;  %v11107_v48 = vpop.permute.xlu0 %11106  ;;  %v9351_v56 = vld [vmem:[%s15839_s3 + $0x70] sm:$0xff]  ;;  %v9352_v1 = vld [vmem:[%s15839_s3 + $0x78] sm:$0xff]  ;;  %v9357_v58 = vpack.c.bf16 %v9346_v13, %v9345_v22 }
0x12c8   : > { %v11109_v45 = vunpack.i.h.bf16 %v11107_v48  ;;  %v11108_v40 = vunpack.i.l.bf16 %v11107_v48  ;;  %v11102_v57 = vpop.permute.xlu1 %11101  ;;  %v9360_v51 = vpack.c.bf16 %v9352_v1, %v9351_v56  ;;  %v9343_v30 = vld [vmem:[%s15839_s3 + $0x30] sm:$0xff] }
0x12c9   : > { %v11104_v28 = vunpack.i.h.bf16 %v11102_v57  ;;  %v11103_v18 = vunpack.i.l.bf16 %v11102_v57 }
0x12ca   : > { %v9291_v31 = vsel %vm9278_vm5, %v9274_v4, %v11108_v40  ;;  %v9292_v59 = vsel %vm9278_vm5, %v9275_v49, %v11109_v45  ;;  %v9348_v4 = vld [vmem:[%s15839_s3 + $0x58] sm:$0xff]  ;;  %10760 = vmatprep.subr.bf16.mxu0 %v9360_v51  ;;  %10792 = vmatprep.subr.bf16.mxu1 %v9360_v51  ;;  %v9339_v45 = vld [vmem:[%s15839_s3 + $0x10] sm:$0xff] }
0x12cb   : > { %v15623_v34 = vsel %vm9278_vm5, %v9266_v19, %v11103_v18  ;;  %v15626_v3 = vsel %vm9278_vm5, %v9267_v2, %v11104_v28  ;;  %v11117_v35 = vpop.permute.xlu0 %11116  ;;  %10761 = vmatpush3.bf16.msra.mxu0 %v9360_v51  ;;  %10800 = vmatpush3.bf16.msra.mxu1 %v9360_v51  ;;  %v9358_v2 = vpack.c.bf16 %v9348_v4, %v9347_v26  ;;  %v9340_v40 = vld [vmem:[%s15839_s3 + $0x18] sm:$0xff]  ;;  %v9337_v28 = vld [vmem:[%s15839_s3] sm:$0xff]  ;;  %v9338_v18 = vld [vmem:[%s15839_s3 + $0x8] sm:$0xff] }
0x12cc   : > { %v11119_v15 = vunpack.i.h.bf16 %v11117_v35  ;;  %v11118_v44 = vunpack.i.l.bf16 %v11117_v35  ;;  %v11112_v10 = vpop.permute.xlu1 %11111  ;;  %10762 = vmatprep.subr.bf16.mxu0 %v9359_v47  ;;  %10793 = vmatprep.subr.bf16.mxu1 %v9359_v47  ;;  %v9354_v57 = vpack.c.bf16 %v9340_v40, %v9339_v45  ;;  %v10983_v45 = vunpack.i.l.bf16 %v15558_v61 }
0x12cd   : > { %v11114_v50 = vunpack.i.h.bf16 %v11112_v10  ;;  %v11113_v38 = vunpack.i.l.bf16 %v11112_v10  ;;  %v11004_v40 = vunpack.i.h.bf16 %v15566_v16 }
0x12ce   : > { %v9293_v54 = vsel %vm9278_vm5, %v9276_v7, %v11118_v44  ;;  %v9294_v20 = vsel %vm9278_vm5, %v9277_v63, %v11119_v15  ;;  %v9344_v7 = vld [vmem:[%s15839_s3 + $0x38] sm:$0xff] }
0x12cf   : > { %v15631_v53 = vsel %vm9278_vm5, %v9268_v41, %v11113_v38  ;;  %v15634_v36 = vsel %vm9278_vm5, %v9269_v33, %v11114_v50  ;;  %v11127_v12 = vpop.permute.xlu0 %11126  ;;  %10763 = vmatpush3.bf16.msra.mxu0 %v9359_v47  ;;  %10801 = vmatpush3.bf16.msra.mxu1 %v9359_v47  ;;  %v9356_v63 = vpack.c.bf16 %v9344_v7, %v9343_v30  ;;  %v9341_v41 = vld [vmem:[%s15839_s3 + $0x20] sm:$0xff]  ;;  %v9342_v33 = vld [vmem:[%s15839_s3 + $0x28] sm:$0xff] }
0x12d0   : > { %v11129_v23 = vunpack.i.h.bf16 %v11127_v12  ;;  %v11128_v42 = vunpack.i.l.bf16 %v11127_v12  ;;  %10764 = vmatprep.subr.bf16.mxu0 %v9358_v2  ;;  %10794 = vmatprep.subr.bf16.mxu1 %v9358_v2  ;;  %v9355_v48 = vpack.c.bf16 %v9342_v33, %v9341_v41  ;;  %v11122_v41 = vpop.permute.xlu1 %11121 }
0x12d2   : > { %v15637_v25 = vsel %vm9295_vm6, %v9291_v31, %v11128_v42  ;;  %v15640_v32 = vsel %vm9295_vm6, %v9292_v59, %v11129_v23  ;;  %v9353_v31 = vpack.c.bf16 %v9338_v18, %v9337_v28  ;;  %v9279_v18 = vsel %vm9278_vm5, %v15547_v52, %v10983_v45 }
0x12d3   : > { %v11137_v17 = vpop.permute.xlu0 %11136  ;;  %10765 = vmatpush3.bf16.msra.mxu0 %v9358_v2  ;;  %10802 = vmatpush3.bf16.msra.mxu1 %v9358_v2  ;;  %v11123_v52 = vunpack.i.l.bf16 %v11122_v41 }
0x12d4   : > { %v11139_v14 = vunpack.i.h.bf16 %v11137_v17  ;;  %v11138_v43 = vunpack.i.l.bf16 %v11137_v17  ;;  %10766 = vmatprep.subr.bf16.mxu0 %v9357_v58  ;;  %10795 = vmatprep.subr.bf16.mxu1 %v9357_v58  ;;  %v11132_v33 = vpop.permute.xlu1 %11131 }
0x12d6   : > { %v15643_v39 = vsel %vm9295_vm6, %v9293_v54, %v11138_v43  ;;  %v15646_v21 = vsel %vm9295_vm6, %v9294_v20, %v11139_v14 }
0x12d7   : > { %10767 = vmatpush3.bf16.msra.mxu0 %v9357_v58  ;;  %10803 = vmatpush3.bf16.msra.mxu1 %v9357_v58 }
0x12d8   : > { %10768 = vmatprep.subr.bf16.mxu0 %v9356_v63  ;;  %10796 = vmatprep.subr.bf16.mxu1 %v9356_v63 }
0x12db   : > { %10769 = vmatpush3.bf16.msra.mxu0 %v9356_v63  ;;  %10804 = vmatpush3.bf16.msra.mxu1 %v9356_v63 }
0x12dc   : > { %10770 = vmatprep.subr.bf16.mxu0 %v9355_v48  ;;  %10797 = vmatprep.subr.bf16.mxu1 %v9355_v48 }
0x12df   : > { %10771 = vmatpush3.bf16.msra.mxu0 %v9355_v48  ;;  %10805 = vmatpush3.bf16.msra.mxu1 %v9355_v48  ;;  %v10984_v48 = vunpack.i.h.bf16 %v15558_v61 }
0x12e0   : > { %10772 = vmatprep.subr.bf16.mxu0 %v9354_v57  ;;  %10798 = vmatprep.subr.bf16.mxu1 %v9354_v57 }
0x12e3   : > { %10773 = vmatpush3.bf16.msra.mxu0 %v9354_v57  ;;  %10806 = vmatpush3.bf16.msra.mxu1 %v9354_v57  ;;  %v11003_v57 = vunpack.i.l.bf16 %v15566_v16 }
0x12e4   : > { %10774 = vmatprep.subr.bf16.mxu0 %v9353_v31  ;;  %10799 = vmatprep.subr.bf16.mxu1 %v9353_v31 }
0x12e7   : > { %10775 = vmatpush3.bf16.msra.mxu0 %v9353_v31  ;;  %10807 = vmatpush3.bf16.msra.mxu1 %v9353_v31  ;;  %v9280_v31 = vsel %vm9278_vm5, %v15550_v0, %v10984_v48 }
0x12f9   : > { %v8427_v46 = vpop.f32.mrf.mxu0 }
0x12fb   : > { %v10716_v49 = vpop.f32.mrf.mxu0 }
0x12fd   : > { %v8430_v19 = vpop.f32.mrf.mxu0 }
0x12fe   : > { %v11140_v11 = vpack.i.bf16 %v8430_v19, %v8427_v46 }
0x12ff   : > { %v10717_v55 = vpop.f32.mrf.mxu0 }
0x1300   : > { %11141 = vrot.lane.b32.xlu1 %v11140_v11, %s11784_s12 }
0x132a   : > { %v8474_v59 = vpop.f32.mrf.mxu1 }
0x132c   : > { %v10722_v35 = vpop.f32.mrf.mxu1 }
0x132e   : > { %v8477_v15 = vpop.f32.mrf.mxu1 }
0x132f   : > { %v11145_v44 = vpack.i.bf16 %v8477_v15, %v8474_v59  ;;  %v8521_v10 = vpop.f32.mrf.mxu0  ;;  %v9296_v15 = vsel %vm9295_vm6, %v9279_v18, %v11003_v57 }
0x1330   : > { %v10723_v50 = vpop.f32.mrf.mxu1 }
0x1331   : > { %v10728_v38 = vpop.f32.mrf.mxu0  ;;  %11146 = vrot.lane.b32.xlu1 %v11145_v44, %s11784_s12  ;;  %v9297_v44 = vsel %vm9295_vm6, %v9280_v31, %v11004_v40 }
0x1333   : > { %v8524_v54 = vpop.f32.mrf.mxu0  ;;  %v8568_v20 = vpop.f32.mrf.mxu1 }
0x1334   : > { %v11150_v12 = vpack.i.bf16 %v8524_v54, %v8521_v10 }
0x1335   : > { %v10729_v23 = vpop.f32.mrf.mxu0  ;;  %v10734_v42 = vpop.f32.mrf.mxu1 }
0x1336   : > { %11151 = vrot.lane.b32.xlu1 %v11150_v12, %s11784_s12 }
0x1337   : > { %v8571_v17 = vpop.f32.mrf.mxu1  ;;  %v8615_v14 = vpop.f32.mrf.mxu0 }
0x1338   : > { %v11170_v43 = vpack.i.bf16 %v8571_v17, %v8568_v20  ;;  %v11124_v20 = vunpack.i.h.bf16 %v11122_v41 }
0x1339   : > { %v10735_v56 = vpop.f32.mrf.mxu1  ;;  %v10740_v1 = vpop.f32.mrf.mxu0 }
0x133a   : > { %11171 = vrot.lane.b32.xlu1 %v11170_v43, %s11784_s12  ;;  %v9300_v43 = vsel %vm9295_vm6, %v15623_v34, %v11123_v52  ;;  %v9301_v56 = vsel %vm9295_vm6, %v15626_v3, %v11124_v20  ;;  %v11134_v1 = vunpack.i.h.bf16 %v11132_v33  ;;  %v11008_v34 = vunpack.i.l.bf16 %v15564_v5 }
0x133b   : > { %v8618_v8 = vpop.f32.mrf.mxu0  ;;  %v8662_v46 = vpop.f32.mrf.mxu1 }
0x133c   : > { %v11155_v51 = vpack.i.bf16 %v8618_v8, %v8615_v14  ;;  %v11133_v8 = vunpack.i.l.bf16 %v11132_v33 }
0x133d   : > { %v10741_v9 = vpop.f32.mrf.mxu0  ;;  %v10746_v47 = vpop.f32.mrf.mxu1 }
0x133e   : > { %11156 = vrot.lane.b32.xlu0 %v11155_v51, %s11784_s12  ;;  %v10988_v47 = vunpack.i.l.bf16 %v15556_v60  ;;  %v9302_v3 = vsel %vm9295_vm6, %v15631_v53, %v11133_v8 }
0x133f   : > { %v8665_v26 = vpop.f32.mrf.mxu1  ;;  %v8709_v4 = vpop.f32.mrf.mxu0 }
0x1340   : > { %v11160_v49 = vpack.i.bf16 %v8665_v26, %v8662_v46 }
0x1341   : > { %v10747_v19 = vpop.f32.mrf.mxu1  ;;  %v10752_v2 = vpop.f32.mrf.mxu0 }
0x1342   : > { %11161 = vrot.lane.b32.xlu0 %v11160_v49, %s11784_s12  ;;  %v11009_v49 = vunpack.i.h.bf16 %v15564_v5  ;;  %v9303_v19 = vsel %vm9295_vm6, %v15634_v36, %v11134_v1 }
0x1343   : > { %v8712_v11 = vpop.f32.mrf.mxu0  ;;  %v8756_v22 = vpop.f32.mrf.mxu1 }
0x1344   : > { %v11165_v13 = vpack.i.bf16 %v8712_v11, %v8709_v4 }
0x1345   : > { %v10753_v55 = vpop.f32.mrf.mxu0  ;;  %v10758_v58 = vpop.f32.mrf.mxu1 }
0x1346   : > { %11166 = vrot.lane.b32.xlu0 %v11165_v13, %s11784_s12 }
0x1347   : > { %v8759_v30 = vpop.f32.mrf.mxu1 }
0x1348   : > { %v11175_v7 = vpack.i.bf16 %v8759_v30, %v8756_v22 }
0x1349   : > { %v10759_v63 = vpop.f32.mrf.mxu1 }
0x134a   : > { %11176 = vrot.lane.b32.xlu0 %v11175_v7, %s11784_s12  ;;  %s267_s12 = sand.u32 1, %s11761_s22  }
0x134b   : > { %s9581_s19 = sshll.u32 %s267_s12, 7  ;;  %s15791_s24 = scalar_lea.sflag [#allocation3], %s267_s12 }
0x134c   : > { %s15762_s28 = scalar_lea.vmem [#allocation2], %s9581_s19 }
0x134d   : > { %s9497_s11 = sshll.u32 %s15762_s28, 4  ;;  %s15785_s11 = int_to_ptr.vmem [resolvable:$true] %s9497_s11 }
0x134e   : > { %s11701_s30 = scalar_lea.vmem %s15785_s11, 2048  ;;  %p11708_p1 = scmp.lt.s32.totalorder %s15785_s11, %s11706_s15 }
0x134f   : > { %p11702_p12 = scmp.ne.s32.totalorder %s15785_s11, %s11701_s30  ;;  %p11709_p2 = scmp.lt.s32.totalorder %s11707_s16, %s11701_s30 }
0x1351   : > { %p11703_p13 = pnand %p11702_p12, %p11869_p4  ;;  %p11710_p3 = por %p11709_p2, %p11708_p1 }
0x1353   : > { %p11704_p0 = pneg %p11703_p13 }
0x1355   : > { %p11711_p5 = pnand %p11710_p3, %p11704_p0 }
0x1372   : > { %v11142_v28 = vpop.permute.xlu1 %11141 }
0x1373   : > { %v11144_v59 = vunpack.i.h.bf16 %v11142_v28  ;;  %v11143_v35 = vunpack.i.l.bf16 %v11142_v28 }
0x1375   : > { %v9313_v61 = vsel %vm9312_vm7, %v9296_v15, %v11143_v35  ;;  %v9314_v10 = vsel %vm9312_vm7, %v9297_v44, %v11144_v59 }
0x1376   : > { %v9329_v50 = vpack.c.bf16 %v9314_v10, %v9313_v61 }
0x1378   : > { %10776 = vmatprep.mubr.bf16.mxu0 %v9329_v50 }
0x13a3   : > { %v11147_v16 = vpop.permute.xlu1 %11146 }
0x13a4   : > { %v11149_v38 = vunpack.i.h.bf16 %v11147_v16  ;;  %v11148_v54 = vunpack.i.l.bf16 %v11147_v16 }
0x13a6   : > { %v9315_v0 = vsel %vm9312_vm7, %v15575_v24, %v11148_v54  ;;  %v9316_v12 = vsel %vm9312_vm7, %v15578_v62, %v11149_v38  ;;  %v10989_v62 = vunpack.i.h.bf16 %v15556_v60  ;;  %v9287_v60 = vsel %vm9278_vm5, %v15541_v6, %v10988_v47 }
0x13a7   : > { %v9330_v23 = vpack.c.bf16 %v9316_v12, %v9315_v0  ;;  %v9304_v53 = vsel %vm9295_vm6, %v9287_v60, %v11008_v34 }
0x13a8   : > { %v11152_v42 = vpop.permute.xlu1 %11151  ;;  %v9288_v55 = vsel %vm9278_vm5, %v15544_v37, %v10989_v62 }
0x13a9   : > { %v11154_v17 = vunpack.i.h.bf16 %v11152_v42  ;;  %v11153_v14 = vunpack.i.l.bf16 %v11152_v42  ;;  %10777 = vmatmul.mubr.bf16.vlgmr.msra.gmra.mxu0 %v9330_v23  ;;  %v9305_v30 = vsel %vm9295_vm6, %v9288_v55, %v11009_v49 }
0x13ab   : > { %v9317_v46 = vsel %vm9312_vm7, %v9300_v43, %v11153_v14  ;;  %v9318_v24 = vsel %vm9312_vm7, %v9301_v56, %v11154_v17 }
0x13ac   : > { %v11172_v51 = vpop.permute.xlu1 %11171  ;;  %v9331_v9 = vpack.c.bf16 %v9318_v24, %v9317_v46 }
0x13ad   : > { %v11174_v26 = vunpack.i.h.bf16 %v11172_v51  ;;  %v11173_v4 = vunpack.i.l.bf16 %v11172_v51 }
0x13ae   : > { %10780 = vmatprep.mubr.bf16.mxu0 %v9331_v9 }
0x13af   : > { %v9319_v2 = vsel %vm9312_vm7, %v9302_v3, %v11173_v4  ;;  %v9320_v11 = vsel %vm9312_vm7, %v9303_v19, %v11174_v26 }
0x13b0   : > { %v9332_v22 = vpack.c.bf16 %v9320_v11, %v9319_v2  ;;  %v11157_v13 = vpop.permute.xlu0 %11156 }
0x13b1   : > { %v11159_v5 = vunpack.i.h.bf16 %v11157_v13  ;;  %v11158_v58 = vunpack.i.l.bf16 %v11157_v13 }
0x13b2   : > { %10781 = vmatmul.mubr.bf16.gmra.mxu0 %v9332_v22 }
0x13b3   : > { %v9321_v36 = vsel %vm9312_vm7, %v9304_v53, %v11158_v58  ;;  %v9322_v7 = vsel %vm9312_vm7, %v9305_v30, %v11159_v5 }
0x13b4   : > { %v11162_v63 = vpop.permute.xlu0 %11161  ;;  %v9333_v41 = vpack.c.bf16 %v9322_v7, %v9321_v36 }
0x13b5   : > { %v11164_v33 = vunpack.i.h.bf16 %v11162_v63  ;;  %v11163_v48 = vunpack.i.l.bf16 %v11162_v63 }
0x13b6   : > { %10784 = vmatprep.mubr.bf16.mxu1 %v9333_v41 }
0x13b7   : > { %v9324_v6 = vsel %vm9312_vm7, %v15572_v29, %v11164_v33  ;;  %v9323_v37 = vsel %vm9312_vm7, %v15569_v27, %v11163_v48 }
0x13b8   : > { %v9334_v45 = vpack.c.bf16 %v9324_v6, %v9323_v37  ;;  %v11167_v40 = vpop.permute.xlu0 %11166 }
0x13b9   : > { %v11169_v57 = vunpack.i.h.bf16 %v11167_v40  ;;  %v11168_v28 = vunpack.i.l.bf16 %v11167_v40 }
0x13ba   : > { %10785 = vmatmul.mubr.bf16.vlgmr.msra.gmra.mxu1 %v9334_v45 }
0x13bb   : > { %v9325_v18 = vsel %vm9312_vm7, %v15637_v25, %v11168_v28  ;;  %v9326_v31 = vsel %vm9312_vm7, %v15640_v32, %v11169_v57  ;;  %v9712_v25 = vld [vmem:[%s15840_s4] ss:$0 sm:$0xff] }
0x13bc   : > { %v11177_v59 = vpop.permute.xlu0 %11176  ;;  %v9335_v35 = vpack.c.bf16 %v9326_v31, %v9325_v18 }
0x13bd   : > { %v11179_v15 = vunpack.i.h.bf16 %v11177_v59  ;;  %v11178_v29 = vunpack.i.l.bf16 %v11177_v59 }
0x13be   : > { %10788 = vmatprep.mubr.bf16.mxu1 %v9335_v35 }
0x13bf   : > { %v9328_v27 = vsel %vm9312_vm7, %v15646_v21, %v11179_v15  ;;  %v9327_v44 = vsel %vm9312_vm7, %v15643_v39, %v11178_v29 }
0x13c0   : > { %v9336_v61 = vpack.c.bf16 %v9328_v27, %v9327_v44 }
0x13c2   : > { %10789 = vmatmul.mubr.bf16.gmra.mxu1 %v9336_v61 }
0x1469   : > { %v10778_v32 = vpop.f32.mrf.mxu0 }
0x146a   : > { %v9411_v10 = vadd.f32 %v10778_v32, %v9712_v25 }
0x146b   : > { %v9402_v50 = vpop.f32.mrf.mxu0 }
0x146c   : > { %9467 = vst [vmem:[%s15762_s28 + $0x10] sm:$0xff] %v9411_v10  ;;  %v9403_v39 = vadd.f32 %v9712_v25, %v9402_v50 }
0x146d   : > { %v10779_v21 = vpop.f32.mrf.mxu0 }
0x146e   : > { %9465 = vst [vmem:[%s15762_s28] sm:$0xff] %v9403_v39  ;;  %v9414_v16 = vadd.f32 %v10779_v21, %v9712_v25 }
0x146f   : > { %v9405_v38 = vpop.f32.mrf.mxu0 }
0x1470   : > { %9468 = vst [vmem:[%s15762_s28 + $0x18] sm:$0xff] %v9414_v16  ;;  %v9406_v54 = vadd.f32 %v9712_v25, %v9405_v38 }
0x1472   : > { %9466 = vst [vmem:[%s15762_s28 + $0x8] sm:$0xff] %v9406_v54  ;;  %v10782_v20 = vpop.f32.mrf.mxu0 }
0x1473   : > { %v9427_v52 = vadd.f32 %v10782_v20, %v9712_v25 }
0x1474   : > { %v9418_v0 = vpop.f32.mrf.mxu0 }
0x1475   : > { %9471 = vst [vmem:[%s15762_s28 + $0x30] sm:$0xff] %v9427_v52  ;;  %v9419_v12 = vadd.f32 %v9712_v25, %v9418_v0 }
0x1476   : > { %v10783_v23 = vpop.f32.mrf.mxu0 }
0x1477   : > { %9469 = vst [vmem:[%s15762_s28 + $0x20] sm:$0xff] %v9419_v12  ;;  %v9430_v42 = vadd.f32 %v10783_v23, %v9712_v25 }
0x1478   : > { %v9421_v17 = vpop.f32.mrf.mxu0 }
0x1479   : > { %9472 = vst [vmem:[%s15762_s28 + $0x38] sm:$0xff] %v9430_v42  ;;  %v9422_v14 = vadd.f32 %v9712_v25, %v9421_v17 }
0x147a   : > { %v10786_v43 = vpop.f32.mrf.mxu1 }
0x147b   : > { %9470 = vst [vmem:[%s15762_s28 + $0x28] sm:$0xff] %v9422_v14  ;;  %v9443_v56 = vadd.f32 %v10786_v43, %v9712_v25 }
0x147c   : > { %v9434_v1 = vpop.f32.mrf.mxu1 }
0x147d   : > { %9475 = vst [vmem:[%s15762_s28 + $0x50] sm:$0xff] %v9443_v56  ;;  %v9435_v8 = vadd.f32 %v9712_v25, %v9434_v1 }
0x147e   : > { %v10787_v46 = vpop.f32.mrf.mxu1 }
0x147f   : > { %9473 = vst [vmem:[%s15762_s28 + $0x40] sm:$0xff] %v9435_v8  ;;  %v9446_v24 = vadd.f32 %v10787_v46, %v9712_v25 }
0x1480   : > { %v9437_v51 = vpop.f32.mrf.mxu1 }
0x1481   : > { %9476 = vst [vmem:[%s15762_s28 + $0x58] sm:$0xff] %v9446_v24  ;;  %v9438_v9 = vadd.f32 %v9712_v25, %v9437_v51 }
0x1482   : > { %v10790_v62 = vpop.f32.mrf.mxu1 }
0x1483   : > { %9474 = vst [vmem:[%s15762_s28 + $0x48] sm:$0xff] %v9438_v9  ;;  %v9459_v47 = vadd.f32 %v10790_v62, %v9712_v25 }
0x1484   : > { %v9450_v26 = vpop.f32.mrf.mxu1 }
0x1485   : > { %9479 = vst [vmem:[%s15762_s28 + $0x70] sm:$0xff] %v9459_v47  ;;  %v9451_v4 = vadd.f32 %v9712_v25, %v9450_v26 }
0x1486   : > { %v10791_v49 = vpop.f32.mrf.mxu1 }
0x1487   : > { %9477 = vst [vmem:[%s15762_s28 + $0x60] sm:$0xff] %v9451_v4  ;;  %v9462_v34 = vadd.f32 %v10791_v49, %v9712_v25 }
0x1488   : > { %v9453_v3 = vpop.f32.mrf.mxu1 }
0x1489   : > { %9480 = vst [vmem:[%s15762_s28 + $0x78] sm:$0xff] %v9462_v34  ;;  %v9454_v19 = vadd.f32 %v9712_v25, %v9453_v3 }
0x148b   : > { %9478 = vst [vmem:[%s15762_s28 + $0x68] sm:$0xff] %v9454_v19 }
0x148c   : > { %11714 = shalt.err (!%p11711_p5)
}
0x148d   : > { %s11715_s12 = scalar_lea.hbm %s15783_s18, 2048  ;;  %s11719_s27 = scalar_lea.hbm %s15842_s6, 4096 }
0x148e   : > { %p11716_p6 = scmp.ne.s32.totalorder %s15783_s18, %s11715_s12  ;;  %p11720_p10 = scmp.lt.s32.totalorder %s15783_s18, %s15842_s6 }
0x148f   : > { %p11721_p11 = scmp.lt.s32.totalorder %s11719_s27, %s11715_s12 }
0x1490   : > { %p11717_p7 = pnand %p11716_p6, %p11869_p4 }
0x1491   : > { %p11722_p12 = por %p11721_p11, %p11720_p10 }
0x1492   : > { %p11718_p9 = pneg %p11717_p7 }
0x1494   : > { %p11723_p13 = pnand %p11722_p12, %p11718_p9 }
0x1496   : > { %11726 = shalt.err (!%p11723_p13)
}
0x1497   : > { %s11792_s13 = smov 128   ;;  %s11793_s17 = smov 8  }
0x1498   : > { %10808 = dma.vmem_to_hbm [thread:$0]  (%p11869_p4), %s15785_s11, 2048, %s15783_s18, %s15791_s24, %s11792_s13, %s11792_s13, %s11793_s17  }
0x1499 PF: > { %p10814_p0 = scmp.ge.s32.totalorder %s11777_s26, 2  ;;  %s9512_s30 = sand.u32 1, %s11757_s21  }
0x149a   : > { %s9513_s14 = scalar_lea.sflag [#allocation3], %s9512_s30 }
0x149b   : > { %p10811_p1 = pnand %p10814_p0, %p11876_p8 }
0x149d   : > { %p10812_p2 = pneg %p10811_p1 }
0x149f   : > { %11752 = dma.done.wait (%p10812_p2), %s9513_s14, 2048  }
0x14a0   : > { %11754 = vsyncadd (%p10812_p2), %s9513_s14, 4294965248  ;;  %s19_s26 = sadd.s32 1, %s11777_s26   ;;  %s16246_s21 = smov %s11761_s22 }
0x14a1   : > { %p16_p3 = scmp.ge.s32.totalorder %s19_s26, 4   ;;  %s16247_s22 = smov %s11765_s23 }
0x14a2   : > { %s16248_s23 = smov %s11882_s10  ;;  %s16249_s24 = smov %s11773_s25 }
0x14a3   : > { %s16250_s25 = smov %s16252_s29  ;;  %18 = sbr.rel (!%p16_p3) target bundleno = 4 (0x4), region = 79 }
0x14a8   :  { %9518 = vsyncpa [#allocation3], 1 }
0x14a9   :  { %9520 = vsyncpa [#allocation3 + $0x1], 1 }

</bundles_post_ra>
